<compile_context>
chip_gen: v5e
topology: v5e:2x2
jax: 0.10.0
libtpu: 0.0.40
codegen_flags: <defaults>
</compile_context>

<pallas_src>
import functools

import jax
import jax.numpy as jnp
from jax import lax
from jax.experimental import pallas as pl
from jax.experimental.pallas import tpu as pltpu

EPS = 1e-5
ALPHA = 0.05  # LeakyReLU negative slope (assumed, see TODO above)

LAYER_CFG = (
    dict(k=4, stride=2, dilation=2, pad=1, bn=True),
    dict(k=4, stride=2, dilation=2, pad=1, bn=True),
    dict(k=6, stride=4, dilation=2, pad=1, bn=True),
    dict(k=6, stride=4, dilation=2, pad=1, bn=True),
    dict(k=4, stride=2, dilation=2, pad=1, bn=False),
)


def _round_up(x, m):
    return (x + m - 1) // m * m


def _vmem_limit_bytes():
    # Generation-aware VMEM budget (v7x has 64 MiB / TC, v5e/v6e have 128 MiB).
    try:
        cap = int(getattr(pltpu.get_tpu_info(), "vmem_capacity_bytes",
                          128 * 1024 * 1024))
    except Exception:
        cap = 128 * 1024 * 1024
    return int(min(cap * 0.6, 100 * 1024 * 1024))


def _compiler_params(n_axes):
    return pltpu.CompilerParams(
        dimension_semantics=("parallel",) * n_axes,
        vmem_limit_bytes=_vmem_limit_bytes(),
    )


# -----------------------------------------------------------------------------
# Kernel 1: fc2conv (Linear)
# -----------------------------------------------------------------------------
def _linear_kernel(x_ref, w_ref, b_ref, o_ref):
    o_ref[...] = (jnp.dot(x_ref[...], w_ref[...],
                          preferred_element_type=jnp.float32) + b_ref[...])


def linear_pallas(x, w, b):
    """x: (N, Din); w: (Dout, Din) (torch Linear layout); b: (Dout,)."""
    N, Din = x.shape
    Dout = w.shape[0]
    wt = jnp.transpose(w).astype(jnp.float32)
    b2 = b.reshape(1, Dout).astype(jnp.float32)
    return pl.pallas_call(
        _linear_kernel,
        out_shape=jax.ShapeDtypeStruct((N, Dout), jnp.float32),
        grid_spec=pltpu.PrefetchScalarGridSpec(
            num_scalar_prefetch=0,
            grid=(1,),
            in_specs=[
                pl.BlockSpec((N, Din), lambda i: (0, 0)),
                pl.BlockSpec((Din, Dout), lambda i: (0, 0)),
                pl.BlockSpec((1, Dout), lambda i: (0, 0)),
            ],
            out_specs=pl.BlockSpec((N, Dout), lambda i: (0, 0)),
        ),
        compiler_params=_compiler_params(1),
    )(x.astype(jnp.float32), wt, b2)


# -----------------------------------------------------------------------------
# Kernel 2: polyphase transposed conv (+ fused prev-BN/LeakyReLU input path,
#           fused bias/LeakyReLU epilogue on the last layer, BN stat partials)
# -----------------------------------------------------------------------------
def _deconv_poly_kernel(x_ref, w_ref, b_ref, st_ref, out_ref, stats_ref, *,
                        sp, Ksub, Hin, Win, Tx, Txpad, TR, PL, Wpad,
                        Cin, Cout, apply_in_act, is_last, alpha):
    t0 = pl.program_id(1) * TR

    # Hoisted loop-invariant vectors.
    out_col_mask = (lax.broadcasted_iota(jnp.int32, (1, Txpad), 1) < Tx
                    ).astype(jnp.float32)
    if apply_in_act:
        in_col = lax.broadcasted_iota(jnp.int32, (1, Wpad), 1)
        in_col_ok = (in_col >= PL) & (in_col < PL + Win)
        in_scale = st_ref[0]  # (Cin, 1)
        in_shift = st_ref[1]  # (Cin, 1)
    if is_last:
        bias_row = jnp.zeros((Cout, Txpad), jnp.float32) + b_ref[...]

    def load_row(j, iy):
        xr = x_ref[0, j, :, :].astype(jnp.float32)  # (Cin, Wpad)
        if apply_in_act:
            # Fused epilogue of the previous layer: BN affine + LeakyReLU.
            xr = xr * in_scale + in_shift
            xr = jnp.where(xr >= 0.0, xr, alpha * xr)
            ok = (iy >= 0) & (iy < Hin)
            xr = jnp.where(in_col_ok & ok, xr, 0.0)
        return xr

    s_tot = jnp.zeros((Cout, 1), jnp.float32)
    q_tot = jnp.zeros((Cout, 1), jnp.float32)

    for py in range(sp):  # static
        cy = 1 if sp == 1 else 1 - py

        def row_body(l, carry, _py=py, _cy=cy):
            s_acc, q_acc = carry
            t = t0 + l
            # Each needed input row is loaded (and transformed) exactly once.
            rows = [load_row(t + (_cy + PL - m), t + _cy - m)
                    for m in range(Ksub)]
            for px in range(sp):  # static
                cx = 1 if sp == 1 else 1 - px
                acc = jnp.zeros((Cout, Txpad), jnp.float32)
                for m in range(Ksub):  # static
                    rhs = jnp.concatenate(
                        [rows[m][:, cx + PL - n: cx + PL - n + Txpad]
                         for n in range(Ksub)], axis=0)  # (Ksub*Cin, Txpad)
                    acc = acc + jnp.dot(
                        w_ref[(_py * sp + px) * Ksub + m],
                        rhs.astype(jnp.bfloat16),
                        preferred_element_type=jnp.float32)
                acc = acc * out_col_mask
                s_acc = s_acc + jnp.sum(acc, axis=1, keepdims=True)
                q_acc = q_acc + jnp.sum(acc * acc, axis=1, keepdims=True)
                if is_last:
                    y = acc + bias_row
                    y = jnp.where(y >= 0.0, y, alpha * y)
                else:
                    y = acc
                c0 = (_py * sp + px) * Cout
                out_ref[0, l, c0:c0 + Cout, :] = y.astype(out_ref.dtype)
            return s_acc, q_acc

        s_tot, q_tot = lax.fori_loop(0, TR, row_body, (s_tot, q_tot))

    stats_ref[0, 0, :, 0:1] = s_tot
    stats_ref[0, 0, :, 1:2] = q_tot


def _poly_deconv_layer(x_core, interior, in_scale, in_shift, apply_in_act,
                       w, b, gamma, beta, cfg, is_last):
    """One deconv2d layer in polyphase form.

    x_core: (N, hc, Cin, wc) raw (pre-affine) values.  If `interior`, it is the
    odd/odd core of the previous layer's output (full map = zero-upsampled).
    """
    N, hc_in, Cin, wc_in = x_core.shape
    Hin = 2 * hc_in + 1 if interior else hc_in
    Win = 2 * wc_in + 1 if interior else wc_in
    K, s, d, p = cfg["k"], cfg["stride"], cfg["dilation"], cfg["pad"]
    assert d == 2 and p == 1 and s % 2 == 0
    sp = s // 2
    Ksub = K // sp
    P = sp * sp
    Cout = w.shape[1]

    Hout = (Hin - 1) * s - 2 * p + d * (K - 1) + 1
    Wout = (Win - 1) * s - 2 * p + d * (K - 1) + 1
    Hc, Wc = (Hout - 1) // 2, (Wout - 1) // 2
    assert Hc % sp == 0 and Wc % sp == 0
    Ty, Tx = Hc // sp, Wc // sp
    PL = Ksub - 1
    PR_h = max(0, Ty + 1 - Hin)
    Txpad = _round_up(Tx, 128)
    Wpad = _round_up(PL + 1 + Txpad, 128)
    PR_w = Wpad - PL - Win
    TR = max(t for t in range(1, Ty + 1) if Ty % t == 0 and t <= 32)
    RT = Ty // TR

    # Zero-upsample of the previous core + this layer's conv padding, folded
    # into a single XLA pad (pure data movement; the zeros are never matmul'd).
    intr = 1 if interior else 0
    zero = jnp.array(0, dtype=jnp.bfloat16)
    xp = lax.pad(x_core.astype(jnp.bfloat16), zero,
                 ((0, 0, 0), (PL + intr, PR_h + intr, intr),
                  (0, 0, 0), (PL + intr, PR_w + intr, intr)))
    Hp = xp.shape[1]
    assert Hp == Hin + PL + PR_h and xp.shape[3] == Wpad

    # Polyphase weights: wprep[(py*sp+px)*Ksub+m][co, n*Cin+ci]
    #                      = w[ci, co, kh=py+sp*m, kw=px+sp*n]
    wprep = w.reshape(Cin, Cout, Ksub, sp, Ksub, sp)
    wprep = jnp.transpose(wprep, (3, 5, 2, 1, 4, 0))
    wprep = wprep.reshape(P * Ksub, Cout, Ksub * Cin).astype(jnp.bfloat16)

    b2 = b.reshape(Cout, 1).astype(jnp.float32)
    if in_scale is None:
        in_scale = jnp.ones((Cin,), jnp.float32)
        in_shift = jnp.zeros((Cin,), jnp.float32)
    st = jnp.stack([in_scale, in_shift]).reshape(2, Cin, 1).astype(jnp.float32)

    out_dtype = jnp.float32 if is_last else jnp.bfloat16
    kernel = functools.partial(
        _deconv_poly_kernel, sp=sp, Ksub=Ksub, Hin=Hin, Win=Win, Tx=Tx,
        Txpad=Txpad, TR=TR, PL=PL, Wpad=Wpad, Cin=Cin, Cout=Cout,
        apply_in_act=apply_in_act, is_last=is_last, alpha=ALPHA)

    ph_out, stats = pl.pallas_call(
        kernel,
        out_shape=(jax.ShapeDtypeStruct((N, Ty, P * Cout, Txpad), out_dtype),
                   jax.ShapeDtypeStruct((N, RT, Cout, 2), jnp.float32)),
        grid_spec=pltpu.PrefetchScalarGridSpec(
            num_scalar_prefetch=0,
            grid=(N, RT),
            in_specs=[
                pl.BlockSpec((1, Hp, Cin, Wpad), lambda n, r: (n, 0, 0, 0)),
                pl.BlockSpec((P * Ksub, Cout, Ksub * Cin),
                             lambda n, r: (0, 0, 0)),
                pl.BlockSpec((Cout, 1), lambda n, r: (0, 0)),
                pl.BlockSpec((2, Cin, 1), lambda n, r: (0, 0, 0)),
            ],
            out_specs=[
                pl.BlockSpec((1, TR, P * Cout, Txpad),
                             lambda n, r: (n, r, 0, 0)),
                pl.BlockSpec((1, 1, Cout, 2), lambda n, r: (n, r, 0, 0)),
            ],
        ),
        compiler_params=_compiler_params(2),
    )(xp, wprep, b2, st)

    # Re-interleave the sp x sp phases into the odd/odd core (quarter size).
    out_v = ph_out[..., :Tx]  # (N, Ty, P*Cout, Tx)
    if sp == 1:
        core = out_v  # (N, Hc, Cout, Wc)
    else:
        tmp = out_v.reshape(N, Ty, sp, sp, Cout, Tx)   # (N, t, py, px, c, u)
        tmp = tmp[:, :, ::-1, ::-1]                    # phase -> row/col slot
        tmp = jnp.transpose(tmp, (0, 1, 2, 4, 5, 3))   # (N, t, r, c, u, s)
        core = tmp.reshape(N, Hc, Cout, Wc)

    if is_last:
        bg = jnp.where(b >= 0, b, ALPHA * b).astype(jnp.float32)
        if Cout == 1:
            img = lax.pad(core[:, :, 0, :].astype(jnp.float32), bg[0],
                          ((0, 0, 0), (1, 1, 1), (1, 1, 1)))
            return img  # (N, Hout, Wout) -- torch's squeeze(dim=1)
        full = lax.pad(core.astype(jnp.float32), jnp.float32(0.0),
                       ((0, 0, 0), (1, 1, 1), (0, 0, 0), (1, 1, 1)))
        rmask = (jnp.arange(Hout) % 2 == 1)[None, :, None, None]
        cmask = (jnp.arange(Wout) % 2 == 1)[None, None, None, :]
        full = jnp.where(rmask & cmask, full, bg[None, None, :, None])
        return jnp.transpose(full, (0, 2, 1, 3))  # NCHW (squeeze(1) is a no-op)

    # BatchNorm (training-mode batch stats) from kernel-emitted partial sums.
    count = jnp.float32(N * Hout * Wout)
    ssum = jnp.sum(stats[..., 0], axis=(0, 1))
    sqsum = jnp.sum(stats[..., 1], axis=(0, 1))
    mean = ssum / count
    var = jnp.maximum(sqsum / count - mean * mean, 0.0)
    scale = gamma / jnp.sqrt(var + EPS)
    shift = beta - mean * scale
    # (conv bias was skipped: it is cancelled by the mean subtraction above)
    return core, scale, shift


# -----------------------------------------------------------------------------
# Decoder_conv_variational forward (Pallas path)
# -----------------------------------------------------------------------------
def decoder_conv_variational_forward(embedded, params):
    """embedded: (N, conv_dim*4 + 256)."""
    fc_w, fc_b = params["fc"]
    h = linear_pallas(embedded, fc_w, fc_b)          # (N, conv_dim*8)
    N, C8 = h.shape
    x_core = h.reshape(N, 1, C8, 1)                  # NHCW, H=W=1
    interior = False
    in_scale = in_shift = None
    apply_act = False
    n_layers = len(LAYER_CFG)
    for li, (cfg, (w, b, gamma, beta)) in enumerate(
            zip(LAYER_CFG, params["deconv"])):
        is_last = li == n_layers - 1
        res = _poly_deconv_layer(x_core, interior, in_scale, in_shift,
                                 apply_act, w, b, gamma, beta, cfg, is_last)
        if is_last:
            return res
        x_core, in_scale, in_shift = res
        interior = True
        apply_act = True


# -----------------------------------------------------------------------------
# Pure-JAX reference (NCHW, lax.conv_general_dilated, f32 HIGHEST)
# -----------------------------------------------------------------------------
def decoder_reference(embedded, params):
    fc_w, fc_b = params["fc"]
    h = jnp.dot(embedded, fc_w.T, precision=lax.Precision.HIGHEST) + fc_b
    x = h[:, :, None, None]
    for cfg, (w, b, gamma, beta) in zip(LAYER_CFG, params["deconv"]):
        K, s, d, p = cfg["k"], cfg["stride"], cfg["dilation"], cfg["pad"]
        padt = d * (K - 1) - p
        rhs = jnp.transpose(w[:, :, ::-1, ::-1], (1, 0, 2, 3))
        y = lax.conv_general_dilated(
            x, rhs, window_strides=(1, 1),
            padding=((padt, padt), (padt, padt)),
            lhs_dilation=(s, s), rhs_dilation=(d, d),
            dimension_numbers=("NCHW", "OIHW", "NCHW"),
            precision=lax.Precision.HIGHEST)
        y = y + b[None, :, None, None]
        if cfg["bn"]:
            mean = jnp.mean(y, axis=(0, 2, 3), keepdims=True)
            var = jnp.var(y, axis=(0, 2, 3), keepdims=True)
            y = (y - mean) / jnp.sqrt(var + EPS)
            y = y * gamma[None, :, None, None] + beta[None, :, None, None]
        x = jnp.where(y >= 0, y, ALPHA * y)
    return jnp.squeeze(x, axis=1) if x.shape[1] == 1 else x


# -----------------------------------------------------------------------------
# Deterministic parameter init (shapes from Decoder_conv_variational.__init__)
# -----------------------------------------------------------------------------
def init_params(key, conv_dim=4, img_dim=1):
    fc_in = conv_dim * 4 + 128 + 128
    fc_out = conv_dim * 8
    k_fc, k_conv = jax.random.split(key)
    k_fcw, k_fcb = jax.random.split(k_fc)
    fc_w = jax.random.normal(k_fcw, (fc_out, fc_in), jnp.float32) / jnp.sqrt(
        float(fc_in))
    fc_b = 0.1 * jax.random.normal(k_fcb, (fc_out,), jnp.float32)

    layer_io = [
        (conv_dim * 8, conv_dim * 8, 4),
        (conv_dim * 8, conv_dim * 4, 4),
        (conv_dim * 4, conv_dim * 2, 6),
        (conv_dim * 2, conv_dim * 1, 6),
        (conv_dim * 1, img_dim, 4),
    ]
    deconv = []
    for i, (cin, cout, k) in enumerate(layer_io):
        kw_, kb_ = jax.random.split(jax.random.fold_in(k_conv, i))
        fan = cin * k * k
        w = jax.random.normal(kw_, (cin, cout, k, k), jnp.float32) / jnp.sqrt(
            float(fan))
        b = 0.1 * jax.random.normal(kb_, (cout,), jnp.float32)
        gamma = 1.0 + 0.1 * jax.random.normal(
            jax.random.fold_in(kb_, 7), (cout,), jnp.float32)
        beta = 0.1 * jax.random.normal(
            jax.random.fold_in(kb_, 11), (cout,), jnp.float32)
        deconv.append((w, b, gamma, beta))
    return {"fc": (fc_w, fc_b), "deconv": deconv}


if __name__ == "__main__":
    conv_dim, img_dim, batch = 4, 1, 2  # small synthetic config
    key = jax.random.PRNGKey(0)
    k_in, k_par = jax.random.split(key)
    params = init_params(k_par, conv_dim=conv_dim, img_dim=img_dim)
    embedded = jax.random.normal(k_in, (batch, conv_dim * 4 + 256), jnp.float32)

    fwd = jax.jit(decoder_conv_variational_forward)
    out = jax.block_until_ready(fwd(embedded, params))
    ref = jax.block_until_ready(jax.jit(decoder_reference)(embedded, params))

    assert out.shape == ref.shape == (batch, 469, 469), out.shape
    assert bool(jnp.all(jnp.isfinite(out)))
    err = float(jnp.max(jnp.abs(out - ref)))
    # bf16 MXU operands + bf16 intermediate activations vs an f32 HIGHEST
    # reference across 5 layers -> relaxed absolute tolerance.
    assert err < 5e-2, f"max |pallas - reference| = {err}"
    print("KERNEL_OK")
</pallas_src>

<mosaic_0001>
module attributes {stable_mosaic.version = 11 : i64} {
  func.func @_linear_kernel(%arg0: i32, %arg1: memref<2x272xf32, #tpu.memory_space<vmem>>, %arg2: memref<272x32xf32, #tpu.memory_space<vmem>>, %arg3: memref<1x32xf32, #tpu.memory_space<vmem>>, %arg4: memref<2x32xf32, #tpu.memory_space<vmem>>) attributes {dimension_semantics = [#tpu.dimension_semantics<parallel>], iteration_bounds = array<i64: 1>, scalar_prefetch = 0 : i64, scratch_operands = 0 : i64, tpu.core_type = #tpu.core_type<tc>, window_params = [{pipeline_mode = #tpu.pipeline_mode<synchronous>, transform_indices = @transform_0, window_bounds = array<i64: 2, 272>}, {pipeline_mode = #tpu.pipeline_mode<synchronous>, transform_indices = @transform_1, window_bounds = array<i64: 272, 32>}, {pipeline_mode = #tpu.pipeline_mode<synchronous>, transform_indices = @transform_2, window_bounds = array<i64: 1, 32>}, {pipeline_mode = #tpu.pipeline_mode<synchronous>, transform_indices = @transform_3, window_bounds = array<i64: 2, 32>}]} {
    %c0 = arith.constant 0 : index
    %c0_0 = arith.constant 0 : index
    %0 = vector.load %arg1[%c0, %c0_0] : memref<2x272xf32, #tpu.memory_space<vmem>>, vector<2x272xf32>
    %c0_1 = arith.constant 0 : index
    %c0_2 = arith.constant 0 : index
    %1 = vector.load %arg2[%c0_1, %c0_2] : memref<272x32xf32, #tpu.memory_space<vmem>>, vector<272x32xf32>
    %cst = arith.constant dense<0.000000e+00> : vector<2x32xf32>
    %2 = tpu.matmul %0, %1, %cst {dimension_numbers = #tpu.dot_dimension_numbers<[1], [0], [0], [1], [0, 0, 1, 1], [], []>} : vector<2x272xf32>, vector<272x32xf32>, vector<2x32xf32> -> vector<2x32xf32>
    %c0_3 = arith.constant 0 : index
    %c0_4 = arith.constant 0 : index
    %3 = vector.load %arg3[%c0_3, %c0_4] : memref<1x32xf32, #tpu.memory_space<vmem>>, vector<1x32xf32>
    %4 = vector.broadcast %3 : vector<1x32xf32> to vector<2x32xf32>
    %5 = arith.addf %2, %4 : vector<2x32xf32>
    %c0_5 = arith.constant 0 : index
    %c0_6 = arith.constant 0 : index
    %6 = vector.load %arg4[%c0_5, %c0_6] : memref<2x32xf32, #tpu.memory_space<vmem>>, vector<2x32xf32>
    tpu.vector_store %arg4[%c0_5, %c0_6], %5 {strides = array<i32>} : memref<2x32xf32, #tpu.memory_space<vmem>>, vector<2x32xf32>,
    return
  }
  func.func @transform_0(%arg0: i32) -> (i32, i32) {
    %c0_i32 = arith.constant 0 : i32
    %c0_i32_0 = arith.constant 0 : i32
    %c0_i32_1 = arith.constant 0 : i32
    return %c0_i32, %c0_i32_0 : i32, i32
  }
  func.func @transform_1(%arg0: i32) -> (i32, i32) {
    %c0_i32 = arith.constant 0 : i32
    %c0_i32_0 = arith.constant 0 : i32
    %c0_i32_1 = arith.constant 0 : i32
    return %c0_i32, %c0_i32_0 : i32, i32
  }
  func.func @transform_2(%arg0: i32) -> (i32, i32) {
    %c0_i32 = arith.constant 0 : i32
    %c0_i32_0 = arith.constant 0 : i32
    %c0_i32_1 = arith.constant 0 : i32
    return %c0_i32, %c0_i32_0 : i32, i32
  }
  func.func @transform_3(%arg0: i32) -> (i32, i32) {
    %c0_i32 = arith.constant 0 : i32
    %c0_i32_0 = arith.constant 0 : i32
    %c0_i32_1 = arith.constant 0 : i32
    return %c0_i32, %c0_i32_0 : i32, i32
  }
}

module attributes {stable_mosaic.version = 11 : i64} {
  func.func @_deconv_poly_kernel(%arg0: i32, %arg1: i32, %arg2: memref<1x6x32x256xbf16, #tpu.memory_space<vmem>>, %arg3: memref<4x32x128xbf16, #tpu.memory_space<vmem>>, %arg4: memref<32x1xf32, #tpu.memory_space<vmem>>, %arg5: memref<2x32x1xf32, #tpu.memory_space<vmem>>, %arg6: memref<1x2x32x128xbf16, #tpu.memory_space<vmem>>, %arg7: memref<1x1x32x2xf32, #tpu.memory_space<vmem>>) attributes {dimension_semantics = [#tpu.dimension_semantics<parallel>, #tpu.dimension_semantics<parallel>], iteration_bounds = array<i64: 2, 1>, scalar_prefetch = 0 : i64, scratch_operands = 0 : i64, tpu.core_type = #tpu.core_type<tc>, window_params = [{transform_indices = @transform_0, window_bounds = array<i64: 1, 6, 32, 256>}, {pipeline_mode = #tpu.pipeline_mode<synchronous>, transform_indices = @transform_1, window_bounds = array<i64: 4, 32, 128>}, {pipeline_mode = #tpu.pipeline_mode<synchronous>, transform_indices = @transform_2, window_bounds = array<i64: 32, 1>}, {pipeline_mode = #tpu.pipeline_mode<synchronous>, transform_indices = @transform_3, window_bounds = array<i64: 2, 32, 1>}, {transform_indices = @transform_4, window_bounds = array<i64: 1, 2, 32, 128>}, {transform_indices = @transform_5, window_bounds = array<i64: 1, 1, 32, 2>}]} {
    %c2_i32 = arith.constant 2 : i32
    %0 = arith.muli %arg1, %c2_i32 : i32
    %1 = tpu.iota {dimensions = array<i32: 1>} : vector<1x128xi32>
    %c2_i32_0 = arith.constant 2 : i32
    %2 = vector.broadcast %c2_i32_0 : i32 to vector<1x128xi32>
    %3 = arith.cmpi slt, %1, %2 : vector<1x128xi32>
    %4 = arith.extui %3 : vector<1x128xi1> to vector<1x128xi32>
    %5 = arith.sitofp %4 : vector<1x128xi32> to vector<1x128xf32>
    %cst = arith.constant 0.000000e+00 : f32
    %6 = vector.broadcast %cst : f32 to vector<32x1xf32>
    %cst_1 = arith.constant 0.000000e+00 : f32
    %7 = vector.broadcast %cst_1 : f32 to vector<32x1xf32>
    %c0_i32 = arith.constant 0 : i32
    %c2_i32_2 = arith.constant 2 : i32
    %8 = arith.addi %c0_i32, %c2_i32_2 : i32
    %c1_i32 = arith.constant 1 : i32
    %9:2 = scf.for %arg8 = %c0_i32 to %8 step %c1_i32 iter_args(%arg9 = %6, %arg10 = %7) -> (vector<32x1xf32>, vector<32x1xf32>)  : i32 {
      %16 = arith.addi %0, %arg8 : i32
      %c4_i32 = arith.constant 4 : i32
      %17 = arith.addi %16, %c4_i32 : i32
      %c0_10 = arith.constant 0 : index
      %18 = arith.index_cast %17 : i32 to index
      %c0_11 = arith.constant 0 : index
      %c0_12 = arith.constant 0 : index
      %19 = vector.load %arg2[%c0_10, %18, %c0_11, %c0_12] : memref<1x6x32x256xbf16, #tpu.memory_space<vmem>>, vector<1x1x32x256xbf16>
      %20 = vector.shape_cast %19 : vector<1x1x32x256xbf16> to vector<32x256xbf16>
      %21 = arith.extf %20 : vector<32x256xbf16> to vector<32x256xf32>
      %c3_i32 = arith.constant 3 : i32
      %22 = arith.addi %16, %c3_i32 : i32
      %c0_13 = arith.constant 0 : index
      %23 = arith.index_cast %22 : i32 to index
      %c0_14 = arith.constant 0 : index
      %c0_15 = arith.constant 0 : index
      %24 = vector.load %arg2[%c0_13, %23, %c0_14, %c0_15] : memref<1x6x32x256xbf16, #tpu.memory_space<vmem>>, vector<1x1x32x256xbf16>
      %25 = vector.shape_cast %24 : vector<1x1x32x256xbf16> to vector<32x256xbf16>
      %26 = arith.extf %25 : vector<32x256xbf16> to vector<32x256xf32>
      %c2_i32_16 = arith.constant 2 : i32
      %27 = arith.addi %16, %c2_i32_16 : i32
      %c0_17 = arith.constant 0 : index
      %28 = arith.index_cast %27 : i32 to index
      %c0_18 = arith.constant 0 : index
      %c0_19 = arith.constant 0 : index
      %29 = vector.load %arg2[%c0_17, %28, %c0_18, %c0_19] : memref<1x6x32x256xbf16, #tpu.memory_space<vmem>>, vector<1x1x32x256xbf16>
      %30 = vector.shape_cast %29 : vector<1x1x32x256xbf16> to vector<32x256xbf16>
      %31 = arith.extf %30 : vector<32x256xbf16> to vector<32x256xf32>
      %c1_i32_20 = arith.constant 1 : i32
      %32 = arith.addi %16, %c1_i32_20 : i32
      %c0_21 = arith.constant 0 : index
      %33 = arith.index_cast %32 : i32 to index
      %c0_22 = arith.constant 0 : index
      %c0_23 = arith.constant 0 : index
      %34 = vector.load %arg2[%c0_21, %33, %c0_22, %c0_23] : memref<1x6x32x256xbf16, #tpu.memory_space<vmem>>, vector<1x1x32x256xbf16>
      %35 = vector.shape_cast %34 : vector<1x1x32x256xbf16> to vector<32x256xbf16>
      %36 = arith.extf %35 : vector<32x256xbf16> to vector<32x256xf32>
      %cst_24 = arith.constant 0.000000e+00 : f32
      %37 = vector.broadcast %cst_24 : f32 to vector<32x128xf32>
      %38 = vector.extract_strided_slice %21 {offsets = [0, 4], sizes = [32, 128], strides = [1, 1]} : vector<32x256xf32> to vector<32x128xf32>
      %39 = vector.extract_strided_slice %21 {offsets = [0, 3], sizes = [32, 128], strides = [1, 1]} : vector<32x256xf32> to vector<32x128xf32>
      %40 = vector.extract_strided_slice %21 {offsets = [0, 2], sizes = [32, 128], strides = [1, 1]} : vector<32x256xf32> to vector<32x128xf32>
      %41 = vector.extract_strided_slice %21 {offsets = [0, 1], sizes = [32, 128], strides = [1, 1]} : vector<32x256xf32> to vector<32x128xf32>
      %42 = tpu.concatenate %38, %39, %40, %41 in 0 : vector<32x128xf32>, vector<32x128xf32>, vector<32x128xf32>, vector<32x128xf32> -> vector<128x128xf32>
      %c0_25 = arith.constant 0 : index
      %c0_26 = arith.constant 0 : index
      %c0_27 = arith.constant 0 : index
      %43 = vector.load %arg3[%c0_25, %c0_26, %c0_27] : memref<4x32x128xbf16, #tpu.memory_space<vmem>>, vector<1x32x128xbf16>
      %44 = vector.shape_cast %43 : vector<1x32x128xbf16> to vector<32x128xbf16>
      %45 = arith.truncf %42 : vector<128x128xf32> to vector<128x128xbf16>
      %cst_28 = arith.constant dense<0.000000e+00> : vector<32x128xf32>
      %46 = tpu.matmul %44, %45, %cst_28 {dimension_numbers = #tpu.dot_dimension_numbers<[1], [0], [0], [1], [0, 0, 1, 1], [], []>} : vector<32x128xbf16>, vector<128x128xbf16>, vector<32x128xf32> -> vector<32x128xf32>
      %47 = arith.addf %37, %46 : vector<32x128xf32>
      %48 = vector.extract_strided_slice %26 {offsets = [0, 4], sizes = [32, 128], strides = [1, 1]} : vector<32x256xf32> to vector<32x128xf32>
      %49 = vector.extract_strided_slice %26 {offsets = [0, 3], sizes = [32, 128], strides = [1, 1]} : vector<32x256xf32> to vector<32x128xf32>
      %50 = vector.extract_strided_slice %26 {offsets = [0, 2], sizes = [32, 128], strides = [1, 1]} : vector<32x256xf32> to vector<32x128xf32>
      %51 = vector.extract_strided_slice %26 {offsets = [0, 1], sizes = [32, 128], strides = [1, 1]} : vector<32x256xf32> to vector<32x128xf32>
      %52 = tpu.concatenate %48, %49, %50, %51 in 0 : vector<32x128xf32>, vector<32x128xf32>, vector<32x128xf32>, vector<32x128xf32> -> vector<128x128xf32>
      %c1_29 = arith.constant 1 : index
      %c0_30 = arith.constant 0 : index
      %c0_31 = arith.constant 0 : index
      %53 = vector.load %arg3[%c1_29, %c0_30, %c0_31] : memref<4x32x128xbf16, #tpu.memory_space<vmem>>, vector<1x32x128xbf16>
      %54 = vector.shape_cast %53 : vector<1x32x128xbf16> to vector<32x128xbf16>
      %55 = arith.truncf %52 : vector<128x128xf32> to vector<128x128xbf16>
      %cst_32 = arith.constant dense<0.000000e+00> : vector<32x128xf32>
      %56 = tpu.matmul %54, %55, %cst_32 {dimension_numbers = #tpu.dot_dimension_numbers<[1], [0], [0], [1], [0, 0, 1, 1], [], []>} : vector<32x128xbf16>, vector<128x128xbf16>, vector<32x128xf32> -> vector<32x128xf32>
      %57 = arith.addf %47, %56 : vector<32x128xf32>
      %58 = vector.extract_strided_slice %31 {offsets = [0, 4], sizes = [32, 128], strides = [1, 1]} : vector<32x256xf32> to vector<32x128xf32>
      %59 = vector.extract_strided_slice %31 {offsets = [0, 3], sizes = [32, 128], strides = [1, 1]} : vector<32x256xf32> to vector<32x128xf32>
      %60 = vector.extract_strided_slice %31 {offsets = [0, 2], sizes = [32, 128], strides = [1, 1]} : vector<32x256xf32> to vector<32x128xf32>
      %61 = vector.extract_strided_slice %31 {offsets = [0, 1], sizes = [32, 128], strides = [1, 1]} : vector<32x256xf32> to vector<32x128xf32>
      %62 = tpu.concatenate %58, %59, %60, %61 in 0 : vector<32x128xf32>, vector<32x128xf32>, vector<32x128xf32>, vector<32x128xf32> -> vector<128x128xf32>
      %c2 = arith.constant 2 : index
      %c0_33 = arith.constant 0 : index
      %c0_34 = arith.constant 0 : index
      %63 = vector.load %arg3[%c2, %c0_33, %c0_34] : memref<4x32x128xbf16, #tpu.memory_space<vmem>>, vector<1x32x128xbf16>
      %64 = vector.shape_cast %63 : vector<1x32x128xbf16> to vector<32x128xbf16>
      %65 = arith.truncf %62 : vector<128x128xf32> to vector<128x128xbf16>
      %cst_35 = arith.constant dense<0.000000e+00> : vector<32x128xf32>
      %66 = tpu.matmul %64, %65, %cst_35 {dimension_numbers = #tpu.dot_dimension_numbers<[1], [0], [0], [1], [0, 0, 1, 1], [], []>} : vector<32x128xbf16>, vector<128x128xbf16>, vector<32x128xf32> -> vector<32x128xf32>
      %67 = arith.addf %57, %66 : vector<32x128xf32>
      %68 = vector.extract_strided_slice %36 {offsets = [0, 4], sizes = [32, 128], strides = [1, 1]} : vector<32x256xf32> to vector<32x128xf32>
      %69 = vector.extract_strided_slice %36 {offsets = [0, 3], sizes = [32, 128], strides = [1, 1]} : vector<32x256xf32> to vector<32x128xf32>
      %70 = vector.extract_strided_slice %36 {offsets = [0, 2], sizes = [32, 128], strides = [1, 1]} : vector<32x256xf32> to vector<32x128xf32>
      %71 = vector.extract_strided_slice %36 {offsets = [0, 1], sizes = [32, 128], strides = [1, 1]} : vector<32x256xf32> to vector<32x128xf32>
      %72 = tpu.concatenate %68, %69, %70, %71 in 0 : vector<32x128xf32>, vector<32x128xf32>, vector<32x128xf32>, vector<32x128xf32> -> vector<128x128xf32>
      %c3 = arith.constant 3 : index
      %c0_36 = arith.constant 0 : index
      %c0_37 = arith.constant 0 : index
      %73 = vector.load %arg3[%c3, %c0_36, %c0_37] : memref<4x32x128xbf16, #tpu.memory_space<vmem>>, vector<1x32x128xbf16>
      %74 = vector.shape_cast %73 : vector<1x32x128xbf16> to vector<32x128xbf16>
      %75 = arith.truncf %72 : vector<128x128xf32> to vector<128x128xbf16>
      %cst_38 = arith.constant dense<0.000000e+00> : vector<32x128xf32>
      %76 = tpu.matmul %74, %75, %cst_38 {dimension_numbers = #tpu.dot_dimension_numbers<[1], [0], [0], [1], [0, 0, 1, 1], [], []>} : vector<32x128xbf16>, vector<128x128xbf16>, vector<32x128xf32> -> vector<32x128xf32>
      %77 = arith.addf %67, %76 : vector<32x128xf32>
      %78 = vector.broadcast %5 : vector<1x128xf32> to vector<32x128xf32>
      %79 = arith.mulf %77, %78 : vector<32x128xf32>
      %cst_39 = arith.constant dense<0.000000e+00> : vector<32xf32>
      %80 = vector.multi_reduction <add>, %79, %cst_39 [1] : vector<32x128xf32> to vector<32xf32>
      %81 = vector.shape_cast %80 : vector<32xf32> to vector<32x1xf32>
      %82 = arith.addf %arg9, %81 : vector<32x1xf32>
      %83 = arith.mulf %79, %79 : vector<32x128xf32>
      %cst_40 = arith.constant dense<0.000000e+00> : vector<32xf32>
      %84 = vector.multi_reduction <add>, %83, %cst_40 [1] : vector<32x128xf32> to vector<32xf32>
      %85 = vector.shape_cast %84 : vector<32xf32> to vector<32x1xf32>
      %86 = arith.addf %arg10, %85 : vector<32x1xf32>
      %87 = arith.truncf %79 : vector<32x128xf32> to vector<32x128xbf16>
      %c0_41 = arith.constant 0 : index
      %88 = arith.index_cast %arg8 : i32 to index
      %c0_42 = arith.constant 0 : index
      %c0_43 = arith.constant 0 : index
      %89 = vector.load %arg6[%c0_41, %88, %c0_42, %c0_43] : memref<1x2x32x128xbf16, #tpu.memory_space<vmem>>, vector<1x1x32x128xbf16>
      %90 = vector.shape_cast %89 : vector<1x1x32x128xbf16> to vector<32x128xbf16>
      %91 = vector.shape_cast %87 : vector<32x128xbf16> to vector<1x1x32x128xbf16>
      tpu.vector_store %arg6[%c0_41, %88, %c0_42, %c0_43], %91 {strides = array<i32>} : memref<1x2x32x128xbf16, #tpu.memory_space<vmem>>, vector<1x1x32x128xbf16>,
      scf.yield %82, %86 : vector<32x1xf32>, vector<32x1xf32>
    }
    %c2_i32_3 = arith.constant 2 : i32
    %c0 = arith.constant 0 : index
    %c0_4 = arith.constant 0 : index
    %c0_5 = arith.constant 0 : index
    %c0_6 = arith.constant 0 : index
    %10 = vector.load %arg7[%c0, %c0_4, %c0_5, %c0_6] : memref<1x1x32x2xf32, #tpu.memory_space<vmem>>, vector<1x1x32x1xf32>
    %11 = vector.shape_cast %10 : vector<1x1x32x1xf32> to vector<32x1xf32>
    %12 = vector.shape_cast %9#0 : vector<32x1xf32> to vector<1x1x32x1xf32>
    tpu.vector_store %arg7[%c0, %c0_4, %c0_5, %c0_6], %12 {strides = array<i32>} : memref<1x1x32x2xf32, #tpu.memory_space<vmem>>, vector<1x1x32x1xf32>,
    %c0_7 = arith.constant 0 : index
    %c0_8 = arith.constant 0 : index
    %c0_9 = arith.constant 0 : index
    %c1 = arith.constant 1 : index
    %13 = vector.load %arg7[%c0_7, %c0_8, %c0_9, %c1] : memref<1x1x32x2xf32, #tpu.memory_space<vmem>>, vector<1x1x32x1xf32>
    %14 = vector.shape_cast %13 : vector<1x1x32x1xf32> to vector<32x1xf32>
    %15 = vector.shape_cast %9#1 : vector<32x1xf32> to vector<1x1x32x1xf32>
    tpu.vector_store %arg7[%c0_7, %c0_8, %c0_9, %c1], %15 {strides = array<i32>} : memref<1x1x32x2xf32, #tpu.memory_space<vmem>>, vector<1x1x32x1xf32>,
    return
  }
  func.func @transform_0(%arg0: i32, %arg1: i32) -> (i32, i32, i32, i32) {
    %c0_i32 = arith.constant 0 : i32
    %c0_i32_0 = arith.constant 0 : i32
    %c0_i32_1 = arith.constant 0 : i32
    %c0_i32_2 = arith.constant 0 : i32
    return %arg0, %c0_i32, %c0_i32_0, %c0_i32_1 : i32, i32, i32, i32
  }
  func.func @transform_1(%arg0: i32, %arg1: i32) -> (i32, i32, i32) {
    %c0_i32 = arith.constant 0 : i32
    %c0_i32_0 = arith.constant 0 : i32
    %c0_i32_1 = arith.constant 0 : i32
    %c0_i32_2 = arith.constant 0 : i32
    return %c0_i32, %c0_i32_0, %c0_i32_1 : i32, i32, i32
  }
  func.func @transform_2(%arg0: i32, %arg1: i32) -> (i32, i32) {
    %c0_i32 = arith.constant 0 : i32
    %c0_i32_0 = arith.constant 0 : i32
    %c0_i32_1 = arith.constant 0 : i32
    return %c0_i32, %c0_i32_0 : i32, i32
  }
  func.func @transform_3(%arg0: i32, %arg1: i32) -> (i32, i32, i32) {
    %c0_i32 = arith.constant 0 : i32
    %c0_i32_0 = arith.constant 0 : i32
    %c0_i32_1 = arith.constant 0 : i32
    %c0_i32_2 = arith.constant 0 : i32
    return %c0_i32, %c0_i32_0, %c0_i32_1 : i32, i32, i32
  }
  func.func @transform_4(%arg0: i32, %arg1: i32) -> (i32, i32, i32, i32) {
    %c0_i32 = arith.constant 0 : i32
    %c0_i32_0 = arith.constant 0 : i32
    %c0_i32_1 = arith.constant 0 : i32
    return %arg0, %arg1, %c0_i32, %c0_i32_0 : i32, i32, i32, i32
  }
  func.func @transform_5(%arg0: i32, %arg1: i32) -> (i32, i32, i32, i32) {
    %c0_i32 = arith.constant 0 : i32
    %c0_i32_0 = arith.constant 0 : i32
    %c0_i32_1 = arith.constant 0 : i32
    return %arg0, %arg1, %c0_i32, %c0_i32_0 : i32, i32, i32, i32
  }
}

module attributes {stable_mosaic.version = 11 : i64} {
  func.func @_deconv_poly_kernel(%arg0: i32, %arg1: i32, %arg2: memref<1x10x32x256xbf16, #tpu.memory_space<vmem>>, %arg3: memref<4x16x128xbf16, #tpu.memory_space<vmem>>, %arg4: memref<16x1xf32, #tpu.memory_space<vmem>>, %arg5: memref<2x32x1xf32, #tpu.memory_space<vmem>>, %arg6: memref<1x6x16x128xbf16, #tpu.memory_space<vmem>>, %arg7: memref<1x1x16x2xf32, #tpu.memory_space<vmem>>) attributes {dimension_semantics = [#tpu.dimension_semantics<parallel>, #tpu.dimension_semantics<parallel>], iteration_bounds = array<i64: 2, 1>, scalar_prefetch = 0 : i64, scratch_operands = 0 : i64, tpu.core_type = #tpu.core_type<tc>, window_params = [{transform_indices = @transform_0, window_bounds = array<i64: 1, 10, 32, 256>}, {pipeline_mode = #tpu.pipeline_mode<synchronous>, transform_indices = @transform_1, window_bounds = array<i64: 4, 16, 128>}, {pipeline_mode = #tpu.pipeline_mode<synchronous>, transform_indices = @transform_2, window_bounds = array<i64: 16, 1>}, {pipeline_mode = #tpu.pipeline_mode<synchronous>, transform_indices = @transform_3, window_bounds = array<i64: 2, 32, 1>}, {transform_indices = @transform_4, window_bounds = array<i64: 1, 6, 16, 128>}, {transform_indices = @transform_5, window_bounds = array<i64: 1, 1, 16, 2>}]} {
    %c6_i32 = arith.constant 6 : i32
    %0 = arith.muli %arg1, %c6_i32 : i32
    %1 = tpu.iota {dimensions = array<i32: 1>} : vector<1x128xi32>
    %c6_i32_0 = arith.constant 6 : i32
    %2 = vector.broadcast %c6_i32_0 : i32 to vector<1x128xi32>
    %3 = arith.cmpi slt, %1, %2 : vector<1x128xi32>
    %4 = arith.extui %3 : vector<1x128xi1> to vector<1x128xi32>
    %5 = arith.sitofp %4 : vector<1x128xi32> to vector<1x128xf32>
    %6 = tpu.iota {dimensions = array<i32: 1>} : vector<1x256xi32>
    %c3_i32 = arith.constant 3 : i32
    %7 = vector.broadcast %c3_i32 : i32 to vector<1x256xi32>
    %8 = arith.cmpi sge, %6, %7 : vector<1x256xi32>
    %c8_i32 = arith.constant 8 : i32
    %9 = vector.broadcast %c8_i32 : i32 to vector<1x256xi32>
    %10 = arith.cmpi slt, %6, %9 : vector<1x256xi32>
    %11 = arith.andi %8, %10 : vector<1x256xi1>
    %c0 = arith.constant 0 : index
    %c0_1 = arith.constant 0 : index
    %c0_2 = arith.constant 0 : index
    %12 = vector.load %arg5[%c0, %c0_1, %c0_2] : memref<2x32x1xf32, #tpu.memory_space<vmem>>, vector<1x32x1xf32>
    %13 = vector.shape_cast %12 : vector<1x32x1xf32> to vector<32x1xf32>
    %c1 = arith.constant 1 : index
    %c0_3 = arith.constant 0 : index
    %c0_4 = arith.constant 0 : index
    %14 = vector.load %arg5[%c1, %c0_3, %c0_4] : memref<2x32x1xf32, #tpu.memory_space<vmem>>, vector<1x32x1xf32>
    %15 = vector.shape_cast %14 : vector<1x32x1xf32> to vector<32x1xf32>
    %cst = arith.constant 0.000000e+00 : f32
    %16 = vector.broadcast %cst : f32 to vector<16x1xf32>
    %cst_5 = arith.constant 0.000000e+00 : f32
    %17 = vector.broadcast %cst_5 : f32 to vector<16x1xf32>
    %c0_i32 = arith.constant 0 : i32
    %c6_i32_6 = arith.constant 6 : i32
    %18 = arith.addi %c0_i32, %c6_i32_6 : i32
    %c1_i32 = arith.constant 1 : i32
    %19:2 = scf.for %arg8 = %c0_i32 to %18 step %c1_i32 iter_args(%arg9 = %16, %arg10 = %17) -> (vector<16x1xf32>, vector<16x1xf32>)  : i32 {
      %26 = arith.addi %0, %arg8 : i32
      %c4_i32 = arith.constant 4 : i32
      %27 = arith.addi %26, %c4_i32 : i32
      %c1_i32_16 = arith.constant 1 : i32
      %28 = arith.addi %26, %c1_i32_16 : i32
      %c0_i32_17 = arith.constant 0 : i32
      %29 = arith.subi %28, %c0_i32_17 : i32
      %c0_18 = arith.constant 0 : index
      %30 = arith.index_cast %27 : i32 to index
      %c0_19 = arith.constant 0 : index
      %c0_20 = arith.constant 0 : index
      %31 = vector.load %arg2[%c0_18, %30, %c0_19, %c0_20] : memref<1x10x32x256xbf16, #tpu.memory_space<vmem>>, vector<1x1x32x256xbf16>
      %32 = vector.shape_cast %31 : vector<1x1x32x256xbf16> to vector<32x256xbf16>
      %33 = arith.extf %32 : vector<32x256xbf16> to vector<32x256xf32>
      %34 = vector.broadcast %13 : vector<32x1xf32> to vector<32x256xf32>
      %35 = arith.mulf %33, %34 : vector<32x256xf32>
      %36 = vector.broadcast %15 : vector<32x1xf32> to vector<32x256xf32>
      %37 = arith.addf %35, %36 : vector<32x256xf32>
      %cst_21 = arith.constant 0.000000e+00 : f32
      %38 = vector.broadcast %cst_21 : f32 to vector<32x256xf32>
      %39 = arith.cmpf oge, %37, %38 : vector<32x256xf32>
      %cst_22 = arith.constant 5.000000e-02 : f32
      %40 = vector.broadcast %cst_22 : f32 to vector<32x256xf32>
      %41 = arith.mulf %40, %37 : vector<32x256xf32>
      %42 = arith.select %39, %37, %41 : vector<32x256xi1>, vector<32x256xf32>
      %c0_i32_23 = arith.constant 0 : i32
      %43 = arith.cmpi sge, %29, %c0_i32_23 : i32
      %c5_i32 = arith.constant 5 : i32
      %44 = arith.cmpi slt, %29, %c5_i32 : i32
      %45 = arith.andi %43, %44 : i1
      %46 = vector.broadcast %45 : i1 to vector<1x256xi1>
      %47 = arith.andi %11, %46 : vector<1x256xi1>
      %cst_24 = arith.constant 0.000000e+00 : f32
      %48 = vector.shape_cast %47 : vector<1x256xi1> to vector<1x256xi1>
      %49 = vector.broadcast %48 : vector<1x256xi1> to vector<32x256xi1>
      %50 = vector.broadcast %cst_24 : f32 to vector<32x256xf32>
      %51 = arith.select %49, %42, %50 : vector<32x256xi1>, vector<32x256xf32>
      %c3_i32_25 = arith.constant 3 : i32
      %52 = arith.addi %26, %c3_i32_25 : i32
      %c1_i32_26 = arith.constant 1 : i32
      %53 = arith.addi %26, %c1_i32_26 : i32
      %c1_i32_27 = arith.constant 1 : i32
      %54 = arith.subi %53, %c1_i32_27 : i32
      %c0_28 = arith.constant 0 : index
      %55 = arith.index_cast %52 : i32 to index
      %c0_29 = arith.constant 0 : index
      %c0_30 = arith.constant 0 : index
      %56 = vector.load %arg2[%c0_28, %55, %c0_29, %c0_30] : memref<1x10x32x256xbf16, #tpu.memory_space<vmem>>, vector<1x1x32x256xbf16>
      %57 = vector.shape_cast %56 : vector<1x1x32x256xbf16> to vector<32x256xbf16>
      %58 = arith.extf %57 : vector<32x256xbf16> to vector<32x256xf32>
      %59 = vector.broadcast %13 : vector<32x1xf32> to vector<32x256xf32>
      %60 = arith.mulf %58, %59 : vector<32x256xf32>
      %61 = vector.broadcast %15 : vector<32x1xf32> to vector<32x256xf32>
      %62 = arith.addf %60, %61 : vector<32x256xf32>
      %cst_31 = arith.constant 0.000000e+00 : f32
      %63 = vector.broadcast %cst_31 : f32 to vector<32x256xf32>
      %64 = arith.cmpf oge, %62, %63 : vector<32x256xf32>
      %cst_32 = arith.constant 5.000000e-02 : f32
      %65 = vector.broadcast %cst_32 : f32 to vector<32x256xf32>
      %66 = arith.mulf %65, %62 : vector<32x256xf32>
      %67 = arith.select %64, %62, %66 : vector<32x256xi1>, vector<32x256xf32>
      %c0_i32_33 = arith.constant 0 : i32
      %68 = arith.cmpi sge, %54, %c0_i32_33 : i32
      %c5_i32_34 = arith.constant 5 : i32
      %69 = arith.cmpi slt, %54, %c5_i32_34 : i32
      %70 = arith.andi %68, %69 : i1
      %71 = vector.broadcast %70 : i1 to vector<1x256xi1>
      %72 = arith.andi %11, %71 : vector<1x256xi1>
      %cst_35 = arith.constant 0.000000e+00 : f32
      %73 = vector.shape_cast %72 : vector<1x256xi1> to vector<1x256xi1>
      %74 = vector.broadcast %73 : vector<1x256xi1> to vector<32x256xi1>
      %75 = vector.broadcast %cst_35 : f32 to vector<32x256xf32>
      %76 = arith.select %74, %67, %75 : vector<32x256xi1>, vector<32x256xf32>
      %c2_i32 = arith.constant 2 : i32
      %77 = arith.addi %26, %c2_i32 : i32
      %c1_i32_36 = arith.constant 1 : i32
      %78 = arith.addi %26, %c1_i32_36 : i32
      %c2_i32_37 = arith.constant 2 : i32
      %79 = arith.subi %78, %c2_i32_37 : i32
      %c0_38 = arith.constant 0 : index
      %80 = arith.index_cast %77 : i32 to index
      %c0_39 = arith.constant 0 : index
      %c0_40 = arith.constant 0 : index
      %81 = vector.load %arg2[%c0_38, %80, %c0_39, %c0_40] : memref<1x10x32x256xbf16, #tpu.memory_space<vmem>>, vector<1x1x32x256xbf16>
      %82 = vector.shape_cast %81 : vector<1x1x32x256xbf16> to vector<32x256xbf16>
      %83 = arith.extf %82 : vector<32x256xbf16> to vector<32x256xf32>
      %84 = vector.broadcast %13 : vector<32x1xf32> to vector<32x256xf32>
      %85 = arith.mulf %83, %84 : vector<32x256xf32>
      %86 = vector.broadcast %15 : vector<32x1xf32> to vector<32x256xf32>
      %87 = arith.addf %85, %86 : vector<32x256xf32>
      %cst_41 = arith.constant 0.000000e+00 : f32
      %88 = vector.broadcast %cst_41 : f32 to vector<32x256xf32>
      %89 = arith.cmpf oge, %87, %88 : vector<32x256xf32>
      %cst_42 = arith.constant 5.000000e-02 : f32
      %90 = vector.broadcast %cst_42 : f32 to vector<32x256xf32>
      %91 = arith.mulf %90, %87 : vector<32x256xf32>
      %92 = arith.select %89, %87, %91 : vector<32x256xi1>, vector<32x256xf32>
      %c0_i32_43 = arith.constant 0 : i32
      %93 = arith.cmpi sge, %79, %c0_i32_43 : i32
      %c5_i32_44 = arith.constant 5 : i32
      %94 = arith.cmpi slt, %79, %c5_i32_44 : i32
      %95 = arith.andi %93, %94 : i1
      %96 = vector.broadcast %95 : i1 to vector<1x256xi1>
      %97 = arith.andi %11, %96 : vector<1x256xi1>
      %cst_45 = arith.constant 0.000000e+00 : f32
      %98 = vector.shape_cast %97 : vector<1x256xi1> to vector<1x256xi1>
      %99 = vector.broadcast %98 : vector<1x256xi1> to vector<32x256xi1>
      %100 = vector.broadcast %cst_45 : f32 to vector<32x256xf32>
      %101 = arith.select %99, %92, %100 : vector<32x256xi1>, vector<32x256xf32>
      %c1_i32_46 = arith.constant 1 : i32
      %102 = arith.addi %26, %c1_i32_46 : i32
      %c1_i32_47 = arith.constant 1 : i32
      %103 = arith.addi %26, %c1_i32_47 : i32
      %c3_i32_48 = arith.constant 3 : i32
      %104 = arith.subi %103, %c3_i32_48 : i32
      %c0_49 = arith.constant 0 : index
      %105 = arith.index_cast %102 : i32 to index
      %c0_50 = arith.constant 0 : index
      %c0_51 = arith.constant 0 : index
      %106 = vector.load %arg2[%c0_49, %105, %c0_50, %c0_51] : memref<1x10x32x256xbf16, #tpu.memory_space<vmem>>, vector<1x1x32x256xbf16>
      %107 = vector.shape_cast %106 : vector<1x1x32x256xbf16> to vector<32x256xbf16>
      %108 = arith.extf %107 : vector<32x256xbf16> to vector<32x256xf32>
      %109 = vector.broadcast %13 : vector<32x1xf32> to vector<32x256xf32>
      %110 = arith.mulf %108, %109 : vector<32x256xf32>
      %111 = vector.broadcast %15 : vector<32x1xf32> to vector<32x256xf32>
      %112 = arith.addf %110, %111 : vector<32x256xf32>
      %cst_52 = arith.constant 0.000000e+00 : f32
      %113 = vector.broadcast %cst_52 : f32 to vector<32x256xf32>
      %114 = arith.cmpf oge, %112, %113 : vector<32x256xf32>
      %cst_53 = arith.constant 5.000000e-02 : f32
      %115 = vector.broadcast %cst_53 : f32 to vector<32x256xf32>
      %116 = arith.mulf %115, %112 : vector<32x256xf32>
      %117 = arith.select %114, %112, %116 : vector<32x256xi1>, vector<32x256xf32>
      %c0_i32_54 = arith.constant 0 : i32
      %118 = arith.cmpi sge, %104, %c0_i32_54 : i32
      %c5_i32_55 = arith.constant 5 : i32
      %119 = arith.cmpi slt, %104, %c5_i32_55 : i32
      %120 = arith.andi %118, %119 : i1
      %121 = vector.broadcast %120 : i1 to vector<1x256xi1>
      %122 = arith.andi %11, %121 : vector<1x256xi1>
      %cst_56 = arith.constant 0.000000e+00 : f32
      %123 = vector.shape_cast %122 : vector<1x256xi1> to vector<1x256xi1>
      %124 = vector.broadcast %123 : vector<1x256xi1> to vector<32x256xi1>
      %125 = vector.broadcast %cst_56 : f32 to vector<32x256xf32>
      %126 = arith.select %124, %117, %125 : vector<32x256xi1>, vector<32x256xf32>
      %cst_57 = arith.constant 0.000000e+00 : f32
      %127 = vector.broadcast %cst_57 : f32 to vector<16x128xf32>
      %128 = vector.extract_strided_slice %51 {offsets = [0, 4], sizes = [32, 128], strides = [1, 1]} : vector<32x256xf32> to vector<32x128xf32>
      %129 = vector.extract_strided_slice %51 {offsets = [0, 3], sizes = [32, 128], strides = [1, 1]} : vector<32x256xf32> to vector<32x128xf32>
      %130 = vector.extract_strided_slice %51 {offsets = [0, 2], sizes = [32, 128], strides = [1, 1]} : vector<32x256xf32> to vector<32x128xf32>
      %131 = vector.extract_strided_slice %51 {offsets = [0, 1], sizes = [32, 128], strides = [1, 1]} : vector<32x256xf32> to vector<32x128xf32>
      %132 = tpu.concatenate %128, %129, %130, %131 in 0 : vector<32x128xf32>, vector<32x128xf32>, vector<32x128xf32>, vector<32x128xf32> -> vector<128x128xf32>
      %c0_58 = arith.constant 0 : index
      %c0_59 = arith.constant 0 : index
      %c0_60 = arith.constant 0 : index
      %133 = vector.load %arg3[%c0_58, %c0_59, %c0_60] : memref<4x16x128xbf16, #tpu.memory_space<vmem>>, vector<1x16x128xbf16>
      %134 = vector.shape_cast %133 : vector<1x16x128xbf16> to vector<16x128xbf16>
      %135 = arith.truncf %132 : vector<128x128xf32> to vector<128x128xbf16>
      %cst_61 = arith.constant dense<0.000000e+00> : vector<16x128xf32>
      %136 = tpu.matmul %134, %135, %cst_61 {dimension_numbers = #tpu.dot_dimension_numbers<[1], [0], [0], [1], [0, 0, 1, 1], [], []>} : vector<16x128xbf16>, vector<128x128xbf16>, vector<16x128xf32> -> vector<16x128xf32>
      %137 = arith.addf %127, %136 : vector<16x128xf32>
      %138 = vector.extract_strided_slice %76 {offsets = [0, 4], sizes = [32, 128], strides = [1, 1]} : vector<32x256xf32> to vector<32x128xf32>
      %139 = vector.extract_strided_slice %76 {offsets = [0, 3], sizes = [32, 128], strides = [1, 1]} : vector<32x256xf32> to vector<32x128xf32>
      %140 = vector.extract_strided_slice %76 {offsets = [0, 2], sizes = [32, 128], strides = [1, 1]} : vector<32x256xf32> to vector<32x128xf32>
      %141 = vector.extract_strided_slice %76 {offsets = [0, 1], sizes = [32, 128], strides = [1, 1]} : vector<32x256xf32> to vector<32x128xf32>
      %142 = tpu.concatenate %138, %139, %140, %141 in 0 : vector<32x128xf32>, vector<32x128xf32>, vector<32x128xf32>, vector<32x128xf32> -> vector<128x128xf32>
      %c1_62 = arith.constant 1 : index
      %c0_63 = arith.constant 0 : index
      %c0_64 = arith.constant 0 : index
      %143 = vector.load %arg3[%c1_62, %c0_63, %c0_64] : memref<4x16x128xbf16, #tpu.memory_space<vmem>>, vector<1x16x128xbf16>
      %144 = vector.shape_cast %143 : vector<1x16x128xbf16> to vector<16x128xbf16>
      %145 = arith.truncf %142 : vector<128x128xf32> to vector<128x128xbf16>
      %cst_65 = arith.constant dense<0.000000e+00> : vector<16x128xf32>
      %146 = tpu.matmul %144, %145, %cst_65 {dimension_numbers = #tpu.dot_dimension_numbers<[1], [0], [0], [1], [0, 0, 1, 1], [], []>} : vector<16x128xbf16>, vector<128x128xbf16>, vector<16x128xf32> -> vector<16x128xf32>
      %147 = arith.addf %137, %146 : vector<16x128xf32>
      %148 = vector.extract_strided_slice %101 {offsets = [0, 4], sizes = [32, 128], strides = [1, 1]} : vector<32x256xf32> to vector<32x128xf32>
      %149 = vector.extract_strided_slice %101 {offsets = [0, 3], sizes = [32, 128], strides = [1, 1]} : vector<32x256xf32> to vector<32x128xf32>
      %150 = vector.extract_strided_slice %101 {offsets = [0, 2], sizes = [32, 128], strides = [1, 1]} : vector<32x256xf32> to vector<32x128xf32>
      %151 = vector.extract_strided_slice %101 {offsets = [0, 1], sizes = [32, 128], strides = [1, 1]} : vector<32x256xf32> to vector<32x128xf32>
      %152 = tpu.concatenate %148, %149, %150, %151 in 0 : vector<32x128xf32>, vector<32x128xf32>, vector<32x128xf32>, vector<32x128xf32> -> vector<128x128xf32>
      %c2 = arith.constant 2 : index
      %c0_66 = arith.constant 0 : index
      %c0_67 = arith.constant 0 : index
      %153 = vector.load %arg3[%c2, %c0_66, %c0_67] : memref<4x16x128xbf16, #tpu.memory_space<vmem>>, vector<1x16x128xbf16>
      %154 = vector.shape_cast %153 : vector<1x16x128xbf16> to vector<16x128xbf16>
      %155 = arith.truncf %152 : vector<128x128xf32> to vector<128x128xbf16>
      %cst_68 = arith.constant dense<0.000000e+00> : vector<16x128xf32>
      %156 = tpu.matmul %154, %155, %cst_68 {dimension_numbers = #tpu.dot_dimension_numbers<[1], [0], [0], [1], [0, 0, 1, 1], [], []>} : vector<16x128xbf16>, vector<128x128xbf16>, vector<16x128xf32> -> vector<16x128xf32>
      %157 = arith.addf %147, %156 : vector<16x128xf32>
      %158 = vector.extract_strided_slice %126 {offsets = [0, 4], sizes = [32, 128], strides = [1, 1]} : vector<32x256xf32> to vector<32x128xf32>
      %159 = vector.extract_strided_slice %126 {offsets = [0, 3], sizes = [32, 128], strides = [1, 1]} : vector<32x256xf32> to vector<32x128xf32>
      %160 = vector.extract_strided_slice %126 {offsets = [0, 2], sizes = [32, 128], strides = [1, 1]} : vector<32x256xf32> to vector<32x128xf32>
      %161 = vector.extract_strided_slice %126 {offsets = [0, 1], sizes = [32, 128], strides = [1, 1]} : vector<32x256xf32> to vector<32x128xf32>
      %162 = tpu.concatenate %158, %159, %160, %161 in 0 : vector<32x128xf32>, vector<32x128xf32>, vector<32x128xf32>, vector<32x128xf32> -> vector<128x128xf32>
      %c3 = arith.constant 3 : index
      %c0_69 = arith.constant 0 : index
      %c0_70 = arith.constant 0 : index
      %163 = vector.load %arg3[%c3, %c0_69, %c0_70] : memref<4x16x128xbf16, #tpu.memory_space<vmem>>, vector<1x16x128xbf16>
      %164 = vector.shape_cast %163 : vector<1x16x128xbf16> to vector<16x128xbf16>
      %165 = arith.truncf %162 : vector<128x128xf32> to vector<128x128xbf16>
      %cst_71 = arith.constant dense<0.000000e+00> : vector<16x128xf32>
      %166 = tpu.matmul %164, %165, %cst_71 {dimension_numbers = #tpu.dot_dimension_numbers<[1], [0], [0], [1], [0, 0, 1, 1], [], []>} : vector<16x128xbf16>, vector<128x128xbf16>, vector<16x128xf32> -> vector<16x128xf32>
      %167 = arith.addf %157, %166 : vector<16x128xf32>
      %168 = vector.broadcast %5 : vector<1x128xf32> to vector<16x128xf32>
      %169 = arith.mulf %167, %168 : vector<16x128xf32>
      %cst_72 = arith.constant dense<0.000000e+00> : vector<16xf32>
      %170 = vector.multi_reduction <add>, %169, %cst_72 [1] : vector<16x128xf32> to vector<16xf32>
      %171 = vector.shape_cast %170 : vector<16xf32> to vector<16x1xf32>
      %172 = arith.addf %arg9, %171 : vector<16x1xf32>
      %173 = arith.mulf %169, %169 : vector<16x128xf32>
      %cst_73 = arith.constant dense<0.000000e+00> : vector<16xf32>
      %174 = vector.multi_reduction <add>, %173, %cst_73 [1] : vector<16x128xf32> to vector<16xf32>
      %175 = vector.shape_cast %174 : vector<16xf32> to vector<16x1xf32>
      %176 = arith.addf %arg10, %175 : vector<16x1xf32>
      %177 = arith.truncf %169 : vector<16x128xf32> to vector<16x128xbf16>
      %c0_74 = arith.constant 0 : index
      %178 = arith.index_cast %arg8 : i32 to index
      %c0_75 = arith.constant 0 : index
      %c0_76 = arith.constant 0 : index
      %179 = vector.load %arg6[%c0_74, %178, %c0_75, %c0_76] : memref<1x6x16x128xbf16, #tpu.memory_space<vmem>>, vector<1x1x16x128xbf16>
      %180 = vector.shape_cast %179 : vector<1x1x16x128xbf16> to vector<16x128xbf16>
      %181 = vector.shape_cast %177 : vector<16x128xbf16> to vector<1x1x16x128xbf16>
      tpu.vector_store %arg6[%c0_74, %178, %c0_75, %c0_76], %181 {strides = array<i32>} : memref<1x6x16x128xbf16, #tpu.memory_space<vmem>>, vector<1x1x16x128xbf16>,
      scf.yield %172, %176 : vector<16x1xf32>, vector<16x1xf32>
    }
    %c6_i32_7 = arith.constant 6 : i32
    %c0_8 = arith.constant 0 : index
    %c0_9 = arith.constant 0 : index
    %c0_10 = arith.constant 0 : index
    %c0_11 = arith.constant 0 : index
    %20 = vector.load %arg7[%c0_8, %c0_9, %c0_10, %c0_11] : memref<1x1x16x2xf32, #tpu.memory_space<vmem>>, vector<1x1x16x1xf32>
    %21 = vector.shape_cast %20 : vector<1x1x16x1xf32> to vector<16x1xf32>
    %22 = vector.shape_cast %19#0 : vector<16x1xf32> to vector<1x1x16x1xf32>
    tpu.vector_store %arg7[%c0_8, %c0_9, %c0_10, %c0_11], %22 {strides = array<i32>} : memref<1x1x16x2xf32, #tpu.memory_space<vmem>>, vector<1x1x16x1xf32>,
    %c0_12 = arith.constant 0 : index
    %c0_13 = arith.constant 0 : index
    %c0_14 = arith.constant 0 : index
    %c1_15 = arith.constant 1 : index
    %23 = vector.load %arg7[%c0_12, %c0_13, %c0_14, %c1_15] : memref<1x1x16x2xf32, #tpu.memory_space<vmem>>, vector<1x1x16x1xf32>
    %24 = vector.shape_cast %23 : vector<1x1x16x1xf32> to vector<16x1xf32>
    %25 = vector.shape_cast %19#1 : vector<16x1xf32> to vector<1x1x16x1xf32>
    tpu.vector_store %arg7[%c0_12, %c0_13, %c0_14, %c1_15], %25 {strides = array<i32>} : memref<1x1x16x2xf32, #tpu.memory_space<vmem>>, vector<1x1x16x1xf32>,
    return
  }
  func.func @transform_0(%arg0: i32, %arg1: i32) -> (i32, i32, i32, i32) {
    %c0_i32 = arith.constant 0 : i32
    %c0_i32_0 = arith.constant 0 : i32
    %c0_i32_1 = arith.constant 0 : i32
    %c0_i32_2 = arith.constant 0 : i32
    return %arg0, %c0_i32, %c0_i32_0, %c0_i32_1 : i32, i32, i32, i32
  }
  func.func @transform_1(%arg0: i32, %arg1: i32) -> (i32, i32, i32) {
    %c0_i32 = arith.constant 0 : i32
    %c0_i32_0 = arith.constant 0 : i32
    %c0_i32_1 = arith.constant 0 : i32
    %c0_i32_2 = arith.constant 0 : i32
    return %c0_i32, %c0_i32_0, %c0_i32_1 : i32, i32, i32
  }
  func.func @transform_2(%arg0: i32, %arg1: i32) -> (i32, i32) {
    %c0_i32 = arith.constant 0 : i32
    %c0_i32_0 = arith.constant 0 : i32
    %c0_i32_1 = arith.constant 0 : i32
    return %c0_i32, %c0_i32_0 : i32, i32
  }
  func.func @transform_3(%arg0: i32, %arg1: i32) -> (i32, i32, i32) {
    %c0_i32 = arith.constant 0 : i32
    %c0_i32_0 = arith.constant 0 : i32
    %c0_i32_1 = arith.constant 0 : i32
    %c0_i32_2 = arith.constant 0 : i32
    return %c0_i32, %c0_i32_0, %c0_i32_1 : i32, i32, i32
  }
  func.func @transform_4(%arg0: i32, %arg1: i32) -> (i32, i32, i32, i32) {
    %c0_i32 = arith.constant 0 : i32
    %c0_i32_0 = arith.constant 0 : i32
    %c0_i32_1 = arith.constant 0 : i32
    return %arg0, %arg1, %c0_i32, %c0_i32_0 : i32, i32, i32, i32
  }
  func.func @transform_5(%arg0: i32, %arg1: i32) -> (i32, i32, i32, i32) {
    %c0_i32 = arith.constant 0 : i32
    %c0_i32_0 = arith.constant 0 : i32
    %c0_i32_1 = arith.constant 0 : i32
    return %arg0, %arg1, %c0_i32, %c0_i32_0 : i32, i32, i32, i32
  }
}

module attributes {stable_mosaic.version = 11 : i64} {
  func.func @_deconv_poly_kernel(%arg0: i32, %arg1: i32, %arg2: memref<1x17x16x256xbf16, #tpu.memory_space<vmem>>, %arg3: memref<12x8x48xbf16, #tpu.memory_space<vmem>>, %arg4: memref<8x1xf32, #tpu.memory_space<vmem>>, %arg5: memref<2x16x1xf32, #tpu.memory_space<vmem>>, %arg6: memref<1x14x32x128xbf16, #tpu.memory_space<vmem>>, %arg7: memref<1x1x8x2xf32, #tpu.memory_space<vmem>>) attributes {dimension_semantics = [#tpu.dimension_semantics<parallel>, #tpu.dimension_semantics<parallel>], iteration_bounds = array<i64: 2, 1>, scalar_prefetch = 0 : i64, scratch_operands = 0 : i64, tpu.core_type = #tpu.core_type<tc>, window_params = [{transform_indices = @transform_0, window_bounds = array<i64: 1, 17, 16, 256>}, {pipeline_mode = #tpu.pipeline_mode<synchronous>, transform_indices = @transform_1, window_bounds = array<i64: 12, 8, 48>}, {pipeline_mode = #tpu.pipeline_mode<synchronous>, transform_indices = @transform_2, window_bounds = array<i64: 8, 1>}, {pipeline_mode = #tpu.pipeline_mode<synchronous>, transform_indices = @transform_3, window_bounds = array<i64: 2, 16, 1>}, {transform_indices = @transform_4, window_bounds = array<i64: 1, 14, 32, 128>}, {transform_indices = @transform_5, window_bounds = array<i64: 1, 1, 8, 2>}]} {
    %c14_i32 = arith.constant 14 : i32
    %0 = arith.muli %arg1, %c14_i32 : i32
    %1 = tpu.iota {dimensions = array<i32: 1>} : vector<1x128xi32>
    %c14_i32_0 = arith.constant 14 : i32
    %2 = vector.broadcast %c14_i32_0 : i32 to vector<1x128xi32>
    %3 = arith.cmpi slt, %1, %2 : vector<1x128xi32>
    %4 = arith.extui %3 : vector<1x128xi1> to vector<1x128xi32>
    %5 = arith.sitofp %4 : vector<1x128xi32> to vector<1x128xf32>
    %6 = tpu.iota {dimensions = array<i32: 1>} : vector<1x256xi32>
    %c2_i32 = arith.constant 2 : i32
    %7 = vector.broadcast %c2_i32 : i32 to vector<1x256xi32>
    %8 = arith.cmpi sge, %6, %7 : vector<1x256xi32>
    %c15_i32 = arith.constant 15 : i32
    %9 = vector.broadcast %c15_i32 : i32 to vector<1x256xi32>
    %10 = arith.cmpi slt, %6, %9 : vector<1x256xi32>
    %11 = arith.andi %8, %10 : vector<1x256xi1>
    %c0 = arith.constant 0 : index
    %c0_1 = arith.constant 0 : index
    %c0_2 = arith.constant 0 : index
    %12 = vector.load %arg5[%c0, %c0_1, %c0_2] : memref<2x16x1xf32, #tpu.memory_space<vmem>>, vector<1x16x1xf32>
    %13 = vector.shape_cast %12 : vector<1x16x1xf32> to vector<16x1xf32>
    %c1 = arith.constant 1 : index
    %c0_3 = arith.constant 0 : index
    %c0_4 = arith.constant 0 : index
    %14 = vector.load %arg5[%c1, %c0_3, %c0_4] : memref<2x16x1xf32, #tpu.memory_space<vmem>>, vector<1x16x1xf32>
    %15 = vector.shape_cast %14 : vector<1x16x1xf32> to vector<16x1xf32>
    %cst = arith.constant 0.000000e+00 : f32
    %16 = vector.broadcast %cst : f32 to vector<8x1xf32>
    %cst_5 = arith.constant 0.000000e+00 : f32
    %17 = vector.broadcast %cst_5 : f32 to vector<8x1xf32>
    %c0_i32 = arith.constant 0 : i32
    %c14_i32_6 = arith.constant 14 : i32
    %18 = arith.addi %c0_i32, %c14_i32_6 : i32
    %c1_i32 = arith.constant 1 : i32
    %19:2 = scf.for %arg8 = %c0_i32 to %18 step %c1_i32 iter_args(%arg9 = %16, %arg10 = %17) -> (vector<8x1xf32>, vector<8x1xf32>)  : i32 {
      %28 = arith.addi %0, %arg8 : i32
      %c3_i32 = arith.constant 3 : i32
      %29 = arith.addi %28, %c3_i32 : i32
      %c1_i32_20 = arith.constant 1 : i32
      %30 = arith.addi %28, %c1_i32_20 : i32
      %c0_i32_21 = arith.constant 0 : i32
      %31 = arith.subi %30, %c0_i32_21 : i32
      %c0_22 = arith.constant 0 : index
      %32 = arith.index_cast %29 : i32 to index
      %c0_23 = arith.constant 0 : index
      %c0_24 = arith.constant 0 : index
      %33 = vector.load %arg2[%c0_22, %32, %c0_23, %c0_24] : memref<1x17x16x256xbf16, #tpu.memory_space<vmem>>, vector<1x1x16x256xbf16>
      %34 = vector.shape_cast %33 : vector<1x1x16x256xbf16> to vector<16x256xbf16>
      %35 = arith.extf %34 : vector<16x256xbf16> to vector<16x256xf32>
      %36 = vector.broadcast %13 : vector<16x1xf32> to vector<16x256xf32>
      %37 = arith.mulf %35, %36 : vector<16x256xf32>
      %38 = vector.broadcast %15 : vector<16x1xf32> to vector<16x256xf32>
      %39 = arith.addf %37, %38 : vector<16x256xf32>
      %cst_25 = arith.constant 0.000000e+00 : f32
      %40 = vector.broadcast %cst_25 : f32 to vector<16x256xf32>
      %41 = arith.cmpf oge, %39, %40 : vector<16x256xf32>
      %cst_26 = arith.constant 5.000000e-02 : f32
      %42 = vector.broadcast %cst_26 : f32 to vector<16x256xf32>
      %43 = arith.mulf %42, %39 : vector<16x256xf32>
      %44 = arith.select %41, %39, %43 : vector<16x256xi1>, vector<16x256xf32>
      %c0_i32_27 = arith.constant 0 : i32
      %45 = arith.cmpi sge, %31, %c0_i32_27 : i32
      %c13_i32 = arith.constant 13 : i32
      %46 = arith.cmpi slt, %31, %c13_i32 : i32
      %47 = arith.andi %45, %46 : i1
      %48 = vector.broadcast %47 : i1 to vector<1x256xi1>
      %49 = arith.andi %11, %48 : vector<1x256xi1>
      %cst_28 = arith.constant 0.000000e+00 : f32
      %50 = vector.shape_cast %49 : vector<1x256xi1> to vector<1x256xi1>
      %51 = vector.broadcast %50 : vector<1x256xi1> to vector<16x256xi1>
      %52 = vector.broadcast %cst_28 : f32 to vector<16x256xf32>
      %53 = arith.select %51, %44, %52 : vector<16x256xi1>, vector<16x256xf32>
      %c2_i32_29 = arith.constant 2 : i32
      %54 = arith.addi %28, %c2_i32_29 : i32
      %c1_i32_30 = arith.constant 1 : i32
      %55 = arith.addi %28, %c1_i32_30 : i32
      %c1_i32_31 = arith.constant 1 : i32
      %56 = arith.subi %55, %c1_i32_31 : i32
      %c0_32 = arith.constant 0 : index
      %57 = arith.index_cast %54 : i32 to index
      %c0_33 = arith.constant 0 : index
      %c0_34 = arith.constant 0 : index
      %58 = vector.load %arg2[%c0_32, %57, %c0_33, %c0_34] : memref<1x17x16x256xbf16, #tpu.memory_space<vmem>>, vector<1x1x16x256xbf16>
      %59 = vector.shape_cast %58 : vector<1x1x16x256xbf16> to vector<16x256xbf16>
      %60 = arith.extf %59 : vector<16x256xbf16> to vector<16x256xf32>
      %61 = vector.broadcast %13 : vector<16x1xf32> to vector<16x256xf32>
      %62 = arith.mulf %60, %61 : vector<16x256xf32>
      %63 = vector.broadcast %15 : vector<16x1xf32> to vector<16x256xf32>
      %64 = arith.addf %62, %63 : vector<16x256xf32>
      %cst_35 = arith.constant 0.000000e+00 : f32
      %65 = vector.broadcast %cst_35 : f32 to vector<16x256xf32>
      %66 = arith.cmpf oge, %64, %65 : vector<16x256xf32>
      %cst_36 = arith.constant 5.000000e-02 : f32
      %67 = vector.broadcast %cst_36 : f32 to vector<16x256xf32>
      %68 = arith.mulf %67, %64 : vector<16x256xf32>
      %69 = arith.select %66, %64, %68 : vector<16x256xi1>, vector<16x256xf32>
      %c0_i32_37 = arith.constant 0 : i32
      %70 = arith.cmpi sge, %56, %c0_i32_37 : i32
      %c13_i32_38 = arith.constant 13 : i32
      %71 = arith.cmpi slt, %56, %c13_i32_38 : i32
      %72 = arith.andi %70, %71 : i1
      %73 = vector.broadcast %72 : i1 to vector<1x256xi1>
      %74 = arith.andi %11, %73 : vector<1x256xi1>
      %cst_39 = arith.constant 0.000000e+00 : f32
      %75 = vector.shape_cast %74 : vector<1x256xi1> to vector<1x256xi1>
      %76 = vector.broadcast %75 : vector<1x256xi1> to vector<16x256xi1>
      %77 = vector.broadcast %cst_39 : f32 to vector<16x256xf32>
      %78 = arith.select %76, %69, %77 : vector<16x256xi1>, vector<16x256xf32>
      %c1_i32_40 = arith.constant 1 : i32
      %79 = arith.addi %28, %c1_i32_40 : i32
      %c1_i32_41 = arith.constant 1 : i32
      %80 = arith.addi %28, %c1_i32_41 : i32
      %c2_i32_42 = arith.constant 2 : i32
      %81 = arith.subi %80, %c2_i32_42 : i32
      %c0_43 = arith.constant 0 : index
      %82 = arith.index_cast %79 : i32 to index
      %c0_44 = arith.constant 0 : index
      %c0_45 = arith.constant 0 : index
      %83 = vector.load %arg2[%c0_43, %82, %c0_44, %c0_45] : memref<1x17x16x256xbf16, #tpu.memory_space<vmem>>, vector<1x1x16x256xbf16>
      %84 = vector.shape_cast %83 : vector<1x1x16x256xbf16> to vector<16x256xbf16>
      %85 = arith.extf %84 : vector<16x256xbf16> to vector<16x256xf32>
      %86 = vector.broadcast %13 : vector<16x1xf32> to vector<16x256xf32>
      %87 = arith.mulf %85, %86 : vector<16x256xf32>
      %88 = vector.broadcast %15 : vector<16x1xf32> to vector<16x256xf32>
      %89 = arith.addf %87, %88 : vector<16x256xf32>
      %cst_46 = arith.constant 0.000000e+00 : f32
      %90 = vector.broadcast %cst_46 : f32 to vector<16x256xf32>
      %91 = arith.cmpf oge, %89, %90 : vector<16x256xf32>
      %cst_47 = arith.constant 5.000000e-02 : f32
      %92 = vector.broadcast %cst_47 : f32 to vector<16x256xf32>
      %93 = arith.mulf %92, %89 : vector<16x256xf32>
      %94 = arith.select %91, %89, %93 : vector<16x256xi1>, vector<16x256xf32>
      %c0_i32_48 = arith.constant 0 : i32
      %95 = arith.cmpi sge, %81, %c0_i32_48 : i32
      %c13_i32_49 = arith.constant 13 : i32
      %96 = arith.cmpi slt, %81, %c13_i32_49 : i32
      %97 = arith.andi %95, %96 : i1
      %98 = vector.broadcast %97 : i1 to vector<1x256xi1>
      %99 = arith.andi %11, %98 : vector<1x256xi1>
      %cst_50 = arith.constant 0.000000e+00 : f32
      %100 = vector.shape_cast %99 : vector<1x256xi1> to vector<1x256xi1>
      %101 = vector.broadcast %100 : vector<1x256xi1> to vector<16x256xi1>
      %102 = vector.broadcast %cst_50 : f32 to vector<16x256xf32>
      %103 = arith.select %101, %94, %102 : vector<16x256xi1>, vector<16x256xf32>
      %cst_51 = arith.constant 0.000000e+00 : f32
      %104 = vector.broadcast %cst_51 : f32 to vector<8x128xf32>
      %105 = vector.extract_strided_slice %53 {offsets = [0, 3], sizes = [16, 128], strides = [1, 1]} : vector<16x256xf32> to vector<16x128xf32>
      %106 = vector.extract_strided_slice %53 {offsets = [0, 2], sizes = [16, 128], strides = [1, 1]} : vector<16x256xf32> to vector<16x128xf32>
      %107 = vector.extract_strided_slice %53 {offsets = [0, 1], sizes = [16, 128], strides = [1, 1]} : vector<16x256xf32> to vector<16x128xf32>
      %108 = tpu.concatenate %105, %106, %107 in 0 : vector<16x128xf32>, vector<16x128xf32>, vector<16x128xf32> -> vector<48x128xf32>
      %c0_52 = arith.constant 0 : index
      %c0_53 = arith.constant 0 : index
      %c0_54 = arith.constant 0 : index
      %109 = vector.load %arg3[%c0_52, %c0_53, %c0_54] : memref<12x8x48xbf16, #tpu.memory_space<vmem>>, vector<1x8x48xbf16>
      %110 = vector.shape_cast %109 : vector<1x8x48xbf16> to vector<8x48xbf16>
      %111 = arith.truncf %108 : vector<48x128xf32> to vector<48x128xbf16>
      %cst_55 = arith.constant dense<0.000000e+00> : vector<8x128xf32>
      %112 = tpu.matmul %110, %111, %cst_55 {dimension_numbers = #tpu.dot_dimension_numbers<[1], [0], [0], [1], [0, 0, 1, 1], [], []>} : vector<8x48xbf16>, vector<48x128xbf16>, vector<8x128xf32> -> vector<8x128xf32>
      %113 = arith.addf %104, %112 : vector<8x128xf32>
      %114 = vector.extract_strided_slice %78 {offsets = [0, 3], sizes = [16, 128], strides = [1, 1]} : vector<16x256xf32> to vector<16x128xf32>
      %115 = vector.extract_strided_slice %78 {offsets = [0, 2], sizes = [16, 128], strides = [1, 1]} : vector<16x256xf32> to vector<16x128xf32>
      %116 = vector.extract_strided_slice %78 {offsets = [0, 1], sizes = [16, 128], strides = [1, 1]} : vector<16x256xf32> to vector<16x128xf32>
      %117 = tpu.concatenate %114, %115, %116 in 0 : vector<16x128xf32>, vector<16x128xf32>, vector<16x128xf32> -> vector<48x128xf32>
      %c1_56 = arith.constant 1 : index
      %c0_57 = arith.constant 0 : index
      %c0_58 = arith.constant 0 : index
      %118 = vector.load %arg3[%c1_56, %c0_57, %c0_58] : memref<12x8x48xbf16, #tpu.memory_space<vmem>>, vector<1x8x48xbf16>
      %119 = vector.shape_cast %118 : vector<1x8x48xbf16> to vector<8x48xbf16>
      %120 = arith.truncf %117 : vector<48x128xf32> to vector<48x128xbf16>
      %cst_59 = arith.constant dense<0.000000e+00> : vector<8x128xf32>
      %121 = tpu.matmul %119, %120, %cst_59 {dimension_numbers = #tpu.dot_dimension_numbers<[1], [0], [0], [1], [0, 0, 1, 1], [], []>} : vector<8x48xbf16>, vector<48x128xbf16>, vector<8x128xf32> -> vector<8x128xf32>
      %122 = arith.addf %113, %121 : vector<8x128xf32>
      %123 = vector.extract_strided_slice %103 {offsets = [0, 3], sizes = [16, 128], strides = [1, 1]} : vector<16x256xf32> to vector<16x128xf32>
      %124 = vector.extract_strided_slice %103 {offsets = [0, 2], sizes = [16, 128], strides = [1, 1]} : vector<16x256xf32> to vector<16x128xf32>
      %125 = vector.extract_strided_slice %103 {offsets = [0, 1], sizes = [16, 128], strides = [1, 1]} : vector<16x256xf32> to vector<16x128xf32>
      %126 = tpu.concatenate %123, %124, %125 in 0 : vector<16x128xf32>, vector<16x128xf32>, vector<16x128xf32> -> vector<48x128xf32>
      %c2 = arith.constant 2 : index
      %c0_60 = arith.constant 0 : index
      %c0_61 = arith.constant 0 : index
      %127 = vector.load %arg3[%c2, %c0_60, %c0_61] : memref<12x8x48xbf16, #tpu.memory_space<vmem>>, vector<1x8x48xbf16>
      %128 = vector.shape_cast %127 : vector<1x8x48xbf16> to vector<8x48xbf16>
      %129 = arith.truncf %126 : vector<48x128xf32> to vector<48x128xbf16>
      %cst_62 = arith.constant dense<0.000000e+00> : vector<8x128xf32>
      %130 = tpu.matmul %128, %129, %cst_62 {dimension_numbers = #tpu.dot_dimension_numbers<[1], [0], [0], [1], [0, 0, 1, 1], [], []>} : vector<8x48xbf16>, vector<48x128xbf16>, vector<8x128xf32> -> vector<8x128xf32>
      %131 = arith.addf %122, %130 : vector<8x128xf32>
      %132 = vector.broadcast %5 : vector<1x128xf32> to vector<8x128xf32>
      %133 = arith.mulf %131, %132 : vector<8x128xf32>
      %cst_63 = arith.constant dense<0.000000e+00> : vector<8xf32>
      %134 = vector.multi_reduction <add>, %133, %cst_63 [1] : vector<8x128xf32> to vector<8xf32>
      %135 = vector.shape_cast %134 : vector<8xf32> to vector<8x1xf32>
      %136 = arith.addf %arg9, %135 : vector<8x1xf32>
      %137 = arith.mulf %133, %133 : vector<8x128xf32>
      %cst_64 = arith.constant dense<0.000000e+00> : vector<8xf32>
      %138 = vector.multi_reduction <add>, %137, %cst_64 [1] : vector<8x128xf32> to vector<8xf32>
      %139 = vector.shape_cast %138 : vector<8xf32> to vector<8x1xf32>
      %140 = arith.addf %arg10, %139 : vector<8x1xf32>
      %141 = arith.truncf %133 : vector<8x128xf32> to vector<8x128xbf16>
      %c0_65 = arith.constant 0 : index
      %142 = arith.index_cast %arg8 : i32 to index
      %c0_66 = arith.constant 0 : index
      %c0_67 = arith.constant 0 : index
      %143 = vector.load %arg6[%c0_65, %142, %c0_66, %c0_67] : memref<1x14x32x128xbf16, #tpu.memory_space<vmem>>, vector<1x1x8x128xbf16>
      %144 = vector.shape_cast %143 : vector<1x1x8x128xbf16> to vector<8x128xbf16>
      %145 = vector.shape_cast %141 : vector<8x128xbf16> to vector<1x1x8x128xbf16>
      tpu.vector_store %arg6[%c0_65, %142, %c0_66, %c0_67], %145 {strides = array<i32>} : memref<1x14x32x128xbf16, #tpu.memory_space<vmem>>, vector<1x1x8x128xbf16>,
      %cst_68 = arith.constant 0.000000e+00 : f32
      %146 = vector.broadcast %cst_68 : f32 to vector<8x128xf32>
      %147 = vector.extract_strided_slice %53 {offsets = [0, 2], sizes = [16, 128], strides = [1, 1]} : vector<16x256xf32> to vector<16x128xf32>
      %148 = vector.extract_strided_slice %53 {offsets = [0, 1], sizes = [16, 128], strides = [1, 1]} : vector<16x256xf32> to vector<16x128xf32>
      %149 = vector.extract_strided_slice %53 {offsets = [0, 0], sizes = [16, 128], strides = [1, 1]} : vector<16x256xf32> to vector<16x128xf32>
      %150 = tpu.concatenate %147, %148, %149 in 0 : vector<16x128xf32>, vector<16x128xf32>, vector<16x128xf32> -> vector<48x128xf32>
      %c3 = arith.constant 3 : index
      %c0_69 = arith.constant 0 : index
      %c0_70 = arith.constant 0 : index
      %151 = vector.load %arg3[%c3, %c0_69, %c0_70] : memref<12x8x48xbf16, #tpu.memory_space<vmem>>, vector<1x8x48xbf16>
      %152 = vector.shape_cast %151 : vector<1x8x48xbf16> to vector<8x48xbf16>
      %153 = arith.truncf %150 : vector<48x128xf32> to vector<48x128xbf16>
      %cst_71 = arith.constant dense<0.000000e+00> : vector<8x128xf32>
      %154 = tpu.matmul %152, %153, %cst_71 {dimension_numbers = #tpu.dot_dimension_numbers<[1], [0], [0], [1], [0, 0, 1, 1], [], []>} : vector<8x48xbf16>, vector<48x128xbf16>, vector<8x128xf32> -> vector<8x128xf32>
      %155 = arith.addf %146, %154 : vector<8x128xf32>
      %156 = vector.extract_strided_slice %78 {offsets = [0, 2], sizes = [16, 128], strides = [1, 1]} : vector<16x256xf32> to vector<16x128xf32>
      %157 = vector.extract_strided_slice %78 {offsets = [0, 1], sizes = [16, 128], strides = [1, 1]} : vector<16x256xf32> to vector<16x128xf32>
      %158 = vector.extract_strided_slice %78 {offsets = [0, 0], sizes = [16, 128], strides = [1, 1]} : vector<16x256xf32> to vector<16x128xf32>
      %159 = tpu.concatenate %156, %157, %158 in 0 : vector<16x128xf32>, vector<16x128xf32>, vector<16x128xf32> -> vector<48x128xf32>
      %c4 = arith.constant 4 : index
      %c0_72 = arith.constant 0 : index
      %c0_73 = arith.constant 0 : index
      %160 = vector.load %arg3[%c4, %c0_72, %c0_73] : memref<12x8x48xbf16, #tpu.memory_space<vmem>>, vector<1x8x48xbf16>
      %161 = vector.shape_cast %160 : vector<1x8x48xbf16> to vector<8x48xbf16>
      %162 = arith.truncf %159 : vector<48x128xf32> to vector<48x128xbf16>
      %cst_74 = arith.constant dense<0.000000e+00> : vector<8x128xf32>
      %163 = tpu.matmul %161, %162, %cst_74 {dimension_numbers = #tpu.dot_dimension_numbers<[1], [0], [0], [1], [0, 0, 1, 1], [], []>} : vector<8x48xbf16>, vector<48x128xbf16>, vector<8x128xf32> -> vector<8x128xf32>
      %164 = arith.addf %155, %163 : vector<8x128xf32>
      %165 = vector.extract_strided_slice %103 {offsets = [0, 2], sizes = [16, 128], strides = [1, 1]} : vector<16x256xf32> to vector<16x128xf32>
      %166 = vector.extract_strided_slice %103 {offsets = [0, 1], sizes = [16, 128], strides = [1, 1]} : vector<16x256xf32> to vector<16x128xf32>
      %167 = vector.extract_strided_slice %103 {offsets = [0, 0], sizes = [16, 128], strides = [1, 1]} : vector<16x256xf32> to vector<16x128xf32>
      %168 = tpu.concatenate %165, %166, %167 in 0 : vector<16x128xf32>, vector<16x128xf32>, vector<16x128xf32> -> vector<48x128xf32>
      %c5 = arith.constant 5 : index
      %c0_75 = arith.constant 0 : index
      %c0_76 = arith.constant 0 : index
      %169 = vector.load %arg3[%c5, %c0_75, %c0_76] : memref<12x8x48xbf16, #tpu.memory_space<vmem>>, vector<1x8x48xbf16>
      %170 = vector.shape_cast %169 : vector<1x8x48xbf16> to vector<8x48xbf16>
      %171 = arith.truncf %168 : vector<48x128xf32> to vector<48x128xbf16>
      %cst_77 = arith.constant dense<0.000000e+00> : vector<8x128xf32>
      %172 = tpu.matmul %170, %171, %cst_77 {dimension_numbers = #tpu.dot_dimension_numbers<[1], [0], [0], [1], [0, 0, 1, 1], [], []>} : vector<8x48xbf16>, vector<48x128xbf16>, vector<8x128xf32> -> vector<8x128xf32>
      %173 = arith.addf %164, %172 : vector<8x128xf32>
      %174 = vector.broadcast %5 : vector<1x128xf32> to vector<8x128xf32>
      %175 = arith.mulf %173, %174 : vector<8x128xf32>
      %cst_78 = arith.constant dense<0.000000e+00> : vector<8xf32>
      %176 = vector.multi_reduction <add>, %175, %cst_78 [1] : vector<8x128xf32> to vector<8xf32>
      %177 = vector.shape_cast %176 : vector<8xf32> to vector<8x1xf32>
      %178 = arith.addf %136, %177 : vector<8x1xf32>
      %179 = arith.mulf %175, %175 : vector<8x128xf32>
      %cst_79 = arith.constant dense<0.000000e+00> : vector<8xf32>
      %180 = vector.multi_reduction <add>, %179, %cst_79 [1] : vector<8x128xf32> to vector<8xf32>
      %181 = vector.shape_cast %180 : vector<8xf32> to vector<8x1xf32>
      %182 = arith.addf %140, %181 : vector<8x1xf32>
      %183 = arith.truncf %175 : vector<8x128xf32> to vector<8x128xbf16>
      %c0_80 = arith.constant 0 : index
      %184 = arith.index_cast %arg8 : i32 to index
      %c8 = arith.constant 8 : index
      %c0_81 = arith.constant 0 : index
      %185 = vector.load %arg6[%c0_80, %184, %c8, %c0_81] : memref<1x14x32x128xbf16, #tpu.memory_space<vmem>>, vector<1x1x8x128xbf16>
      %186 = vector.shape_cast %185 : vector<1x1x8x128xbf16> to vector<8x128xbf16>
      %187 = vector.shape_cast %183 : vector<8x128xbf16> to vector<1x1x8x128xbf16>
      tpu.vector_store %arg6[%c0_80, %184, %c8, %c0_81], %187 {strides = array<i32>} : memref<1x14x32x128xbf16, #tpu.memory_space<vmem>>, vector<1x1x8x128xbf16>,
      scf.yield %178, %182 : vector<8x1xf32>, vector<8x1xf32>
    }
    %c14_i32_7 = arith.constant 14 : i32
    %c0_i32_8 = arith.constant 0 : i32
    %c14_i32_9 = arith.constant 14 : i32
    %20 = arith.addi %c0_i32_8, %c14_i32_9 : i32
    %c1_i32_10 = arith.constant 1 : i32
    %21:2 = scf.for %arg8 = %c0_i32_8 to %20 step %c1_i32_10 iter_args(%arg9 = %19#0, %arg10 = %19#1) -> (vector<8x1xf32>, vector<8x1xf32>)  : i32 {
      %28 = arith.addi %0, %arg8 : i32
      %c2_i32_20 = arith.constant 2 : i32
      %29 = arith.addi %28, %c2_i32_20 : i32
      %c0_i32_21 = arith.constant 0 : i32
      %30 = arith.addi %28, %c0_i32_21 : i32
      %c0_i32_22 = arith.constant 0 : i32
      %31 = arith.subi %30, %c0_i32_22 : i32
      %c0_23 = arith.constant 0 : index
      %32 = arith.index_cast %29 : i32 to index
      %c0_24 = arith.constant 0 : index
      %c0_25 = arith.constant 0 : index
      %33 = vector.load %arg2[%c0_23, %32, %c0_24, %c0_25] : memref<1x17x16x256xbf16, #tpu.memory_space<vmem>>, vector<1x1x16x256xbf16>
      %34 = vector.shape_cast %33 : vector<1x1x16x256xbf16> to vector<16x256xbf16>
      %35 = arith.extf %34 : vector<16x256xbf16> to vector<16x256xf32>
      %36 = vector.broadcast %13 : vector<16x1xf32> to vector<16x256xf32>
      %37 = arith.mulf %35, %36 : vector<16x256xf32>
      %38 = vector.broadcast %15 : vector<16x1xf32> to vector<16x256xf32>
      %39 = arith.addf %37, %38 : vector<16x256xf32>
      %cst_26 = arith.constant 0.000000e+00 : f32
      %40 = vector.broadcast %cst_26 : f32 to vector<16x256xf32>
      %41 = arith.cmpf oge, %39, %40 : vector<16x256xf32>
      %cst_27 = arith.constant 5.000000e-02 : f32
      %42 = vector.broadcast %cst_27 : f32 to vector<16x256xf32>
      %43 = arith.mulf %42, %39 : vector<16x256xf32>
      %44 = arith.select %41, %39, %43 : vector<16x256xi1>, vector<16x256xf32>
      %c0_i32_28 = arith.constant 0 : i32
      %45 = arith.cmpi sge, %31, %c0_i32_28 : i32
      %c13_i32 = arith.constant 13 : i32
      %46 = arith.cmpi slt, %31, %c13_i32 : i32
      %47 = arith.andi %45, %46 : i1
      %48 = vector.broadcast %47 : i1 to vector<1x256xi1>
      %49 = arith.andi %11, %48 : vector<1x256xi1>
      %cst_29 = arith.constant 0.000000e+00 : f32
      %50 = vector.shape_cast %49 : vector<1x256xi1> to vector<1x256xi1>
      %51 = vector.broadcast %50 : vector<1x256xi1> to vector<16x256xi1>
      %52 = vector.broadcast %cst_29 : f32 to vector<16x256xf32>
      %53 = arith.select %51, %44, %52 : vector<16x256xi1>, vector<16x256xf32>
      %c1_i32_30 = arith.constant 1 : i32
      %54 = arith.addi %28, %c1_i32_30 : i32
      %c0_i32_31 = arith.constant 0 : i32
      %55 = arith.addi %28, %c0_i32_31 : i32
      %c1_i32_32 = arith.constant 1 : i32
      %56 = arith.subi %55, %c1_i32_32 : i32
      %c0_33 = arith.constant 0 : index
      %57 = arith.index_cast %54 : i32 to index
      %c0_34 = arith.constant 0 : index
      %c0_35 = arith.constant 0 : index
      %58 = vector.load %arg2[%c0_33, %57, %c0_34, %c0_35] : memref<1x17x16x256xbf16, #tpu.memory_space<vmem>>, vector<1x1x16x256xbf16>
      %59 = vector.shape_cast %58 : vector<1x1x16x256xbf16> to vector<16x256xbf16>
      %60 = arith.extf %59 : vector<16x256xbf16> to vector<16x256xf32>
      %61 = vector.broadcast %13 : vector<16x1xf32> to vector<16x256xf32>
      %62 = arith.mulf %60, %61 : vector<16x256xf32>
      %63 = vector.broadcast %15 : vector<16x1xf32> to vector<16x256xf32>
      %64 = arith.addf %62, %63 : vector<16x256xf32>
      %cst_36 = arith.constant 0.000000e+00 : f32
      %65 = vector.broadcast %cst_36 : f32 to vector<16x256xf32>
      %66 = arith.cmpf oge, %64, %65 : vector<16x256xf32>
      %cst_37 = arith.constant 5.000000e-02 : f32
      %67 = vector.broadcast %cst_37 : f32 to vector<16x256xf32>
      %68 = arith.mulf %67, %64 : vector<16x256xf32>
      %69 = arith.select %66, %64, %68 : vector<16x256xi1>, vector<16x256xf32>
      %c0_i32_38 = arith.constant 0 : i32
      %70 = arith.cmpi sge, %56, %c0_i32_38 : i32
      %c13_i32_39 = arith.constant 13 : i32
      %71 = arith.cmpi slt, %56, %c13_i32_39 : i32
      %72 = arith.andi %70, %71 : i1
      %73 = vector.broadcast %72 : i1 to vector<1x256xi1>
      %74 = arith.andi %11, %73 : vector<1x256xi1>
      %cst_40 = arith.constant 0.000000e+00 : f32
      %75 = vector.shape_cast %74 : vector<1x256xi1> to vector<1x256xi1>
      %76 = vector.broadcast %75 : vector<1x256xi1> to vector<16x256xi1>
      %77 = vector.broadcast %cst_40 : f32 to vector<16x256xf32>
      %78 = arith.select %76, %69, %77 : vector<16x256xi1>, vector<16x256xf32>
      %c0_i32_41 = arith.constant 0 : i32
      %79 = arith.addi %28, %c0_i32_41 : i32
      %c0_i32_42 = arith.constant 0 : i32
      %80 = arith.addi %28, %c0_i32_42 : i32
      %c2_i32_43 = arith.constant 2 : i32
      %81 = arith.subi %80, %c2_i32_43 : i32
      %c0_44 = arith.constant 0 : index
      %82 = arith.index_cast %79 : i32 to index
      %c0_45 = arith.constant 0 : index
      %c0_46 = arith.constant 0 : index
      %83 = vector.load %arg2[%c0_44, %82, %c0_45, %c0_46] : memref<1x17x16x256xbf16, #tpu.memory_space<vmem>>, vector<1x1x16x256xbf16>
      %84 = vector.shape_cast %83 : vector<1x1x16x256xbf16> to vector<16x256xbf16>
      %85 = arith.extf %84 : vector<16x256xbf16> to vector<16x256xf32>
      %86 = vector.broadcast %13 : vector<16x1xf32> to vector<16x256xf32>
      %87 = arith.mulf %85, %86 : vector<16x256xf32>
      %88 = vector.broadcast %15 : vector<16x1xf32> to vector<16x256xf32>
      %89 = arith.addf %87, %88 : vector<16x256xf32>
      %cst_47 = arith.constant 0.000000e+00 : f32
      %90 = vector.broadcast %cst_47 : f32 to vector<16x256xf32>
      %91 = arith.cmpf oge, %89, %90 : vector<16x256xf32>
      %cst_48 = arith.constant 5.000000e-02 : f32
      %92 = vector.broadcast %cst_48 : f32 to vector<16x256xf32>
      %93 = arith.mulf %92, %89 : vector<16x256xf32>
      %94 = arith.select %91, %89, %93 : vector<16x256xi1>, vector<16x256xf32>
      %c0_i32_49 = arith.constant 0 : i32
      %95 = arith.cmpi sge, %81, %c0_i32_49 : i32
      %c13_i32_50 = arith.constant 13 : i32
      %96 = arith.cmpi slt, %81, %c13_i32_50 : i32
      %97 = arith.andi %95, %96 : i1
      %98 = vector.broadcast %97 : i1 to vector<1x256xi1>
      %99 = arith.andi %11, %98 : vector<1x256xi1>
      %cst_51 = arith.constant 0.000000e+00 : f32
      %100 = vector.shape_cast %99 : vector<1x256xi1> to vector<1x256xi1>
      %101 = vector.broadcast %100 : vector<1x256xi1> to vector<16x256xi1>
      %102 = vector.broadcast %cst_51 : f32 to vector<16x256xf32>
      %103 = arith.select %101, %94, %102 : vector<16x256xi1>, vector<16x256xf32>
      %cst_52 = arith.constant 0.000000e+00 : f32
      %104 = vector.broadcast %cst_52 : f32 to vector<8x128xf32>
      %105 = vector.extract_strided_slice %53 {offsets = [0, 3], sizes = [16, 128], strides = [1, 1]} : vector<16x256xf32> to vector<16x128xf32>
      %106 = vector.extract_strided_slice %53 {offsets = [0, 2], sizes = [16, 128], strides = [1, 1]} : vector<16x256xf32> to vector<16x128xf32>
      %107 = vector.extract_strided_slice %53 {offsets = [0, 1], sizes = [16, 128], strides = [1, 1]} : vector<16x256xf32> to vector<16x128xf32>
      %108 = tpu.concatenate %105, %106, %107 in 0 : vector<16x128xf32>, vector<16x128xf32>, vector<16x128xf32> -> vector<48x128xf32>
      %c6 = arith.constant 6 : index
      %c0_53 = arith.constant 0 : index
      %c0_54 = arith.constant 0 : index
      %109 = vector.load %arg3[%c6, %c0_53, %c0_54] : memref<12x8x48xbf16, #tpu.memory_space<vmem>>, vector<1x8x48xbf16>
      %110 = vector.shape_cast %109 : vector<1x8x48xbf16> to vector<8x48xbf16>
      %111 = arith.truncf %108 : vector<48x128xf32> to vector<48x128xbf16>
      %cst_55 = arith.constant dense<0.000000e+00> : vector<8x128xf32>
      %112 = tpu.matmul %110, %111, %cst_55 {dimension_numbers = #tpu.dot_dimension_numbers<[1], [0], [0], [1], [0, 0, 1, 1], [], []>} : vector<8x48xbf16>, vector<48x128xbf16>, vector<8x128xf32> -> vector<8x128xf32>
      %113 = arith.addf %104, %112 : vector<8x128xf32>
      %114 = vector.extract_strided_slice %78 {offsets = [0, 3], sizes = [16, 128], strides = [1, 1]} : vector<16x256xf32> to vector<16x128xf32>
      %115 = vector.extract_strided_slice %78 {offsets = [0, 2], sizes = [16, 128], strides = [1, 1]} : vector<16x256xf32> to vector<16x128xf32>
      %116 = vector.extract_strided_slice %78 {offsets = [0, 1], sizes = [16, 128], strides = [1, 1]} : vector<16x256xf32> to vector<16x128xf32>
      %117 = tpu.concatenate %114, %115, %116 in 0 : vector<16x128xf32>, vector<16x128xf32>, vector<16x128xf32> -> vector<48x128xf32>
      %c7 = arith.constant 7 : index
      %c0_56 = arith.constant 0 : index
      %c0_57 = arith.constant 0 : index
      %118 = vector.load %arg3[%c7, %c0_56, %c0_57] : memref<12x8x48xbf16, #tpu.memory_space<vmem>>, vector<1x8x48xbf16>
      %119 = vector.shape_cast %118 : vector<1x8x48xbf16> to vector<8x48xbf16>
      %120 = arith.truncf %117 : vector<48x128xf32> to vector<48x128xbf16>
      %cst_58 = arith.constant dense<0.000000e+00> : vector<8x128xf32>
      %121 = tpu.matmul %119, %120, %cst_58 {dimension_numbers = #tpu.dot_dimension_numbers<[1], [0], [0], [1], [0, 0, 1, 1], [], []>} : vector<8x48xbf16>, vector<48x128xbf16>, vector<8x128xf32> -> vector<8x128xf32>
      %122 = arith.addf %113, %121 : vector<8x128xf32>
      %123 = vector.extract_strided_slice %103 {offsets = [0, 3], sizes = [16, 128], strides = [1, 1]} : vector<16x256xf32> to vector<16x128xf32>
      %124 = vector.extract_strided_slice %103 {offsets = [0, 2], sizes = [16, 128], strides = [1, 1]} : vector<16x256xf32> to vector<16x128xf32>
      %125 = vector.extract_strided_slice %103 {offsets = [0, 1], sizes = [16, 128], strides = [1, 1]} : vector<16x256xf32> to vector<16x128xf32>
      %126 = tpu.concatenate %123, %124, %125 in 0 : vector<16x128xf32>, vector<16x128xf32>, vector<16x128xf32> -> vector<48x128xf32>
      %c8 = arith.constant 8 : index
      %c0_59 = arith.constant 0 : index
      %c0_60 = arith.constant 0 : index
      %127 = vector.load %arg3[%c8, %c0_59, %c0_60] : memref<12x8x48xbf16, #tpu.memory_space<vmem>>, vector<1x8x48xbf16>
      %128 = vector.shape_cast %127 : vector<1x8x48xbf16> to vector<8x48xbf16>
      %129 = arith.truncf %126 : vector<48x128xf32> to vector<48x128xbf16>
      %cst_61 = arith.constant dense<0.000000e+00> : vector<8x128xf32>
      %130 = tpu.matmul %128, %129, %cst_61 {dimension_numbers = #tpu.dot_dimension_numbers<[1], [0], [0], [1], [0, 0, 1, 1], [], []>} : vector<8x48xbf16>, vector<48x128xbf16>, vector<8x128xf32> -> vector<8x128xf32>
      %131 = arith.addf %122, %130 : vector<8x128xf32>
      %132 = vector.broadcast %5 : vector<1x128xf32> to vector<8x128xf32>
      %133 = arith.mulf %131, %132 : vector<8x128xf32>
      %cst_62 = arith.constant dense<0.000000e+00> : vector<8xf32>
      %134 = vector.multi_reduction <add>, %133, %cst_62 [1] : vector<8x128xf32> to vector<8xf32>
      %135 = vector.shape_cast %134 : vector<8xf32> to vector<8x1xf32>
      %136 = arith.addf %arg9, %135 : vector<8x1xf32>
      %137 = arith.mulf %133, %133 : vector<8x128xf32>
      %cst_63 = arith.constant dense<0.000000e+00> : vector<8xf32>
      %138 = vector.multi_reduction <add>, %137, %cst_63 [1] : vector<8x128xf32> to vector<8xf32>
      %139 = vector.shape_cast %138 : vector<8xf32> to vector<8x1xf32>
      %140 = arith.addf %arg10, %139 : vector<8x1xf32>
      %141 = arith.truncf %133 : vector<8x128xf32> to vector<8x128xbf16>
      %c0_64 = arith.constant 0 : index
      %142 = arith.index_cast %arg8 : i32 to index
      %c16 = arith.constant 16 : index
      %c0_65 = arith.constant 0 : index
      %143 = vector.load %arg6[%c0_64, %142, %c16, %c0_65] : memref<1x14x32x128xbf16, #tpu.memory_space<vmem>>, vector<1x1x8x128xbf16>
      %144 = vector.shape_cast %143 : vector<1x1x8x128xbf16> to vector<8x128xbf16>
      %145 = vector.shape_cast %141 : vector<8x128xbf16> to vector<1x1x8x128xbf16>
      tpu.vector_store %arg6[%c0_64, %142, %c16, %c0_65], %145 {strides = array<i32>} : memref<1x14x32x128xbf16, #tpu.memory_space<vmem>>, vector<1x1x8x128xbf16>,
      %cst_66 = arith.constant 0.000000e+00 : f32
      %146 = vector.broadcast %cst_66 : f32 to vector<8x128xf32>
      %147 = vector.extract_strided_slice %53 {offsets = [0, 2], sizes = [16, 128], strides = [1, 1]} : vector<16x256xf32> to vector<16x128xf32>
      %148 = vector.extract_strided_slice %53 {offsets = [0, 1], sizes = [16, 128], strides = [1, 1]} : vector<16x256xf32> to vector<16x128xf32>
      %149 = vector.extract_strided_slice %53 {offsets = [0, 0], sizes = [16, 128], strides = [1, 1]} : vector<16x256xf32> to vector<16x128xf32>
      %150 = tpu.concatenate %147, %148, %149 in 0 : vector<16x128xf32>, vector<16x128xf32>, vector<16x128xf32> -> vector<48x128xf32>
      %c9 = arith.constant 9 : index
      %c0_67 = arith.constant 0 : index
      %c0_68 = arith.constant 0 : index
      %151 = vector.load %arg3[%c9, %c0_67, %c0_68] : memref<12x8x48xbf16, #tpu.memory_space<vmem>>, vector<1x8x48xbf16>
      %152 = vector.shape_cast %151 : vector<1x8x48xbf16> to vector<8x48xbf16>
      %153 = arith.truncf %150 : vector<48x128xf32> to vector<48x128xbf16>
      %cst_69 = arith.constant dense<0.000000e+00> : vector<8x128xf32>
      %154 = tpu.matmul %152, %153, %cst_69 {dimension_numbers = #tpu.dot_dimension_numbers<[1], [0], [0], [1], [0, 0, 1, 1], [], []>} : vector<8x48xbf16>, vector<48x128xbf16>, vector<8x128xf32> -> vector<8x128xf32>
      %155 = arith.addf %146, %154 : vector<8x128xf32>
      %156 = vector.extract_strided_slice %78 {offsets = [0, 2], sizes = [16, 128], strides = [1, 1]} : vector<16x256xf32> to vector<16x128xf32>
      %157 = vector.extract_strided_slice %78 {offsets = [0, 1], sizes = [16, 128], strides = [1, 1]} : vector<16x256xf32> to vector<16x128xf32>
      %158 = vector.extract_strided_slice %78 {offsets = [0, 0], sizes = [16, 128], strides = [1, 1]} : vector<16x256xf32> to vector<16x128xf32>
      %159 = tpu.concatenate %156, %157, %158 in 0 : vector<16x128xf32>, vector<16x128xf32>, vector<16x128xf32> -> vector<48x128xf32>
      %c10 = arith.constant 10 : index
      %c0_70 = arith.constant 0 : index
      %c0_71 = arith.constant 0 : index
      %160 = vector.load %arg3[%c10, %c0_70, %c0_71] : memref<12x8x48xbf16, #tpu.memory_space<vmem>>, vector<1x8x48xbf16>
      %161 = vector.shape_cast %160 : vector<1x8x48xbf16> to vector<8x48xbf16>
      %162 = arith.truncf %159 : vector<48x128xf32> to vector<48x128xbf16>
      %cst_72 = arith.constant dense<0.000000e+00> : vector<8x128xf32>
      %163 = tpu.matmul %161, %162, %cst_72 {dimension_numbers = #tpu.dot_dimension_numbers<[1], [0], [0], [1], [0, 0, 1, 1], [], []>} : vector<8x48xbf16>, vector<48x128xbf16>, vector<8x128xf32> -> vector<8x128xf32>
      %164 = arith.addf %155, %163 : vector<8x128xf32>
      %165 = vector.extract_strided_slice %103 {offsets = [0, 2], sizes = [16, 128], strides = [1, 1]} : vector<16x256xf32> to vector<16x128xf32>
      %166 = vector.extract_strided_slice %103 {offsets = [0, 1], sizes = [16, 128], strides = [1, 1]} : vector<16x256xf32> to vector<16x128xf32>
      %167 = vector.extract_strided_slice %103 {offsets = [0, 0], sizes = [16, 128], strides = [1, 1]} : vector<16x256xf32> to vector<16x128xf32>
      %168 = tpu.concatenate %165, %166, %167 in 0 : vector<16x128xf32>, vector<16x128xf32>, vector<16x128xf32> -> vector<48x128xf32>
      %c11 = arith.constant 11 : index
      %c0_73 = arith.constant 0 : index
      %c0_74 = arith.constant 0 : index
      %169 = vector.load %arg3[%c11, %c0_73, %c0_74] : memref<12x8x48xbf16, #tpu.memory_space<vmem>>, vector<1x8x48xbf16>
      %170 = vector.shape_cast %169 : vector<1x8x48xbf16> to vector<8x48xbf16>
      %171 = arith.truncf %168 : vector<48x128xf32> to vector<48x128xbf16>
      %cst_75 = arith.constant dense<0.000000e+00> : vector<8x128xf32>
      %172 = tpu.matmul %170, %171, %cst_75 {dimension_numbers = #tpu.dot_dimension_numbers<[1], [0], [0], [1], [0, 0, 1, 1], [], []>} : vector<8x48xbf16>, vector<48x128xbf16>, vector<8x128xf32> -> vector<8x128xf32>
      %173 = arith.addf %164, %172 : vector<8x128xf32>
      %174 = vector.broadcast %5 : vector<1x128xf32> to vector<8x128xf32>
      %175 = arith.mulf %173, %174 : vector<8x128xf32>
      %cst_76 = arith.constant dense<0.000000e+00> : vector<8xf32>
      %176 = vector.multi_reduction <add>, %175, %cst_76 [1] : vector<8x128xf32> to vector<8xf32>
      %177 = vector.shape_cast %176 : vector<8xf32> to vector<8x1xf32>
      %178 = arith.addf %136, %177 : vector<8x1xf32>
      %179 = arith.mulf %175, %175 : vector<8x128xf32>
      %cst_77 = arith.constant dense<0.000000e+00> : vector<8xf32>
      %180 = vector.multi_reduction <add>, %179, %cst_77 [1] : vector<8x128xf32> to vector<8xf32>
      %181 = vector.shape_cast %180 : vector<8xf32> to vector<8x1xf32>
      %182 = arith.addf %140, %181 : vector<8x1xf32>
      %183 = arith.truncf %175 : vector<8x128xf32> to vector<8x128xbf16>
      %c0_78 = arith.constant 0 : index
      %184 = arith.index_cast %arg8 : i32 to index
      %c24 = arith.constant 24 : index
      %c0_79 = arith.constant 0 : index
      %185 = vector.load %arg6[%c0_78, %184, %c24, %c0_79] : memref<1x14x32x128xbf16, #tpu.memory_space<vmem>>, vector<1x1x8x128xbf16>
      %186 = vector.shape_cast %185 : vector<1x1x8x128xbf16> to vector<8x128xbf16>
      %187 = vector.shape_cast %183 : vector<8x128xbf16> to vector<1x1x8x128xbf16>
      tpu.vector_store %arg6[%c0_78, %184, %c24, %c0_79], %187 {strides = array<i32>} : memref<1x14x32x128xbf16, #tpu.memory_space<vmem>>, vector<1x1x8x128xbf16>,
      scf.yield %178, %182 : vector<8x1xf32>, vector<8x1xf32>
    }
    %c14_i32_11 = arith.constant 14 : i32
    %c0_12 = arith.constant 0 : index
    %c0_13 = arith.constant 0 : index
    %c0_14 = arith.constant 0 : index
    %c0_15 = arith.constant 0 : index
    %22 = vector.load %arg7[%c0_12, %c0_13, %c0_14, %c0_15] : memref<1x1x8x2xf32, #tpu.memory_space<vmem>>, vector<1x1x8x1xf32>
    %23 = vector.shape_cast %22 : vector<1x1x8x1xf32> to vector<8x1xf32>
    %24 = vector.shape_cast %21#0 : vector<8x1xf32> to vector<1x1x8x1xf32>
    tpu.vector_store %arg7[%c0_12, %c0_13, %c0_14, %c0_15], %24 {strides = array<i32>} : memref<1x1x8x2xf32, #tpu.memory_space<vmem>>, vector<1x1x8x1xf32>,
    %c0_16 = arith.constant 0 : index
    %c0_17 = arith.constant 0 : index
    %c0_18 = arith.constant 0 : index
    %c1_19 = arith.constant 1 : index
    %25 = vector.load %arg7[%c0_16, %c0_17, %c0_18, %c1_19] : memref<1x1x8x2xf32, #tpu.memory_space<vmem>>, vector<1x1x8x1xf32>
    %26 = vector.shape_cast %25 : vector<1x1x8x1xf32> to vector<8x1xf32>
    %27 = vector.shape_cast %21#1 : vector<8x1xf32> to vector<1x1x8x1xf32>
    tpu.vector_store %arg7[%c0_16, %c0_17, %c0_18, %c1_19], %27 {strides = array<i32>} : memref<1x1x8x2xf32, #tpu.memory_space<vmem>>, vector<1x1x8x1xf32>,
    return
  }
  func.func @transform_0(%arg0: i32, %arg1: i32) -> (i32, i32, i32, i32) {
    %c0_i32 = arith.constant 0 : i32
    %c0_i32_0 = arith.constant 0 : i32
    %c0_i32_1 = arith.constant 0 : i32
    %c0_i32_2 = arith.constant 0 : i32
    return %arg0, %c0_i32, %c0_i32_0, %c0_i32_1 : i32, i32, i32, i32
  }
  func.func @transform_1(%arg0: i32, %arg1: i32) -> (i32, i32, i32) {
    %c0_i32 = arith.constant 0 : i32
    %c0_i32_0 = arith.constant 0 : i32
    %c0_i32_1 = arith.constant 0 : i32
    %c0_i32_2 = arith.constant 0 : i32
    return %c0_i32, %c0_i32_0, %c0_i32_1 : i32, i32, i32
  }
  func.func @transform_2(%arg0: i32, %arg1: i32) -> (i32, i32) {
    %c0_i32 = arith.constant 0 : i32
    %c0_i32_0 = arith.constant 0 : i32
    %c0_i32_1 = arith.constant 0 : i32
    return %c0_i32, %c0_i32_0 : i32, i32
  }
  func.func @transform_3(%arg0: i32, %arg1: i32) -> (i32, i32, i32) {
    %c0_i32 = arith.constant 0 : i32
    %c0_i32_0 = arith.constant 0 : i32
    %c0_i32_1 = arith.constant 0 : i32
    %c0_i32_2 = arith.constant 0 : i32
    return %c0_i32, %c0_i32_0, %c0_i32_1 : i32, i32, i32
  }
  func.func @transform_4(%arg0: i32, %arg1: i32) -> (i32, i32, i32, i32) {
    %c0_i32 = arith.constant 0 : i32
    %c0_i32_0 = arith.constant 0 : i32
    %c0_i32_1 = arith.constant 0 : i32
    return %arg0, %arg1, %c0_i32, %c0_i32_0 : i32, i32, i32, i32
  }
  func.func @transform_5(%arg0: i32, %arg1: i32) -> (i32, i32, i32, i32) {
    %c0_i32 = arith.constant 0 : i32
    %c0_i32_0 = arith.constant 0 : i32
    %c0_i32_1 = arith.constant 0 : i32
    return %arg0, %arg1, %c0_i32, %c0_i32_0 : i32, i32, i32, i32
  }
}

module attributes {stable_mosaic.version = 11 : i64} {
  func.func @_deconv_poly_kernel(%arg0: i32, %arg1: i32, %arg2: memref<1x61x8x256xbf16, #tpu.memory_space<vmem>>, %arg3: memref<12x4x24xbf16, #tpu.memory_space<vmem>>, %arg4: memref<4x1xf32, #tpu.memory_space<vmem>>, %arg5: memref<2x8x1xf32, #tpu.memory_space<vmem>>, %arg6: memref<1x29x16x128xbf16, #tpu.memory_space<vmem>>, %arg7: memref<1x1x4x2xf32, #tpu.memory_space<vmem>>) attributes {dimension_semantics = [#tpu.dimension_semantics<parallel>, #tpu.dimension_semantics<parallel>], iteration_bounds = array<i64: 2, 2>, scalar_prefetch = 0 : i64, scratch_operands = 0 : i64, tpu.core_type = #tpu.core_type<tc>, window_params = [{transform_indices = @transform_0, window_bounds = array<i64: 1, 61, 8, 256>}, {pipeline_mode = #tpu.pipeline_mode<synchronous>, transform_indices = @transform_1, window_bounds = array<i64: 12, 4, 24>}, {pipeline_mode = #tpu.pipeline_mode<synchronous>, transform_indices = @transform_2, window_bounds = array<i64: 4, 1>}, {pipeline_mode = #tpu.pipeline_mode<synchronous>, transform_indices = @transform_3, window_bounds = array<i64: 2, 8, 1>}, {transform_indices = @transform_4, window_bounds = array<i64: 1, 29, 16, 128>}, {transform_indices = @transform_5, window_bounds = array<i64: 1, 1, 4, 2>}]} {
    %c29_i32 = arith.constant 29 : i32
    %0 = arith.muli %arg1, %c29_i32 : i32
    %1 = tpu.iota {dimensions = array<i32: 1>} : vector<1x128xi32>
    %c58_i32 = arith.constant 58 : i32
    %2 = vector.broadcast %c58_i32 : i32 to vector<1x128xi32>
    %3 = arith.cmpi slt, %1, %2 : vector<1x128xi32>
    %4 = arith.extui %3 : vector<1x128xi1> to vector<1x128xi32>
    %5 = arith.sitofp %4 : vector<1x128xi32> to vector<1x128xf32>
    %6 = tpu.iota {dimensions = array<i32: 1>} : vector<1x256xi32>
    %c2_i32 = arith.constant 2 : i32
    %7 = vector.broadcast %c2_i32 : i32 to vector<1x256xi32>
    %8 = arith.cmpi sge, %6, %7 : vector<1x256xi32>
    %c59_i32 = arith.constant 59 : i32
    %9 = vector.broadcast %c59_i32 : i32 to vector<1x256xi32>
    %10 = arith.cmpi slt, %6, %9 : vector<1x256xi32>
    %11 = arith.andi %8, %10 : vector<1x256xi1>
    %c0 = arith.constant 0 : index
    %c0_0 = arith.constant 0 : index
    %c0_1 = arith.constant 0 : index
    %12 = vector.load %arg5[%c0, %c0_0, %c0_1] : memref<2x8x1xf32, #tpu.memory_space<vmem>>, vector<1x8x1xf32>
    %13 = vector.shape_cast %12 : vector<1x8x1xf32> to vector<8x1xf32>
    %c1 = arith.constant 1 : index
    %c0_2 = arith.constant 0 : index
    %c0_3 = arith.constant 0 : index
    %14 = vector.load %arg5[%c1, %c0_2, %c0_3] : memref<2x8x1xf32, #tpu.memory_space<vmem>>, vector<1x8x1xf32>
    %15 = vector.shape_cast %14 : vector<1x8x1xf32> to vector<8x1xf32>
    %cst = arith.constant 0.000000e+00 : f32
    %16 = vector.broadcast %cst : f32 to vector<4x1xf32>
    %cst_4 = arith.constant 0.000000e+00 : f32
    %17 = vector.broadcast %cst_4 : f32 to vector<4x1xf32>
    %c0_i32 = arith.constant 0 : i32
    %c29_i32_5 = arith.constant 29 : i32
    %18 = arith.addi %c0_i32, %c29_i32_5 : i32
    %c1_i32 = arith.constant 1 : i32
    %19:2 = scf.for %arg8 = %c0_i32 to %18 step %c1_i32 iter_args(%arg9 = %16, %arg10 = %17) -> (vector<4x1xf32>, vector<4x1xf32>)  : i32 {
      %28 = arith.addi %0, %arg8 : i32
      %c3_i32 = arith.constant 3 : i32
      %29 = arith.addi %28, %c3_i32 : i32
      %c1_i32_19 = arith.constant 1 : i32
      %30 = arith.addi %28, %c1_i32_19 : i32
      %c0_i32_20 = arith.constant 0 : i32
      %31 = arith.subi %30, %c0_i32_20 : i32
      %c0_21 = arith.constant 0 : index
      %32 = arith.index_cast %29 : i32 to index
      %c0_22 = arith.constant 0 : index
      %c0_23 = arith.constant 0 : index
      %33 = vector.load %arg2[%c0_21, %32, %c0_22, %c0_23] : memref<1x61x8x256xbf16, #tpu.memory_space<vmem>>, vector<1x1x8x256xbf16>
      %34 = vector.shape_cast %33 : vector<1x1x8x256xbf16> to vector<8x256xbf16>
      %35 = arith.extf %34 : vector<8x256xbf16> to vector<8x256xf32>
      %36 = vector.broadcast %13 : vector<8x1xf32> to vector<8x256xf32>
      %37 = arith.mulf %35, %36 : vector<8x256xf32>
      %38 = vector.broadcast %15 : vector<8x1xf32> to vector<8x256xf32>
      %39 = arith.addf %37, %38 : vector<8x256xf32>
      %cst_24 = arith.constant 0.000000e+00 : f32
      %40 = vector.broadcast %cst_24 : f32 to vector<8x256xf32>
      %41 = arith.cmpf oge, %39, %40 : vector<8x256xf32>
      %cst_25 = arith.constant 5.000000e-02 : f32
      %42 = vector.broadcast %cst_25 : f32 to vector<8x256xf32>
      %43 = arith.mulf %42, %39 : vector<8x256xf32>
      %44 = arith.select %41, %39, %43 : vector<8x256xi1>, vector<8x256xf32>
      %c0_i32_26 = arith.constant 0 : i32
      %45 = arith.cmpi sge, %31, %c0_i32_26 : i32
      %c57_i32 = arith.constant 57 : i32
      %46 = arith.cmpi slt, %31, %c57_i32 : i32
      %47 = arith.andi %45, %46 : i1
      %48 = vector.broadcast %47 : i1 to vector<1x256xi1>
      %49 = arith.andi %11, %48 : vector<1x256xi1>
      %cst_27 = arith.constant 0.000000e+00 : f32
      %50 = vector.shape_cast %49 : vector<1x256xi1> to vector<1x256xi1>
      %51 = vector.broadcast %50 : vector<1x256xi1> to vector<8x256xi1>
      %52 = vector.broadcast %cst_27 : f32 to vector<8x256xf32>
      %53 = arith.select %51, %44, %52 : vector<8x256xi1>, vector<8x256xf32>
      %c2_i32_28 = arith.constant 2 : i32
      %54 = arith.addi %28, %c2_i32_28 : i32
      %c1_i32_29 = arith.constant 1 : i32
      %55 = arith.addi %28, %c1_i32_29 : i32
      %c1_i32_30 = arith.constant 1 : i32
      %56 = arith.subi %55, %c1_i32_30 : i32
      %c0_31 = arith.constant 0 : index
      %57 = arith.index_cast %54 : i32 to index
      %c0_32 = arith.constant 0 : index
      %c0_33 = arith.constant 0 : index
      %58 = vector.load %arg2[%c0_31, %57, %c0_32, %c0_33] : memref<1x61x8x256xbf16, #tpu.memory_space<vmem>>, vector<1x1x8x256xbf16>
      %59 = vector.shape_cast %58 : vector<1x1x8x256xbf16> to vector<8x256xbf16>
      %60 = arith.extf %59 : vector<8x256xbf16> to vector<8x256xf32>
      %61 = vector.broadcast %13 : vector<8x1xf32> to vector<8x256xf32>
      %62 = arith.mulf %60, %61 : vector<8x256xf32>
      %63 = vector.broadcast %15 : vector<8x1xf32> to vector<8x256xf32>
      %64 = arith.addf %62, %63 : vector<8x256xf32>
      %cst_34 = arith.constant 0.000000e+00 : f32
      %65 = vector.broadcast %cst_34 : f32 to vector<8x256xf32>
      %66 = arith.cmpf oge, %64, %65 : vector<8x256xf32>
      %cst_35 = arith.constant 5.000000e-02 : f32
      %67 = vector.broadcast %cst_35 : f32 to vector<8x256xf32>
      %68 = arith.mulf %67, %64 : vector<8x256xf32>
      %69 = arith.select %66, %64, %68 : vector<8x256xi1>, vector<8x256xf32>
      %c0_i32_36 = arith.constant 0 : i32
      %70 = arith.cmpi sge, %56, %c0_i32_36 : i32
      %c57_i32_37 = arith.constant 57 : i32
      %71 = arith.cmpi slt, %56, %c57_i32_37 : i32
      %72 = arith.andi %70, %71 : i1
      %73 = vector.broadcast %72 : i1 to vector<1x256xi1>
      %74 = arith.andi %11, %73 : vector<1x256xi1>
      %cst_38 = arith.constant 0.000000e+00 : f32
      %75 = vector.shape_cast %74 : vector<1x256xi1> to vector<1x256xi1>
      %76 = vector.broadcast %75 : vector<1x256xi1> to vector<8x256xi1>
      %77 = vector.broadcast %cst_38 : f32 to vector<8x256xf32>
      %78 = arith.select %76, %69, %77 : vector<8x256xi1>, vector<8x256xf32>
      %c1_i32_39 = arith.constant 1 : i32
      %79 = arith.addi %28, %c1_i32_39 : i32
      %c1_i32_40 = arith.constant 1 : i32
      %80 = arith.addi %28, %c1_i32_40 : i32
      %c2_i32_41 = arith.constant 2 : i32
      %81 = arith.subi %80, %c2_i32_41 : i32
      %c0_42 = arith.constant 0 : index
      %82 = arith.index_cast %79 : i32 to index
      %c0_43 = arith.constant 0 : index
      %c0_44 = arith.constant 0 : index
      %83 = vector.load %arg2[%c0_42, %82, %c0_43, %c0_44] : memref<1x61x8x256xbf16, #tpu.memory_space<vmem>>, vector<1x1x8x256xbf16>
      %84 = vector.shape_cast %83 : vector<1x1x8x256xbf16> to vector<8x256xbf16>
      %85 = arith.extf %84 : vector<8x256xbf16> to vector<8x256xf32>
      %86 = vector.broadcast %13 : vector<8x1xf32> to vector<8x256xf32>
      %87 = arith.mulf %85, %86 : vector<8x256xf32>
      %88 = vector.broadcast %15 : vector<8x1xf32> to vector<8x256xf32>
      %89 = arith.addf %87, %88 : vector<8x256xf32>
      %cst_45 = arith.constant 0.000000e+00 : f32
      %90 = vector.broadcast %cst_45 : f32 to vector<8x256xf32>
      %91 = arith.cmpf oge, %89, %90 : vector<8x256xf32>
      %cst_46 = arith.constant 5.000000e-02 : f32
      %92 = vector.broadcast %cst_46 : f32 to vector<8x256xf32>
      %93 = arith.mulf %92, %89 : vector<8x256xf32>
      %94 = arith.select %91, %89, %93 : vector<8x256xi1>, vector<8x256xf32>
      %c0_i32_47 = arith.constant 0 : i32
      %95 = arith.cmpi sge, %81, %c0_i32_47 : i32
      %c57_i32_48 = arith.constant 57 : i32
      %96 = arith.cmpi slt, %81, %c57_i32_48 : i32
      %97 = arith.andi %95, %96 : i1
      %98 = vector.broadcast %97 : i1 to vector<1x256xi1>
      %99 = arith.andi %11, %98 : vector<1x256xi1>
      %cst_49 = arith.constant 0.000000e+00 : f32
      %100 = vector.shape_cast %99 : vector<1x256xi1> to vector<1x256xi1>
      %101 = vector.broadcast %100 : vector<1x256xi1> to vector<8x256xi1>
      %102 = vector.broadcast %cst_49 : f32 to vector<8x256xf32>
      %103 = arith.select %101, %94, %102 : vector<8x256xi1>, vector<8x256xf32>
      %cst_50 = arith.constant 0.000000e+00 : f32
      %104 = vector.broadcast %cst_50 : f32 to vector<4x128xf32>
      %105 = vector.extract_strided_slice %53 {offsets = [0, 3], sizes = [8, 128], strides = [1, 1]} : vector<8x256xf32> to vector<8x128xf32>
      %106 = vector.extract_strided_slice %53 {offsets = [0, 2], sizes = [8, 128], strides = [1, 1]} : vector<8x256xf32> to vector<8x128xf32>
      %107 = vector.extract_strided_slice %53 {offsets = [0, 1], sizes = [8, 128], strides = [1, 1]} : vector<8x256xf32> to vector<8x128xf32>
      %108 = tpu.concatenate %105, %106, %107 in 0 : vector<8x128xf32>, vector<8x128xf32>, vector<8x128xf32> -> vector<24x128xf32>
      %c0_51 = arith.constant 0 : index
      %c0_52 = arith.constant 0 : index
      %c0_53 = arith.constant 0 : index
      %109 = vector.load %arg3[%c0_51, %c0_52, %c0_53] : memref<12x4x24xbf16, #tpu.memory_space<vmem>>, vector<1x4x24xbf16>
      %110 = vector.shape_cast %109 : vector<1x4x24xbf16> to vector<4x24xbf16>
      %111 = arith.truncf %108 : vector<24x128xf32> to vector<24x128xbf16>
      %cst_54 = arith.constant dense<0.000000e+00> : vector<4x128xf32>
      %112 = tpu.matmul %110, %111, %cst_54 {dimension_numbers = #tpu.dot_dimension_numbers<[1], [0], [0], [1], [0, 0, 1, 1], [], []>} : vector<4x24xbf16>, vector<24x128xbf16>, vector<4x128xf32> -> vector<4x128xf32>
      %113 = arith.addf %104, %112 : vector<4x128xf32>
      %114 = vector.extract_strided_slice %78 {offsets = [0, 3], sizes = [8, 128], strides = [1, 1]} : vector<8x256xf32> to vector<8x128xf32>
      %115 = vector.extract_strided_slice %78 {offsets = [0, 2], sizes = [8, 128], strides = [1, 1]} : vector<8x256xf32> to vector<8x128xf32>
      %116 = vector.extract_strided_slice %78 {offsets = [0, 1], sizes = [8, 128], strides = [1, 1]} : vector<8x256xf32> to vector<8x128xf32>
      %117 = tpu.concatenate %114, %115, %116 in 0 : vector<8x128xf32>, vector<8x128xf32>, vector<8x128xf32> -> vector<24x128xf32>
      %c1_55 = arith.constant 1 : index
      %c0_56 = arith.constant 0 : index
      %c0_57 = arith.constant 0 : index
      %118 = vector.load %arg3[%c1_55, %c0_56, %c0_57] : memref<12x4x24xbf16, #tpu.memory_space<vmem>>, vector<1x4x24xbf16>
      %119 = vector.shape_cast %118 : vector<1x4x24xbf16> to vector<4x24xbf16>
      %120 = arith.truncf %117 : vector<24x128xf32> to vector<24x128xbf16>
      %cst_58 = arith.constant dense<0.000000e+00> : vector<4x128xf32>
      %121 = tpu.matmul %119, %120, %cst_58 {dimension_numbers = #tpu.dot_dimension_numbers<[1], [0], [0], [1], [0, 0, 1, 1], [], []>} : vector<4x24xbf16>, vector<24x128xbf16>, vector<4x128xf32> -> vector<4x128xf32>
      %122 = arith.addf %113, %121 : vector<4x128xf32>
      %123 = vector.extract_strided_slice %103 {offsets = [0, 3], sizes = [8, 128], strides = [1, 1]} : vector<8x256xf32> to vector<8x128xf32>
      %124 = vector.extract_strided_slice %103 {offsets = [0, 2], sizes = [8, 128], strides = [1, 1]} : vector<8x256xf32> to vector<8x128xf32>
      %125 = vector.extract_strided_slice %103 {offsets = [0, 1], sizes = [8, 128], strides = [1, 1]} : vector<8x256xf32> to vector<8x128xf32>
      %126 = tpu.concatenate %123, %124, %125 in 0 : vector<8x128xf32>, vector<8x128xf32>, vector<8x128xf32> -> vector<24x128xf32>
      %c2 = arith.constant 2 : index
      %c0_59 = arith.constant 0 : index
      %c0_60 = arith.constant 0 : index
      %127 = vector.load %arg3[%c2, %c0_59, %c0_60] : memref<12x4x24xbf16, #tpu.memory_space<vmem>>, vector<1x4x24xbf16>
      %128 = vector.shape_cast %127 : vector<1x4x24xbf16> to vector<4x24xbf16>
      %129 = arith.truncf %126 : vector<24x128xf32> to vector<24x128xbf16>
      %cst_61 = arith.constant dense<0.000000e+00> : vector<4x128xf32>
      %130 = tpu.matmul %128, %129, %cst_61 {dimension_numbers = #tpu.dot_dimension_numbers<[1], [0], [0], [1], [0, 0, 1, 1], [], []>} : vector<4x24xbf16>, vector<24x128xbf16>, vector<4x128xf32> -> vector<4x128xf32>
      %131 = arith.addf %122, %130 : vector<4x128xf32>
      %132 = vector.broadcast %5 : vector<1x128xf32> to vector<4x128xf32>
      %133 = arith.mulf %131, %132 : vector<4x128xf32>
      %cst_62 = arith.constant dense<0.000000e+00> : vector<4xf32>
      %134 = vector.multi_reduction <add>, %133, %cst_62 [1] : vector<4x128xf32> to vector<4xf32>
      %135 = vector.shape_cast %134 : vector<4xf32> to vector<4x1xf32>
      %136 = arith.addf %arg9, %135 : vector<4x1xf32>
      %137 = arith.mulf %133, %133 : vector<4x128xf32>
      %cst_63 = arith.constant dense<0.000000e+00> : vector<4xf32>
      %138 = vector.multi_reduction <add>, %137, %cst_63 [1] : vector<4x128xf32> to vector<4xf32>
      %139 = vector.shape_cast %138 : vector<4xf32> to vector<4x1xf32>
      %140 = arith.addf %arg10, %139 : vector<4x1xf32>
      %141 = arith.truncf %133 : vector<4x128xf32> to vector<4x128xbf16>
      %c0_64 = arith.constant 0 : index
      %142 = arith.index_cast %arg8 : i32 to index
      %c0_65 = arith.constant 0 : index
      %c0_66 = arith.constant 0 : index
      %143 = vector.load %arg6[%c0_64, %142, %c0_65, %c0_66] : memref<1x29x16x128xbf16, #tpu.memory_space<vmem>>, vector<1x1x4x128xbf16>
      %144 = vector.shape_cast %143 : vector<1x1x4x128xbf16> to vector<4x128xbf16>
      %145 = vector.shape_cast %141 : vector<4x128xbf16> to vector<1x1x4x128xbf16>
      tpu.vector_store %arg6[%c0_64, %142, %c0_65, %c0_66], %145 {strides = array<i32>} : memref<1x29x16x128xbf16, #tpu.memory_space<vmem>>, vector<1x1x4x128xbf16>,
      %cst_67 = arith.constant 0.000000e+00 : f32
      %146 = vector.broadcast %cst_67 : f32 to vector<4x128xf32>
      %147 = vector.extract_strided_slice %53 {offsets = [0, 2], sizes = [8, 128], strides = [1, 1]} : vector<8x256xf32> to vector<8x128xf32>
      %148 = vector.extract_strided_slice %53 {offsets = [0, 1], sizes = [8, 128], strides = [1, 1]} : vector<8x256xf32> to vector<8x128xf32>
      %149 = vector.extract_strided_slice %53 {offsets = [0, 0], sizes = [8, 128], strides = [1, 1]} : vector<8x256xf32> to vector<8x128xf32>
      %150 = tpu.concatenate %147, %148, %149 in 0 : vector<8x128xf32>, vector<8x128xf32>, vector<8x128xf32> -> vector<24x128xf32>
      %c3 = arith.constant 3 : index
      %c0_68 = arith.constant 0 : index
      %c0_69 = arith.constant 0 : index
      %151 = vector.load %arg3[%c3, %c0_68, %c0_69] : memref<12x4x24xbf16, #tpu.memory_space<vmem>>, vector<1x4x24xbf16>
      %152 = vector.shape_cast %151 : vector<1x4x24xbf16> to vector<4x24xbf16>
      %153 = arith.truncf %150 : vector<24x128xf32> to vector<24x128xbf16>
      %cst_70 = arith.constant dense<0.000000e+00> : vector<4x128xf32>
      %154 = tpu.matmul %152, %153, %cst_70 {dimension_numbers = #tpu.dot_dimension_numbers<[1], [0], [0], [1], [0, 0, 1, 1], [], []>} : vector<4x24xbf16>, vector<24x128xbf16>, vector<4x128xf32> -> vector<4x128xf32>
      %155 = arith.addf %146, %154 : vector<4x128xf32>
      %156 = vector.extract_strided_slice %78 {offsets = [0, 2], sizes = [8, 128], strides = [1, 1]} : vector<8x256xf32> to vector<8x128xf32>
      %157 = vector.extract_strided_slice %78 {offsets = [0, 1], sizes = [8, 128], strides = [1, 1]} : vector<8x256xf32> to vector<8x128xf32>
      %158 = vector.extract_strided_slice %78 {offsets = [0, 0], sizes = [8, 128], strides = [1, 1]} : vector<8x256xf32> to vector<8x128xf32>
      %159 = tpu.concatenate %156, %157, %158 in 0 : vector<8x128xf32>, vector<8x128xf32>, vector<8x128xf32> -> vector<24x128xf32>
      %c4 = arith.constant 4 : index
      %c0_71 = arith.constant 0 : index
      %c0_72 = arith.constant 0 : index
      %160 = vector.load %arg3[%c4, %c0_71, %c0_72] : memref<12x4x24xbf16, #tpu.memory_space<vmem>>, vector<1x4x24xbf16>
      %161 = vector.shape_cast %160 : vector<1x4x24xbf16> to vector<4x24xbf16>
      %162 = arith.truncf %159 : vector<24x128xf32> to vector<24x128xbf16>
      %cst_73 = arith.constant dense<0.000000e+00> : vector<4x128xf32>
      %163 = tpu.matmul %161, %162, %cst_73 {dimension_numbers = #tpu.dot_dimension_numbers<[1], [0], [0], [1], [0, 0, 1, 1], [], []>} : vector<4x24xbf16>, vector<24x128xbf16>, vector<4x128xf32> -> vector<4x128xf32>
      %164 = arith.addf %155, %163 : vector<4x128xf32>
      %165 = vector.extract_strided_slice %103 {offsets = [0, 2], sizes = [8, 128], strides = [1, 1]} : vector<8x256xf32> to vector<8x128xf32>
      %166 = vector.extract_strided_slice %103 {offsets = [0, 1], sizes = [8, 128], strides = [1, 1]} : vector<8x256xf32> to vector<8x128xf32>
      %167 = vector.extract_strided_slice %103 {offsets = [0, 0], sizes = [8, 128], strides = [1, 1]} : vector<8x256xf32> to vector<8x128xf32>
      %168 = tpu.concatenate %165, %166, %167 in 0 : vector<8x128xf32>, vector<8x128xf32>, vector<8x128xf32> -> vector<24x128xf32>
      %c5 = arith.constant 5 : index
      %c0_74 = arith.constant 0 : index
      %c0_75 = arith.constant 0 : index
      %169 = vector.load %arg3[%c5, %c0_74, %c0_75] : memref<12x4x24xbf16, #tpu.memory_space<vmem>>, vector<1x4x24xbf16>
      %170 = vector.shape_cast %169 : vector<1x4x24xbf16> to vector<4x24xbf16>
      %171 = arith.truncf %168 : vector<24x128xf32> to vector<24x128xbf16>
      %cst_76 = arith.constant dense<0.000000e+00> : vector<4x128xf32>
      %172 = tpu.matmul %170, %171, %cst_76 {dimension_numbers = #tpu.dot_dimension_numbers<[1], [0], [0], [1], [0, 0, 1, 1], [], []>} : vector<4x24xbf16>, vector<24x128xbf16>, vector<4x128xf32> -> vector<4x128xf32>
      %173 = arith.addf %164, %172 : vector<4x128xf32>
      %174 = vector.broadcast %5 : vector<1x128xf32> to vector<4x128xf32>
      %175 = arith.mulf %173, %174 : vector<4x128xf32>
      %cst_77 = arith.constant dense<0.000000e+00> : vector<4xf32>
      %176 = vector.multi_reduction <add>, %175, %cst_77 [1] : vector<4x128xf32> to vector<4xf32>
      %177 = vector.shape_cast %176 : vector<4xf32> to vector<4x1xf32>
      %178 = arith.addf %136, %177 : vector<4x1xf32>
      %179 = arith.mulf %175, %175 : vector<4x128xf32>
      %cst_78 = arith.constant dense<0.000000e+00> : vector<4xf32>
      %180 = vector.multi_reduction <add>, %179, %cst_78 [1] : vector<4x128xf32> to vector<4xf32>
      %181 = vector.shape_cast %180 : vector<4xf32> to vector<4x1xf32>
      %182 = arith.addf %140, %181 : vector<4x1xf32>
      %183 = arith.truncf %175 : vector<4x128xf32> to vector<4x128xbf16>
      %c0_79 = arith.constant 0 : index
      %184 = arith.index_cast %arg8 : i32 to index
      %c4_80 = arith.constant 4 : index
      %c0_81 = arith.constant 0 : index
      %185 = vector.load %arg6[%c0_79, %184, %c4_80, %c0_81] : memref<1x29x16x128xbf16, #tpu.memory_space<vmem>>, vector<1x1x4x128xbf16>
      %186 = vector.shape_cast %185 : vector<1x1x4x128xbf16> to vector<4x128xbf16>
      %187 = vector.shape_cast %183 : vector<4x128xbf16> to vector<1x1x4x128xbf16>
      tpu.vector_store %arg6[%c0_79, %184, %c4_80, %c0_81], %187 {strides = array<i32>} : memref<1x29x16x128xbf16, #tpu.memory_space<vmem>>, vector<1x1x4x128xbf16>,
      scf.yield %178, %182 : vector<4x1xf32>, vector<4x1xf32>
    }
    %c29_i32_6 = arith.constant 29 : i32
    %c0_i32_7 = arith.constant 0 : i32
    %c29_i32_8 = arith.constant 29 : i32
    %20 = arith.addi %c0_i32_7, %c29_i32_8 : i32
    %c1_i32_9 = arith.constant 1 : i32
    %21:2 = scf.for %arg8 = %c0_i32_7 to %20 step %c1_i32_9 iter_args(%arg9 = %19#0, %arg10 = %19#1) -> (vector<4x1xf32>, vector<4x1xf32>)  : i32 {
      %28 = arith.addi %0, %arg8 : i32
      %c2_i32_19 = arith.constant 2 : i32
      %29 = arith.addi %28, %c2_i32_19 : i32
      %c0_i32_20 = arith.constant 0 : i32
      %30 = arith.addi %28, %c0_i32_20 : i32
      %c0_i32_21 = arith.constant 0 : i32
      %31 = arith.subi %30, %c0_i32_21 : i32
      %c0_22 = arith.constant 0 : index
      %32 = arith.index_cast %29 : i32 to index
      %c0_23 = arith.constant 0 : index
      %c0_24 = arith.constant 0 : index
      %33 = vector.load %arg2[%c0_22, %32, %c0_23, %c0_24] : memref<1x61x8x256xbf16, #tpu.memory_space<vmem>>, vector<1x1x8x256xbf16>
      %34 = vector.shape_cast %33 : vector<1x1x8x256xbf16> to vector<8x256xbf16>
      %35 = arith.extf %34 : vector<8x256xbf16> to vector<8x256xf32>
      %36 = vector.broadcast %13 : vector<8x1xf32> to vector<8x256xf32>
      %37 = arith.mulf %35, %36 : vector<8x256xf32>
      %38 = vector.broadcast %15 : vector<8x1xf32> to vector<8x256xf32>
      %39 = arith.addf %37, %38 : vector<8x256xf32>
      %cst_25 = arith.constant 0.000000e+00 : f32
      %40 = vector.broadcast %cst_25 : f32 to vector<8x256xf32>
      %41 = arith.cmpf oge, %39, %40 : vector<8x256xf32>
      %cst_26 = arith.constant 5.000000e-02 : f32
      %42 = vector.broadcast %cst_26 : f32 to vector<8x256xf32>
      %43 = arith.mulf %42, %39 : vector<8x256xf32>
      %44 = arith.select %41, %39, %43 : vector<8x256xi1>, vector<8x256xf32>
      %c0_i32_27 = arith.constant 0 : i32
      %45 = arith.cmpi sge, %31, %c0_i32_27 : i32
      %c57_i32 = arith.constant 57 : i32
      %46 = arith.cmpi slt, %31, %c57_i32 : i32
      %47 = arith.andi %45, %46 : i1
      %48 = vector.broadcast %47 : i1 to vector<1x256xi1>
      %49 = arith.andi %11, %48 : vector<1x256xi1>
      %cst_28 = arith.constant 0.000000e+00 : f32
      %50 = vector.shape_cast %49 : vector<1x256xi1> to vector<1x256xi1>
      %51 = vector.broadcast %50 : vector<1x256xi1> to vector<8x256xi1>
      %52 = vector.broadcast %cst_28 : f32 to vector<8x256xf32>
      %53 = arith.select %51, %44, %52 : vector<8x256xi1>, vector<8x256xf32>
      %c1_i32_29 = arith.constant 1 : i32
      %54 = arith.addi %28, %c1_i32_29 : i32
      %c0_i32_30 = arith.constant 0 : i32
      %55 = arith.addi %28, %c0_i32_30 : i32
      %c1_i32_31 = arith.constant 1 : i32
      %56 = arith.subi %55, %c1_i32_31 : i32
      %c0_32 = arith.constant 0 : index
      %57 = arith.index_cast %54 : i32 to index
      %c0_33 = arith.constant 0 : index
      %c0_34 = arith.constant 0 : index
      %58 = vector.load %arg2[%c0_32, %57, %c0_33, %c0_34] : memref<1x61x8x256xbf16, #tpu.memory_space<vmem>>, vector<1x1x8x256xbf16>
      %59 = vector.shape_cast %58 : vector<1x1x8x256xbf16> to vector<8x256xbf16>
      %60 = arith.extf %59 : vector<8x256xbf16> to vector<8x256xf32>
      %61 = vector.broadcast %13 : vector<8x1xf32> to vector<8x256xf32>
      %62 = arith.mulf %60, %61 : vector<8x256xf32>
      %63 = vector.broadcast %15 : vector<8x1xf32> to vector<8x256xf32>
      %64 = arith.addf %62, %63 : vector<8x256xf32>
      %cst_35 = arith.constant 0.000000e+00 : f32
      %65 = vector.broadcast %cst_35 : f32 to vector<8x256xf32>
      %66 = arith.cmpf oge, %64, %65 : vector<8x256xf32>
      %cst_36 = arith.constant 5.000000e-02 : f32
      %67 = vector.broadcast %cst_36 : f32 to vector<8x256xf32>
      %68 = arith.mulf %67, %64 : vector<8x256xf32>
      %69 = arith.select %66, %64, %68 : vector<8x256xi1>, vector<8x256xf32>
      %c0_i32_37 = arith.constant 0 : i32
      %70 = arith.cmpi sge, %56, %c0_i32_37 : i32
      %c57_i32_38 = arith.constant 57 : i32
      %71 = arith.cmpi slt, %56, %c57_i32_38 : i32
      %72 = arith.andi %70, %71 : i1
      %73 = vector.broadcast %72 : i1 to vector<1x256xi1>
      %74 = arith.andi %11, %73 : vector<1x256xi1>
      %cst_39 = arith.constant 0.000000e+00 : f32
      %75 = vector.shape_cast %74 : vector<1x256xi1> to vector<1x256xi1>
      %76 = vector.broadcast %75 : vector<1x256xi1> to vector<8x256xi1>
      %77 = vector.broadcast %cst_39 : f32 to vector<8x256xf32>
      %78 = arith.select %76, %69, %77 : vector<8x256xi1>, vector<8x256xf32>
      %c0_i32_40 = arith.constant 0 : i32
      %79 = arith.addi %28, %c0_i32_40 : i32
      %c0_i32_41 = arith.constant 0 : i32
      %80 = arith.addi %28, %c0_i32_41 : i32
      %c2_i32_42 = arith.constant 2 : i32
      %81 = arith.subi %80, %c2_i32_42 : i32
      %c0_43 = arith.constant 0 : index
      %82 = arith.index_cast %79 : i32 to index
      %c0_44 = arith.constant 0 : index
      %c0_45 = arith.constant 0 : index
      %83 = vector.load %arg2[%c0_43, %82, %c0_44, %c0_45] : memref<1x61x8x256xbf16, #tpu.memory_space<vmem>>, vector<1x1x8x256xbf16>
      %84 = vector.shape_cast %83 : vector<1x1x8x256xbf16> to vector<8x256xbf16>
      %85 = arith.extf %84 : vector<8x256xbf16> to vector<8x256xf32>
      %86 = vector.broadcast %13 : vector<8x1xf32> to vector<8x256xf32>
      %87 = arith.mulf %85, %86 : vector<8x256xf32>
      %88 = vector.broadcast %15 : vector<8x1xf32> to vector<8x256xf32>
      %89 = arith.addf %87, %88 : vector<8x256xf32>
      %cst_46 = arith.constant 0.000000e+00 : f32
      %90 = vector.broadcast %cst_46 : f32 to vector<8x256xf32>
      %91 = arith.cmpf oge, %89, %90 : vector<8x256xf32>
      %cst_47 = arith.constant 5.000000e-02 : f32
      %92 = vector.broadcast %cst_47 : f32 to vector<8x256xf32>
      %93 = arith.mulf %92, %89 : vector<8x256xf32>
      %94 = arith.select %91, %89, %93 : vector<8x256xi1>, vector<8x256xf32>
      %c0_i32_48 = arith.constant 0 : i32
      %95 = arith.cmpi sge, %81, %c0_i32_48 : i32
      %c57_i32_49 = arith.constant 57 : i32
      %96 = arith.cmpi slt, %81, %c57_i32_49 : i32
      %97 = arith.andi %95, %96 : i1
      %98 = vector.broadcast %97 : i1 to vector<1x256xi1>
      %99 = arith.andi %11, %98 : vector<1x256xi1>
      %cst_50 = arith.constant 0.000000e+00 : f32
      %100 = vector.shape_cast %99 : vector<1x256xi1> to vector<1x256xi1>
      %101 = vector.broadcast %100 : vector<1x256xi1> to vector<8x256xi1>
      %102 = vector.broadcast %cst_50 : f32 to vector<8x256xf32>
      %103 = arith.select %101, %94, %102 : vector<8x256xi1>, vector<8x256xf32>
      %cst_51 = arith.constant 0.000000e+00 : f32
      %104 = vector.broadcast %cst_51 : f32 to vector<4x128xf32>
      %105 = vector.extract_strided_slice %53 {offsets = [0, 3], sizes = [8, 128], strides = [1, 1]} : vector<8x256xf32> to vector<8x128xf32>
      %106 = vector.extract_strided_slice %53 {offsets = [0, 2], sizes = [8, 128], strides = [1, 1]} : vector<8x256xf32> to vector<8x128xf32>
      %107 = vector.extract_strided_slice %53 {offsets = [0, 1], sizes = [8, 128], strides = [1, 1]} : vector<8x256xf32> to vector<8x128xf32>
      %108 = tpu.concatenate %105, %106, %107 in 0 : vector<8x128xf32>, vector<8x128xf32>, vector<8x128xf32> -> vector<24x128xf32>
      %c6 = arith.constant 6 : index
      %c0_52 = arith.constant 0 : index
      %c0_53 = arith.constant 0 : index
      %109 = vector.load %arg3[%c6, %c0_52, %c0_53] : memref<12x4x24xbf16, #tpu.memory_space<vmem>>, vector<1x4x24xbf16>
      %110 = vector.shape_cast %109 : vector<1x4x24xbf16> to vector<4x24xbf16>
      %111 = arith.truncf %108 : vector<24x128xf32> to vector<24x128xbf16>
      %cst_54 = arith.constant dense<0.000000e+00> : vector<4x128xf32>
      %112 = tpu.matmul %110, %111, %cst_54 {dimension_numbers = #tpu.dot_dimension_numbers<[1], [0], [0], [1], [0, 0, 1, 1], [], []>} : vector<4x24xbf16>, vector<24x128xbf16>, vector<4x128xf32> -> vector<4x128xf32>
      %113 = arith.addf %104, %112 : vector<4x128xf32>
      %114 = vector.extract_strided_slice %78 {offsets = [0, 3], sizes = [8, 128], strides = [1, 1]} : vector<8x256xf32> to vector<8x128xf32>
      %115 = vector.extract_strided_slice %78 {offsets = [0, 2], sizes = [8, 128], strides = [1, 1]} : vector<8x256xf32> to vector<8x128xf32>
      %116 = vector.extract_strided_slice %78 {offsets = [0, 1], sizes = [8, 128], strides = [1, 1]} : vector<8x256xf32> to vector<8x128xf32>
      %117 = tpu.concatenate %114, %115, %116 in 0 : vector<8x128xf32>, vector<8x128xf32>, vector<8x128xf32> -> vector<24x128xf32>
      %c7 = arith.constant 7 : index
      %c0_55 = arith.constant 0 : index
      %c0_56 = arith.constant 0 : index
      %118 = vector.load %arg3[%c7, %c0_55, %c0_56] : memref<12x4x24xbf16, #tpu.memory_space<vmem>>, vector<1x4x24xbf16>
      %119 = vector.shape_cast %118 : vector<1x4x24xbf16> to vector<4x24xbf16>
      %120 = arith.truncf %117 : vector<24x128xf32> to vector<24x128xbf16>
      %cst_57 = arith.constant dense<0.000000e+00> : vector<4x128xf32>
      %121 = tpu.matmul %119, %120, %cst_57 {dimension_numbers = #tpu.dot_dimension_numbers<[1], [0], [0], [1], [0, 0, 1, 1], [], []>} : vector<4x24xbf16>, vector<24x128xbf16>, vector<4x128xf32> -> vector<4x128xf32>
      %122 = arith.addf %113, %121 : vector<4x128xf32>
      %123 = vector.extract_strided_slice %103 {offsets = [0, 3], sizes = [8, 128], strides = [1, 1]} : vector<8x256xf32> to vector<8x128xf32>
      %124 = vector.extract_strided_slice %103 {offsets = [0, 2], sizes = [8, 128], strides = [1, 1]} : vector<8x256xf32> to vector<8x128xf32>
      %125 = vector.extract_strided_slice %103 {offsets = [0, 1], sizes = [8, 128], strides = [1, 1]} : vector<8x256xf32> to vector<8x128xf32>
      %126 = tpu.concatenate %123, %124, %125 in 0 : vector<8x128xf32>, vector<8x128xf32>, vector<8x128xf32> -> vector<24x128xf32>
      %c8 = arith.constant 8 : index
      %c0_58 = arith.constant 0 : index
      %c0_59 = arith.constant 0 : index
      %127 = vector.load %arg3[%c8, %c0_58, %c0_59] : memref<12x4x24xbf16, #tpu.memory_space<vmem>>, vector<1x4x24xbf16>
      %128 = vector.shape_cast %127 : vector<1x4x24xbf16> to vector<4x24xbf16>
      %129 = arith.truncf %126 : vector<24x128xf32> to vector<24x128xbf16>
      %cst_60 = arith.constant dense<0.000000e+00> : vector<4x128xf32>
      %130 = tpu.matmul %128, %129, %cst_60 {dimension_numbers = #tpu.dot_dimension_numbers<[1], [0], [0], [1], [0, 0, 1, 1], [], []>} : vector<4x24xbf16>, vector<24x128xbf16>, vector<4x128xf32> -> vector<4x128xf32>
      %131 = arith.addf %122, %130 : vector<4x128xf32>
      %132 = vector.broadcast %5 : vector<1x128xf32> to vector<4x128xf32>
      %133 = arith.mulf %131, %132 : vector<4x128xf32>
      %cst_61 = arith.constant dense<0.000000e+00> : vector<4xf32>
      %134 = vector.multi_reduction <add>, %133, %cst_61 [1] : vector<4x128xf32> to vector<4xf32>
      %135 = vector.shape_cast %134 : vector<4xf32> to vector<4x1xf32>
      %136 = arith.addf %arg9, %135 : vector<4x1xf32>
      %137 = arith.mulf %133, %133 : vector<4x128xf32>
      %cst_62 = arith.constant dense<0.000000e+00> : vector<4xf32>
      %138 = vector.multi_reduction <add>, %137, %cst_62 [1] : vector<4x128xf32> to vector<4xf32>
      %139 = vector.shape_cast %138 : vector<4xf32> to vector<4x1xf32>
      %140 = arith.addf %arg10, %139 : vector<4x1xf32>
      %141 = arith.truncf %133 : vector<4x128xf32> to vector<4x128xbf16>
      %c0_63 = arith.constant 0 : index
      %142 = arith.index_cast %arg8 : i32 to index
      %c8_64 = arith.constant 8 : index
      %c0_65 = arith.constant 0 : index
      %143 = vector.load %arg6[%c0_63, %142, %c8_64, %c0_65] : memref<1x29x16x128xbf16, #tpu.memory_space<vmem>>, vector<1x1x4x128xbf16>
      %144 = vector.shape_cast %143 : vector<1x1x4x128xbf16> to vector<4x128xbf16>
      %145 = vector.shape_cast %141 : vector<4x128xbf16> to vector<1x1x4x128xbf16>
      tpu.vector_store %arg6[%c0_63, %142, %c8_64, %c0_65], %145 {strides = array<i32>} : memref<1x29x16x128xbf16, #tpu.memory_space<vmem>>, vector<1x1x4x128xbf16>,
      %cst_66 = arith.constant 0.000000e+00 : f32
      %146 = vector.broadcast %cst_66 : f32 to vector<4x128xf32>
      %147 = vector.extract_strided_slice %53 {offsets = [0, 2], sizes = [8, 128], strides = [1, 1]} : vector<8x256xf32> to vector<8x128xf32>
      %148 = vector.extract_strided_slice %53 {offsets = [0, 1], sizes = [8, 128], strides = [1, 1]} : vector<8x256xf32> to vector<8x128xf32>
      %149 = vector.extract_strided_slice %53 {offsets = [0, 0], sizes = [8, 128], strides = [1, 1]} : vector<8x256xf32> to vector<8x128xf32>
      %150 = tpu.concatenate %147, %148, %149 in 0 : vector<8x128xf32>, vector<8x128xf32>, vector<8x128xf32> -> vector<24x128xf32>
      %c9 = arith.constant 9 : index
      %c0_67 = arith.constant 0 : index
      %c0_68 = arith.constant 0 : index
      %151 = vector.load %arg3[%c9, %c0_67, %c0_68] : memref<12x4x24xbf16, #tpu.memory_space<vmem>>, vector<1x4x24xbf16>
      %152 = vector.shape_cast %151 : vector<1x4x24xbf16> to vector<4x24xbf16>
      %153 = arith.truncf %150 : vector<24x128xf32> to vector<24x128xbf16>
      %cst_69 = arith.constant dense<0.000000e+00> : vector<4x128xf32>
      %154 = tpu.matmul %152, %153, %cst_69 {dimension_numbers = #tpu.dot_dimension_numbers<[1], [0], [0], [1], [0, 0, 1, 1], [], []>} : vector<4x24xbf16>, vector<24x128xbf16>, vector<4x128xf32> -> vector<4x128xf32>
      %155 = arith.addf %146, %154 : vector<4x128xf32>
      %156 = vector.extract_strided_slice %78 {offsets = [0, 2], sizes = [8, 128], strides = [1, 1]} : vector<8x256xf32> to vector<8x128xf32>
      %157 = vector.extract_strided_slice %78 {offsets = [0, 1], sizes = [8, 128], strides = [1, 1]} : vector<8x256xf32> to vector<8x128xf32>
      %158 = vector.extract_strided_slice %78 {offsets = [0, 0], sizes = [8, 128], strides = [1, 1]} : vector<8x256xf32> to vector<8x128xf32>
      %159 = tpu.concatenate %156, %157, %158 in 0 : vector<8x128xf32>, vector<8x128xf32>, vector<8x128xf32> -> vector<24x128xf32>
      %c10 = arith.constant 10 : index
      %c0_70 = arith.constant 0 : index
      %c0_71 = arith.constant 0 : index
      %160 = vector.load %arg3[%c10, %c0_70, %c0_71] : memref<12x4x24xbf16, #tpu.memory_space<vmem>>, vector<1x4x24xbf16>
      %161 = vector.shape_cast %160 : vector<1x4x24xbf16> to vector<4x24xbf16>
      %162 = arith.truncf %159 : vector<24x128xf32> to vector<24x128xbf16>
      %cst_72 = arith.constant dense<0.000000e+00> : vector<4x128xf32>
      %163 = tpu.matmul %161, %162, %cst_72 {dimension_numbers = #tpu.dot_dimension_numbers<[1], [0], [0], [1], [0, 0, 1, 1], [], []>} : vector<4x24xbf16>, vector<24x128xbf16>, vector<4x128xf32> -> vector<4x128xf32>
      %164 = arith.addf %155, %163 : vector<4x128xf32>
      %165 = vector.extract_strided_slice %103 {offsets = [0, 2], sizes = [8, 128], strides = [1, 1]} : vector<8x256xf32> to vector<8x128xf32>
      %166 = vector.extract_strided_slice %103 {offsets = [0, 1], sizes = [8, 128], strides = [1, 1]} : vector<8x256xf32> to vector<8x128xf32>
      %167 = vector.extract_strided_slice %103 {offsets = [0, 0], sizes = [8, 128], strides = [1, 1]} : vector<8x256xf32> to vector<8x128xf32>
      %168 = tpu.concatenate %165, %166, %167 in 0 : vector<8x128xf32>, vector<8x128xf32>, vector<8x128xf32> -> vector<24x128xf32>
      %c11 = arith.constant 11 : index
      %c0_73 = arith.constant 0 : index
      %c0_74 = arith.constant 0 : index
      %169 = vector.load %arg3[%c11, %c0_73, %c0_74] : memref<12x4x24xbf16, #tpu.memory_space<vmem>>, vector<1x4x24xbf16>
      %170 = vector.shape_cast %169 : vector<1x4x24xbf16> to vector<4x24xbf16>
      %171 = arith.truncf %168 : vector<24x128xf32> to vector<24x128xbf16>
      %cst_75 = arith.constant dense<0.000000e+00> : vector<4x128xf32>
      %172 = tpu.matmul %170, %171, %cst_75 {dimension_numbers = #tpu.dot_dimension_numbers<[1], [0], [0], [1], [0, 0, 1, 1], [], []>} : vector<4x24xbf16>, vector<24x128xbf16>, vector<4x128xf32> -> vector<4x128xf32>
      %173 = arith.addf %164, %172 : vector<4x128xf32>
      %174 = vector.broadcast %5 : vector<1x128xf32> to vector<4x128xf32>
      %175 = arith.mulf %173, %174 : vector<4x128xf32>
      %cst_76 = arith.constant dense<0.000000e+00> : vector<4xf32>
      %176 = vector.multi_reduction <add>, %175, %cst_76 [1] : vector<4x128xf32> to vector<4xf32>
      %177 = vector.shape_cast %176 : vector<4xf32> to vector<4x1xf32>
      %178 = arith.addf %136, %177 : vector<4x1xf32>
      %179 = arith.mulf %175, %175 : vector<4x128xf32>
      %cst_77 = arith.constant dense<0.000000e+00> : vector<4xf32>
      %180 = vector.multi_reduction <add>, %179, %cst_77 [1] : vector<4x128xf32> to vector<4xf32>
      %181 = vector.shape_cast %180 : vector<4xf32> to vector<4x1xf32>
      %182 = arith.addf %140, %181 : vector<4x1xf32>
      %183 = arith.truncf %175 : vector<4x128xf32> to vector<4x128xbf16>
      %c0_78 = arith.constant 0 : index
      %184 = arith.index_cast %arg8 : i32 to index
      %c12 = arith.constant 12 : index
      %c0_79 = arith.constant 0 : index
      %185 = vector.load %arg6[%c0_78, %184, %c12, %c0_79] : memref<1x29x16x128xbf16, #tpu.memory_space<vmem>>, vector<1x1x4x128xbf16>
      %186 = vector.shape_cast %185 : vector<1x1x4x128xbf16> to vector<4x128xbf16>
      %187 = vector.shape_cast %183 : vector<4x128xbf16> to vector<1x1x4x128xbf16>
      tpu.vector_store %arg6[%c0_78, %184, %c12, %c0_79], %187 {strides = array<i32>} : memref<1x29x16x128xbf16, #tpu.memory_space<vmem>>, vector<1x1x4x128xbf16>,
      scf.yield %178, %182 : vector<4x1xf32>, vector<4x1xf32>
    }
    %c29_i32_10 = arith.constant 29 : i32
    %c0_11 = arith.constant 0 : index
    %c0_12 = arith.constant 0 : index
    %c0_13 = arith.constant 0 : index
    %c0_14 = arith.constant 0 : index
    %22 = vector.load %arg7[%c0_11, %c0_12, %c0_13, %c0_14] : memref<1x1x4x2xf32, #tpu.memory_space<vmem>>, vector<1x1x4x1xf32>
    %23 = vector.shape_cast %22 : vector<1x1x4x1xf32> to vector<4x1xf32>
    %24 = vector.shape_cast %21#0 : vector<4x1xf32> to vector<1x1x4x1xf32>
    tpu.vector_store %arg7[%c0_11, %c0_12, %c0_13, %c0_14], %24 {strides = array<i32>} : memref<1x1x4x2xf32, #tpu.memory_space<vmem>>, vector<1x1x4x1xf32>,
    %c0_15 = arith.constant 0 : index
    %c0_16 = arith.constant 0 : index
    %c0_17 = arith.constant 0 : index
    %c1_18 = arith.constant 1 : index
    %25 = vector.load %arg7[%c0_15, %c0_16, %c0_17, %c1_18] : memref<1x1x4x2xf32, #tpu.memory_space<vmem>>, vector<1x1x4x1xf32>
    %26 = vector.shape_cast %25 : vector<1x1x4x1xf32> to vector<4x1xf32>
    %27 = vector.shape_cast %21#1 : vector<4x1xf32> to vector<1x1x4x1xf32>
    tpu.vector_store %arg7[%c0_15, %c0_16, %c0_17, %c1_18], %27 {strides = array<i32>} : memref<1x1x4x2xf32, #tpu.memory_space<vmem>>, vector<1x1x4x1xf32>,
    return
  }
  func.func @transform_0(%arg0: i32, %arg1: i32) -> (i32, i32, i32, i32) {
    %c0_i32 = arith.constant 0 : i32
    %c0_i32_0 = arith.constant 0 : i32
    %c0_i32_1 = arith.constant 0 : i32
    %c0_i32_2 = arith.constant 0 : i32
    return %arg0, %c0_i32, %c0_i32_0, %c0_i32_1 : i32, i32, i32, i32
  }
  func.func @transform_1(%arg0: i32, %arg1: i32) -> (i32, i32, i32) {
    %c0_i32 = arith.constant 0 : i32
    %c0_i32_0 = arith.constant 0 : i32
    %c0_i32_1 = arith.constant 0 : i32
    %c0_i32_2 = arith.constant 0 : i32
    return %c0_i32, %c0_i32_0, %c0_i32_1 : i32, i32, i32
  }
  func.func @transform_2(%arg0: i32, %arg1: i32) -> (i32, i32) {
    %c0_i32 = arith.constant 0 : i32
    %c0_i32_0 = arith.constant 0 : i32
    %c0_i32_1 = arith.constant 0 : i32
    return %c0_i32, %c0_i32_0 : i32, i32
  }
  func.func @transform_3(%arg0: i32, %arg1: i32) -> (i32, i32, i32) {
    %c0_i32 = arith.constant 0 : i32
    %c0_i32_0 = arith.constant 0 : i32
    %c0_i32_1 = arith.constant 0 : i32
    %c0_i32_2 = arith.constant 0 : i32
    return %c0_i32, %c0_i32_0, %c0_i32_1 : i32, i32, i32
  }
  func.func @transform_4(%arg0: i32, %arg1: i32) -> (i32, i32, i32, i32) {
    %c0_i32 = arith.constant 0 : i32
    %c0_i32_0 = arith.constant 0 : i32
    %c0_i32_1 = arith.constant 0 : i32
    return %arg0, %arg1, %c0_i32, %c0_i32_0 : i32, i32, i32, i32
  }
  func.func @transform_5(%arg0: i32, %arg1: i32) -> (i32, i32, i32, i32) {
    %c0_i32 = arith.constant 0 : i32
    %c0_i32_0 = arith.constant 0 : i32
    %c0_i32_1 = arith.constant 0 : i32
    return %arg0, %arg1, %c0_i32, %c0_i32_0 : i32, i32, i32, i32
  }
}

module attributes {stable_mosaic.version = 11 : i64} {
  func.func @_deconv_poly_kernel(%arg0: i32, %arg1: i32, %arg2: memref<1x238x4x384xbf16, #tpu.memory_space<vmem>>, %arg3: memref<4x1x16xbf16, #tpu.memory_space<vmem>>, %arg4: memref<1x1xf32, #tpu.memory_space<vmem>>, %arg5: memref<2x4x1xf32, #tpu.memory_space<vmem>>, %arg6: memref<1x26x1x256xf32, #tpu.memory_space<vmem>>, %arg7: memref<1x1x1x2xf32, #tpu.memory_space<vmem>>) attributes {dimension_semantics = [#tpu.dimension_semantics<parallel>, #tpu.dimension_semantics<parallel>], iteration_bounds = array<i64: 2, 9>, scalar_prefetch = 0 : i64, scratch_operands = 0 : i64, tpu.core_type = #tpu.core_type<tc>, window_params = [{transform_indices = @transform_0, window_bounds = array<i64: 1, 238, 4, 384>}, {pipeline_mode = #tpu.pipeline_mode<synchronous>, transform_indices = @transform_1, window_bounds = array<i64: 4, 1, 16>}, {pipeline_mode = #tpu.pipeline_mode<synchronous>, transform_indices = @transform_2, window_bounds = array<i64: 1, 1>}, {pipeline_mode = #tpu.pipeline_mode<synchronous>, transform_indices = @transform_3, window_bounds = array<i64: 2, 4, 1>}, {transform_indices = @transform_4, window_bounds = array<i64: 1, 26, 1, 256>}, {transform_indices = @transform_5, window_bounds = array<i64: 1, 1, 1, 2>}]} {
    %c26_i32 = arith.constant 26 : i32
    %0 = arith.muli %arg1, %c26_i32 : i32
    %1 = tpu.iota {dimensions = array<i32: 1>} : vector<1x256xi32>
    %c234_i32 = arith.constant 234 : i32
    %2 = vector.broadcast %c234_i32 : i32 to vector<1x256xi32>
    %3 = arith.cmpi slt, %1, %2 : vector<1x256xi32>
    %4 = arith.extui %3 : vector<1x256xi1> to vector<1x256xi32>
    %5 = arith.sitofp %4 : vector<1x256xi32> to vector<1x256xf32>
    %6 = tpu.iota {dimensions = array<i32: 1>} : vector<1x384xi32>
    %c3_i32 = arith.constant 3 : i32
    %7 = vector.broadcast %c3_i32 : i32 to vector<1x384xi32>
    %8 = arith.cmpi sge, %6, %7 : vector<1x384xi32>
    %c236_i32 = arith.constant 236 : i32
    %9 = vector.broadcast %c236_i32 : i32 to vector<1x384xi32>
    %10 = arith.cmpi slt, %6, %9 : vector<1x384xi32>
    %11 = arith.andi %8, %10 : vector<1x384xi1>
    %c0 = arith.constant 0 : index
    %c0_0 = arith.constant 0 : index
    %c0_1 = arith.constant 0 : index
    %12 = vector.load %arg5[%c0, %c0_0, %c0_1] : memref<2x4x1xf32, #tpu.memory_space<vmem>>, vector<1x4x1xf32>
    %13 = vector.shape_cast %12 : vector<1x4x1xf32> to vector<4x1xf32>
    %c1 = arith.constant 1 : index
    %c0_2 = arith.constant 0 : index
    %c0_3 = arith.constant 0 : index
    %14 = vector.load %arg5[%c1, %c0_2, %c0_3] : memref<2x4x1xf32, #tpu.memory_space<vmem>>, vector<1x4x1xf32>
    %15 = vector.shape_cast %14 : vector<1x4x1xf32> to vector<4x1xf32>
    %cst = arith.constant 0.000000e+00 : f32
    %16 = vector.broadcast %cst : f32 to vector<1x256xf32>
    %c0_4 = arith.constant 0 : index
    %c0_5 = arith.constant 0 : index
    %17 = vector.load %arg4[%c0_4, %c0_5] : memref<1x1xf32, #tpu.memory_space<vmem>>, vector<1x1xf32>
    %18 = vector.broadcast %17 : vector<1x1xf32> to vector<1x256xf32>
    %19 = arith.addf %16, %18 : vector<1x256xf32>
    %cst_6 = arith.constant 0.000000e+00 : f32
    %20 = vector.broadcast %cst_6 : f32 to vector<1x1xf32>
    %cst_7 = arith.constant 0.000000e+00 : f32
    %21 = vector.broadcast %cst_7 : f32 to vector<1x1xf32>
    %c0_i32 = arith.constant 0 : i32
    %c26_i32_8 = arith.constant 26 : i32
    %22 = arith.addi %c0_i32, %c26_i32_8 : i32
    %c1_i32 = arith.constant 1 : i32
    %23:2 = scf.for %arg8 = %c0_i32 to %22 step %c1_i32 iter_args(%arg9 = %20, %arg10 = %21) -> (vector<1x1xf32>, vector<1x1xf32>)  : i32 {
      %30 = arith.addi %0, %arg8 : i32
      %c4_i32 = arith.constant 4 : i32
      %31 = arith.addi %30, %c4_i32 : i32
      %c1_i32_18 = arith.constant 1 : i32
      %32 = arith.addi %30, %c1_i32_18 : i32
      %c0_i32_19 = arith.constant 0 : i32
      %33 = arith.subi %32, %c0_i32_19 : i32
      %c0_20 = arith.constant 0 : index
      %34 = arith.index_cast %31 : i32 to index
      %c0_21 = arith.constant 0 : index
      %c0_22 = arith.constant 0 : index
      %35 = vector.load %arg2[%c0_20, %34, %c0_21, %c0_22] : memref<1x238x4x384xbf16, #tpu.memory_space<vmem>>, vector<1x1x4x384xbf16>
      %36 = vector.shape_cast %35 : vector<1x1x4x384xbf16> to vector<4x384xbf16>
      %37 = arith.extf %36 : vector<4x384xbf16> to vector<4x384xf32>
      %38 = vector.broadcast %13 : vector<4x1xf32> to vector<4x384xf32>
      %39 = arith.mulf %37, %38 : vector<4x384xf32>
      %40 = vector.broadcast %15 : vector<4x1xf32> to vector<4x384xf32>
      %41 = arith.addf %39, %40 : vector<4x384xf32>
      %cst_23 = arith.constant 0.000000e+00 : f32
      %42 = vector.broadcast %cst_23 : f32 to vector<4x384xf32>
      %43 = arith.cmpf oge, %41, %42 : vector<4x384xf32>
      %cst_24 = arith.constant 5.000000e-02 : f32
      %44 = vector.broadcast %cst_24 : f32 to vector<4x384xf32>
      %45 = arith.mulf %44, %41 : vector<4x384xf32>
      %46 = arith.select %43, %41, %45 : vector<4x384xi1>, vector<4x384xf32>
      %c0_i32_25 = arith.constant 0 : i32
      %47 = arith.cmpi sge, %33, %c0_i32_25 : i32
      %c233_i32 = arith.constant 233 : i32
      %48 = arith.cmpi slt, %33, %c233_i32 : i32
      %49 = arith.andi %47, %48 : i1
      %50 = vector.broadcast %49 : i1 to vector<1x384xi1>
      %51 = arith.andi %11, %50 : vector<1x384xi1>
      %cst_26 = arith.constant 0.000000e+00 : f32
      %52 = vector.shape_cast %51 : vector<1x384xi1> to vector<1x384xi1>
      %53 = vector.broadcast %52 : vector<1x384xi1> to vector<4x384xi1>
      %54 = vector.broadcast %cst_26 : f32 to vector<4x384xf32>
      %55 = arith.select %53, %46, %54 : vector<4x384xi1>, vector<4x384xf32>
      %c3_i32_27 = arith.constant 3 : i32
      %56 = arith.addi %30, %c3_i32_27 : i32
      %c1_i32_28 = arith.constant 1 : i32
      %57 = arith.addi %30, %c1_i32_28 : i32
      %c1_i32_29 = arith.constant 1 : i32
      %58 = arith.subi %57, %c1_i32_29 : i32
      %c0_30 = arith.constant 0 : index
      %59 = arith.index_cast %56 : i32 to index
      %c0_31 = arith.constant 0 : index
      %c0_32 = arith.constant 0 : index
      %60 = vector.load %arg2[%c0_30, %59, %c0_31, %c0_32] : memref<1x238x4x384xbf16, #tpu.memory_space<vmem>>, vector<1x1x4x384xbf16>
      %61 = vector.shape_cast %60 : vector<1x1x4x384xbf16> to vector<4x384xbf16>
      %62 = arith.extf %61 : vector<4x384xbf16> to vector<4x384xf32>
      %63 = vector.broadcast %13 : vector<4x1xf32> to vector<4x384xf32>
      %64 = arith.mulf %62, %63 : vector<4x384xf32>
      %65 = vector.broadcast %15 : vector<4x1xf32> to vector<4x384xf32>
      %66 = arith.addf %64, %65 : vector<4x384xf32>
      %cst_33 = arith.constant 0.000000e+00 : f32
      %67 = vector.broadcast %cst_33 : f32 to vector<4x384xf32>
      %68 = arith.cmpf oge, %66, %67 : vector<4x384xf32>
      %cst_34 = arith.constant 5.000000e-02 : f32
      %69 = vector.broadcast %cst_34 : f32 to vector<4x384xf32>
      %70 = arith.mulf %69, %66 : vector<4x384xf32>
      %71 = arith.select %68, %66, %70 : vector<4x384xi1>, vector<4x384xf32>
      %c0_i32_35 = arith.constant 0 : i32
      %72 = arith.cmpi sge, %58, %c0_i32_35 : i32
      %c233_i32_36 = arith.constant 233 : i32
      %73 = arith.cmpi slt, %58, %c233_i32_36 : i32
      %74 = arith.andi %72, %73 : i1
      %75 = vector.broadcast %74 : i1 to vector<1x384xi1>
      %76 = arith.andi %11, %75 : vector<1x384xi1>
      %cst_37 = arith.constant 0.000000e+00 : f32
      %77 = vector.shape_cast %76 : vector<1x384xi1> to vector<1x384xi1>
      %78 = vector.broadcast %77 : vector<1x384xi1> to vector<4x384xi1>
      %79 = vector.broadcast %cst_37 : f32 to vector<4x384xf32>
      %80 = arith.select %78, %71, %79 : vector<4x384xi1>, vector<4x384xf32>
      %c2_i32 = arith.constant 2 : i32
      %81 = arith.addi %30, %c2_i32 : i32
      %c1_i32_38 = arith.constant 1 : i32
      %82 = arith.addi %30, %c1_i32_38 : i32
      %c2_i32_39 = arith.constant 2 : i32
      %83 = arith.subi %82, %c2_i32_39 : i32
      %c0_40 = arith.constant 0 : index
      %84 = arith.index_cast %81 : i32 to index
      %c0_41 = arith.constant 0 : index
      %c0_42 = arith.constant 0 : index
      %85 = vector.load %arg2[%c0_40, %84, %c0_41, %c0_42] : memref<1x238x4x384xbf16, #tpu.memory_space<vmem>>, vector<1x1x4x384xbf16>
      %86 = vector.shape_cast %85 : vector<1x1x4x384xbf16> to vector<4x384xbf16>
      %87 = arith.extf %86 : vector<4x384xbf16> to vector<4x384xf32>
      %88 = vector.broadcast %13 : vector<4x1xf32> to vector<4x384xf32>
      %89 = arith.mulf %87, %88 : vector<4x384xf32>
      %90 = vector.broadcast %15 : vector<4x1xf32> to vector<4x384xf32>
      %91 = arith.addf %89, %90 : vector<4x384xf32>
      %cst_43 = arith.constant 0.000000e+00 : f32
      %92 = vector.broadcast %cst_43 : f32 to vector<4x384xf32>
      %93 = arith.cmpf oge, %91, %92 : vector<4x384xf32>
      %cst_44 = arith.constant 5.000000e-02 : f32
      %94 = vector.broadcast %cst_44 : f32 to vector<4x384xf32>
      %95 = arith.mulf %94, %91 : vector<4x384xf32>
      %96 = arith.select %93, %91, %95 : vector<4x384xi1>, vector<4x384xf32>
      %c0_i32_45 = arith.constant 0 : i32
      %97 = arith.cmpi sge, %83, %c0_i32_45 : i32
      %c233_i32_46 = arith.constant 233 : i32
      %98 = arith.cmpi slt, %83, %c233_i32_46 : i32
      %99 = arith.andi %97, %98 : i1
      %100 = vector.broadcast %99 : i1 to vector<1x384xi1>
      %101 = arith.andi %11, %100 : vector<1x384xi1>
      %cst_47 = arith.constant 0.000000e+00 : f32
      %102 = vector.shape_cast %101 : vector<1x384xi1> to vector<1x384xi1>
      %103 = vector.broadcast %102 : vector<1x384xi1> to vector<4x384xi1>
      %104 = vector.broadcast %cst_47 : f32 to vector<4x384xf32>
      %105 = arith.select %103, %96, %104 : vector<4x384xi1>, vector<4x384xf32>
      %c1_i32_48 = arith.constant 1 : i32
      %106 = arith.addi %30, %c1_i32_48 : i32
      %c1_i32_49 = arith.constant 1 : i32
      %107 = arith.addi %30, %c1_i32_49 : i32
      %c3_i32_50 = arith.constant 3 : i32
      %108 = arith.subi %107, %c3_i32_50 : i32
      %c0_51 = arith.constant 0 : index
      %109 = arith.index_cast %106 : i32 to index
      %c0_52 = arith.constant 0 : index
      %c0_53 = arith.constant 0 : index
      %110 = vector.load %arg2[%c0_51, %109, %c0_52, %c0_53] : memref<1x238x4x384xbf16, #tpu.memory_space<vmem>>, vector<1x1x4x384xbf16>
      %111 = vector.shape_cast %110 : vector<1x1x4x384xbf16> to vector<4x384xbf16>
      %112 = arith.extf %111 : vector<4x384xbf16> to vector<4x384xf32>
      %113 = vector.broadcast %13 : vector<4x1xf32> to vector<4x384xf32>
      %114 = arith.mulf %112, %113 : vector<4x384xf32>
      %115 = vector.broadcast %15 : vector<4x1xf32> to vector<4x384xf32>
      %116 = arith.addf %114, %115 : vector<4x384xf32>
      %cst_54 = arith.constant 0.000000e+00 : f32
      %117 = vector.broadcast %cst_54 : f32 to vector<4x384xf32>
      %118 = arith.cmpf oge, %116, %117 : vector<4x384xf32>
      %cst_55 = arith.constant 5.000000e-02 : f32
      %119 = vector.broadcast %cst_55 : f32 to vector<4x384xf32>
      %120 = arith.mulf %119, %116 : vector<4x384xf32>
      %121 = arith.select %118, %116, %120 : vector<4x384xi1>, vector<4x384xf32>
      %c0_i32_56 = arith.constant 0 : i32
      %122 = arith.cmpi sge, %108, %c0_i32_56 : i32
      %c233_i32_57 = arith.constant 233 : i32
      %123 = arith.cmpi slt, %108, %c233_i32_57 : i32
      %124 = arith.andi %122, %123 : i1
      %125 = vector.broadcast %124 : i1 to vector<1x384xi1>
      %126 = arith.andi %11, %125 : vector<1x384xi1>
      %cst_58 = arith.constant 0.000000e+00 : f32
      %127 = vector.shape_cast %126 : vector<1x384xi1> to vector<1x384xi1>
      %128 = vector.broadcast %127 : vector<1x384xi1> to vector<4x384xi1>
      %129 = vector.broadcast %cst_58 : f32 to vector<4x384xf32>
      %130 = arith.select %128, %121, %129 : vector<4x384xi1>, vector<4x384xf32>
      %cst_59 = arith.constant 0.000000e+00 : f32
      %131 = vector.broadcast %cst_59 : f32 to vector<1x256xf32>
      %132 = vector.extract_strided_slice %55 {offsets = [0, 4], sizes = [4, 256], strides = [1, 1]} : vector<4x384xf32> to vector<4x256xf32>
      %133 = vector.extract_strided_slice %55 {offsets = [0, 3], sizes = [4, 256], strides = [1, 1]} : vector<4x384xf32> to vector<4x256xf32>
      %134 = vector.extract_strided_slice %55 {offsets = [0, 2], sizes = [4, 256], strides = [1, 1]} : vector<4x384xf32> to vector<4x256xf32>
      %135 = vector.extract_strided_slice %55 {offsets = [0, 1], sizes = [4, 256], strides = [1, 1]} : vector<4x384xf32> to vector<4x256xf32>
      %136 = tpu.concatenate %132, %133, %134, %135 in 0 : vector<4x256xf32>, vector<4x256xf32>, vector<4x256xf32>, vector<4x256xf32> -> vector<16x256xf32>
      %c0_60 = arith.constant 0 : index
      %c0_61 = arith.constant 0 : index
      %c0_62 = arith.constant 0 : index
      %137 = vector.load %arg3[%c0_60, %c0_61, %c0_62] : memref<4x1x16xbf16, #tpu.memory_space<vmem>>, vector<1x1x16xbf16>
      %138 = vector.shape_cast %137 : vector<1x1x16xbf16> to vector<1x16xbf16>
      %139 = arith.truncf %136 : vector<16x256xf32> to vector<16x256xbf16>
      %cst_63 = arith.constant dense<0.000000e+00> : vector<1x256xf32>
      %140 = tpu.matmul %138, %139, %cst_63 {dimension_numbers = #tpu.dot_dimension_numbers<[1], [0], [0], [1], [0, 0, 1, 1], [], []>} : vector<1x16xbf16>, vector<16x256xbf16>, vector<1x256xf32> -> vector<1x256xf32>
      %141 = arith.addf %131, %140 : vector<1x256xf32>
      %142 = vector.extract_strided_slice %80 {offsets = [0, 4], sizes = [4, 256], strides = [1, 1]} : vector<4x384xf32> to vector<4x256xf32>
      %143 = vector.extract_strided_slice %80 {offsets = [0, 3], sizes = [4, 256], strides = [1, 1]} : vector<4x384xf32> to vector<4x256xf32>
      %144 = vector.extract_strided_slice %80 {offsets = [0, 2], sizes = [4, 256], strides = [1, 1]} : vector<4x384xf32> to vector<4x256xf32>
      %145 = vector.extract_strided_slice %80 {offsets = [0, 1], sizes = [4, 256], strides = [1, 1]} : vector<4x384xf32> to vector<4x256xf32>
      %146 = tpu.concatenate %142, %143, %144, %145 in 0 : vector<4x256xf32>, vector<4x256xf32>, vector<4x256xf32>, vector<4x256xf32> -> vector<16x256xf32>
      %c1_64 = arith.constant 1 : index
      %c0_65 = arith.constant 0 : index
      %c0_66 = arith.constant 0 : index
      %147 = vector.load %arg3[%c1_64, %c0_65, %c0_66] : memref<4x1x16xbf16, #tpu.memory_space<vmem>>, vector<1x1x16xbf16>
      %148 = vector.shape_cast %147 : vector<1x1x16xbf16> to vector<1x16xbf16>
      %149 = arith.truncf %146 : vector<16x256xf32> to vector<16x256xbf16>
      %cst_67 = arith.constant dense<0.000000e+00> : vector<1x256xf32>
      %150 = tpu.matmul %148, %149, %cst_67 {dimension_numbers = #tpu.dot_dimension_numbers<[1], [0], [0], [1], [0, 0, 1, 1], [], []>} : vector<1x16xbf16>, vector<16x256xbf16>, vector<1x256xf32> -> vector<1x256xf32>
      %151 = arith.addf %141, %150 : vector<1x256xf32>
      %152 = vector.extract_strided_slice %105 {offsets = [0, 4], sizes = [4, 256], strides = [1, 1]} : vector<4x384xf32> to vector<4x256xf32>
      %153 = vector.extract_strided_slice %105 {offsets = [0, 3], sizes = [4, 256], strides = [1, 1]} : vector<4x384xf32> to vector<4x256xf32>
      %154 = vector.extract_strided_slice %105 {offsets = [0, 2], sizes = [4, 256], strides = [1, 1]} : vector<4x384xf32> to vector<4x256xf32>
      %155 = vector.extract_strided_slice %105 {offsets = [0, 1], sizes = [4, 256], strides = [1, 1]} : vector<4x384xf32> to vector<4x256xf32>
      %156 = tpu.concatenate %152, %153, %154, %155 in 0 : vector<4x256xf32>, vector<4x256xf32>, vector<4x256xf32>, vector<4x256xf32> -> vector<16x256xf32>
      %c2 = arith.constant 2 : index
      %c0_68 = arith.constant 0 : index
      %c0_69 = arith.constant 0 : index
      %157 = vector.load %arg3[%c2, %c0_68, %c0_69] : memref<4x1x16xbf16, #tpu.memory_space<vmem>>, vector<1x1x16xbf16>
      %158 = vector.shape_cast %157 : vector<1x1x16xbf16> to vector<1x16xbf16>
      %159 = arith.truncf %156 : vector<16x256xf32> to vector<16x256xbf16>
      %cst_70 = arith.constant dense<0.000000e+00> : vector<1x256xf32>
      %160 = tpu.matmul %158, %159, %cst_70 {dimension_numbers = #tpu.dot_dimension_numbers<[1], [0], [0], [1], [0, 0, 1, 1], [], []>} : vector<1x16xbf16>, vector<16x256xbf16>, vector<1x256xf32> -> vector<1x256xf32>
      %161 = arith.addf %151, %160 : vector<1x256xf32>
      %162 = vector.extract_strided_slice %130 {offsets = [0, 4], sizes = [4, 256], strides = [1, 1]} : vector<4x384xf32> to vector<4x256xf32>
      %163 = vector.extract_strided_slice %130 {offsets = [0, 3], sizes = [4, 256], strides = [1, 1]} : vector<4x384xf32> to vector<4x256xf32>
      %164 = vector.extract_strided_slice %130 {offsets = [0, 2], sizes = [4, 256], strides = [1, 1]} : vector<4x384xf32> to vector<4x256xf32>
      %165 = vector.extract_strided_slice %130 {offsets = [0, 1], sizes = [4, 256], strides = [1, 1]} : vector<4x384xf32> to vector<4x256xf32>
      %166 = tpu.concatenate %162, %163, %164, %165 in 0 : vector<4x256xf32>, vector<4x256xf32>, vector<4x256xf32>, vector<4x256xf32> -> vector<16x256xf32>
      %c3 = arith.constant 3 : index
      %c0_71 = arith.constant 0 : index
      %c0_72 = arith.constant 0 : index
      %167 = vector.load %arg3[%c3, %c0_71, %c0_72] : memref<4x1x16xbf16, #tpu.memory_space<vmem>>, vector<1x1x16xbf16>
      %168 = vector.shape_cast %167 : vector<1x1x16xbf16> to vector<1x16xbf16>
      %169 = arith.truncf %166 : vector<16x256xf32> to vector<16x256xbf16>
      %cst_73 = arith.constant dense<0.000000e+00> : vector<1x256xf32>
      %170 = tpu.matmul %168, %169, %cst_73 {dimension_numbers = #tpu.dot_dimension_numbers<[1], [0], [0], [1], [0, 0, 1, 1], [], []>} : vector<1x16xbf16>, vector<16x256xbf16>, vector<1x256xf32> -> vector<1x256xf32>
      %171 = arith.addf %161, %170 : vector<1x256xf32>
      %172 = arith.mulf %171, %5 : vector<1x256xf32>
      %cst_74 = arith.constant dense<0.000000e+00> : vector<1xf32>
      %173 = vector.multi_reduction <add>, %172, %cst_74 [1] : vector<1x256xf32> to vector<1xf32>
      %174 = vector.shape_cast %173 : vector<1xf32> to vector<1x1xf32>
      %175 = arith.addf %arg9, %174 : vector<1x1xf32>
      %176 = arith.mulf %172, %172 : vector<1x256xf32>
      %cst_75 = arith.constant dense<0.000000e+00> : vector<1xf32>
      %177 = vector.multi_reduction <add>, %176, %cst_75 [1] : vector<1x256xf32> to vector<1xf32>
      %178 = vector.shape_cast %177 : vector<1xf32> to vector<1x1xf32>
      %179 = arith.addf %arg10, %178 : vector<1x1xf32>
      %180 = arith.addf %172, %19 : vector<1x256xf32>
      %cst_76 = arith.constant 0.000000e+00 : f32
      %181 = vector.broadcast %cst_76 : f32 to vector<1x256xf32>
      %182 = arith.cmpf oge, %180, %181 : vector<1x256xf32>
      %cst_77 = arith.constant 5.000000e-02 : f32
      %183 = vector.broadcast %cst_77 : f32 to vector<1x256xf32>
      %184 = arith.mulf %183, %180 : vector<1x256xf32>
      %185 = arith.select %182, %180, %184 : vector<1x256xi1>, vector<1x256xf32>
      %c0_78 = arith.constant 0 : index
      %186 = arith.index_cast %arg8 : i32 to index
      %c0_79 = arith.constant 0 : index
      %c0_80 = arith.constant 0 : index
      %187 = vector.load %arg6[%c0_78, %186, %c0_79, %c0_80] : memref<1x26x1x256xf32, #tpu.memory_space<vmem>>, vector<1x1x1x256xf32>
      %188 = vector.shape_cast %187 : vector<1x1x1x256xf32> to vector<1x256xf32>
      %189 = vector.shape_cast %185 : vector<1x256xf32> to vector<1x1x1x256xf32>
      tpu.vector_store %arg6[%c0_78, %186, %c0_79, %c0_80], %189 {strides = array<i32>} : memref<1x26x1x256xf32, #tpu.memory_space<vmem>>, vector<1x1x1x256xf32>,
      scf.yield %175, %179 : vector<1x1xf32>, vector<1x1xf32>
    }
    %c26_i32_9 = arith.constant 26 : i32
    %c0_10 = arith.constant 0 : index
    %c0_11 = arith.constant 0 : index
    %c0_12 = arith.constant 0 : index
    %c0_13 = arith.constant 0 : index
    %24 = vector.load %arg7[%c0_10, %c0_11, %c0_12, %c0_13] : memref<1x1x1x2xf32, #tpu.memory_space<vmem>>, vector<1x1x1x1xf32>
    %25 = vector.shape_cast %24 : vector<1x1x1x1xf32> to vector<1x1xf32>
    %26 = vector.shape_cast %23#0 : vector<1x1xf32> to vector<1x1x1x1xf32>
    tpu.vector_store %arg7[%c0_10, %c0_11, %c0_12, %c0_13], %26 {strides = array<i32>} : memref<1x1x1x2xf32, #tpu.memory_space<vmem>>, vector<1x1x1x1xf32>,
    %c0_14 = arith.constant 0 : index
    %c0_15 = arith.constant 0 : index
    %c0_16 = arith.constant 0 : index
    %c1_17 = arith.constant 1 : index
    %27 = vector.load %arg7[%c0_14, %c0_15, %c0_16, %c1_17] : memref<1x1x1x2xf32, #tpu.memory_space<vmem>>, vector<1x1x1x1xf32>
    %28 = vector.shape_cast %27 : vector<1x1x1x1xf32> to vector<1x1xf32>
    %29 = vector.shape_cast %23#1 : vector<1x1xf32> to vector<1x1x1x1xf32>
    tpu.vector_store %arg7[%c0_14, %c0_15, %c0_16, %c1_17], %29 {strides = array<i32>} : memref<1x1x1x2xf32, #tpu.memory_space<vmem>>, vector<1x1x1x1xf32>,
    return
  }
  func.func @transform_0(%arg0: i32, %arg1: i32) -> (i32, i32, i32, i32) {
    %c0_i32 = arith.constant 0 : i32
    %c0_i32_0 = arith.constant 0 : i32
    %c0_i32_1 = arith.constant 0 : i32
    %c0_i32_2 = arith.constant 0 : i32
    return %arg0, %c0_i32, %c0_i32_0, %c0_i32_1 : i32, i32, i32, i32
  }
  func.func @transform_1(%arg0: i32, %arg1: i32) -> (i32, i32, i32) {
    %c0_i32 = arith.constant 0 : i32
    %c0_i32_0 = arith.constant 0 : i32
    %c0_i32_1 = arith.constant 0 : i32
    %c0_i32_2 = arith.constant 0 : i32
    return %c0_i32, %c0_i32_0, %c0_i32_1 : i32, i32, i32
  }
  func.func @transform_2(%arg0: i32, %arg1: i32) -> (i32, i32) {
    %c0_i32 = arith.constant 0 : i32
    %c0_i32_0 = arith.constant 0 : i32
    %c0_i32_1 = arith.constant 0 : i32
    return %c0_i32, %c0_i32_0 : i32, i32
  }
  func.func @transform_3(%arg0: i32, %arg1: i32) -> (i32, i32, i32) {
    %c0_i32 = arith.constant 0 : i32
    %c0_i32_0 = arith.constant 0 : i32
    %c0_i32_1 = arith.constant 0 : i32
    %c0_i32_2 = arith.constant 0 : i32
    return %c0_i32, %c0_i32_0, %c0_i32_1 : i32, i32, i32
  }
  func.func @transform_4(%arg0: i32, %arg1: i32) -> (i32, i32, i32, i32) {
    %c0_i32 = arith.constant 0 : i32
    %c0_i32_0 = arith.constant 0 : i32
    %c0_i32_1 = arith.constant 0 : i32
    return %arg0, %arg1, %c0_i32, %c0_i32_0 : i32, i32, i32, i32
  }
  func.func @transform_5(%arg0: i32, %arg1: i32) -> (i32, i32, i32, i32) {
    %c0_i32 = arith.constant 0 : i32
    %c0_i32_0 = arith.constant 0 : i32
    %c0_i32_1 = arith.constant 0 : i32
    return %arg0, %arg1, %c0_i32, %c0_i32_0 : i32, i32, i32, i32
  }
}

</mosaic_0001>

<bundles_post_ra>
// kernel: decoder_conv_variational_forward.6
= control target key start
LH: loop header
LB: loop body
LE: loop exit
PB: predicated region body
PF: predicated region fallthrough
CT: control target
= control target key end

     0   :  { %8 = vsyncpa [#allocation3], 0  ;;  %s348_s0 = inlined_call_operand.hbm [shape: f32[2,272], index: 0, kind: input, shape index: {}]   ;;  %s349_s1 = inlined_call_operand.vmem [shape: f32[272,32], index: 1, kind: input, shape index: {}]   ;;  %s350_s2 = inlined_call_operand.hbm [shape: f32[1,32], index: 2, kind: input, shape index: {}]   ;;  %s351_s3 = inlined_call_operand.vmem [shape: f32[2,32], index: 3, kind: output, shape index: {}]  }
   0x1   :  { %s15_s14 = sshll.u32 %s348_s0, 4  ;;  %s16_s14 = int_to_ptr.hbm [resolvable:$true] %s15_s14 }
   0x2   :  { %9 = vsyncpa [#allocation5], 0  ;;  %s215_s15 = smov [#allocation2]   ;;  %s28_s19 = sshll.u32 %s350_s2, 4  ;;  %s29_s19 = int_to_ptr.hbm [resolvable:$true] %s28_s19 }
   0x3   :  { %s17_s16 = sshll.u32 %s215_s15, 4  ;;  %s216_s20 = smov [#allocation4]   ;;  %s18_s16 = int_to_ptr.vmem [resolvable:$true] %s17_s16 }
   0x4   :  { %20 = dma.hbm_to_vmem [thread:$0]  %s16_s14, 96, %s18_s16, [#allocation3]  }
   0x5   :  { %s30_s21 = sshll.u32 %s216_s20, 4  ;;  %s31_s21 = int_to_ptr.vmem [resolvable:$true] %s30_s21 }
   0x6   :  { %33 = dma.hbm_to_vmem [thread:$0]  %s29_s19, 16, %s31_s21, [#allocation5]  }
   0x7   :  { %211 = dma.done.wait [#allocation3], 96  }
   0x8   :  { %212 = vsyncadd [#allocation3], 4294967200 }
   0x9   :  { %213 = dma.done.wait [#allocation5], 16  }
   0xa   :  { %214 = vsyncadd [#allocation5], 4294967280  ;;  %v58_v0 = vld [vmem:[%s349_s1 + $0x78] sm:$0xff]  ;;  %v57_v1 = vld [vmem:[%s349_s1 + $0x70] sm:$0xff]  ;;  %vm88_vm0 = vcmask 130048   ;;  %vm151_vm1 = vcmask 254976  }
   0xb   :  { %v74_v2 = vld [vmem:[%s349_s1 + $0xf8] sm:$0xff]  ;;  %91 = vmatpush.msra.mxu0 %v58_v0  ;;  %v73_v3 = vld [vmem:[%s349_s1 + $0xf0] sm:$0xff]  ;;  %v56_v4 = vld [vmem:[%s349_s1 + $0x68] sm:$0xff] }
   0xc   :  { %111 = vmatpush.msra.mxu1 %v74_v2  ;;  %v72_v5 = vld [vmem:[%s349_s1 + $0xe8] sm:$0xff]  ;;  %v55_v6 = vld [vmem:[%s349_s1 + $0x60] sm:$0xff]  ;;  %v54_v8 = vld [vmem:[%s349_s1 + $0x58] sm:$0xff] }
   0xd   :  { %92 = vmatpush.msra.mxu0 %v57_v1  ;;  %v71_v7 = vld [vmem:[%s349_s1 + $0xe0] sm:$0xff]  ;;  %v70_v9 = vld [vmem:[%s349_s1 + $0xd8] sm:$0xff]  ;;  %v53_v10 = vld [vmem:[%s349_s1 + $0x50] sm:$0xff] }
   0xe   :  { %112 = vmatpush.msra.mxu1 %v73_v3  ;;  %v69_v11 = vld [vmem:[%s349_s1 + $0xd0] sm:$0xff]  ;;  %v52_v12 = vld [vmem:[%s349_s1 + $0x48] sm:$0xff]  ;;  %v75_v15 = vld [vmem:[%s349_s1 + $0x100] sm:$0xff] }
   0xf   :  { %93 = vmatpush.msra.mxu0 %v56_v4  ;;  %v76_v13 = vld [vmem:[%s349_s1 + $0x108] sm:$0xff]  ;;  %v51_v17 = vld [vmem:[%s349_s1 + $0x40] sm:$0xff]  ;;  %v50_v19 = vld [vmem:[%s349_s1 + $0x38] sm:$0xff] }
  0x10   :  { %113 = vmatpush.msra.mxu1 %v72_v5  ;;  %v68_v14 = vld [vmem:[%s349_s1 + $0xc8] sm:$0xff]  ;;  %145 = vmatpush.msra.mxu2 %v76_v13  ;;  %v67_v18 = vld [vmem:[%s349_s1 + $0xc0] sm:$0xff]  ;;  %v66_v20 = vld [vmem:[%s349_s1 + $0xb8] sm:$0xff] }
  0x11   :  { %94 = vmatpush.msra.mxu0 %v55_v6  ;;  %v42_v16 = vld [vmem:[#allocation2] sm:$0x3f]  ;;  %v49_v21 = vld [vmem:[%s349_s1 + $0x30] sm:$0xff]  ;;  %v47_v26 = vld [vmem:[%s349_s1 + $0x20] sm:$0xff] }
  0x12   :  { %114 = vmatpush.msra.mxu1 %v71_v7  ;;  %82 = vst [vmem:[#allocation1] ss:$4 sm:$0xff] %v42_v16  ;;  %146 = vmatpush.msra.mxu2 %v75_v15  ;;  %v65_v22 = vld [vmem:[%s349_s1 + $0xb0] sm:$0xff]  ;;  %v48_v23 = vld [vmem:[%s349_s1 + $0x28] sm:$0xff]  ;;  %v63_v27 = vld [vmem:[%s349_s1 + $0xa0] sm:$0xff] }
  0x13   :  { %95 = vmatpush.msra.mxu0 %v54_v8  ;;  %v64_v24 = vld [vmem:[%s349_s1 + $0xa8] sm:$0xff]  ;;  %v46_v28 = vld [vmem:[%s349_s1 + $0x18] sm:$0xff]  ;;  %v45_v30 = vld [vmem:[%s349_s1 + $0x10] sm:$0xff] }
  0x14   :  { %115 = vmatpush.msra.mxu1 %v70_v9  ;;  %v62_v29 = vld [vmem:[%s349_s1 + $0x98] sm:$0xff]  ;;  %v61_v31 = vld [vmem:[%s349_s1 + $0x90] sm:$0xff]  ;;  %v44_v32 = vld [vmem:[%s349_s1 + $0x8] sm:$0xff] }
  0x15   :  { %96 = vmatpush.msra.mxu0 %v53_v10  ;;  %v60_v33 = vld [vmem:[%s349_s1 + $0x88] sm:$0xff]  ;;  %v43_v34 = vld [vmem:[%s349_s1] sm:$0xff] }
  0x16   :  { %116 = vmatpush.msra.mxu1 %v69_v11  ;;  %v59_v35 = vld [vmem:[%s349_s1 + $0x80] sm:$0xff]  ;;  %v162_v38 = vld [vmem:[#allocation4] ss:$0 sm:$0xff] }
  0x17   :  { %97 = vmatpush.msra.mxu0 %v52_v12 }
  0x18   :  { %117 = vmatpush.msra.mxu1 %v68_v14 }
  0x19   :  { %98 = vmatpush.msra.mxu0 %v51_v17  ;;  %v85_v25 = vld.sshfl [vmem:[#allocation1 + $0x10] sm:$0xff pattern:$0x73625140]  ;;  %v83_v36 = vld.sshfl [vmem:[#allocation1] sm:$0xff pattern:$0x73625140] }
  0x1a   :  { %118 = vmatpush.msra.mxu1 %v67_v18  ;;  %159 = vmatmul.msk.f32.vlgmr.msra.gmra.mxu2 %vm88_vm0, %v85_v25  ;;  %v84_v37 = vld.sshfl [vmem:[#allocation1 + $0x8] sm:$0xff pattern:$0x73625140] }
  0x1b   :  { %99 = vmatpush.msra.mxu0 %v50_v19 }
  0x1c   :  { %119 = vmatpush.msra.mxu1 %v66_v20 }
  0x1d   :  { %100 = vmatpush.msra.mxu0 %v49_v21 }
  0x1e   :  { %120 = vmatpush.msra.mxu1 %v65_v22 }
  0x1f   :  { %101 = vmatpush.msra.mxu0 %v48_v23 }
  0x20   :  { %121 = vmatpush.msra.mxu1 %v64_v24 }
  0x21   :  { %102 = vmatpush.msra.mxu0 %v47_v26 }
  0x22   :  { %122 = vmatpush.msra.mxu1 %v63_v27 }
  0x23   :  { %103 = vmatpush.msra.mxu0 %v46_v28 }
  0x24   :  { %123 = vmatpush.msra.mxu1 %v62_v29 }
  0x25   :  { %104 = vmatpush.msra.mxu0 %v45_v30 }
  0x26   :  { %124 = vmatpush.msra.mxu1 %v61_v31 }
  0x27   :  { %105 = vmatpush.msra.mxu0 %v44_v32 }
  0x28   :  { %125 = vmatpush.msra.mxu1 %v60_v33 }
  0x29   :  { %106 = vmatpush.msra.mxu0 %v43_v34 }
  0x2a   :  { %126 = vmatpush.msra.mxu1 %v59_v35  ;;  %107 = vmatmul.f32.vlgmr.msra.gmra.mxu0 %v83_v36 }
  0x2b   :  { %127 = vmatmul.f32.vlgmr.msra.gmra.mxu1 %v84_v37 }
  0x9d   :  { %v148_v42 = vpop.f32.mrf.mxu2 }
  0xa7   :  { %v108_v39 = vpop.f32.mrf.mxu0 }
  0xa8   :  { %v128_v40 = vpop.f32.mrf.mxu1  ;;  %v109_v41 = vadd.f32 %v162_v38, %v108_v39 }
  0xaa   :  { %v129_v43 = vadd.f32 %v128_v40, %v109_v41 }
  0xac   :  { %v149_v44 = vadd.f32 %v148_v42, %v129_v43 }
  0xae   :  { %152 = vst.msk [vmem:[%s351_s3] sm:$0x3] %vm151_vm1, %v149_v44 }
  0xaf   :  { %157 = vsyncpa [#allocation3], 1 }
  0xb0   :  { %158 = vsyncpa [#allocation5], 1 }

// kernel: decoder_conv_variational_forward.7
= control target key start
LH: loop header
LB: loop body
LE: loop exit
PB: predicated region body
PF: predicated region fallthrough
CT: control target
= control target key end

     0   :  { %11 = vsyncpa [#allocation3], 0  ;;  %s2100_s18 = smov 0   ;;  %s2102_s19 = smov 0   ;;  %s2737_s0 = inlined_call_operand.vmem [shape: bf16[2,6,32,256], index: 0, kind: input, shape index: {}]   ;;  %s2738_s1 = inlined_call_operand.vmem [shape: bf16[4,32,128], index: 1, kind: input, shape index: {}]   ;;  %s2739_s2 = inlined_call_operand.vmem [shape: f32[32,1], index: 2, kind: input, shape index: {}]   ;;  %s2740_s3 = inlined_call_operand.hbm [shape: f32[2,32,1], index: 3, kind: input, shape index: {}]   ;;  %s2741_s4 = inlined_call_operand.vmem [shape: bf16[2,2,32,128], index: 4, kind: output, shape index: {0}]   ;;  %s2742_s5 = inlined_call_operand.vmem [shape: f32[2,1,32,2], index: 5, kind: output, shape index: {1}]  }
   0x1   :  { %s2104_s20 = smov 0  }
   0x2 LB: > { %s1474_s2 = sadd.s32 4294967295, %s2024_s20   ;;  %s29_s21 = sadd.s32 1, %s2020_s19  ;;  %s2024_s20 = sphi %s2104_s20, %s17_s20   ;;  %s2020_s19 = sphi %s2102_s19, %s2822_s19   ;;  %s2016_s18 = sphi %s2100_s18, %s2821_s18  }
   0x3   : > { %p31_p0 = scmp.ge.s32.totalorder %s29_s21, 2  ;;  %p1476_p1 = scmp.ge.s32.totalorder %s2024_s20, 1 }
   0x4   : > { %p179_p2 = scmp.lt.s32.totalorder %s2024_s20, 3  ;;  %p1586_p4 = scmp.eq.s32.totalorder %s1474_s2, 0 }
   0x5   : > { %s2824_s21 = smov (%p31_p0, %s29_s21), 0  ;;  %s196_s24 = sshll.u32 %s2740_s3, 4  ;;  %s197_s24 = int_to_ptr.hbm [resolvable:$true] %s196_s24 }
   0x6   : > { %p180_p3 = pnand %p1476_p1, %p179_p2  ;;  %s2062_s25 = smov [#allocation2]  }
   0x7   : > { %s198_s26 = sshll.u32 %s2062_s25, 4  ;;  %s2063_s27 = smov 128   ;;  %s199_s26 = int_to_ptr.vmem [resolvable:$true] %s198_s26 }
   0x8   : > { %p1582_p5 = pneg %p180_p3  ;;  %s2064_s28 = smov 8  }
   0x9   : > { %222 = sbr.rel (%p180_p3) target bundleno = 850 (0x352), region = 36 }
   0xa   : > { %p1583_p6 = pnand %p1586_p4, %p1582_p5 }
   0xc   : > { %1585 = dma.hbm_to_vmem [thread:$0]  (!%p1583_p6), %s197_s24, 1024, %s199_s26, [#allocation3], %s2063_s27, %s2063_s27, %s2064_s28  }
   0xe   : > { %2011 = dma.done.wait (%p1586_p4), [#allocation3], 1024  }
   0xf   : > { %2013 = vsyncadd (%p1586_p4), [#allocation3], 4294966272  ;;  %p265_p7 = scmp.lt.s32.totalorder %s2016_s18, 1  ;;  %v291_v0 = vlaneseq  ;;  %v2065_v2 = vmov 0.0   ;;  %v2139_v4 = vmov 0.0   ;;  %v2141_v5 = vmov 0.0  }
  0x10   : > { %v2143_v6 = vmov 0.0   ;;  %v2145_v7 = vmov 0.0   ;;  %v2147_v8 = vmov 0.0   ;;  %v2149_v9 = vmov 0.0   ;;  %s2155_s15 = smov 0  }
  0x11   : > { %s2826_s18 = smov (!%p265_p7, %s2016_s18), 1  ;;  %v292_v1 = vand.u32 127, %v291_v0  ;;  %v2151_v10 = vmov 0.0   ;;  %v2153_v11 = vmov 0.0  }
  0x12   : > { %s1577_s29 = smul.u32 192, %s2826_s18  ;;  %s1555_s30 = sshll.u32 %s2826_s18, 5 }
  0x13   : > { %vm293_vm0 = vcmp.lt.s32.totalorder %v292_v1, 2  ;;  %s2125_s8 = scalar_lea.vmem %s2741_s4, %s1555_s30  ;;  %s2130_s11 = scalar_lea.vmem %s2742_s5, %s1555_s30 }
  0x14   : > { %v2132_v3 = vsel %vm293_vm0, 1.0, %v2065_v2  ;;  %s2137_s14 = scalar_lea.vmem %s2737_s0, %s1577_s29 }
  0x15   : > { %2766 = vst [vmem:[#allocation5_spill] sm:$0xff] %v2132_v3 }
  0x16 LB: >> { %2767 = vst [vmem:[#allocation6_spill] sm:$0xff] %v2028_v4  ;;  %s1487_s16 = sshll.u32 %s2060_s15, 5  ;;  %s2066_s18 = smov 1   ;;  %vm428_vm1 = vcmask 15360   ;;  %vm399_vm2 = vcmask 7168   ;;  %vm457_vm3 = vcmask 23552   ;;  %s2060_s15 = sphi %s2155_s15, %s301_s15   ;;  %v2056_v11 = vphi %v2153_v11, %v2820_v11   ;;  %v2052_v10 = vphi %v2151_v10, %v2819_v10   ;;  %v2048_v9 = vphi %v2149_v9, %v2818_v9   ;;  %v2044_v8 = vphi %v2147_v8, %v2817_v8   ;;  %v2040_v7 = vphi %v2145_v7, %v2816_v7   ;;  %v2036_v6 = vphi %v2143_v6, %v2815_v6   ;;  %v2032_v5 = vphi %v2141_v5, %v2814_v5   ;;  %v2028_v4 = vphi %v2139_v4, %v2813_v4  }
  0x17   : >> { %2768 = vst [vmem:[#allocation7_spill] sm:$0xff] %v2032_v5  ;;  %s2186_s17 = scalar_lea.vmem %s2137_s14, %s1487_s16  ;;  %s2067_s2 = smov 2   ;;  %vm663_vm4 = vcmask 1014784  }
  0x18   : >> { %2769 = vst [vmem:[#allocation8_spill] sm:$0xff] %v2036_v6  ;;  %v2189_v12 = vld [vmem:[%s2186_s17 + $0x90] sm:$0xff]  ;;  %v2192_v13 = vld [vmem:[%s2186_s17 + $0x80] sm:$0xff]  ;;  %v2199_v18 = vld [vmem:[%s2186_s17 + $0x98] sm:$0xff]  ;;  %s2068_s22 = smov 3   ;;  %s2069_s23 = smov 124  }
  0x19   : >> { %2770 = vst [vmem:[#allocation9_spill] sm:$0xff] %v2040_v7  ;;  %v2750_v14 = vunpack.c.l.bf16 %v2189_v12  ;;  %v2748_v15 = vunpack.c.h.bf16 %v2189_v12  ;;  %v319_v16 = vunpack.c.l.bf16 %v2192_v13  ;;  %v320_v17 = vunpack.c.h.bf16 %v2192_v13  ;;  %v2202_v19 = vld [vmem:[%s2186_s17 + $0x88] sm:$0xff]  ;;  %v1493_v29 = vld [vmem:[%s2186_s17 + $0x60] sm:$0xff]  ;;  %v1495_v34 = vld [vmem:[%s2186_s17 + $0x70] sm:$0xff] }
  0x1a   : >> { %2771 = vst [vmem:[#allocation10_spill] sm:$0xff] %v2044_v8  ;;  %v2749_v22 = vunpack.c.l.bf16 %v2199_v18  ;;  %v2747_v23 = vunpack.c.h.bf16 %v2199_v18  ;;  %v321_v24 = vunpack.c.l.bf16 %v2202_v19  ;;  %v322_v25 = vunpack.c.h.bf16 %v2202_v19  ;;  %v1494_v28 = vld [vmem:[%s2186_s17 + $0x68] sm:$0xff]  ;;  %v1496_v39 = vld [vmem:[%s2186_s17 + $0x78] sm:$0xff]  ;;  %v2253_v48 = vld [vmem:[%s2186_s17 + $0x50] sm:$0xff] }
  0x1b   : >> { %2772 = vst [vmem:[#allocation11_spill] sm:$0xff] %v2048_v9  ;;  %v1702_v20 = vpack.i.bf16 %v2748_v15, %v2750_v14  ;;  %v1692_v21 = vpack.i.bf16 %v320_v17, %v319_v16  ;;  %v337_v30 = vunpack.c.l.bf16 %v1494_v28  ;;  %v338_v31 = vunpack.c.h.bf16 %v1494_v28  ;;  %v2256_v49 = vld [vmem:[%s2186_s17 + $0x58] sm:$0xff]  ;;  %v2292_v63 = vld [vmem:[%s2186_s17 + $0x40] sm:$0xff] }
  0x1c   : >> { %2773 = vst [vmem:[#allocation12_spill] sm:$0xff] %v2052_v10  ;;  %v1707_v26 = vpack.i.bf16 %v2747_v23, %v2749_v22  ;;  %v1697_v27 = vpack.i.bf16 %v322_v25, %v321_v24  ;;  %v335_v32 = vunpack.c.l.bf16 %v1493_v29  ;;  %v336_v33 = vunpack.c.h.bf16 %v1493_v29  ;;  %v2279_v57 = vld [vmem:[%s2186_s17 + $0x38] sm:$0xff] }
  0x1d   : >> { %2774 = vst [vmem:[#allocation13_spill] sm:$0xff] %v2056_v11  ;;  %1703 = vrot.lane.b32.xlu1 %v1702_v20, %s2066_s18  ;;  %1693 = vrot.lane.b32.xlu0 %v1692_v21, %s2066_s18  ;;  %v339_v35 = vunpack.c.l.bf16 %v1495_v34  ;;  %v340_v36 = vunpack.c.h.bf16 %v1495_v34  ;;  %v1757_v37 = vpack.i.bf16 %v338_v31, %v337_v30  ;;  %v341_v41 = vunpack.c.l.bf16 %v1496_v39 }
  0x1e   : >> { %2775 = vst [vmem:[#allocation14_spill] sm:$0xff] %v2199_v18  ;;  %1713 = vrot.lane.b32.xlu2 %v1692_v21, %s2067_s2  ;;  %v1752_v38 = vpack.i.bf16 %v336_v33, %v335_v32  ;;  %v342_v42 = vunpack.c.h.bf16 %v1496_v39  ;;  %v474_v44 = vpack.c.bf16 %v321_v24, %v319_v16  ;;  %v588_v45 = vpack.c.bf16 %v338_v31, %v336_v33  ;;  %v2321_v33 = vld [vmem:[%s2186_s17 + $0x30] sm:$0xff] }
  0x1f   : >> { %v1762_v40 = vpack.i.bf16 %v340_v36, %v339_v35  ;;  %v587_v46 = vpack.c.bf16 %v337_v30, %v335_v32  ;;  %v2758_v50 = vunpack.c.l.bf16 %v2253_v48  ;;  %v2756_v51 = vunpack.c.h.bf16 %v2253_v48  ;;  %2776 = vst [vmem:[#allocation15_spill] sm:$0xff] %v2292_v63 }
  0x20   : >> { %v1767_v43 = vpack.i.bf16 %v342_v42, %v341_v41  ;;  %v590_v47 = vpack.c.bf16 %v342_v42, %v340_v36  ;;  %v2757_v52 = vunpack.c.l.bf16 %v2256_v49  ;;  %v2755_v53 = vunpack.c.h.bf16 %v2256_v49 }
  0x21   : >> { %v2266_v54 = vpack.i.bf16 %v2756_v51, %v2758_v50  ;;  %v2753_v58 = vunpack.c.l.bf16 %v2279_v57  ;;  %v2751_v59 = vunpack.c.h.bf16 %v2279_v57  ;;  %v2746_v1 = vunpack.c.l.bf16 %v2292_v63 }
  0x22   : >> { %v2272_v55 = vpack.i.bf16 %v2755_v53, %v2757_v52  ;;  %v2744_v2 = vunpack.c.h.bf16 %v2292_v63  ;;  %v589_v24 = vpack.c.bf16 %v341_v41, %v339_v35  ;;  %v475_v30 = vpack.c.bf16 %v322_v25, %v320_v17 }
  0x23   : >> { %v2287_v60 = vpack.i.bf16 %v2751_v59, %v2753_v58  ;;  %v2754_v35 = vunpack.c.l.bf16 %v2321_v33  ;;  %v2752_v36 = vunpack.c.h.bf16 %v2321_v33 }
  0x25   : >> { %1708 = vrot.lane.b32.xlu1 %v1707_v26, %s2066_s18  ;;  %1698 = vrot.lane.b32.xlu0 %v1697_v27, %s2066_s18  ;;  %v2329_v13 = vpack.i.bf16 %v2752_v36, %v2754_v35 }
  0x26   : >> { %1718 = vrot.lane.b32.xlu2 %v1697_v27, %s2067_s2 }
  0x2d   : >> { %1728 = vrot.lane.b32.xlu1 %v1707_v26, %s2067_s2  ;;  %1723 = vrot.lane.b32.xlu0 %v1702_v20, %s2067_s2 }
  0x2e   : >> { %1733 = vrot.lane.b32.xlu2 %v1692_v21, %s2068_s22 }
  0x35   : >> { %1743 = vrot.lane.b32.xlu1 %v1702_v20, %s2068_s22  ;;  %1738 = vrot.lane.b32.xlu0 %v1697_v27, %s2068_s22 }
  0x36   : >> { %1748 = vrot.lane.b32.xlu2 %v1707_v26, %s2068_s22  ;;  %v2303_v26 = vpack.i.bf16 %v2744_v2, %v2746_v1 }
  0x3d   : >> { %1758 = vrot.lane.b32.xlu1 %v1757_v37, %s2066_s18  ;;  %1753 = vrot.lane.b32.xlu0 %v1752_v38, %s2066_s18 }
  0x3e   : >> { %1763 = vrot.lane.b32.xlu2 %v1762_v40, %s2066_s18 }
  0x45   : >> { %1773 = vrot.lane.b32.xlu1 %v1752_v38, %s2067_s2  ;;  %1768 = vrot.lane.b32.xlu0 %v1767_v43, %s2066_s18 }
  0x46   : >> { %1778 = vrot.lane.b32.xlu2 %v1757_v37, %s2067_s2 }
  0x4d   : >> { %1788 = vrot.lane.b32.xlu1 %v1767_v43, %s2067_s2  ;;  %1783 = vrot.lane.b32.xlu0 %v1762_v40, %s2067_s2 }
  0x4e   : >> { %1793 = vrot.lane.b32.xlu2 %v1752_v38, %s2068_s22 }
  0x55   : >> { %1803 = vrot.lane.b32.xlu1 %v1762_v40, %s2068_s22  ;;  %1798 = vrot.lane.b32.xlu0 %v1757_v37, %s2068_s22  ;;  %v2334_v40 = vld [vmem:[%s2186_s17 + $0x48] sm:$0xff] }
  0x56   : >> { %1808 = vrot.lane.b32.xlu2 %v1767_v43, %s2068_s22  ;;  %2777 = vst [vmem:[#allocation16_spill] sm:$0xff] %v2334_v40 }
  0x5d   : >> { %633 = vrot.lane.b32.xlu1 %v588_v45, %s2069_s23  ;;  %631 = vrot.lane.b32.xlu0 %v587_v46, %s2069_s23  ;;  %v2745_v46 = vunpack.c.l.bf16 %v2334_v40 }
  0x5e   : >> { %635 = vrot.lane.b32.xlu2 %v589_v24, %s2069_s23 }
  0x65   : >> { %637 = vrot.lane.b32.xlu0 %v590_v47, %s2069_s23  ;;  %727 = vrot.lane.b32.xlu1 %v474_v44, %s2069_s23  ;;  %v2743_v47 = vunpack.c.h.bf16 %v2334_v40 }
  0x66   : >> { %729 = vrot.lane.b32.xlu2 %v475_v30, %s2069_s23 }
  0x67   : >> { %v2358_v24 = vpack.i.bf16 %v2743_v47, %v2745_v46 }
  0x6d   : >> { %1813 = vrot.lane.b32.xlu0 %v2266_v54, %s2068_s22  ;;  %1818 = vrot.lane.b32.xlu1 %v2272_v55, %s2068_s22 }
  0x6e   : >> { %1823 = vrot.lane.b32.xlu2 %v2329_v13, %s2068_s22 }
  0x75   : >> { %1828 = vrot.lane.b32.xlu0 %v2287_v60, %s2068_s22  ;;  %1833 = vrot.lane.b32.xlu1 %v2303_v26, %s2068_s22 }
  0x76   : >> { %1838 = vrot.lane.b32.xlu2 %v2358_v24, %s2068_s22 }
  0x78   : >> { %v1714_v56 = vpop.permute.xlu2 %1713 }
  0x79   : >> { %v1716_v61 = vunpack.i.h.bf16 %v1714_v56  ;;  %v1715_v62 = vunpack.i.l.bf16 %v1714_v56 }
  0x7b   : >> { %v2297_v21 = vsel %vm428_vm1, %v1715_v62, %v1716_v61 }
  0x80   : >> { %v1719_v0 = vpop.permute.xlu2 %1718 }
  0x81   : >> { %v1721_v16 = vunpack.i.h.bf16 %v1719_v0  ;;  %v1720_v20 = vunpack.i.l.bf16 %v1719_v0 }
  0x83   : >> { %v2305_v27 = vpack.c.bf16 %v1720_v20, %v1715_v62  ;;  %v2308_v28 = vsel %vm428_vm1, %v1720_v20, %v1721_v16 }
  0x88   : >> { %v1734_v34 = vpop.permute.xlu2 %1733 }
  0x8f   : >> { %v1704_v31 = vpop.permute.xlu1 %1703  ;;  %v1694_v32 = vpop.permute.xlu0 %1693 }
  0x90   : >> { %v1706_v37 = vunpack.i.h.bf16 %v1704_v31  ;;  %v1705_v38 = vunpack.i.l.bf16 %v1704_v31  ;;  %v1696_v17 = vunpack.i.h.bf16 %v1694_v32  ;;  %v1695_v19 = vunpack.i.l.bf16 %v1694_v32  ;;  %v1749_v0 = vpop.permute.xlu2 %1748 }
  0x91   : >> { %v1751_v47 = vunpack.i.h.bf16 %v1749_v0  ;;  %v1750_v2 = vunpack.i.l.bf16 %v1749_v0 }
  0x92   : >> { %v2337_v41 = vsel %vm399_vm2, %v1705_v38, %v1706_v37  ;;  %v2342_v56 = vsel %vm399_vm2, %v1695_v19, %v1696_v17 }
  0x97   : >> { %v1709_v25 = vpop.permute.xlu1 %1708  ;;  %v1699_v39 = vpop.permute.xlu0 %1698 }
  0x98   : >> { %v1711_v42 = vunpack.i.h.bf16 %v1709_v25  ;;  %v1710_v43 = vunpack.i.l.bf16 %v1709_v25  ;;  %v1701_v44 = vunpack.i.h.bf16 %v1699_v39  ;;  %v1700_v45 = vunpack.i.l.bf16 %v1699_v39  ;;  %v1764_v1 = vpop.permute.xlu2 %1763 }
  0x99   : >> { %v1736_v39 = vunpack.i.h.bf16 %v1734_v34 }
  0x9a   : >> { %v2344_v61 = vpack.c.bf16 %v1710_v43, %v1705_v38  ;;  %v2346_v62 = vpack.c.bf16 %v1700_v45, %v1695_v19  ;;  %v2349_v16 = vsel %vm399_vm2, %v1710_v43, %v1711_v42  ;;  %v2352_v20 = vsel %vm399_vm2, %v1700_v45, %v1701_v44 }
  0x9b   : >> { %v1735_v45 = vunpack.i.l.bf16 %v1734_v34 }
  0x9d   : >> { %v2380_v15 = vsel %vm457_vm3, %v1735_v45, %v1736_v39 }
  0x9f   : >> { %v1729_v32 = vpop.permute.xlu1 %1728  ;;  %v1724_v37 = vpop.permute.xlu0 %1723 }
  0xa0   : >> { %v1731_v38 = vunpack.i.h.bf16 %v1729_v32  ;;  %v1730_v17 = vunpack.i.l.bf16 %v1729_v32  ;;  %v1726_v19 = vunpack.i.h.bf16 %v1724_v37  ;;  %v1725_v25 = vunpack.i.l.bf16 %v1724_v37  ;;  %v1779_v59 = vpop.permute.xlu2 %1778 }
  0xa1   : >> { %v2377_v37 = vsel %vm457_vm3, %v1750_v2, %v1751_v47  ;;  %v1781_v7 = vunpack.i.h.bf16 %v1779_v59 }
  0xa2   : >> { %v2366_v42 = vpack.c.bf16 %v1730_v17, %v1725_v25  ;;  %v2369_v43 = vsel %vm428_vm1, %v1725_v25, %v1726_v19  ;;  %v2372_v44 = vsel %vm428_vm1, %v1730_v17, %v1731_v38 }
  0xa7   : >> { %v1744_v32 = vpop.permute.xlu1 %1743  ;;  %v1739_v23 = vpop.permute.xlu0 %1738 }
  0xa8   : >> { %v1746_v19 = vunpack.i.h.bf16 %v1744_v32  ;;  %v1745_v25 = vunpack.i.l.bf16 %v1744_v32  ;;  %v1741_v38 = vunpack.i.h.bf16 %v1739_v23  ;;  %v1740_v17 = vunpack.i.l.bf16 %v1739_v23  ;;  %v1794_v31 = vpop.permute.xlu2 %1793 }
  0xa9   : >> { %v1795_v6 = vunpack.i.l.bf16 %v1794_v31 }
  0xaa   : >> { %v2382_v34 = vpack.c.bf16 %v1750_v2, %v1745_v25  ;;  %v2384_v0 = vpack.c.bf16 %v1740_v17, %v1735_v45  ;;  %v2387_v22 = vsel %vm457_vm3, %v1745_v25, %v1746_v19  ;;  %v2390_v14 = vsel %vm457_vm3, %v1740_v17, %v1741_v38 }
  0xab   : >> { %v1765_v45 = vunpack.i.l.bf16 %v1764_v1  ;;  %v1780_v19 = vunpack.i.l.bf16 %v1779_v59 }
  0xaf   : >> { %v1759_v32 = vpop.permute.xlu1 %1758  ;;  %v1754_v36 = vpop.permute.xlu0 %1753 }
  0xb0   : >> { %v1760_v23 = vunpack.i.l.bf16 %v1759_v32  ;;  %v1755_v2 = vunpack.i.l.bf16 %v1754_v36  ;;  %v1809_v39 = vpop.permute.xlu2 %1808  ;;  %v1761_v40 = vunpack.i.h.bf16 %v1759_v32  ;;  %v1756_v63 = vunpack.i.h.bf16 %v1754_v36 }
  0xb1   : >> { %v1810_v4 = vunpack.i.l.bf16 %v1809_v39 }
  0xb2   : >> { %v591_v58 = vpack.c.bf16 %v1760_v23, %v1755_v2  ;;  %v514_v59 = vsel %vm399_vm2, %v1755_v2, %v1756_v63  ;;  %v515_v32 = vsel %vm399_vm2, %v1760_v23, %v1761_v40 }
  0xb4   : >> { %639 = vrot.lane.b32.xlu1 %v591_v58, %s2069_s23  ;;  %v1766_v58 = vunpack.i.h.bf16 %v1764_v1 }
  0xb7   : >> { %v1774_v25 = vpop.permute.xlu1 %1773  ;;  %v1769_v35 = vpop.permute.xlu0 %1768 }
  0xb8   : >> { %v1775_v38 = vunpack.i.l.bf16 %v1774_v25  ;;  %v1770_v17 = vunpack.i.l.bf16 %v1769_v35  ;;  %v1771_v47 = vunpack.i.h.bf16 %v1769_v35  ;;  %v1776_v18 = vunpack.i.h.bf16 %v1774_v25 }
  0xb9   : >> { %v1796_v35 = vunpack.i.h.bf16 %v1794_v31 }
  0xba   : >> { %v595_v53 = vpack.c.bf16 %v1780_v19, %v1775_v38  ;;  %v593_v51 = vpack.c.bf16 %v1770_v17, %v1765_v45 }
  0xbb   : >> { %v570_v36 = vsel %vm457_vm3, %v1795_v6, %v1796_v35 }
  0xbc   : >> { %643 = vrot.lane.b32.xlu0 %v593_v51, %s2069_s23  ;;  %647 = vrot.lane.b32.xlu2 %v595_v53, %s2069_s23  ;;  %v516_v51 = vsel %vm399_vm2, %v1765_v45, %v1766_v58  ;;  %v517_v53 = vsel %vm399_vm2, %v1770_v17, %v1771_v47  ;;  %v542_v45 = vsel %vm428_vm1, %v1775_v38, %v1776_v18 }
  0xbd   : >> { %v594_v1 = vpack.c.bf16 %v517_v53, %v516_v51  ;;  %v543_v47 = vsel %vm428_vm1, %v1780_v19, %v1781_v7  ;;  %v636_v19 = vpop.permute.xlu2 %635 }
  0xbe   : >> { %v596_v17 = vpack.c.bf16 %v543_v47, %v542_v45 }
  0xbf   : >> { %v1789_v52 = vpop.permute.xlu1 %1788  ;;  %v1784_v50 = vpop.permute.xlu0 %1783 }
  0xc0   : >> { %v1790_v30 = vunpack.i.l.bf16 %v1789_v52  ;;  %v1785_v29 = vunpack.i.l.bf16 %v1784_v50  ;;  %v1791_v58 = vunpack.i.h.bf16 %v1789_v52  ;;  %v1786_v51 = vunpack.i.h.bf16 %v1784_v50 }
  0xc2   : >> { %v597_v46 = vpack.c.bf16 %v1790_v30, %v1785_v29  ;;  %v544_v63 = vsel %vm428_vm1, %v1785_v29, %v1786_v51  ;;  %v545_v52 = vsel %vm428_vm1, %v1790_v30, %v1791_v58 }
  0xc3   : >> { %v598_v23 = vpack.c.bf16 %v545_v52, %v544_v63 }
  0xc4   : >> { %651 = vrot.lane.b32.xlu1 %v597_v46, %s2069_s23 }
  0xc5   : >> { %v730_v35 = vpop.permute.xlu2 %729 }
  0xc7   : >> { %v1804_v8 = vpop.permute.xlu1 %1803  ;;  %v1799_v5 = vpop.permute.xlu0 %1798 }
  0xc8   : >> { %v1805_v9 = vunpack.i.l.bf16 %v1804_v8  ;;  %v1800_v10 = vunpack.i.l.bf16 %v1799_v5  ;;  %v1801_v46 = vunpack.i.h.bf16 %v1799_v5  ;;  %v1806_v31 = vunpack.i.h.bf16 %v1804_v8 }
  0xc9   : >> { %v1811_v5 = vunpack.i.h.bf16 %v1809_v39  ;;  %v2428_v39 = vld [vmem:[%s2186_s17 + $0x20] sm:$0xff] }
  0xca   : >> { %v601_v11 = vpack.c.bf16 %v1810_v4, %v1805_v9  ;;  %v599_v3 = vpack.c.bf16 %v1800_v10, %v1795_v6  ;;  %v571_v25 = vsel %vm457_vm3, %v1800_v10, %v1801_v46  ;;  %v572_v6 = vsel %vm457_vm3, %v1805_v9, %v1806_v31 }
  0xcb   : >> { %v600_v18 = vpack.c.bf16 %v571_v25, %v570_v36  ;;  %v573_v7 = vsel %vm457_vm3, %v1810_v4, %v1811_v5  ;;  %v367_v4 = vunpack.c.l.bf16 %v2428_v39  ;;  %v368_v9 = vunpack.c.h.bf16 %v2428_v39 }
  0xcc   : >> { %659 = vrot.lane.b32.xlu2 %v601_v11, %s2069_s23  ;;  %655 = vrot.lane.b32.xlu0 %v599_v3, %s2069_s23  ;;  %v592_v11 = vpack.c.bf16 %v515_v32, %v514_v59  ;;  %v2412_v3 = vld [vmem:[%s2186_s17 + $0x28] sm:$0xff]  ;;  %v602_v50 = vpack.c.bf16 %v573_v7, %v572_v6 }
  0xcd   : >> { %645 = vrot.lane.b32.xlu1 %v594_v1, %s2069_s23  ;;  %v369_v8 = vunpack.c.l.bf16 %v2412_v3  ;;  %v370_v10 = vunpack.c.h.bf16 %v2412_v3  ;;  %v1842_v29 = vpack.i.bf16 %v368_v9, %v367_v4 }
  0xcf   : >> { %v1847_v40 = vpack.i.bf16 %v370_v10, %v369_v8  ;;  %v634_v30 = vpop.permute.xlu1 %633  ;;  %v632_v2 = vpop.permute.xlu0 %631 }
  0xd0   : >> { %v2456_v1 = vsel %vm663_vm4, %v632_v2, %v634_v30 }
  0xd4   : >> { %649 = vrot.lane.b32.xlu0 %v596_v17, %s2069_s23  ;;  %641 = vrot.lane.b32.xlu2 %v592_v11, %s2069_s23 }
  0xd5   : >> { %657 = vrot.lane.b32.xlu1 %v600_v18, %s2069_s23 }
  0xd7   : >> { %v638_v38 = vpop.permute.xlu0 %637  ;;  %v728_v53 = vpop.permute.xlu1 %727 }
  0xd8   : >> { %v2464_v47 = vsel %vm663_vm4, %v636_v19, %v638_v38  ;;  %v2778_v38 = vpack.c.bf16 %v2377_v37, %v2387_v22 }
  0xdc   : >> { %661 = vrot.lane.b32.xlu0 %v602_v50, %s2069_s23  ;;  %653 = vrot.lane.b32.xlu2 %v598_v23, %s2069_s23 }
  0xdd   : >> { %1848 = vrot.lane.b32.xlu1 %v1847_v40, %s2068_s22 }
  0xdf   : >> { %v1814_v46 = vpop.permute.xlu0 %1813  ;;  %v1819_v45 = vpop.permute.xlu1 %1818 }
  0xe0   : >> { %v1816_v59 = vunpack.i.h.bf16 %v1814_v46  ;;  %v1815_v32 = vunpack.i.l.bf16 %v1814_v46  ;;  %v1821_v36 = vunpack.i.h.bf16 %v1819_v45  ;;  %v1820_v25 = vunpack.i.l.bf16 %v1819_v45 }
  0xe2   : >> { %v877_v31 = vsel %vm457_vm3, %v1820_v25, %v1821_v36  ;;  %v905_v51 = vpack.c.bf16 %v1820_v25, %v1815_v32 }
  0xe4   : >> { %1843 = vrot.lane.b32.xlu0 %v1842_v29, %s2068_s22  ;;  %1853 = vrot.lane.b32.xlu2 %v2266_v54, %s2067_s2 }
  0xe5   : >> { %1863 = vrot.lane.b32.xlu1 %v2329_v13, %s2067_s2 }
  0xe7   : >> { %v1829_v17 = vpop.permute.xlu0 %1828 }
  0xe8   : >> { %v1830_v58 = vunpack.i.l.bf16 %v1829_v17  ;;  %v1831_v7 = vunpack.i.h.bf16 %v1829_v17 }
  0xec   : >> { %1858 = vrot.lane.b32.xlu0 %v2272_v55, %s2067_s2  ;;  %1868 = vrot.lane.b32.xlu2 %v2287_v60, %s2067_s2 }
  0xed   : >> { %1878 = vrot.lane.b32.xlu1 %v2358_v24, %s2067_s2 }
  0xf4   : >> { %1873 = vrot.lane.b32.xlu0 %v2303_v26, %s2067_s2  ;;  %1883 = vrot.lane.b32.xlu2 %v1842_v29, %s2067_s2 }
  0xf5   : >> { %1893 = vrot.lane.b32.xlu1 %v2266_v54, %s2066_s18  ;;  %v2467_v54 = vsel %vm663_vm4, %v728_v53, %v730_v35 }
  0xfc   : >> { %1888 = vrot.lane.b32.xlu0 %v1847_v40, %s2067_s2  ;;  %1898 = vrot.lane.b32.xlu2 %v2272_v55, %s2066_s18  ;;  %v1824_v55 = vpop.permute.xlu2 %1823  ;;  %s1565_s2 = sshll.u32 %s2060_s15, 4  ;;  %s301_s15 = sadd.s32 1, %s2060_s15  }
  0xfd   : >> { %1908 = vrot.lane.b32.xlu1 %v2287_v60, %s2066_s18  ;;  %v876_v60 = vsel %vm457_vm3, %v1815_v32, %v1816_v59  ;;  %v1825_v11 = vunpack.i.l.bf16 %v1824_v55  ;;  %v1826_v6 = vunpack.i.h.bf16 %v1824_v55  ;;  %s1256_s22 = scalar_lea.vmem %s2125_s8, %s1565_s2  ;;  %p298_p8 = scmp.ge.s32.totalorder %s301_s15, 2  }
  0xfe   : >> { %v906_v5 = vpack.c.bf16 %v877_v31, %v876_v60  ;;  %vm1266_vm5 = vcmask (%p298_p8), 15368  }
  0xff   : >> { %v1117_v18 = vpack.c.bf16 %v1830_v58, %v1825_v11 }
 0x104   : >> { %1903 = vrot.lane.b32.xlu0 %v2329_v13, %s2066_s18  ;;  %1913 = vrot.lane.b32.xlu2 %v2303_v26, %s2066_s18  ;;  %v1839_v13 = vpop.permute.xlu2 %1838  ;;  %v1834_v26 = vpop.permute.xlu1 %1833 }
 0x105   : >> { %1923 = vrot.lane.b32.xlu1 %v1842_v29, %s2066_s18  ;;  %v1841_v63 = vunpack.i.h.bf16 %v1839_v13  ;;  %v1840_v52 = vunpack.i.l.bf16 %v1839_v13  ;;  %v1836_v50 = vunpack.i.h.bf16 %v1834_v26  ;;  %v1835_v23 = vunpack.i.l.bf16 %v1834_v26 }
 0x107   : >> { %v874_v29 = vsel %vm457_vm3, %v1835_v23, %v1836_v50  ;;  %v875_v30 = vsel %vm457_vm3, %v1840_v52, %v1841_v63 }
 0x108   : >> { %v904_v19 = vpack.c.bf16 %v875_v30, %v874_v29 }
 0x10c   : >> { %1918 = vrot.lane.b32.xlu0 %v2358_v24, %s2066_s18  ;;  %1928 = vrot.lane.b32.xlu2 %v1847_v40, %s2066_s18  ;;  %v1088_v24 = vsel %vm457_vm3, %v1825_v11, %v1826_v6  ;;  %v1089_v40 = vsel %vm457_vm3, %v1830_v58, %v1831_v7 }
 0x10d   : >> { %965 = vrot.lane.b32.xlu1 %v906_v5, %s2069_s23  ;;  %v1118_v2 = vpack.c.bf16 %v1089_v40, %v1088_v24 }
 0x114   : >> { %1175 = vrot.lane.b32.xlu2 %v1117_v18, %s2069_s23  ;;  %963 = vrot.lane.b32.xlu0 %v905_v51, %s2069_s23 }
 0x115   : >> { %755 = vrot.lane.b32.xlu1 %v2382_v34, %s2069_s23  ;;  %v903_v34 = vpack.c.bf16 %v1840_v52, %v1835_v23 }
 0x116   : >> { %v648_v53 = vpop.permute.xlu2 %647 }
 0x11c   : >> { %757 = vrot.lane.b32.xlu2 %v2778_v38, %s2069_s23  ;;  %1177 = vrot.lane.b32.xlu0 %v1118_v2, %s2069_s23 }
 0x11d   : >> { %961 = vrot.lane.b32.xlu1 %v904_v19, %s2069_s23 }
 0x124   : >> { %959 = vrot.lane.b32.xlu0 %v903_v34, %s2069_s23 }
 0x125   : >> { %751 = vrot.lane.b32.xlu1 %v2384_v0, %s2069_s23 }
 0x126   : >> { %v660_v35 = vpop.permute.xlu2 %659  ;;  %v640_v46 = vpop.permute.xlu1 %639 }
 0x12e   : >> { %v642_v45 = vpop.permute.xlu2 %641  ;;  %v644_v59 = vpop.permute.xlu0 %643 }
 0x136   : >> { %v652_v32 = vpop.permute.xlu1 %651  ;;  %v654_v36 = vpop.permute.xlu2 %653 }
 0x137   : >> { %v669_v63 = vsel %vm663_vm4, %v652_v32, %v654_v36 }
 0x13e   : >> { %v656_v25 = vpop.permute.xlu0 %655  ;;  %v1854_v37 = vpop.permute.xlu2 %1853 }
 0x13f   : >> { %v646_v22 = vpop.permute.xlu1 %645  ;;  %v1856_v40 = vunpack.i.h.bf16 %v1854_v37  ;;  %v1855_v29 = vunpack.i.l.bf16 %v1854_v37 }
 0x140   : >> { %v667_v32 = vsel %vm663_vm4, %v644_v59, %v646_v22 }
 0x141   : >> { %v848_v36 = vsel %vm428_vm1, %v1855_v29, %v1856_v40 }
 0x146   : >> { %v650_v55 = vpop.permute.xlu0 %649  ;;  %v1869_v31 = vpop.permute.xlu2 %1868 }
 0x147   : >> { %v658_v60 = vpop.permute.xlu1 %657  ;;  %v668_v30 = vsel %vm663_vm4, %v648_v53, %v650_v55 }
 0x148   : >> { %v670_v0 = vsel %vm663_vm4, %v656_v25, %v658_v60  ;;  %v1871_v25 = vunpack.i.h.bf16 %v1869_v31  ;;  %v1870_v60 = vunpack.i.l.bf16 %v1869_v31 }
 0x14a   : >> { %v1061_v22 = vsel %vm428_vm1, %v1870_v60, %v1871_v25 }
 0x14e   : >> { %v662_v5 = vpop.permute.xlu0 %661  ;;  %v2499_v26 = vpop.permute.xlu2 %1883 }
 0x14f   : >> { %v1849_v17 = vpop.permute.xlu1 %1848  ;;  %v671_v11 = vsel %vm663_vm4, %v660_v35, %v662_v5 }
 0x150   : >> { %680 = vmatpush.bf16.msra.mxu0 %v671_v11  ;;  %v1851_v58 = vunpack.i.h.bf16 %v1849_v17  ;;  %v1850_v13 = vunpack.i.l.bf16 %v1849_v17  ;;  %v2779_v11 = vpack.c.bf16 %v2390_v14, %v2380_v15 }
 0x152   : >> { %v1087_v52 = vsel %vm457_vm3, %v1850_v13, %v1851_v58  ;;  %v666_v58 = vsel %vm663_vm4, %v640_v46, %v642_v45 }
 0x154   : >> { %681 = vmatpush.bf16.msra.mxu0 %v670_v0 }
 0x156   : >> { %v1844_v51 = vpop.permute.xlu0 %1843  ;;  %v2507_v19 = vpop.permute.xlu2 %1898 }
 0x157   : >> { %v1846_v18 = vunpack.i.h.bf16 %v1844_v51  ;;  %v1845_v6 = vunpack.i.l.bf16 %v1844_v51  ;;  %v1864_v7 = vpop.permute.xlu1 %1863 }
 0x158   : >> { %682 = vmatpush.bf16.msra.mxu0 %v669_v63  ;;  %v1866_v37 = vunpack.i.h.bf16 %v1864_v7  ;;  %v1865_v5 = vunpack.i.l.bf16 %v1864_v7 }
 0x159   : >> { %v1115_v50 = vpack.c.bf16 %v1850_v13, %v1845_v6  ;;  %v1086_v23 = vsel %vm457_vm3, %v1845_v6, %v1846_v18 }
 0x15a   : >> { %v1116_v24 = vpack.c.bf16 %v1087_v52, %v1086_v23  ;;  %v1060_v59 = vsel %vm428_vm1, %v1865_v5, %v1866_v37  ;;  %v1113_v13 = vpack.c.bf16 %v1870_v60, %v1865_v5  ;;  %v1886_v52 = vunpack.i.h.bf16 %v2499_v26 }
 0x15b   : >> { %1171 = vrot.lane.b32.xlu2 %v1115_v50, %s2069_s23  ;;  %v1114_v51 = vpack.c.bf16 %v1061_v22, %v1060_v59  ;;  %v1885_v23 = vunpack.i.l.bf16 %v2499_v26  ;;  %v2781_v22 = vpack.c.bf16 %v2308_v28, %v2297_v21 }
 0x15c   : >> { %683 = vmatpush.bf16.msra.mxu0 %v668_v30  ;;  %1173 = vrot.lane.b32.xlu0 %v1116_v24, %s2069_s23 }
 0x15d   : >> { %v1058_v30 = vsel %vm428_vm1, %v1885_v23, %v1886_v52 }
 0x15e   : >> { %v1859_v2 = vpop.permute.xlu0 %1858  ;;  %v2522_v18 = vpop.permute.xlu2 %1913 }
 0x15f   : >> { %v1861_v38 = vunpack.i.h.bf16 %v1859_v2  ;;  %v1860_v34 = vunpack.i.l.bf16 %v1859_v2  ;;  %v1879_v35 = vpop.permute.xlu1 %1878  ;;  %v1916_v21 = vunpack.i.h.bf16 %v2522_v18  ;;  %v1915_v28 = vunpack.i.l.bf16 %v2522_v18 }
 0x160   : >> { %684 = vmatpush.bf16.msra.mxu0 %v667_v32  ;;  %v1881_v14 = vunpack.i.h.bf16 %v1879_v35  ;;  %v1880_v15 = vunpack.i.l.bf16 %v1879_v35  ;;  %v1901_v32 = vunpack.i.h.bf16 %v2507_v19 }
 0x161   : >> { %v901_v17 = vpack.c.bf16 %v1860_v34, %v1855_v29  ;;  %v849_v53 = vsel %vm428_vm1, %v1860_v34, %v1861_v38 }
 0x162   : >> { %v902_v55 = vpack.c.bf16 %v849_v53, %v848_v36  ;;  %v1900_v36 = vunpack.i.l.bf16 %v2507_v19 }
 0x163   : >> { %753 = vrot.lane.b32.xlu2 %v2779_v11, %s2069_s23 }
 0x164   : >> { %685 = vmatpush.bf16.msra.mxu0 %v666_v58  ;;  %955 = vrot.lane.b32.xlu0 %v901_v17, %s2069_s23  ;;  %v821_v37 = vsel %vm399_vm2, %v1900_v36, %v1901_v32 }
 0x165   : >> { %957 = vrot.lane.b32.xlu1 %v902_v55, %s2069_s23 }
 0x166   : >> { %v1874_v31 = vpop.permute.xlu0 %1873 }
 0x167   : >> { %v1894_v0 = vpop.permute.xlu1 %1893  ;;  %v1876_v46 = vunpack.i.h.bf16 %v1874_v31  ;;  %v1875_v45 = vunpack.i.l.bf16 %v1874_v31 }
 0x168   : >> { %686 = vmatpush.bf16.msra.mxu0 %v2464_v47  ;;  %v847_v47 = vsel %vm428_vm1, %v1880_v15, %v1881_v14  ;;  %v1896_v25 = vunpack.i.h.bf16 %v1894_v0  ;;  %v1895_v60 = vunpack.i.l.bf16 %v1894_v0 }
 0x169   : >> { %v846_v7 = vsel %vm428_vm1, %v1875_v45, %v1876_v46  ;;  %v899_v50 = vpack.c.bf16 %v1880_v15, %v1875_v45 }
 0x16a   : >> { %v900_v29 = vpack.c.bf16 %v847_v47, %v846_v7  ;;  %v897_v53 = vpack.c.bf16 %v1900_v36, %v1895_v60  ;;  %v2785_v36 = vunpack.c.h.bf16 %v2253_v48 }
 0x16b   : >> { %1167 = vrot.lane.b32.xlu2 %v1113_v13, %s2069_s23 }
 0x16c   : >> { %687 = vmatpush.bf16.msra.mxu0 %v2456_v1  ;;  %1169 = vrot.lane.b32.xlu0 %v1114_v51, %s2069_s23  ;;  %v2533_v1 = vpop.permute.xlu2 %1928 }
 0x16d   : >> { %747 = vrot.lane.b32.xlu1 %v2366_v42, %s2069_s23  ;;  %v2780_v42 = vpack.c.bf16 %v2372_v44, %v2369_v43  ;;  %v820_v44 = vsel %vm399_vm2, %v1895_v60, %v1896_v25  ;;  %v1930_v18 = vunpack.i.l.bf16 %v2533_v1  ;;  %v2786_v25 = vunpack.c.h.bf16 %v2256_v49 }
 0x16e   : >> { %v1889_v6 = vpop.permute.xlu0 %1888  ;;  %v898_v55 = vpack.c.bf16 %v821_v37, %v820_v44  ;;  %v2789_v44 = vunpack.c.l.bf16 %v2279_v57 }
 0x16f   : >> { %v1909_v63 = vpop.permute.xlu1 %1908  ;;  %v1891_v24 = vunpack.i.h.bf16 %v1889_v6  ;;  %v1890_v40 = vunpack.i.l.bf16 %v1889_v6  ;;  %v894_v60 = vpack.c.bf16 %v2786_v25, %v2785_v36 }
 0x170   : >> { %v1911_v11 = vunpack.i.h.bf16 %v1909_v63  ;;  %v1910_v19 = vunpack.i.l.bf16 %v1909_v63  ;;  %v818_v63 = vsel %vm399_vm2, %v1915_v28, %v1916_v21 }
 0x171   : >> { %v1059_v2 = vsel %vm428_vm1, %v1890_v40, %v1891_v24  ;;  %v1111_v26 = vpack.c.bf16 %v1890_v40, %v1885_v23  ;;  %v1931_v23 = vunpack.i.h.bf16 %v2533_v1 }
 0x172   : >> { %v1112_v35 = vpack.c.bf16 %v1059_v2, %v1058_v30  ;;  %v1033_v31 = vsel %vm399_vm2, %v1910_v19, %v1911_v11 }
 0x173   : >> { %749 = vrot.lane.b32.xlu2 %v2780_v42, %s2069_s23  ;;  %v1031_v2 = vsel %vm399_vm2, %v1930_v18, %v1931_v23 }
 0x174   : >> { %951 = vrot.lane.b32.xlu0 %v899_v50, %s2069_s23  ;;  %v1176_v43 = vpop.permute.xlu2 %1175 }
 0x175   : >> { %953 = vrot.lane.b32.xlu1 %v900_v29, %s2069_s23 }
 0x176   : >> { %v1904_v38 = vpop.permute.xlu0 %1903 }
 0x177   : >> { %v1924_v34 = vpop.permute.xlu1 %1923  ;;  %v1906_v58 = vunpack.i.h.bf16 %v1904_v38  ;;  %v1905_v59 = vunpack.i.l.bf16 %v1904_v38 }
 0x178   : >> { %v1926_v40 = vunpack.i.h.bf16 %v1924_v34  ;;  %v1925_v29 = vunpack.i.l.bf16 %v1924_v34 }
 0x179   : >> { %v1109_v0 = vpack.c.bf16 %v1910_v19, %v1905_v59 }
 0x17a   : >> { %v1030_v30 = vsel %vm399_vm2, %v1925_v29, %v1926_v40 }
 0x17b   : >> { %1163 = vrot.lane.b32.xlu2 %v1111_v26, %s2069_s23  ;;  %v1108_v34 = vpack.c.bf16 %v1031_v2, %v1030_v30 }
 0x17c   : >> { %1165 = vrot.lane.b32.xlu0 %v1112_v35, %s2069_s23  ;;  %v758_v51 = vpop.permute.xlu2 %757  ;;  %v1107_v35 = vpack.c.bf16 %v1930_v18, %v1925_v29 }
 0x17d   : >> { %743 = vrot.lane.b32.xlu1 %v2305_v27, %s2069_s23  ;;  %v1032_v27 = vsel %vm399_vm2, %v1905_v59, %v1906_v58 }
 0x17e   : >> { %v1919_v5 = vpop.permute.xlu0 %1918  ;;  %v1110_v45 = vpack.c.bf16 %v1033_v31, %v1032_v27 }
 0x17f   : >> { %v966_v17 = vpop.permute.xlu1 %965  ;;  %v1921_v6 = vunpack.i.h.bf16 %v1919_v5  ;;  %v1920_v7 = vunpack.i.l.bf16 %v1919_v5  ;;  %v2790_v5 = vunpack.c.h.bf16 %v2321_v33 }
 0x181   : >> { %v819_v52 = vsel %vm399_vm2, %v1920_v7, %v1921_v6  ;;  %v895_v24 = vpack.c.bf16 %v1920_v7, %v1915_v28 }
 0x182   : >> { %v896_v42 = vpack.c.bf16 %v819_v52, %v818_v63 }
 0x183   : >> { %745 = vrot.lane.b32.xlu2 %v2781_v22, %s2069_s23 }
 0x184   : >> { %947 = vrot.lane.b32.xlu0 %v897_v53, %s2069_s23  ;;  %v2793_v53 = vld [vmem:[#allocation14_spill] sm:$0xff] }
 0x185   : >> { %949 = vrot.lane.b32.xlu1 %v898_v55, %s2069_s23  ;;  %v2794_v55 = vunpack.c.l.bf16 %v2793_v53  ;;  %v2796_v11 = vunpack.c.h.bf16 %v2793_v53  ;;  %v1560_v53 = vld [vmem:[%s2738_s1 + $0x18] sm:$0xff] }
 0x186   : >> { %v964_v13 = vpop.permute.xlu0 %963 }
 0x187   : >> { %v756_v14 = vpop.permute.xlu1 %755  ;;  %v974_v15 = vsel %vm663_vm4, %v964_v13, %v966_v17  ;;  %v2792_v17 = vunpack.c.l.bf16 %v2189_v12 }
 0x188   : >> { %v766_v46 = vsel %vm663_vm4, %v756_v14, %v758_v51  ;;  %983 = vmatpush.bf16.msra.mxu2 %v974_v15  ;;  %v1104_v51 = vpack.c.bf16 %v370_v10, %v368_v9 }
 0x189   : >> { %775 = vmatpush.bf16.msra.mxu1 %v766_v46 }
 0x18b   : >> { %1159 = vrot.lane.b32.xlu2 %v1109_v0, %s2069_s23  ;;  %v1103_v0 = vpack.c.bf16 %v369_v8, %v367_v4 }
 0x18c   : >> { %1161 = vrot.lane.b32.xlu0 %v1110_v45, %s2069_s23 }
 0x18d   : >> { %739 = vrot.lane.b32.xlu1 %v2344_v61, %s2069_s23  ;;  %v2782_v61 = vpack.c.bf16 %v2349_v16, %v2337_v41  ;;  %v2783_v41 = vunpack.c.l.bf16 %v2253_v48  ;;  %v2784_v16 = vunpack.c.l.bf16 %v2256_v49  ;;  %v2791_v48 = vunpack.c.h.bf16 %v2279_v57  ;;  %v2799_v57 = vld [vmem:[#allocation16_spill] sm:$0xff] }
 0x18e   : >> { %v1178_v47 = vpop.permute.xlu0 %1177  ;;  %v2800_v59 = vunpack.c.l.bf16 %v2799_v57  ;;  %v2802_v31 = vunpack.c.h.bf16 %v2799_v57 }
 0x18f   : >> { %v1186_v50 = vsel %vm663_vm4, %v1176_v43, %v1178_v47  ;;  %v962_v38 = vpop.permute.xlu1 %961  ;;  %v893_v32 = vpack.c.bf16 %v2784_v16, %v2783_v41  ;;  %v2787_v43 = vpack.c.bf16 %v2352_v20, %v2342_v56  ;;  %v1106_v49 = vpack.c.bf16 %v2791_v48, %v2790_v5 }
 0x190   : >> { %1195 = vmatpush.bf16.msra.mxu3 %v1186_v50  ;;  %v476_v56 = vpack.c.bf16 %v2794_v55, %v2792_v17  ;;  %v2795_v20 = vunpack.c.h.bf16 %v2189_v12 }
 0x192   : >> { %v477_v19 = vpack.c.bf16 %v2796_v11, %v2795_v20 }
 0x193   : >> { %741 = vrot.lane.b32.xlu2 %v2782_v61, %s2069_s23 }
 0x194   : >> { %943 = vrot.lane.b32.xlu0 %v895_v24, %s2069_s23 }
 0x195   : >> { %945 = vrot.lane.b32.xlu1 %v896_v42, %s2069_s23 }
 0x196   : >> { %v960_v26 = vpop.permute.xlu0 %959 }
 0x197   : >> { %v973_v1 = vsel %vm663_vm4, %v960_v26, %v962_v38  ;;  %v752_v14 = vpop.permute.xlu1 %751 }
 0x198   : >> { %984 = vmatpush.bf16.msra.mxu2 %v973_v1 }
 0x19b   : >> { %1155 = vrot.lane.b32.xlu2 %v1107_v35, %s2069_s23 }
 0x19c   : >> { %1157 = vrot.lane.b32.xlu0 %v1108_v34, %s2069_s23 }
 0x19d   : >> { %735 = vrot.lane.b32.xlu1 %v2346_v62, %s2069_s23  ;;  %v2788_v62 = vunpack.c.l.bf16 %v2321_v33  ;;  %v2797_v33 = vld [vmem:[#allocation15_spill] sm:$0xff] }
 0x19e   : >> { %v2798_v58 = vunpack.c.l.bf16 %v2797_v33  ;;  %v2801_v27 = vunpack.c.h.bf16 %v2797_v33  ;;  %v1557_v33 = vld [vmem:[%s2738_s1] sm:$0xff] }
 0x19f   : >> { %v1105_v37 = vpack.c.bf16 %v2789_v44, %v2788_v62 }
 0x1a0   : >> { %v891_v22 = vpack.c.bf16 %v2800_v59, %v2798_v58  ;;  %v892_v13 = vpack.c.bf16 %v2802_v31, %v2801_v27 }
 0x1a3   : >> { %737 = vrot.lane.b32.xlu2 %v2787_v43, %s2069_s23 }
 0x1a4   : >> { %939 = vrot.lane.b32.xlu0 %v893_v32, %s2069_s23 }
 0x1a5   : >> { %941 = vrot.lane.b32.xlu1 %v894_v60, %s2069_s23  ;;  %v1559_v60 = vld [vmem:[%s2738_s1 + $0x10] sm:$0xff] }
 0x1a6   : >> { %688 = vmatmul.bf16.vlgmr.msra.gmra.mxu0 %v1559_v60 }
 0x1ab   : >> { %1151 = vrot.lane.b32.xlu2 %v1105_v37, %s2069_s23 }
 0x1ac   : >> { %1153 = vrot.lane.b32.xlu0 %v1106_v49, %s2069_s23 }
 0x1ad   : >> { %731 = vrot.lane.b32.xlu1 %v476_v56, %s2069_s23 }
 0x1b3   : >> { %733 = vrot.lane.b32.xlu2 %v477_v19, %s2069_s23 }
 0x1b4   : >> { %935 = vrot.lane.b32.xlu0 %v891_v22, %s2069_s23  ;;  %v1561_v22 = vld [vmem:[%s2738_s1 + $0x20] sm:$0xff] }
 0x1b5   : >> { %937 = vrot.lane.b32.xlu1 %v892_v13, %s2069_s23  ;;  %v1172_v12 = vpop.permute.xlu2 %1171 }
 0x1b6   : >> { %693 = vmatmul.bf16.gmra.mxu0 %v1560_v53 }
 0x1bb   : >> { %1147 = vrot.lane.b32.xlu2 %v1103_v0, %s2069_s23  ;;  %v1562_v0 = vld [vmem:[%s2738_s1 + $0x28] sm:$0xff] }
 0x1bc   : >> { %1149 = vrot.lane.b32.xlu0 %v1104_v51, %s2069_s23  ;;  %v1564_v51 = vld [vmem:[%s2738_s1 + $0x38] sm:$0xff] }
 0x1bd   : >> { %v754_v15 = vpop.permute.xlu2 %753 }
 0x1be   : >> { %v765_v46 = vsel %vm663_vm4, %v752_v14, %v754_v15 }
 0x1bf   : >> { %776 = vmatpush.bf16.msra.mxu1 %v765_v46 }
 0x1c5   : >> { %v1168_v45 = vpop.permute.xlu2 %1167 }
 0x1cd   : >> { %v750_v28 = vpop.permute.xlu2 %749 }
 0x1ce   : >> { %v1174_v21 = vpop.permute.xlu0 %1173 }
 0x1cf   : >> { %v1185_v6 = vsel %vm663_vm4, %v1172_v12, %v1174_v21  ;;  %v1563_v12 = vld [vmem:[%s2738_s1 + $0x30] sm:$0xff] }
 0x1d0   : >> { %1196 = vmatpush.bf16.msra.mxu3 %v1185_v6 }
 0x1d5   : >> { %v1164_v10 = vpop.permute.xlu2 %1163 }
 0x1d6   : >> { %v956_v8 = vpop.permute.xlu0 %955 }
 0x1d7   : >> { %v958_v39 = vpop.permute.xlu1 %957 }
 0x1d8   : >> { %v972_v3 = vsel %vm663_vm4, %v956_v8, %v958_v39 }
 0x1d9   : >> { %985 = vmatpush.bf16.msra.mxu2 %v972_v3 }
 0x1dd   : >> { %v746_v63 = vpop.permute.xlu2 %745 }
 0x1de   : >> { %v1170_v4 = vpop.permute.xlu0 %1169 }
 0x1df   : >> { %v748_v9 = vpop.permute.xlu1 %747  ;;  %v1184_v7 = vsel %vm663_vm4, %v1168_v45, %v1170_v4 }
 0x1e0   : >> { %v764_v47 = vsel %vm663_vm4, %v748_v9, %v750_v28  ;;  %1197 = vmatpush.bf16.msra.mxu3 %v1184_v7 }
 0x1e1   : >> { %777 = vmatpush.bf16.msra.mxu1 %v764_v47 }
 0x1e5   : >> { %v1160_v24 = vpop.permute.xlu2 %1159 }
 0x1e6   : >> { %v952_v52 = vpop.permute.xlu0 %951 }
 0x1e7   : >> { %v954_v50 = vpop.permute.xlu1 %953 }
 0x1e8   : >> { %v971_v23 = vsel %vm663_vm4, %v952_v52, %v954_v50 }
 0x1e9   : >> { %986 = vmatpush.bf16.msra.mxu2 %v971_v23 }
 0x1ed   : >> { %v742_v30 = vpop.permute.xlu2 %741 }
 0x1ee   : >> { %v1166_v18 = vpop.permute.xlu0 %1165 }
 0x1ef   : >> { %v744_v40 = vpop.permute.xlu1 %743  ;;  %v1183_v29 = vsel %vm663_vm4, %v1164_v10, %v1166_v18  ;;  %v2803_v10 = vld [vmem:[#allocation5_spill] sm:$0xff] }
 0x1f0   : >> { %v763_v42 = vsel %vm663_vm4, %v744_v40, %v746_v63  ;;  %1198 = vmatpush.bf16.msra.mxu3 %v1183_v29  ;;  %v2804_v47 = vmov %v2803_v10 }
 0x1f1   : >> { %778 = vmatpush.bf16.msra.mxu1 %v763_v42 }
 0x1f5   : >> { %v1156_v41 = vpop.permute.xlu2 %1155 }
 0x1f6   : >> { %v948_v61 = vpop.permute.xlu0 %947 }
 0x1f7   : >> { %v950_v2 = vpop.permute.xlu1 %949 }
 0x1f8   : >> { %v970_v38 = vsel %vm663_vm4, %v948_v61, %v950_v2 }
 0x1f9   : >> { %987 = vmatpush.bf16.msra.mxu2 %v970_v38 }
 0x1fd   : >> { %v738_v25 = vpop.permute.xlu2 %737 }
 0x1fe   : >> { %v1162_v26 = vpop.permute.xlu0 %1161 }
 0x1ff   : >> { %v740_v35 = vpop.permute.xlu1 %739  ;;  %v1182_v1 = vsel %vm663_vm4, %v1160_v24, %v1162_v26 }
 0x200   : >> { %v762_v34 = vsel %vm663_vm4, %v740_v35, %v742_v30  ;;  %1199 = vmatpush.bf16.msra.mxu3 %v1182_v1 }
 0x201   : >> { %779 = vmatpush.bf16.msra.mxu1 %v762_v34 }
 0x205   : >> { %v1152_v5 = vpop.permute.xlu2 %1151 }
 0x206   : >> { %v944_v16 = vpop.permute.xlu0 %943 }
 0x207   : >> { %v946_v32 = vpop.permute.xlu1 %945 }
 0x208   : >> { %v969_v36 = vsel %vm663_vm4, %v944_v16, %v946_v32 }
 0x209   : >> { %988 = vmatpush.bf16.msra.mxu2 %v969_v36 }
 0x20d   : >> { %v734_v55 = vpop.permute.xlu2 %733 }
 0x20e   : >> { %v1158_v43 = vpop.permute.xlu0 %1157 }
 0x20f   : >> { %v736_v62 = vpop.permute.xlu1 %735  ;;  %v1181_v44 = vsel %vm663_vm4, %v1156_v41, %v1158_v43 }
 0x210   : >> { %v761_v37 = vsel %vm663_vm4, %v736_v62, %v738_v25  ;;  %1200 = vmatpush.bf16.msra.mxu3 %v1181_v44 }
 0x211   : >> { %780 = vmatpush.bf16.msra.mxu1 %v761_v37  ;;  %v2805_v37 = vld [vmem:[#allocation13_spill] sm:$0xff] }
 0x215   : >> { %v1148_v27 = vpop.permute.xlu2 %1147 }
 0x216   : >> { %v940_v48 = vpop.permute.xlu0 %939 }
 0x217   : >> { %v942_v49 = vpop.permute.xlu1 %941 }
 0x218   : >> { %v968_v17 = vsel %vm663_vm4, %v940_v48, %v942_v49 }
 0x219   : >> { %989 = vmatpush.bf16.msra.mxu2 %v968_v17  ;;  %v2806_v17 = vld [vmem:[#allocation9_spill] sm:$0xff] }
 0x21e   : >> { %v1154_v56 = vpop.permute.xlu0 %1153 }
 0x21f   : >> { %v732_v20 = vpop.permute.xlu1 %731  ;;  %v1180_v11 = vsel %vm663_vm4, %v1152_v5, %v1154_v56 }
 0x220   : >> { %v760_v19 = vsel %vm663_vm4, %v732_v20, %v734_v55  ;;  %1201 = vmatpush.bf16.msra.mxu3 %v1180_v11  ;;  %v2807_v55 = vld [vmem:[#allocation12_spill] sm:$0xff]  ;;  %v2808_v11 = vld [vmem:[#allocation11_spill] sm:$0xff] }
 0x221   : >> { %781 = vmatpush.bf16.msra.mxu1 %v760_v19 }
 0x223   : >> { %v689_v14 = vpop.f32.mrf.mxu0 }
 0x225   : >> { %782 = vmatpush.bf16.msra.mxu1 %v2467_v54  ;;  %v1558_v54 = vld [vmem:[%s2738_s1 + $0x8] sm:$0xff] }
 0x226   : >> { %v936_v58 = vpop.permute.xlu0 %935 }
 0x227   : >> { %v938_v57 = vpop.permute.xlu1 %937 }
 0x228   : >> { %v967_v59 = vsel %vm663_vm4, %v936_v58, %v938_v57  ;;  %783 = vmatmul.bf16.vlgmr.msra.gmra.mxu1 %v1557_v33  ;;  %v2809_v57 = vld [vmem:[#allocation7_spill] sm:$0xff] }
 0x229   : >> { %990 = vmatpush.bf16.msra.mxu2 %v967_v59 }
 0x22b   : >> { %v691_v28 = vpop.f32.mrf.mxu0 }
 0x22c   : >> { %991 = vmatmul.bf16.vlgmr.msra.gmra.mxu2 %v1561_v22  ;;  %v2810_v22 = vld [vmem:[#allocation10_spill] sm:$0xff] }
 0x22e   : >> { %v1150_v31 = vpop.permute.xlu0 %1149 }
 0x22f   : >> { %v1179_v13 = vsel %vm663_vm4, %v1148_v27, %v1150_v31 }
 0x230   : >> { %1202 = vmatpush.bf16.msra.mxu3 %v1179_v13  ;;  %v2811_v13 = vld [vmem:[#allocation6_spill] sm:$0xff] }
 0x233   : >> { %1203 = vmatmul.bf16.vlgmr.msra.gmra.mxu3 %v1563_v12  ;;  %v694_v63 = vpop.f32.mrf.mxu0 }
 0x238   : >> { %788 = vmatmul.bf16.gmra.mxu1 %v1558_v54 }
 0x23b   : >> { %v696_v38 = vpop.f32.mrf.mxu0 }
 0x23c   : >> { %996 = vmatmul.bf16.gmra.mxu2 %v1562_v0  ;;  %v2812_v0 = vld [vmem:[#allocation8_spill] sm:$0xff] }
 0x243   : >> { %1208 = vmatmul.bf16.gmra.mxu3 %v1564_v51 }
 0x2a5   : >> { %v784_v15 = vpop.f32.mrf.mxu1 }
 0x2a6   : >> { %v785_v46 = vadd.f32 %v784_v15, %v689_v14 }
 0x2ad   : >> { %v786_v6 = vpop.f32.mrf.mxu1 }
 0x2ae   : >> { %v787_v9 = vadd.f32 %v786_v6, %v691_v28 }
 0x2af   : >> { %v992_v45 = vpop.f32.mrf.mxu2 }
 0x2b0   : >> { %v1002_v21 = vadd.f32 %v992_v45, %v785_v46 }
 0x2b5   : >> { %v789_v52 = vpop.f32.mrf.mxu1 }
 0x2b6   : >> { %v1204_v8 = vpop.f32.mrf.mxu3  ;;  %v790_v23 = vadd.f32 %v789_v52, %v694_v63 }
 0x2b7   : >> { %v994_v39 = vpop.f32.mrf.mxu2  ;;  %v1214_v3 = vadd.f32 %v1204_v8, %v1002_v21 }
 0x2b8   : >> { %v1003_v7 = vadd.f32 %v994_v39, %v787_v9 }
 0x2b9   : >> { %v1218_v4 = vmul.f32 %v2803_v10, %v1214_v3 }
 0x2bb   : >> { %1222 = vadd.xlane.f32.xlu1 %v1218_v4  ;;  %v1234_v29 = vmul.f32 %v1218_v4, %v1218_v4 }
 0x2bd   : >> { %v791_v26 = vpop.f32.mrf.mxu1 }
 0x2be   : >> { %v1206_v50 = vpop.f32.mrf.mxu3  ;;  %v792_v34 = vadd.f32 %v791_v26, %v696_v38 }
 0x2bf   : >> { %v1215_v24 = vadd.f32 %v1206_v50, %v1003_v7  ;;  %v997_v18 = vpop.f32.mrf.mxu2 }
 0x2c0   : >> { %v1004_v42 = vadd.f32 %v997_v18, %v790_v23 }
 0x2c1   : >> { %v1219_v40 = vmul.f32 %v2804_v47, %v1215_v24 }
 0x2c3   : >> { %v1569_v61 = vpack.c.bf16 %v1219_v40, %v1218_v4  ;;  %1238 = vadd.xlane.f32.xlu1 %v1234_v29  ;;  %1224 = vadd.xlane.f32.xlu2 %v1219_v40  ;;  %v1235_v62 = vmul.f32 %v1219_v40, %v1219_v40 }
 0x2c5   : >> { %1570 = vst [vmem:[%s1256_s22] sm:$0xff] %v1569_v61  }
 0x2c6   : >> { %v1209_v30 = vpop.f32.mrf.mxu3 }
 0x2c7   : >> { %v1216_v2 = vadd.f32 %v1209_v30, %v1004_v42  ;;  %v999_v1 = vpop.f32.mrf.mxu2 }
 0x2c8   : >> { %v1005_v41 = vadd.f32 %v999_v1, %v792_v34 }
 0x2c9   : >> { %v1220_v35 = vmul.f32 %v2804_v47, %v1216_v2 }
 0x2cb   : >> { %1226 = vadd.xlane.f32.xlu0 %v1220_v35  ;;  %v1236_v25 = vmul.f32 %v1220_v35, %v1220_v35 }
 0x2ce   : >> { %v1211_v16 = vpop.f32.mrf.mxu3 }
 0x2cf   : >> { %v1217_v32 = vadd.f32 %v1211_v16, %v1005_v41 }
 0x2d1   : >> { %v1221_v36 = vmul.f32 %v2804_v47, %v1217_v32 }
 0x2d3   : >> { %v1574_v60 = vpack.c.bf16 %v1221_v36, %v1220_v35  ;;  %1242 = vadd.xlane.f32.xlu0 %v1236_v25  ;;  %1228 = vadd.xlane.f32.xlu2 %v1221_v36  ;;  %v1237_v43 = vmul.f32 %v1221_v36, %v1221_v36 }
 0x2d5   : >> { %1576 = vst [vmem:[%s1256_s22 + $0x8] sm:$0xff] %v1574_v60   ;;  %1244 = vadd.xlane.f32.xlu1 %v1237_v43 }
 0x2db   : >> { %1240 = vadd.xlane.f32.xlu2 %v1235_v62 }
 0x32e   : >> { %v1223_v44 = vpop.xlane.xlu1 %1222 }
 0x32f   : >> { %v1230_v48 = vadd.f32 %v2805_v37, %v1223_v44  }
 0x331   : > { %1262 = vst.msk [vmem:[%s2130_s11] sm:$0xff] (%p298_p8), %vm399_vm2, %v1230_v48 }
 0x336   : >> { %v1239_v5 = vpop.xlane.xlu1 %1238  ;;  %v1225_v49 = vpop.xlane.xlu2 %1224 }
 0x337   : >> { %v1246_v53 = vadd.f32 %v2806_v17, %v1239_v5   ;;  %v1231_v56 = vadd.f32 %v2807_v55, %v1225_v49  }
 0x339   : >> { %v2816_v7 = vmov %v1246_v53  ;;  %v2819_v10 = vmov %v1231_v56  ;;  %1263 = vst.msk [vmem:[%s2130_s11 + $0x8] sm:$0xff] (%p298_p8), %vm399_vm2, %v1231_v56 }
 0x33a   : > { %1267 = vst.msk [vmem:[%s2130_s11] sm:$0xff] (%p298_p8), %vm1266_vm5, %v1246_v53 }
 0x33e   : >> { %v1227_v20 = vpop.xlane.xlu0 %1226 }
 0x33f   : >> { %v1232_v19 = vadd.f32 %v2808_v11, %v1227_v20   ;;  %v2820_v11 = vmov %v1230_v48 }
 0x341   : >> { %v2818_v9 = vmov %v1232_v19  ;;  %1264 = vst.msk [vmem:[%s2130_s11 + $0x10] sm:$0xff] (%p298_p8), %vm399_vm2, %v1232_v19 }
 0x346   : >> { %v1243_v33 = vpop.xlane.xlu0 %1242  ;;  %v1229_v58 = vpop.xlane.xlu2 %1228 }
 0x347   : >> { %v1248_v59 = vadd.f32 %v2809_v57, %v1243_v33   ;;  %v1233_v27 = vadd.f32 %v2810_v22, %v1229_v58  }
 0x348   : >> { %v1245_v31 = vpop.xlane.xlu1 %1244 }
 0x349   : >> { %v1249_v12 = vadd.f32 %v2811_v13, %v1245_v31   ;;  %v2814_v5 = vmov %v1248_v59  ;;  %v2817_v8 = vmov %v1233_v27  ;;  %1265 = vst.msk [vmem:[%s2130_s11 + $0x18] sm:$0xff] (%p298_p8), %vm399_vm2, %v1233_v27 }
 0x34a   : > { %1269 = vst.msk [vmem:[%s2130_s11 + $0x10] sm:$0xff] (%p298_p8), %vm1266_vm5, %v1248_v59 }
 0x34b   : >> { %v2813_v4 = vmov %v1249_v12  ;;  %1270 = vst.msk [vmem:[%s2130_s11 + $0x18] sm:$0xff] (%p298_p8), %vm1266_vm5, %v1249_v12 }
 0x34d   : > { %300 = sbr.rel (!%p298_p8) target bundleno = 22 (0x16), region = 98 }
 0x34e   : >> { %v1241_v54 = vpop.xlane.xlu2 %1240 }
 0x34f   : >> { %v1247_v51 = vadd.f32 %v2812_v0, %v1241_v54  }
 0x351   : >> { %v2815_v6 = vmov %v1247_v51  ;;  %1268 = vst.msk [vmem:[%s2130_s11 + $0x8] sm:$0xff] (%p298_p8), %vm1266_vm5, %v1247_v51 }
 0x352 PF: > { %s17_s20 = sadd.s32 1, %s2024_s20   ;;  %s2821_s18 = smov %s2020_s19 }
 0x353   : > { %p14_p9 = scmp.ge.s32.totalorder %s17_s20, 4   ;;  %s2822_s19 = smov %s2824_s21 }
 0x355   :  { %16 = sbr.rel (!%p14_p9) target bundleno = 2 (0x2), region = 109 }
 0x35a   :  { %1327 = vsyncpa [#allocation3], 1 }
 0x35b   :  { %1329 = vsyncpa [#allocation3 + $0x1], 1 }

// kernel: decoder_conv_variational_forward.9
= control target key start
LH: loop header
LB: loop body
LE: loop exit
PB: predicated region body
PF: predicated region fallthrough
CT: control target
= control target key end

     0   :  { %s1948_s18 = smov 0   ;;  %s1950_s19 = smov 0   ;;  %s2454_s0 = inlined_call_operand.vmem [shape: bf16[2,17,16,256], index: 0, kind: input, shape index: {}]   ;;  %s2455_s1 = inlined_call_operand.vmem [shape: bf16[12,8,48], index: 1, kind: input, shape index: {}]   ;;  %s2456_s2 = inlined_call_operand.vmem [shape: f32[8,1], index: 2, kind: input, shape index: {}]   ;;  %s2457_s3 = inlined_call_operand.vmem [shape: f32[2,16,1], index: 3, kind: input, shape index: {}]   ;;  %s2458_s4 = inlined_call_operand.vmem [shape: bf16[2,14,32,128], index: 4, kind: output, shape index: {0}]   ;;  %s2459_s5 = inlined_call_operand.vmem [shape: f32[2,1,8,2], index: 5, kind: output, shape index: {1}]  }
   0x1   :  { %s1952_s20 = smov 0  }
   0x2 LB: > { %s28_s2 = sadd.s32 1, %s1875_s19  ;;  %p1558_p0 = scmp.ge.s32.totalorder %s1879_s20, 1  ;;  %s1879_s20 = sphi %s1952_s20, %s16_s20   ;;  %s1875_s19 = sphi %s1950_s19, %s2484_s19   ;;  %s1871_s18 = sphi %s1948_s18, %s2483_s18  }
   0x3   : > { %p30_p1 = scmp.ge.s32.totalorder %s28_s2, 2  ;;  %p206_p2 = scmp.lt.s32.totalorder %s1879_s20, 3 }
   0x5   : > { %s2486_s2 = smov (%p30_p1, %s28_s2), 0  ;;  %p207_p3 = pnand %p1558_p0, %p206_p2 }
   0x6   : > { %p246_p4 = scmp.lt.s32.totalorder (!%p207_p3), %s1871_s18, 1  ;;  %s2011_s16 = smov (!%p207_p3), 0  }
   0x7   : > { %210 = sbr.rel (%p207_p3) target bundleno = 1398 (0x576), region = 36 }
   0xc   : > { %v271_v0 = vlaneseq  ;;  %v1969_v1 = vld [vmem:[%s2457_s3] sm:$0xff]  ;;  %v1974_v2 = vld [vmem:[%s2457_s3 + $0x8] sm:$0xff]  ;;  %v1979_v3 = vld [vmem:[%s2457_s3 + $0x10] sm:$0xff]  ;;  %s2488_s18 = smov (!%p246_p4, %s1871_s18), 1  ;;  %v1905_v6 = vmov 0.0   ;;  %v2007_v9 = vmov 0.0  }
   0xd   : > { %v1984_v4 = vld [vmem:[%s2457_s3 + $0x18] sm:$0xff]  ;;  %s1620_s29 = smul.u32 272, %s2488_s18  ;;  %s1561_s30 = sshll.u32 %s2488_s18, 3  ;;  %v2009_v10 = vmov 0.0  }
   0xe   : > { %v272_v5 = vand.u32 127, %v271_v0  ;;  %s1621_s6 = smul.u32 224, %s2488_s18  ;;  %s1989_s9 = scalar_lea.vmem %s2459_s5, %s1561_s30 }
   0xf   : > { %s2000_s12 = scalar_lea.vmem %s2454_s0, %s1620_s29 }
  0x10   : > { %vm273_vm0 = vcmp.lt.s32.totalorder %v272_v5, 14  ;;  %vm277_vm1 = vcmp.ge.s32.totalorder %v272_v5, 2  ;;  %vm279_vm2 = vcmp.lt.s32.totalorder %v272_v5, 15  ;;  %s2005_s15 = scalar_lea.vmem %s2458_s4, %s1621_s6 }
  0x11   : > { %v1991_v7 = vsel %vm273_vm0, 1.0, %v1905_v6  ;;  %vm1993_vm3 = vmand %vm277_vm1, %vm279_vm2 }
  0x12 LB: >> { %v1906_v11 = vmov 0   ;;  %v1907_v12 = vmov 0.0|0.0   ;;  %s1908_s17 = smov 125   ;;  %s1909_s18 = smov 126   ;;  %vm558_vm0 = vcmask 1022976   ;;  %vm471_vm1 = vcmask 7168   ;;  %s1891_s16 = sphi %s2011_s16, %s2472_s16   ;;  %v1887_v10 = vphi %v2009_v10, %v2471_v10   ;;  %v1883_v9 = vphi %v2007_v9, %v2470_v9  }
  0x13   : >> { %1710 = vset.pattern.permute.xlu1 %v1906_v11  ;;  %1709 = vset.pattern.permute.xlu0 %v1906_v11  ;;  %s2035_s21 = sadd.s32 1, %s1891_s16   ;;  %s1565_s22 = sshll.u32 %s1891_s16, 4  ;;  %vm486_vm2 = vcmask 15360  }
  0x14   : >> { %324 = vperm.xlu1 %1710, %v1979_v3   ;;  %310 = vperm.xlu0 %1709, %v1969_v1   ;;  %p348_p5 = scmp.ge.s32.totalorder %s2035_s21, 0  ;;  %p349_p6 = scmp.lt.s32.totalorder %s2035_s21, 13 }
  0x15   : >> { %p395_p7 = scmp.ge.s32.totalorder %s1891_s16, 0  ;;  %p396_p8 = scmp.lt.s32.totalorder %s1891_s16, 13 }
  0x16   : >> { %s2045_s23 = scalar_lea.vmem %s2000_s12, %s1565_s22  ;;  %p350_p9 = pnand %p349_p6, %p348_p5 }
  0x17   : >> { %p397_p10 = pnand %p396_p8, %p395_p7  ;;  %v1566_v13 = vld [vmem:[%s2045_s23 + $0x30] sm:$0xf]  ;;  %v1570_v14 = vld [vmem:[%s2045_s23 + $0x20] sm:$0xf]  ;;  %s412_s26 = sadd.s32 4294967295, %s1891_s16 }
  0x18   : >> { %s1568_s24 = scalar_select %p350_p9, 0, 1  ;;  %v304_v15 = vunpack.c.l.bf16 %v1566_v13  ;;  %v371_v16 = vunpack.c.l.bf16 %v1570_v14  ;;  %v1574_v23 = vld [vmem:[%s2045_s23 + $0x10] sm:$0xf]  ;;  %v1567_v24 = vld [vmem:[%s2045_s23 + $0x38] sm:$0xf] }
  0x19   : >> { %s1572_s25 = scalar_select %p397_p10, 0, 1  ;;  %v1571_v25 = vld [vmem:[%s2045_s23 + $0x28] sm:$0xf]  ;;  %v418_v28 = vunpack.c.l.bf16 %v1574_v23  ;;  %v306_v29 = vunpack.c.l.bf16 %v1567_v24  ;;  %v1575_v38 = vld [vmem:[%s2045_s23 + $0x18] sm:$0xf] }
  0x1a   : >> { %v353_v17 = vstv %s1568_s24  ;;  %p2052_p11 = scmp.ge.s32.totalorder %s412_s26, 0  ;;  %p2056_p12 = scmp.lt.s32.totalorder %s412_s26, 13  ;;  %v373_v31 = vunpack.c.l.bf16 %v1571_v25  ;;  %v420_v49 = vunpack.c.l.bf16 %v1575_v38 }
  0x1b   : >> { %v400_v20 = vstv %s1572_s25  ;;  %vm354_vm4 = vcmp.eq.s32.totalorder %v353_v17, 1  ;;  %s1910_s30 = smov 2   ;;  %s1911_s6 = smov 1  }
  0x1c   : >> { %329 = vperm.xlu1 %1710, %v1984_v4   ;;  %315 = vperm.xlu0 %1709, %v1974_v2   ;;  %vm401_vm5 = vcmp.eq.s32.totalorder %v400_v20, 1  ;;  %vm2063_vm8 = vmand %vm1993_vm3, %vm354_vm4  ;;  %p444_p13 = pnand %p2056_p12, %p2052_p11  ;;  %vm565_vm4 = vcmask 392192   ;;  %s714_s27 = scalar_lea.vmem %s2005_s15, %s1565_s22 }
  0x1d   : >> { %vm2073_vm9 = vmand %vm1993_vm3, %vm401_vm5  ;;  %vm730_vm5 = vcmask 1031168   ;;  %p290_p0 = scmp.ge.s32.totalorder %s2035_s21, 14   ;;  %s2472_s16 = smov %s2035_s21 }
  0x1e   : >> { %s1576_s29 = scalar_select %p444_p13, 0, 1 }
  0x1f   : > { %s2229_s16 = smov (%p290_p0), 0  }
  0x20   : >> { %v447_v53 = vstv %s1576_s29 }
  0x21   : >> { %vm2088_vm12 = vcmp.eq.s32.totalorder %v447_v53, 1 }
  0x22   : >> { %vm449_vm14 = vmand %vm1993_vm3, %vm2088_vm12 }
  0x24   : >> { %590 = vrot.lane.b32.xlu0 %v1907_v12, %s1908_s17  ;;  %548 = vrot.lane.b32.xlu1 %v1907_v12, %s1908_s17 }
  0x2c   : >> { %722 = vrot.lane.b32.xlu0 %v1907_v12, %s1909_s18  ;;  %670 = vrot.lane.b32.xlu1 %v1907_v12, %s1908_s17 }
  0x86   : >> { %v325_v18 = vpop.permute.xlu1 %324  ;;  %v311_v19 = vpop.permute.xlu0 %310 }
  0x87   : >> { %v318_v21 = vmul.f32 %v311_v19, %v304_v15  ;;  %v375_v22 = vmul.f32 %v371_v16, %v311_v19  ;;  %v422_v36 = vmul.f32 %v418_v28, %v311_v19 }
  0x89   : >> { %v332_v26 = vadd.f32 %v325_v18, %v318_v21  ;;  %v379_v27 = vadd.f32 %v375_v22, %v325_v18  ;;  %v426_v50 = vadd.f32 %v422_v36, %v325_v18 }
  0x8b   : >> { %v340_v30 = vmul.f32 0.05, %v332_v26  ;;  %vm383_vm6 = vcmp.ge.f32.partialorder %v379_v27, 0.0  ;;  %vm336_vm7 = vcmp.ge.f32.partialorder %v332_v26, 0.0  ;;  %v387_v33 = vmul.f32 0.05, %v379_v27 }
  0x8c   : >> { %v434_v57 = vmul.f32 0.05, %v426_v50  ;;  %vm430_vm13 = vcmp.ge.f32.partialorder %v426_v50, 0.0 }
  0x8d   : >> { %v344_v35 = vsel %vm336_vm7, %v332_v26, %v340_v30  ;;  %v391_v39 = vsel %vm383_vm6, %v379_v27, %v387_v33 }
  0x8e   : >> { %v316_v37 = vpop.permute.xlu0 %315  ;;  %v361_v40 = vsel %vm2063_vm8, %v344_v35, 0.0  ;;  %v408_v43 = vsel %vm2073_vm9, %v391_v39, 0.0  ;;  %v330_v44 = vpop.permute.xlu1 %329  ;;  %v438_v0 = vsel %vm430_vm13, %v426_v50, %v434_v57 }
  0x8f   : >> { %v320_v41 = vmul.f32 %v316_v37, %v306_v29  ;;  %v377_v42 = vmul.f32 %v373_v31, %v316_v37  ;;  %v1711_v45 = vpack.i.bf16 0.0, %v408_v43  ;;  %v1721_v46 = vpack.i.bf16 0.0, %v361_v40 }
  0x90   : >> { %v424_v54 = vmul.f32 %v420_v49, %v316_v37  ;;  %v455_v6 = vsel %vm449_vm14, %v438_v0, 0.0 }
  0x91   : >> { %v334_v47 = vadd.f32 %v330_v44, %v320_v41  ;;  %v381_v48 = vadd.f32 %v377_v42, %v330_v44  ;;  %1712 = vrot.lane.b32.xlu2 %v1711_v45, %s1910_s30  ;;  %1722 = vrot.lane.b32.xlu0 %v1721_v46, %s1910_s30  ;;  %v1751_v11 = vpack.i.bf16 0.0, %v455_v6 }
  0x92   : >> { %v428_v63 = vadd.f32 %v424_v54, %v330_v44 }
  0x93   : >> { %v342_v51 = vmul.f32 0.05, %v334_v47  ;;  %v389_v52 = vmul.f32 0.05, %v381_v48  ;;  %vm385_vm10 = vcmp.ge.f32.partialorder %v381_v48, 0.0  ;;  %vm338_vm11 = vcmp.ge.f32.partialorder %v334_v47, 0.0 }
  0x94   : >> { %v436_v5 = vmul.f32 0.05, %v428_v63  ;;  %vm432_vm15 = vcmp.ge.f32.partialorder %v428_v63, 0.0 }
  0x95   : >> { %v393_v55 = vsel %vm385_vm10, %v381_v48, %v389_v52  ;;  %v346_v56 = vsel %vm338_vm11, %v334_v47, %v342_v51 }
  0x96   : >> { %v410_v58 = vsel %vm2073_vm9, %v393_v55, 0.0  ;;  %v363_v59 = vsel %vm2063_vm8, %v346_v56, 0.0  ;;  %v440_v13 = vsel %vm432_vm15, %v428_v63, %v436_v5  ;;  %v591_v20 = vpop.permute.xlu0 %590  ;;  %v2110_v25 = vpop.permute.xlu1 %548 }
  0x97   : >> { %v1716_v61 = vpack.i.bf16 0.0, %v410_v58  ;;  %v1726_v62 = vpack.i.bf16 0.0, %v363_v59  ;;  %v457_v14 = vsel %vm449_vm14, %v440_v13, 0.0  ;;  %v534_v16 = vpack.c.bf16 %v410_v58, %v408_v43 }
  0x98   : >> { %v1756_v15 = vpack.i.bf16 0.0, %v457_v14  ;;  %v2101_v17 = vpack.c.bf16 %v457_v14, %v455_v6  ;;  %v2103_v18 = vpack.c.bf16 %v363_v59, %v361_v40 }
  0x99   : >> { %1727 = vrot.lane.b32.xlu1 %v1726_v62, %s1910_s30  ;;  %1717 = vrot.lane.b32.xlu2 %v1716_v61, %s1910_s30 }
  0x9a   : >> { %1737 = vrot.lane.b32.xlu0 %v1716_v61, %s1911_s6 }
  0x9e   : >> { %v2113_v26 = vpop.permute.xlu0 %722  ;;  %v2115_v28 = vpop.permute.xlu1 %670 }
  0xa1   : >> { %1742 = vrot.lane.b32.xlu1 %v1721_v46, %s1911_s6  ;;  %1732 = vrot.lane.b32.xlu2 %v1711_v45, %s1911_s6 }
  0xa2   : >> { %1752 = vrot.lane.b32.xlu0 %v1751_v11, %s1910_s30 }
  0xa9   : >> { %1757 = vrot.lane.b32.xlu1 %v1756_v15, %s1910_s30  ;;  %1747 = vrot.lane.b32.xlu2 %v1726_v62, %s1911_s6 }
  0xaa   : >> { %1767 = vrot.lane.b32.xlu0 %v1756_v15, %s1911_s6 }
  0xb1   : >> { %1762 = vrot.lane.b32.xlu2 %v1751_v11, %s1911_s6 }
  0xb2   : >> { %546 = vrot.lane.b32.xlu0 %v534_v16, %s1908_s17 }
  0xb9   : >> { %588 = vrot.lane.b32.xlu2 %v2103_v18, %s1908_s17 }
  0xba   : >> { %668 = vrot.lane.b32.xlu0 %v2101_v17, %s1908_s17 }
  0xc1   : >> { %720 = vrot.lane.b32.xlu2 %v534_v16, %s1909_s18 }
  0xeb   : >> { %v1713_v19 = vpop.permute.xlu2 %1712 }
  0xec   : >> { %v1714_v22 = vunpack.i.l.bf16 %v1713_v19  ;;  %v1715_v55 = vunpack.i.h.bf16 %v1713_v19 }
  0xee   : >> { %v526_v63 = vsel %vm486_vm2, %v1714_v22, %v1715_v55 }
  0xf3   : >> { %v1718_v21 = vpop.permute.xlu2 %1717 }
  0xf4   : >> { %v1719_v23 = vunpack.i.l.bf16 %v1718_v21  ;;  %v1720_v53 = vunpack.i.h.bf16 %v1718_v21 }
  0xf6   : >> { %v538_v24 = vpack.c.bf16 %v1719_v23, %v1714_v22  ;;  %v527_v59 = vsel %vm486_vm2, %v1719_v23, %v1720_v53 }
  0xf7   : >> { %v539_v0 = vpack.c.bf16 %v527_v59, %v526_v63 }
  0xf8   : >> { %554 = vrot.lane.b32.xlu1 %v538_v24, %s1908_s17 }
  0xfb   : >> { %v1733_v27 = vpop.permute.xlu2 %1732 }
  0xfc   : >> { %v1734_v36 = vunpack.i.l.bf16 %v1733_v27  ;;  %v1735_v54 = vunpack.i.h.bf16 %v1733_v27 }
  0xfe   : >> { %v512_v60 = vsel %vm471_vm1, %v1734_v36, %v1735_v54 }
 0x103   : >> { %v1748_v29 = vpop.permute.xlu2 %1747  ;;  %v2117_v30 = vpop.permute.xlu0 %1722 }
 0x104   : >> { %v1724_v32 = vunpack.i.l.bf16 %v2117_v30  ;;  %v1749_v41 = vunpack.i.l.bf16 %v1748_v29  ;;  %v1750_v6 = vunpack.i.h.bf16 %v1748_v29  ;;  %v1725_v19 = vunpack.i.h.bf16 %v2117_v30 }
 0x106   : >> { %v473_v13 = vsel %vm471_vm1, %v1749_v41, %v1750_v6  ;;  %v487_v23 = vsel %vm486_vm2, %v1724_v32, %v1725_v19 }
 0x10b   : >> { %v1728_v31 = vpop.permute.xlu1 %1727  ;;  %v2120_v33 = vpop.permute.xlu2 %1762 }
 0x10c   : >> { %v1729_v34 = vunpack.i.l.bf16 %v1728_v31  ;;  %v1738_v35 = vpop.permute.xlu0 %1737  ;;  %v1764_v58 = vunpack.i.l.bf16 %v2120_v33  ;;  %v1730_v14 = vunpack.i.h.bf16 %v1728_v31 }
 0x10d   : >> { %v1739_v37 = vunpack.i.l.bf16 %v1738_v35  ;;  %v1740_v51 = vunpack.i.h.bf16 %v1738_v35 }
 0x10e   : >> { %v498_v38 = vpack.c.bf16 %v1729_v34, %v1724_v32  ;;  %v488_v21 = vsel %vm486_vm2, %v1729_v34, %v1730_v14  ;;  %v1585_v14 = vld [vmem:[%s2455_s1 + $0x10] sm:$0xf] }
 0x10f   : >> { %v536_v39 = vpack.c.bf16 %v1739_v37, %v1734_v36  ;;  %v513_v57 = vsel %vm471_vm1, %v1739_v37, %v1740_v51 }
 0x110   : >> { %596 = vrot.lane.b32.xlu0 %v498_v38, %s1908_s17  ;;  %v537_v62 = vpack.c.bf16 %v513_v57, %v512_v60  ;;  %v1577_v57 = vld [vmem:[%s2455_s1 + $0x4] sm:$0xf] }
 0x111   : >> { %550 = vrot.lane.b32.xlu2 %v536_v39, %s1908_s17 }
 0x113   : >> { %v1743_v40 = vpop.permute.xlu1 %1742  ;;  %v589_v43 = vpop.permute.xlu2 %588 }
 0x114   : >> { %v1744_v42 = vunpack.i.l.bf16 %v1743_v40  ;;  %v1753_v44 = vpop.permute.xlu0 %1752  ;;  %v2125_v45 = vsel %vm558_vm0, %v589_v43, %v591_v20  ;;  %v1745_v5 = vunpack.i.h.bf16 %v1743_v40 }
 0x115   : >> { %v1754_v48 = vunpack.i.l.bf16 %v1753_v44  ;;  %v1755_v20 = vunpack.i.h.bf16 %v1753_v44 }
 0x116   : >> { %v496_v46 = vpack.c.bf16 %v1749_v41, %v1744_v42  ;;  %v472_v11 = vsel %vm471_vm1, %v1744_v42, %v1745_v5 }
 0x117   : >> { %v497_v15 = vpack.c.bf16 %v473_v13, %v472_v11  ;;  %v648_v27 = vsel %vm486_vm2, %v1754_v48, %v1755_v20  ;;  %v493_v11 = vld [vmem:[%s2455_s1] sm:$0xf] }
 0x118   : >> { %592 = vrot.lane.b32.xlu1 %v496_v46, %s1908_s17  ;;  %728 = vrot.lane.b32.xlu0 %v538_v24, %s1909_s18  ;;  %v499_v24 = vpack.c.bf16 %v488_v21, %v487_v23  ;;  %v1588_v23 = vld [vmem:[%s2455_s1 + $0x14] sm:$0xf] }
 0x119   : >> { %760 = vrot.lane.b32.xlu2 %v498_v38, %s1909_s18 }
 0x11b   : >> { %v1758_v47 = vpop.permute.xlu1 %1757  ;;  %v721_v32 = vpop.permute.xlu2 %720 }
 0x11c   : >> { %v1759_v49 = vunpack.i.l.bf16 %v1758_v47  ;;  %v1768_v52 = vpop.permute.xlu0 %1767  ;;  %v1760_v16 = vunpack.i.h.bf16 %v1758_v47  ;;  %v731_v13 = vsel %vm730_vm5, %v721_v32, %v2113_v26 }
 0x11d   : >> { %v1769_v56 = vunpack.i.l.bf16 %v1768_v52  ;;  %v1770_v31 = vunpack.i.h.bf16 %v1768_v52 }
 0x11e   : >> { %v660_v50 = vpack.c.bf16 %v1759_v49, %v1754_v48  ;;  %v649_v22 = vsel %vm486_vm2, %v1759_v49, %v1760_v16 }
 0x11f   : >> { %v658_v61 = vpack.c.bf16 %v1769_v56, %v1764_v58  ;;  %v661_v29 = vpack.c.bf16 %v649_v22, %v648_v27  ;;  %v635_v30 = vsel %vm471_vm1, %v1769_v56, %v1770_v31  ;;  %v1584_v22 = vld [vmem:[%s2455_s1 + $0xc] sm:$0xf] }
 0x120   : >> { %676 = vrot.lane.b32.xlu1 %v660_v50, %s1908_s17  ;;  %724 = vrot.lane.b32.xlu0 %v536_v39, %s1909_s18 }
 0x121   : >> { %756 = vrot.lane.b32.xlu2 %v496_v46, %s1909_s18 }
 0x124   : >> { %v547_v36 = vpop.permute.xlu0 %546 }
 0x125   : >> { %v559_v55 = vsel %vm558_vm0, %v547_v36, %v2110_v25 }
 0x128   : >> { %672 = vrot.lane.b32.xlu1 %v658_v61, %s1908_s17  ;;  %552 = vrot.lane.b32.xlu0 %v537_v62, %s1908_s17 }
 0x129   : >> { %556 = vrot.lane.b32.xlu2 %v539_v0, %s1908_s17 }
 0x12c   : >> { %v669_v38 = vpop.permute.xlu0 %668 }
 0x12d   : >> { %v680_v56 = vsel %vm558_vm0, %v669_v38, %v2115_v28 }
 0x130   : >> { %793 = vrot.lane.b32.xlu1 %v660_v50, %s1909_s18  ;;  %752 = vrot.lane.b32.xlu0 %v2103_v18, %s1909_s18  ;;  %v1765_v18 = vunpack.i.h.bf16 %v2120_v33 }
 0x131   : >> { %594 = vrot.lane.b32.xlu2 %v497_v15, %s1908_s17 }
 0x132   : >> { %v634_v34 = vsel %vm471_vm1, %v1764_v58, %v1765_v18  ;;  %v1580_v58 = vld [vmem:[%s2455_s1 + $0x8] sm:$0xf] }
 0x133   : >> { %v659_v35 = vpack.c.bf16 %v635_v30, %v634_v34 }
 0x138   : >> { %598 = vrot.lane.b32.xlu1 %v499_v24, %s1908_s17  ;;  %758 = vrot.lane.b32.xlu0 %v497_v15, %s1909_s18 }
 0x139   : >> { %678 = vrot.lane.b32.xlu2 %v661_v29, %s1908_s17 }
 0x140   : >> { %726 = vrot.lane.b32.xlu1 %v537_v62, %s1909_s18  ;;  %787 = vrot.lane.b32.xlu0 %v1907_v12, %s1909_s18 }
 0x141   : >> { %674 = vrot.lane.b32.xlu2 %v659_v35, %s1908_s17 }
 0x148   : >> { %789 = vrot.lane.b32.xlu1 %v658_v61, %s1909_s18 }
 0x149   : >> { %791 = vrot.lane.b32.xlu2 %v659_v35, %s1909_s18 }
 0x150   : >> { %754 = vrot.lane.b32.xlu1 %v1907_v12, %s1909_s18 }
 0x151   : >> { %785 = vrot.lane.b32.xlu2 %v2101_v17, %s1909_s18 }
 0x16a   : >> { %v555_v40 = vpop.permute.xlu1 %554 }
 0x16b   : >> { %v551_v33 = vpop.permute.xlu2 %550 }
 0x173   : >> { %v761_v37 = vpop.permute.xlu2 %760 }
 0x17b   : >> { %v757_v39 = vpop.permute.xlu2 %756 }
 0x182   : >> { %v597_v41 = vpop.permute.xlu0 %596 }
 0x183   : >> { %v557_v42 = vpop.permute.xlu2 %556 }
 0x184   : >> { %v561_v43 = vsel %vm558_vm0, %v555_v40, %v557_v42 }
 0x185   : >> { %574 = vmatpush.bf16.msra.mxu0 %v561_v43 }
 0x18a   : >> { %v593_v44 = vpop.permute.xlu1 %592  ;;  %v729_v46 = vpop.permute.xlu0 %728 }
 0x18b   : >> { %v595_v47 = vpop.permute.xlu2 %594  ;;  %744 = vmatpush.bf16.msra.mxu3 %v729_v46 }
 0x18c   : >> { %v601_v63 = vsel %vm558_vm0, %v593_v44, %v595_v47 }
 0x192   : >> { %v677_v12 = vpop.permute.xlu1 %676  ;;  %v725_v48 = vpop.permute.xlu0 %724 }
 0x193   : >> { %v679_v49 = vpop.permute.xlu2 %678 }
 0x194   : >> { %v682_v17 = vsel %vm558_vm0, %v677_v12, %v679_v49 }
 0x195   : >> { %694 = vmatpush.bf16.msra.mxu2 %v682_v17 }
 0x19a   : >> { %v673_v50 = vpop.permute.xlu1 %672  ;;  %v553_v51 = vpop.permute.xlu0 %552 }
 0x19b   : >> { %v675_v52 = vpop.permute.xlu2 %674  ;;  %v560_v53 = vsel %vm558_vm0, %v551_v33, %v553_v51 }
 0x19c   : >> { %575 = vmatpush.bf16.msra.mxu0 %v560_v53  ;;  %v681_v54 = vsel %vm558_vm0, %v673_v50, %v675_v52 }
 0x19d   : >> { %695 = vmatpush.bf16.msra.mxu2 %v681_v54 }
 0x1a0   : >> { %576 = vmatpush.bf16.msra.mxu0 %v559_v55 }
 0x1a1   : >> { %696 = vmatpush.bf16.msra.mxu2 %v680_v56 }
 0x1a2   : >> { %v794_v59 = vpop.permute.xlu1 %793  ;;  %v753_v60 = vpop.permute.xlu0 %752 }
 0x1a3   : >> { %1578 = vmatmul.msk.bf16.vlgmr.msra.gmra.mxu0 %vm565_vm4, %v1577_v57  ;;  %v792_v6 = vpop.permute.xlu2 %791 }
 0x1a4   : >> { %775 = vmatpush.bf16.msrb.mxu0 %v761_v37  ;;  %1581 = vmatmul.msk.bf16.vlgmr.msra.gmra.mxu2 %vm565_vm4, %v1580_v58 }
 0x1aa   : >> { %v599_v25 = vpop.permute.xlu1 %598  ;;  %v759_v61 = vpop.permute.xlu0 %758 }
 0x1ab   : >> { %v602_v28 = vsel %vm558_vm0, %v597_v41, %v599_v25  ;;  %v763_v62 = vsel %vm730_vm5, %v757_v39, %v759_v61  ;;  %v786_v19 = vpop.permute.xlu2 %785 }
 0x1ac   : >> { %614 = vmatpush.bf16.msra.mxu1 %v602_v28  ;;  %776 = vmatpush.bf16.msrb.mxu0 %v763_v62 }
 0x1b0   : >> { %615 = vmatpush.bf16.msra.mxu1 %v601_v63 }
 0x1b2   : >> { %v727_v0 = vpop.permute.xlu1 %726  ;;  %v788_v16 = vpop.permute.xlu0 %787 }
 0x1b3   : >> { %v732_v5 = vsel %vm730_vm5, %v725_v48, %v727_v0  ;;  %v795_v20 = vsel %vm730_vm5, %v786_v19, %v788_v16 }
 0x1b4   : >> { %616 = vmatpush.bf16.msra.mxu1 %v2125_v45  ;;  %745 = vmatpush.bf16.msra.mxu3 %v732_v5 }
 0x1b7   : >> { %1579 = vmatmul.msk.bf16.vlgmr.msra.gmra.mxu1 %vm565_vm4, %v493_v11 }
 0x1b8   : >> { %808 = vmatpush.bf16.msrb.mxu1 %v794_v59  ;;  %746 = vmatpush.bf16.msra.mxu3 %v731_v13 }
 0x1ba   : >> { %v790_v15 = vpop.permute.xlu1 %789 }
 0x1bb   : >> { %1586 = vmatmul.msk.bf16.vlgmr.msra.gmra.mxu3 %vm565_vm4, %v1585_v14  ;;  %v796_v45 = vsel %vm730_vm5, %v790_v15, %v792_v6 }
 0x1bc   : >> { %809 = vmatpush.bf16.msrb.mxu1 %v796_v45 }
 0x1c0   : >> { %810 = vmatpush.bf16.msrb.mxu1 %v795_v20 }
 0x1c2   : >> { %v755_v21 = vpop.permute.xlu1 %754 }
 0x1c3   : >> { %v762_v26 = vsel %vm730_vm5, %v753_v60, %v755_v21 }
 0x1c4   : >> { %777 = vmatpush.bf16.msrb.mxu0 %v762_v26 }
 0x1c7   : >> { %1587 = vmatmul.msk.bf16.vlgmr.msrb.gmra.mxu0 %vm565_vm4, %v1584_v22  ;;  %1589 = vmatmul.msk.bf16.vlgmr.msrb.gmra.mxu1 %vm565_vm4, %v1588_v23 }
 0x220   : >> { %v578_v24 = vpop.f32.mrf.mxu0 }
 0x227   : >> { %v698_v27 = vpop.f32.mrf.mxu2 }
 0x228   : >> { %v580_v29 = vpop.f32.mrf.mxu0 }
 0x22f   : >> { %v700_v31 = vpop.f32.mrf.mxu2 }
 0x234   : >> { %v618_v18 = vpop.f32.mrf.mxu1 }
 0x235   : >> { %v619_v30 = vadd.f32 %v618_v18, %v578_v24 }
 0x237   : >> { %v702_v34 = vadd.f32 %v698_v27, %v619_v30 }
 0x239   : >> { %v703_v35 = vmul.f32 %v1991_v7, %v702_v34 }
 0x23b   : >> { %v711_v32 = vpack.c.bf16 %v703_v35, %v703_v35  ;;  %704 = vadd.xlane.f32.xlu1 %v703_v35  ;;  %v707_v33 = vmul.f32 %v703_v35, %v703_v35 }
 0x23c   : >> { %v620_v36 = vpop.f32.mrf.mxu1 }
 0x23d   : >> { %715 = vst [vmem:[%s714_s27] sm:$0xf] %v711_v32  ;;  %708 = vadd.xlane.f32.xlu2 %v707_v33 }
 0x23e   : >> { %v748_v37 = vpop.f32.mrf.mxu3 }
 0x244   : >> { %v779_v38 = vpop.f32.mrf.mxu0  ;;  %v812_v39 = vpop.f32.mrf.mxu1 }
 0x245   : >> { %v780_v40 = vadd.f32 %v779_v38, %v748_v37 }
 0x246   : >> { %v750_v41 = vpop.f32.mrf.mxu3 }
 0x247   : >> { %v816_v42 = vadd.f32 %v812_v39, %v780_v40 }
 0x249   : >> { %v817_v43 = vmul.f32 %v1991_v7, %v816_v42 }
 0x24b   : >> { %v825_v44 = vpack.c.bf16 %v817_v43, %v817_v43  ;;  %818 = vadd.xlane.f32.xlu0 %v817_v43  ;;  %v821_v46 = vmul.f32 %v817_v43, %v817_v43 }
 0x24c   : >> { %v781_v47 = vpop.f32.mrf.mxu0  ;;  %v814_v12 = vpop.f32.mrf.mxu1 }
 0x24d   : >> { %826 = vst [vmem:[%s714_s27 + $0x4] sm:$0xf] %v825_v44  ;;  %822 = vadd.xlane.f32.xlu2 %v821_v46 }
 0x2ae   : >> { %v705_v49 = vpop.xlane.xlu1 %704 }
 0x2af   : >> { %v706_v17 = vadd.f32 %v1887_v10, %v705_v49 }
 0x2b0   : >> { %v709_v48 = vpop.xlane.xlu2 %708 }
 0x2b1   : >> { %v710_v51 = vadd.f32 %v1883_v9, %v709_v48 }
 0x2be   : >> { %v819_v50 = vpop.xlane.xlu0 %818 }
 0x2bf   : >> { %v820_v52 = vadd.f32 %v819_v50, %v706_v17   ;;  %292 = sbr.rel (!%p290_p0) target bundleno = 18 (0x12), region = 112 }
 0x2c0   : >> { %v823_v53 = vpop.xlane.xlu2 %822 }
 0x2c1   : >> { %v824_v54 = vadd.f32 %v823_v53, %v710_v51   ;;  %v2471_v10 = vmov %v820_v52 }
 0x2c3   : >> { %v2470_v9 = vmov %v824_v54 }
 0x2c4 LB: >> { %v1912_v10 = vmov 0   ;;  %v1913_v9 = vmov 0.0|0.0   ;;  %s1914_s21 = smov 125   ;;  %s1915_s22 = smov 126   ;;  %s1903_s16 = sphi %s2229_s16, %s832_s16   ;;  %v1899_v52 = vphi %v820_v52, %v2482_v52   ;;  %v1895_v54 = vphi %v824_v54, %v2481_v54  }
 0x2c5   : >> { %1772 = vset.pattern.permute.xlu1 %v1912_v10  ;;  %1771 = vset.pattern.permute.xlu0 %v1912_v10  ;;  %s904_s28 = sadd.s32 4294967295, %s1903_s16  ;;  %s1590_s29 = sshll.u32 %s1903_s16, 4 }
 0x2c6   : >> { %862 = vperm.xlu1 %1772, %v1979_v3   ;;  %848 = vperm.xlu0 %1771, %v1969_v1   ;;  %p886_p1 = scmp.ge.s32.totalorder %s1903_s16, 0  ;;  %p887_p2 = scmp.lt.s32.totalorder %s1903_s16, 13 }
 0x2c7   : >> { %p934_p3 = scmp.ge.s32.totalorder %s904_s28, 0  ;;  %p935_p4 = scmp.lt.s32.totalorder %s904_s28, 13 }
 0x2c8   : >> { %s2259_s30 = scalar_lea.vmem %s2000_s12, %s1590_s29  ;;  %p888_p5 = pnand %p887_p2, %p886_p1 }
 0x2c9   : >> { %p936_p6 = pnand %p935_p4, %p934_p3  ;;  %v1591_v55 = vld [vmem:[%s2259_s30 + $0x20] sm:$0xf]  ;;  %v1595_v56 = vld [vmem:[%s2259_s30 + $0x10] sm:$0xf]  ;;  %s951_s8 = sadd.s32 4294967294, %s1903_s16 }
 0x2ca   : >> { %s1593_s6 = scalar_select %p888_p5, 0, 1  ;;  %v842_v57 = vunpack.c.l.bf16 %v1591_v55  ;;  %v910_v58 = vunpack.c.l.bf16 %v1595_v56  ;;  %v955_v63 = vld [vmem:[%s2259_s30] sm:$0xf]  ;;  %v1592_v0 = vld [vmem:[%s2259_s30 + $0x28] sm:$0xf] }
 0x2cb   : >> { %s1597_s7 = scalar_select %p936_p6, 0, 1  ;;  %v1596_v5 = vld [vmem:[%s2259_s30 + $0x18] sm:$0xf]  ;;  %v957_v14 = vunpack.c.l.bf16 %v955_v63  ;;  %v844_v15 = vunpack.c.l.bf16 %v1592_v0  ;;  %v956_v23 = vld [vmem:[%s2259_s30 + $0x8] sm:$0xf] }
 0x2cc   : >> { %v891_v59 = vstv %s1593_s6  ;;  %p2266_p7 = scmp.ge.s32.totalorder %s951_s8, 0  ;;  %p2270_p8 = scmp.lt.s32.totalorder %s951_s8, 13  ;;  %v912_v16 = vunpack.c.l.bf16 %v1596_v5  ;;  %v959_v36 = vunpack.c.l.bf16 %v956_v23 }
 0x2cd   : >> { %v939_v61 = vstv %s1597_s7  ;;  %vm892_vm6 = vcmp.eq.s32.totalorder %v891_v59, 1  ;;  %s1916_s14 = smov 2   ;;  %s1917_s17 = smov 1  }
 0x2ce   : >> { %867 = vperm.xlu1 %1772, %v1984_v4   ;;  %853 = vperm.xlu0 %1771, %v1974_v2   ;;  %vm2275_vm7 = vcmp.eq.s32.totalorder %v939_v61, 1  ;;  %vm2281_vm10 = vmand %vm1993_vm3, %vm892_vm6  ;;  %p983_p9 = pnand %p2270_p8, %p2266_p7  ;;  %s1254_s8 = scalar_lea.vmem %s2005_s15, %s1590_s29 }
 0x2cf   : >> { %vm941_vm11 = vmand %vm1993_vm3, %vm2275_vm7  ;;  %s832_s16 = sadd.s32 1, %s1903_s16  }
 0x2d0   : >> { %s1600_s13 = scalar_select %p983_p9, 0, 1 }
 0x2d1   : >> { %p829_p10 = scmp.ge.s32.totalorder %s832_s16, 14  }
 0x2d2   : >> { %v986_v40 = vstv %s1600_s13 }
 0x2d3   : >> { %vm2310_vm14 = vcmp.eq.s32.totalorder %v986_v40, 1 }
 0x2d4   : >> { %vm988_vm6 = vmand %vm1993_vm3, %vm2310_vm14 }
 0x2d6   : >> { %1130 = vrot.lane.b32.xlu0 %v1913_v9, %s1914_s21  ;;  %1088 = vrot.lane.b32.xlu1 %v1913_v9, %s1914_s21 }
 0x2de   : >> { %1262 = vrot.lane.b32.xlu0 %v1913_v9, %s1915_s22  ;;  %1210 = vrot.lane.b32.xlu1 %v1913_v9, %s1914_s21 }
 0x338   : >> { %v863_v60 = vpop.permute.xlu1 %862  ;;  %v849_v25 = vpop.permute.xlu0 %848 }
 0x339   : >> { %v856_v28 = vmul.f32 %v849_v25, %v842_v57  ;;  %v914_v62 = vmul.f32 %v910_v58, %v849_v25  ;;  %v961_v26 = vmul.f32 %v957_v14, %v849_v25 }
 0x33b   : >> { %v870_v6 = vadd.f32 %v863_v60, %v856_v28  ;;  %v918_v11 = vadd.f32 %v914_v62, %v863_v60  ;;  %v965_v37 = vadd.f32 %v961_v26, %v863_v60 }
 0x33d   : >> { %v878_v45 = vmul.f32 0.05, %v870_v6  ;;  %vm922_vm8 = vcmp.ge.f32.partialorder %v918_v11, 0.0  ;;  %vm874_vm9 = vcmp.ge.f32.partialorder %v870_v6, 0.0  ;;  %v926_v20 = vmul.f32 0.05, %v918_v11 }
 0x33e   : >> { %v973_v44 = vmul.f32 0.05, %v965_v37  ;;  %vm969_vm15 = vcmp.ge.f32.partialorder %v965_v37, 0.0 }
 0x33f   : >> { %v882_v21 = vsel %vm874_vm9, %v870_v6, %v878_v45  ;;  %v930_v24 = vsel %vm922_vm8, %v918_v11, %v926_v20  ;;  %vm1369_vm8 = vcmask (%p829_p10), 15368  }
 0x340   : >> { %v854_v22 = vpop.permute.xlu0 %853  ;;  %v899_v27 = vsel %vm2281_vm10, %v882_v21, 0.0  ;;  %v947_v18 = vsel %vm941_vm11, %v930_v24, 0.0  ;;  %v868_v30 = vpop.permute.xlu1 %867  ;;  %v977_v50 = vsel %vm969_vm15, %v965_v37, %v973_v44 }
 0x341   : >> { %v858_v29 = vmul.f32 %v854_v22, %v844_v15  ;;  %v916_v31 = vmul.f32 %v912_v16, %v854_v22  ;;  %v1773_v34 = vpack.i.bf16 0.0, %v947_v18  ;;  %v1783_v35 = vpack.i.bf16 0.0, %v899_v27 }
 0x342   : >> { %v963_v41 = vmul.f32 %v959_v36, %v854_v22  ;;  %v994_v53 = vsel %vm988_vm6, %v977_v50, 0.0 }
 0x343   : >> { %v872_v32 = vadd.f32 %v868_v30, %v858_v29  ;;  %v920_v33 = vadd.f32 %v916_v31, %v868_v30  ;;  %1774 = vrot.lane.b32.xlu2 %v1773_v34, %s1916_s14  ;;  %1784 = vrot.lane.b32.xlu0 %v1783_v35, %s1916_s14  ;;  %v1813_v10 = vpack.i.bf16 0.0, %v994_v53 }
 0x344   : >> { %v967_v17 = vadd.f32 %v963_v41, %v868_v30 }
 0x345   : >> { %v880_v38 = vmul.f32 0.05, %v872_v32  ;;  %v928_v39 = vmul.f32 0.05, %v920_v33  ;;  %vm924_vm12 = vcmp.ge.f32.partialorder %v920_v33, 0.0  ;;  %vm876_vm13 = vcmp.ge.f32.partialorder %v872_v32, 0.0 }
 0x346   : >> { %v975_v51 = vmul.f32 0.05, %v967_v17  ;;  %vm971_vm7 = vcmp.ge.f32.partialorder %v967_v17, 0.0 }
 0x347   : >> { %v932_v42 = vsel %vm924_vm12, %v920_v33, %v928_v39  ;;  %v884_v43 = vsel %vm876_vm13, %v872_v32, %v880_v38 }
 0x348   : >> { %v949_v46 = vsel %vm941_vm11, %v932_v42, 0.0  ;;  %v901_v47 = vsel %vm2281_vm10, %v884_v43, 0.0  ;;  %v979_v55 = vsel %vm971_vm7, %v967_v17, %v975_v51  ;;  %v1131_v61 = vpop.permute.xlu0 %1130  ;;  %v2332_v5 = vpop.permute.xlu1 %1088 }
 0x349   : >> { %v1778_v48 = vpack.i.bf16 0.0, %v949_v46  ;;  %v1788_v49 = vpack.i.bf16 0.0, %v901_v47  ;;  %v996_v56 = vsel %vm988_vm6, %v979_v55, 0.0  ;;  %v1074_v58 = vpack.c.bf16 %v949_v46, %v947_v18 }
 0x34a   : >> { %v1818_v57 = vpack.i.bf16 0.0, %v996_v56  ;;  %v2323_v59 = vpack.c.bf16 %v996_v56, %v994_v53  ;;  %v2325_v60 = vpack.c.bf16 %v901_v47, %v899_v27 }
 0x34b   : >> { %1789 = vrot.lane.b32.xlu1 %v1788_v49, %s1916_s14  ;;  %1779 = vrot.lane.b32.xlu2 %v1778_v48, %s1916_s14 }
 0x34c   : >> { %1799 = vrot.lane.b32.xlu0 %v1778_v48, %s1917_s17 }
 0x350   : >> { %v2335_v6 = vpop.permute.xlu0 %1262  ;;  %v2337_v13 = vpop.permute.xlu1 %1210 }
 0x353   : >> { %1804 = vrot.lane.b32.xlu1 %v1783_v35, %s1917_s17  ;;  %1794 = vrot.lane.b32.xlu2 %v1773_v34, %s1917_s17 }
 0x354   : >> { %1814 = vrot.lane.b32.xlu0 %v1813_v10, %s1916_s14 }
 0x35b   : >> { %1819 = vrot.lane.b32.xlu1 %v1818_v57, %s1916_s14  ;;  %1809 = vrot.lane.b32.xlu2 %v1788_v49, %s1917_s17 }
 0x35c   : >> { %1829 = vrot.lane.b32.xlu0 %v1818_v57, %s1917_s17 }
 0x363   : >> { %1824 = vrot.lane.b32.xlu2 %v1813_v10, %s1917_s17 }
 0x364   : >> { %1086 = vrot.lane.b32.xlu0 %v1074_v58, %s1914_s21 }
 0x36b   : >> { %1128 = vrot.lane.b32.xlu2 %v2325_v60, %s1914_s21 }
 0x36c   : >> { %1208 = vrot.lane.b32.xlu0 %v2323_v59, %s1914_s21 }
 0x373   : >> { %1260 = vrot.lane.b32.xlu2 %v1074_v58, %s1915_s22 }
 0x39d   : >> { %v1775_v25 = vpop.permute.xlu2 %1774 }
 0x39e   : >> { %v1776_v62 = vunpack.i.l.bf16 %v1775_v25  ;;  %v1777_v42 = vunpack.i.h.bf16 %v1775_v25 }
 0x3a0   : >> { %v1066_v48 = vsel %vm486_vm2, %v1776_v62, %v1777_v42 }
 0x3a5   : >> { %v1780_v28 = vpop.permute.xlu2 %1779 }
 0x3a6   : >> { %v1781_v63 = vunpack.i.l.bf16 %v1780_v28  ;;  %v1782_v40 = vunpack.i.h.bf16 %v1780_v28 }
 0x3a8   : >> { %v1078_v0 = vpack.c.bf16 %v1781_v63, %v1776_v62  ;;  %v1067_v46 = vsel %vm486_vm2, %v1781_v63, %v1782_v40 }
 0x3a9   : >> { %v1079_v50 = vpack.c.bf16 %v1067_v46, %v1066_v48  ;;  %v1605_v46 = vld [vmem:[%s2455_s1 + $0x20] sm:$0xf] }
 0x3aa   : >> { %1094 = vrot.lane.b32.xlu1 %v1078_v0, %s1914_s21 }
 0x3ad   : >> { %v1795_v11 = vpop.permute.xlu2 %1794 }
 0x3ae   : >> { %v1796_v26 = vunpack.i.l.bf16 %v1795_v11  ;;  %v1797_v41 = vunpack.i.h.bf16 %v1795_v11 }
 0x3b0   : >> { %v1052_v12 = vsel %vm471_vm1, %v1796_v26, %v1797_v41 }
 0x3b5   : >> { %v1810_v14 = vpop.permute.xlu2 %1809  ;;  %v1785_v15 = vpop.permute.xlu0 %1784 }
 0x3b6   : >> { %v1786_v16 = vunpack.i.l.bf16 %v1785_v15  ;;  %v1811_v29 = vunpack.i.l.bf16 %v1810_v14  ;;  %v1812_v53 = vunpack.i.h.bf16 %v1810_v14  ;;  %v1787_v25 = vunpack.i.h.bf16 %v1785_v15 }
 0x3b8   : >> { %v1012_v55 = vsel %vm471_vm1, %v1811_v29, %v1812_v53  ;;  %v1026_v63 = vsel %vm486_vm2, %v1786_v16, %v1787_v25 }
 0x3bd   : >> { %v1790_v45 = vpop.permute.xlu1 %1789  ;;  %v2339_v19 = vpop.permute.xlu2 %1824 }
 0x3be   : >> { %v1791_v20 = vunpack.i.l.bf16 %v1790_v45  ;;  %v1800_v21 = vpop.permute.xlu0 %1799  ;;  %v1826_v47 = vunpack.i.l.bf16 %v2339_v19  ;;  %v1792_v56 = vunpack.i.h.bf16 %v1790_v45 }
 0x3bf   : >> { %v1801_v22 = vunpack.i.l.bf16 %v1800_v21  ;;  %v1802_v38 = vunpack.i.h.bf16 %v1800_v21 }
 0x3c0   : >> { %v1038_v23 = vpack.c.bf16 %v1791_v20, %v1786_v16  ;;  %v1027_v28 = vsel %vm486_vm2, %v1791_v20, %v1792_v56  ;;  %v1610_v56 = vld [vmem:[%s2455_s1 + $0x28] sm:$0xf] }
 0x3c1   : >> { %v1076_v24 = vpack.c.bf16 %v1801_v22, %v1796_v26  ;;  %v1053_v44 = vsel %vm471_vm1, %v1801_v22, %v1802_v38  ;;  %v1039_v11 = vpack.c.bf16 %v1027_v28, %v1026_v63  ;;  %v1613_v63 = vld [vmem:[%s2455_s1 + $0x2c] sm:$0xf] }
 0x3c2   : >> { %1136 = vrot.lane.b32.xlu0 %v1038_v23, %s1914_s21  ;;  %v1077_v17 = vpack.c.bf16 %v1053_v44, %v1052_v12  ;;  %v1602_v44 = vld [vmem:[%s2455_s1 + $0x1c] sm:$0xf] }
 0x3c3   : >> { %1090 = vrot.lane.b32.xlu2 %v1076_v24, %s1914_s21 }
 0x3c5   : >> { %v1805_v27 = vpop.permute.xlu1 %1804  ;;  %v1129_v18 = vpop.permute.xlu2 %1128 }
 0x3c6   : >> { %v1806_v31 = vunpack.i.l.bf16 %v1805_v27  ;;  %v1815_v30 = vpop.permute.xlu0 %1814  ;;  %v2344_v34 = vsel %vm558_vm0, %v1129_v18, %v1131_v61  ;;  %v1807_v51 = vunpack.i.h.bf16 %v1805_v27 }
 0x3c7   : >> { %v1816_v33 = vunpack.i.l.bf16 %v1815_v30  ;;  %v1817_v61 = vunpack.i.h.bf16 %v1815_v30 }
 0x3c8   : >> { %v1036_v35 = vpack.c.bf16 %v1811_v29, %v1806_v31  ;;  %v1011_v10 = vsel %vm471_vm1, %v1806_v31, %v1807_v51 }
 0x3c9   : >> { %v1037_v57 = vpack.c.bf16 %v1012_v55, %v1011_v10  ;;  %v1601_v10 = vld [vmem:[%s2455_s1 + $0x18] sm:$0xf] }
 0x3ca   : >> { %1132 = vrot.lane.b32.xlu1 %v1036_v35, %s1914_s21  ;;  %1268 = vrot.lane.b32.xlu0 %v1078_v0, %s1915_s22  ;;  %v1188_v0 = vsel %vm486_vm2, %v1816_v33, %v1817_v61 }
 0x3cb   : >> { %1300 = vrot.lane.b32.xlu2 %v1038_v23, %s1915_s22 }
 0x3cd   : >> { %v1820_v32 = vpop.permute.xlu1 %1819  ;;  %v1261_v16 = vpop.permute.xlu2 %1260 }
 0x3ce   : >> { %v1821_v36 = vunpack.i.l.bf16 %v1820_v32  ;;  %v1830_v39 = vpop.permute.xlu0 %1829  ;;  %v1822_v58 = vunpack.i.h.bf16 %v1820_v32  ;;  %v1271_v55 = vsel %vm730_vm5, %v1261_v16, %v2335_v6 }
 0x3cf   : >> { %v1831_v43 = vunpack.i.l.bf16 %v1830_v39  ;;  %v1832_v45 = vunpack.i.h.bf16 %v1830_v39 }
 0x3d0   : >> { %v1200_v37 = vpack.c.bf16 %v1821_v36, %v1816_v33  ;;  %v1189_v62 = vsel %vm486_vm2, %v1821_v36, %v1822_v58 }
 0x3d1   : >> { %v1198_v49 = vpack.c.bf16 %v1831_v43, %v1826_v47  ;;  %v1201_v14 = vpack.c.bf16 %v1189_v62, %v1188_v0  ;;  %v1175_v15 = vsel %vm471_vm1, %v1831_v43, %v1832_v45  ;;  %v1609_v62 = vld [vmem:[%s2455_s1 + $0x24] sm:$0xf] }
 0x3d2   : >> { %1216 = vrot.lane.b32.xlu1 %v1200_v37, %s1914_s21  ;;  %1264 = vrot.lane.b32.xlu0 %v1076_v24, %s1915_s22 }
 0x3d3   : >> { %1296 = vrot.lane.b32.xlu2 %v1036_v35, %s1915_s22 }
 0x3d6   : >> { %v1087_v26 = vpop.permute.xlu0 %1086 }
 0x3d7   : >> { %v1099_v42 = vsel %vm558_vm0, %v1087_v26, %v2332_v5 }
 0x3da   : >> { %1212 = vrot.lane.b32.xlu1 %v1198_v49, %s1914_s21  ;;  %1092 = vrot.lane.b32.xlu0 %v1077_v17, %s1914_s21 }
 0x3db   : >> { %1096 = vrot.lane.b32.xlu2 %v1079_v50, %s1914_s21 }
 0x3de   : >> { %v1209_v23 = vpop.permute.xlu0 %1208 }
 0x3df   : >> { %v1220_v43 = vsel %vm558_vm0, %v1209_v23, %v2337_v13 }
 0x3e2   : >> { %1333 = vrot.lane.b32.xlu1 %v1200_v37, %s1915_s22  ;;  %1292 = vrot.lane.b32.xlu0 %v2325_v60, %s1915_s22  ;;  %v1827_v60 = vunpack.i.h.bf16 %v2339_v19 }
 0x3e3   : >> { %1134 = vrot.lane.b32.xlu2 %v1037_v57, %s1914_s21 }
 0x3e4   : >> { %v1174_v20 = vsel %vm471_vm1, %v1826_v47, %v1827_v60 }
 0x3e5   : >> { %v1199_v21 = vpack.c.bf16 %v1175_v15, %v1174_v20 }
 0x3ea   : >> { %1138 = vrot.lane.b32.xlu1 %v1039_v11, %s1914_s21  ;;  %1298 = vrot.lane.b32.xlu0 %v1037_v57, %s1915_s22 }
 0x3eb   : >> { %1218 = vrot.lane.b32.xlu2 %v1201_v14, %s1914_s21 }
 0x3f2   : >> { %1266 = vrot.lane.b32.xlu1 %v1077_v17, %s1915_s22  ;;  %1327 = vrot.lane.b32.xlu0 %v1913_v9, %s1915_s22 }
 0x3f3   : >> { %1214 = vrot.lane.b32.xlu2 %v1199_v21, %s1914_s21 }
 0x3fa   : >> { %1329 = vrot.lane.b32.xlu1 %v1198_v49, %s1915_s22 }
 0x3fb   : >> { %1331 = vrot.lane.b32.xlu2 %v1199_v21, %s1915_s22 }
 0x402   : >> { %1294 = vrot.lane.b32.xlu1 %v1913_v9, %s1915_s22 }
 0x403   : >> { %1325 = vrot.lane.b32.xlu2 %v2323_v59, %s1915_s22 }
 0x41c   : >> { %v1095_v27 = vpop.permute.xlu1 %1094 }
 0x41d   : >> { %v1091_v19 = vpop.permute.xlu2 %1090 }
 0x425   : >> { %v1301_v22 = vpop.permute.xlu2 %1300 }
 0x42d   : >> { %v1297_v24 = vpop.permute.xlu2 %1296 }
 0x434   : >> { %v1137_v29 = vpop.permute.xlu0 %1136 }
 0x435   : >> { %v1097_v31 = vpop.permute.xlu2 %1096 }
 0x436   : >> { %v1101_v18 = vsel %vm558_vm0, %v1095_v27, %v1097_v31 }
 0x437   : >> { %1114 = vmatpush.bf16.msra.mxu0 %v1101_v18 }
 0x43c   : >> { %v1133_v30 = vpop.permute.xlu1 %1132  ;;  %v1269_v35 = vpop.permute.xlu0 %1268 }
 0x43d   : >> { %v1135_v32 = vpop.permute.xlu2 %1134  ;;  %1284 = vmatpush.bf16.msra.mxu3 %v1269_v35 }
 0x43e   : >> { %v1141_v17 = vsel %vm558_vm0, %v1133_v30, %v1135_v32 }
 0x444   : >> { %v1217_v9 = vpop.permute.xlu1 %1216  ;;  %v1265_v33 = vpop.permute.xlu0 %1264 }
 0x445   : >> { %v1219_v36 = vpop.permute.xlu2 %1218 }
 0x446   : >> { %v1222_v59 = vsel %vm558_vm0, %v1217_v9, %v1219_v36 }
 0x447   : >> { %1234 = vmatpush.bf16.msra.mxu2 %v1222_v59 }
 0x44c   : >> { %v1213_v37 = vpop.permute.xlu1 %1212  ;;  %v1093_v38 = vpop.permute.xlu0 %1092 }
 0x44d   : >> { %v1215_v39 = vpop.permute.xlu2 %1214  ;;  %v1100_v40 = vsel %vm558_vm0, %v1091_v19, %v1093_v38 }
 0x44e   : >> { %1115 = vmatpush.bf16.msra.mxu0 %v1100_v40  ;;  %v1221_v41 = vsel %vm558_vm0, %v1213_v37, %v1215_v39 }
 0x44f   : >> { %1235 = vmatpush.bf16.msra.mxu2 %v1221_v41 }
 0x452   : >> { %1116 = vmatpush.bf16.msra.mxu0 %v1099_v42 }
 0x453   : >> { %1236 = vmatpush.bf16.msra.mxu2 %v1220_v43 }
 0x454   : >> { %v1334_v47 = vpop.permute.xlu1 %1333  ;;  %v1293_v12 = vpop.permute.xlu0 %1292 }
 0x455   : >> { %1603 = vmatmul.msk.bf16.vlgmr.msra.gmra.mxu0 %vm565_vm4, %v1602_v44  ;;  %v1332_v53 = vpop.permute.xlu2 %1331 }
 0x456   : >> { %1315 = vmatpush.bf16.msrb.mxu0 %v1301_v22  ;;  %1606 = vmatmul.msk.bf16.vlgmr.msra.gmra.mxu2 %vm565_vm4, %v1605_v46 }
 0x45c   : >> { %v1139_v5 = vpop.permute.xlu1 %1138  ;;  %v1299_v48 = vpop.permute.xlu0 %1298 }
 0x45d   : >> { %v1142_v13 = vsel %vm558_vm0, %v1137_v29, %v1139_v5  ;;  %v1303_v49 = vsel %vm730_vm5, %v1297_v24, %v1299_v48  ;;  %v1326_v25 = vpop.permute.xlu2 %1325 }
 0x45e   : >> { %1154 = vmatpush.bf16.msra.mxu1 %v1142_v13  ;;  %1316 = vmatpush.bf16.msrb.mxu0 %v1303_v49 }
 0x462   : >> { %1155 = vmatpush.bf16.msra.mxu1 %v1141_v17 }
 0x464   : >> { %v1267_v50 = vpop.permute.xlu1 %1266  ;;  %v1328_v58 = vpop.permute.xlu0 %1327 }
 0x465   : >> { %v1272_v51 = vsel %vm730_vm5, %v1265_v33, %v1267_v50  ;;  %v1335_v61 = vsel %vm730_vm5, %v1326_v25, %v1328_v58 }
 0x466   : >> { %1156 = vmatpush.bf16.msra.mxu1 %v2344_v34  ;;  %1285 = vmatpush.bf16.msra.mxu3 %v1272_v51 }
 0x469   : >> { %1604 = vmatmul.msk.bf16.vlgmr.msra.gmra.mxu1 %vm565_vm4, %v1601_v10 }
 0x46a   : >> { %1348 = vmatpush.bf16.msrb.mxu1 %v1334_v47  ;;  %1286 = vmatpush.bf16.msra.mxu3 %v1271_v55 }
 0x46c   : >> { %v1330_v57 = vpop.permute.xlu1 %1329 }
 0x46d   : >> { %1611 = vmatmul.msk.bf16.vlgmr.msra.gmra.mxu3 %vm565_vm4, %v1610_v56  ;;  %v1336_v34 = vsel %vm730_vm5, %v1330_v57, %v1332_v53 }
 0x46e   : >> { %1349 = vmatpush.bf16.msrb.mxu1 %v1336_v34 }
 0x472   : >> { %1350 = vmatpush.bf16.msrb.mxu1 %v1335_v61 }
 0x474   : >> { %v1295_v28 = vpop.permute.xlu1 %1294 }
 0x475   : >> { %v1302_v6 = vsel %vm730_vm5, %v1293_v12, %v1295_v28 }
 0x476   : >> { %1317 = vmatpush.bf16.msrb.mxu0 %v1302_v6 }
 0x479   : >> { %1612 = vmatmul.msk.bf16.vlgmr.msrb.gmra.mxu0 %vm565_vm4, %v1609_v62  ;;  %1614 = vmatmul.msk.bf16.vlgmr.msrb.gmra.mxu1 %vm565_vm4, %v1613_v63 }
 0x4d2   : >> { %v1118_v0 = vpop.f32.mrf.mxu0 }
 0x4d9   : >> { %v1238_v11 = vpop.f32.mrf.mxu2 }
 0x4da   : >> { %v1120_v14 = vpop.f32.mrf.mxu0 }
 0x4e1   : >> { %v1240_v45 = vpop.f32.mrf.mxu2 }
 0x4e6   : >> { %v1158_v60 = vpop.f32.mrf.mxu1 }
 0x4e7   : >> { %v1159_v15 = vadd.f32 %v1158_v60, %v1118_v0 }
 0x4e9   : >> { %v1242_v20 = vadd.f32 %v1238_v11, %v1159_v15 }
 0x4eb   : >> { %v1243_v21 = vmul.f32 %v1991_v7, %v1242_v20 }
 0x4ed   : >> { %v1251_v16 = vpack.c.bf16 %v1243_v21, %v1243_v21  ;;  %1244 = vadd.xlane.f32.xlu1 %v1243_v21  ;;  %v1247_v19 = vmul.f32 %v1243_v21, %v1243_v21 }
 0x4ee   : >> { %v1160_v26 = vpop.f32.mrf.mxu1 }
 0x4ef   : >> { %1255 = vst [vmem:[%s1254_s8 + $0x8] sm:$0xf] %v1251_v16  ;;  %1248 = vadd.xlane.f32.xlu2 %v1247_v19 }
 0x4f0   : >> { %v1288_v22 = vpop.f32.mrf.mxu3 }
 0x4f6   : >> { %v1319_v23 = vpop.f32.mrf.mxu0  ;;  %v1352_v24 = vpop.f32.mrf.mxu1 }
 0x4f7   : >> { %v1320_v27 = vadd.f32 %v1319_v23, %v1288_v22 }
 0x4f8   : >> { %v1290_v29 = vpop.f32.mrf.mxu3 }
 0x4f9   : >> { %v1356_v31 = vadd.f32 %v1352_v24, %v1320_v27 }
 0x4fb   : >> { %v1357_v18 = vmul.f32 %v1991_v7, %v1356_v31 }
 0x4fd   : >> { %v1365_v30 = vpack.c.bf16 %v1357_v18, %v1357_v18  ;;  %1358 = vadd.xlane.f32.xlu0 %v1357_v18  ;;  %v1361_v35 = vmul.f32 %v1357_v18, %v1357_v18 }
 0x4fe   : >> { %v1321_v32 = vpop.f32.mrf.mxu0  ;;  %v1354_v9 = vpop.f32.mrf.mxu1 }
 0x4ff   : >> { %1366 = vst [vmem:[%s1254_s8 + $0xc] sm:$0xf] %v1365_v30  ;;  %1362 = vadd.xlane.f32.xlu2 %v1361_v35 }
 0x560   : >> { %v1245_v36 = vpop.xlane.xlu1 %1244 }
 0x561   : >> { %v1246_v59 = vadd.f32 %v1899_v52, %v1245_v36 }
 0x562   : >> { %v1249_v33 = vpop.xlane.xlu2 %1248 }
 0x563   : >> { %v1250_v38 = vadd.f32 %v1895_v54, %v1249_v33 }
 0x570   : >> { %v1359_v37 = vpop.xlane.xlu0 %1358 }
 0x571   : >> { %v1360_v39 = vadd.f32 %v1359_v37, %v1246_v59   ;;  %831 = sbr.rel (!%p829_p10) target bundleno = 708 (0x2c4), region = 123 }
 0x572   : >> { %v1363_v40 = vpop.xlane.xlu2 %1362 }
 0x573   : >> { %v1364_v41 = vadd.f32 %v1363_v40, %v1250_v38   ;;  %v2482_v52 = vmov %v1360_v39  ;;  %1368 = vst.msk [vmem:[%s1989_s9] sm:$0xff] (%p829_p10), %vm471_vm1, %v1360_v39 }
 0x575   : >> { %v2481_v54 = vmov %v1364_v41  ;;  %1370 = vst.msk [vmem:[%s1989_s9] sm:$0xff] (%p829_p10), %vm1369_vm8, %v1364_v41 }
 0x576 PF: > { %s16_s20 = sadd.s32 1, %s1879_s20   ;;  %s2483_s18 = smov %s1875_s19 }
 0x577   : > { %p13_p11 = scmp.ge.s32.totalorder %s16_s20, 4   ;;  %s2484_s19 = smov %s2486_s2 }
 0x579   :  { %15 = sbr.rel (!%p13_p11) target bundleno = 2 (0x2), region = 134 }

// kernel: decoder_conv_variational_forward.8
= control target key start
LH: loop header
LB: loop body
LE: loop exit
PB: predicated region body
PF: predicated region fallthrough
CT: control target
= control target key end

     0   :  { %s2144_s18 = smov 0   ;;  %s2146_s19 = smov 0   ;;  %s3131_s0 = inlined_call_operand.vmem [shape: bf16[2,10,32,256], index: 0, kind: input, shape index: {}]   ;;  %s3132_s1 = inlined_call_operand.vmem [shape: bf16[4,16,128], index: 1, kind: input, shape index: {}]   ;;  %s3133_s2 = inlined_call_operand.vmem [shape: f32[16,1], index: 2, kind: input, shape index: {}]   ;;  %s3134_s3 = inlined_call_operand.vmem [shape: f32[2,32,1], index: 3, kind: input, shape index: {}]   ;;  %s3135_s4 = inlined_call_operand.vmem [shape: bf16[2,6,16,128], index: 4, kind: output, shape index: {0}]   ;;  %s3136_s5 = inlined_call_operand.vmem [shape: f32[2,1,16,2], index: 5, kind: output, shape index: {1}]  }
   0x1   :  { %s2148_s20 = smov 0  }
   0x2 LB: > { %s28_s2 = sadd.s32 1, %s2081_s19  ;;  %p1655_p0 = scmp.ge.s32.totalorder %s2085_s20, 1  ;;  %s2085_s20 = sphi %s2148_s20, %s16_s20   ;;  %s2081_s19 = sphi %s2146_s19, %s3243_s19   ;;  %s2077_s18 = sphi %s2144_s18, %s3242_s18  }
   0x3   : > { %p30_p1 = scmp.ge.s32.totalorder %s28_s2, 2  ;;  %p206_p2 = scmp.lt.s32.totalorder %s2085_s20, 3 }
   0x5   : > { %s3245_s2 = smov (%p30_p1, %s28_s2), 0  ;;  %p207_p3 = pnand %p1655_p0, %p206_p2 }
   0x7   : > { %210 = sbr.rel (%p207_p3) target bundleno = 875 (0x36b), region = 36 }
   0xc   : > { %p248_p4 = scmp.lt.s32.totalorder %s2077_s18, 1  ;;  %v274_v0 = vlaneseq  ;;  %v2165_v1 = vld [vmem:[%s3134_s3] sm:$0xff]  ;;  %v2170_v2 = vld [vmem:[%s3134_s3 + $0x8] sm:$0xff]  ;;  %v2175_v3 = vld [vmem:[%s3134_s3 + $0x10] sm:$0xff]  ;;  %v2107_v10 = vmov 0.0   ;;  %v3162_v12 = vmov 0 }
   0xd   : > { %3153 = vst [vmem:[#allocation2_spill] sm:$0xff] %v2165_v1  ;;  %v2180_v4 = vld [vmem:[%s3134_s3 + $0x18] sm:$0xff]  ;;  %v2185_v5 = vld [vmem:[%s3134_s3 + $0x20] sm:$0xff]  ;;  %v2190_v6 = vld [vmem:[%s3134_s3 + $0x28] sm:$0xff]  ;;  %v2223_v13 = vmov 0.0   ;;  %v2225_v14 = vmov 0.0  }
   0xe   : > { %3154 = vst [vmem:[#allocation3_spill] sm:$0xff] %v2170_v2  ;;  %s3247_s18 = smov (!%p248_p4, %s2077_s18), 1  ;;  %v275_v7 = vand.u32 127, %v274_v0  ;;  %v2195_v8 = vld [vmem:[%s3134_s3 + $0x30] sm:$0xff]  ;;  %v2200_v9 = vld [vmem:[%s3134_s3 + $0x38] sm:$0xff]  ;;  %v2227_v15 = vmov 0.0  }
   0xf   : > { %3155 = vst [vmem:[#allocation4_spill] sm:$0xff] %v2175_v3  ;;  %s1726_s12 = smul.u32 320, %s3247_s18  ;;  %s1715_s13 = sshll.u32 %s3247_s18, 4  ;;  %v2229_v16 = vmov 0.0  }
  0x10   : > { %3156 = vst [vmem:[#allocation5_spill] sm:$0xff] %v2180_v4  ;;  %vm276_vm0 = vcmp.lt.s32.totalorder %v275_v7, 6  ;;  %vm280_vm1 = vcmp.ge.s32.totalorder %v275_v7, 3  ;;  %vm282_vm2 = vcmp.lt.s32.totalorder %v275_v7, 8  ;;  %s1727_s14 = smul.u32 48, %s3247_s18  ;;  %s2205_s17 = scalar_lea.vmem %s3136_s5, %s1715_s13 }
  0x11   : > { %3157 = vst [vmem:[#allocation6_spill] sm:$0xff] %v2185_v5  ;;  %v2207_v11 = vsel %vm276_vm0, 1.0, %v2107_v10  ;;  %vm2209_vm3 = vmand %vm280_vm1, %vm282_vm2  ;;  %s2216_s23 = scalar_lea.vmem %s3131_s0, %s1726_s12  ;;  %s2231_s26 = smov 0  }
  0x12   : > { %3158 = vst [vmem:[#allocation7_spill] sm:$0xff] %v2190_v6  ;;  %v3163_v12 = vsel %vm2209_vm3, 4294967295, %v3162_v12  ;;  %s2221_s18 = scalar_lea.vmem %s3135_s4, %s1727_s14 }
  0x13   : > { %3159 = vst [vmem:[#allocation8_spill] sm:$0xff] %v2195_v8 }
  0x14   : > { %3160 = vst [vmem:[#allocation9_spill] sm:$0xff] %v2200_v9 }
  0x15   : > { %3161 = vst [vmem:[#allocation10_spill] sm:$0xff] %v2207_v11 }
  0x16   : > { %3164 = vst [vmem:[#allocation11_spill] sm:$0xff] %v3163_v12 }
  0x17 LB: >> { %3166 = vst [vmem:[#allocation12_spill] sm:$0xff] %v2089_v13  ;;  %v2108_v17 = vmov 0   ;;  %v3170_v3 = vld [vmem:[#allocation4_spill] sm:$0xff]  ;;  %v3171_v1 = vld [vmem:[#allocation2_spill] sm:$0xff]  ;;  %v3173_v4 = vld [vmem:[#allocation5_spill] sm:$0xff]  ;;  %v3137_v18 = vmov 0.0|0.0   ;;  %v2089_v13 = vphi %v2223_v13, %v3237_v13   ;;  %s2105_s26 = sphi %s2231_s26, %s3241_s26   ;;  %v2101_v16 = vphi %v2229_v16, %v3240_v16   ;;  %v2097_v15 = vphi %v2227_v15, %v3239_v15   ;;  %v2093_v14 = vphi %v2225_v14, %v3238_v14  }
  0x18   : >> { %3167 = vst [vmem:[#allocation13_spill] sm:$0xff] %v2093_v14  ;;  %1801 = vset.pattern.permute.xlu1 %v2108_v17  ;;  %1800 = vset.pattern.permute.xlu0 %v2108_v17  ;;  %v3172_v5 = vld [vmem:[#allocation6_spill] sm:$0xff]  ;;  %v3174_v2 = vld [vmem:[#allocation3_spill] sm:$0xff]  ;;  %s2110_s27 = smov 124   ;;  %s2265_s28 = sadd.s32 1, %s2105_s26  }
  0x19   : >> { %3168 = vst [vmem:[#allocation14_spill] sm:$0xff] %v2097_v15  ;;  %335 = vperm.xlu1 %1801, %v3170_v3   ;;  %325 = vperm.xlu0 %1800, %v3171_v1   ;;  %v3175_v6 = vld [vmem:[#allocation7_spill] sm:$0xff]  ;;  %s1665_s29 = sshll.u32 %s2105_s26, 5  ;;  %p403_p5 = scmp.ge.s32.totalorder %s2265_s28, 0 }
  0x1a   : >> { %3169 = vst [vmem:[#allocation15_spill] sm:$0xff] %v2101_v16  ;;  %1802 = vset.pattern.permute.xlu2 %v2108_v17  ;;  %v3177_v8 = vld [vmem:[#allocation8_spill] sm:$0xff]  ;;  %p404_p6 = scmp.lt.s32.totalorder %s2265_s28, 5  ;;  %s2271_s30 = scalar_lea.vmem %s2216_s23, %s1665_s29 }
  0x1b   : >> { %353 = vperm.xlu2 %1802, %v3172_v5   ;;  %v3176_v9 = vld [vmem:[#allocation9_spill] sm:$0xff]  ;;  %v1680_v19 = vld [vmem:[%s2271_s30 + $0x50] sm:$0xf]  ;;  %v1666_v21 = vld [vmem:[%s2271_s30 + $0x80] sm:$0xf]  ;;  %s502_s8 = sadd.s32 4294967295, %s2105_s26 }
  0x1c   : >> { %v1686_v20 = vld [vmem:[%s2271_s30 + $0x30] sm:$0xf]  ;;  %p2275_p7 = pnand %p404_p6, %p403_p5  ;;  %v1678_v22 = vld [vmem:[%s2271_s30 + $0x40] sm:$0xf]  ;;  %v514_v24 = vunpack.c.l.bf16 %v1680_v19  ;;  %v315_v26 = vunpack.c.l.bf16 %v1666_v21  ;;  %s579_s9 = sadd.s32 4294967294, %s2105_s26 }
  0x1d   : >> { %v1684_v23 = vld [vmem:[%s2271_s30 + $0x20] sm:$0xf]  ;;  %v591_v25 = vunpack.c.l.bf16 %v1686_v20  ;;  %v510_v27 = vunpack.c.l.bf16 %v1678_v22  ;;  %v1687_v37 = vld [vmem:[%s2271_s30 + $0x38] sm:$0xf]  ;;  %v1667_v38 = vld [vmem:[%s2271_s30 + $0x88] sm:$0xf] }
  0x1e   : >> { %v587_v28 = vunpack.c.l.bf16 %v1684_v23  ;;  %s1670_s7 = scalar_select %p2275_p7, 0, 1  ;;  %v1679_v40 = vld [vmem:[%s2271_s30 + $0x48] sm:$0xf]  ;;  %v1668_v45 = vld [vmem:[%s2271_s30 + $0x90] sm:$0xf]  ;;  %v593_v46 = vunpack.c.l.bf16 %v1687_v37  ;;  %v317_v47 = vunpack.c.l.bf16 %v1667_v38 }
  0x1f   : >> { %v1685_v41 = vld [vmem:[%s2271_s30 + $0x28] sm:$0xf]  ;;  %p2305_p8 = scmp.ge.s32.totalorder %s502_s8, 0  ;;  %p2309_p9 = scmp.lt.s32.totalorder %s502_s8, 5  ;;  %v1669_v49 = vld [vmem:[%s2271_s30 + $0x98] sm:$0xf]  ;;  %v512_v50 = vunpack.c.l.bf16 %v1679_v40  ;;  %v319_v57 = vunpack.c.l.bf16 %v1668_v45 }
  0x20   : >> { %v408_v39 = vstv %s1670_s7  ;;  %p2320_p10 = scmp.ge.s32.totalorder %s579_s9, 0  ;;  %p2324_p11 = scmp.lt.s32.totalorder %s579_s9, 5  ;;  %v589_v51 = vunpack.c.l.bf16 %v1685_v41  ;;  %v1672_v52 = vld [vmem:[%s2271_s30 + $0x60] sm:$0xf]  ;;  %v321_v58 = vunpack.c.l.bf16 %v1669_v49  ;;  %v1681_v59 = vld [vmem:[%s2271_s30 + $0x58] sm:$0xf] }
  0x21   : >> { %340 = vperm.xlu1 %1801, %v3173_v4   ;;  %330 = vperm.xlu0 %1800, %v3174_v2   ;;  %vm409_vm4 = vcmp.eq.s32.totalorder %v408_v39, 1  ;;  %p480_p12 = scmp.ge.s32.totalorder %s2105_s26, 0  ;;  %p481_p13 = scmp.lt.s32.totalorder %s2105_s26, 5  ;;  %v432_v7 = vunpack.c.l.bf16 %v1672_v52  ;;  %v1674_v17 = vld [vmem:[%s2271_s30 + $0x70] sm:$0xf]  ;;  %v516_v19 = vunpack.c.l.bf16 %v1681_v59 }
  0x22   : >> { %p560_p0 = pnand %p2309_p9, %p2305_p8  ;;  %vm2343_vm6 = vmand %vm2209_vm3, %vm409_vm4  ;;  %p637_p1 = pnand %p2324_p11, %p2320_p10 }
  0x23   : >> { %358 = vperm.xlu2 %1802, %v3175_v6   ;;  %p2362_p2 = pnand %p481_p13, %p480_p12  ;;  %s2111_s22 = smov 1  }
  0x24   : >> { %s2375_s15 = scalar_select %p560_p0, 0, 1 }
  0x25   : >> { %s1688_s16 = scalar_select %p637_p1, 0, 1 }
  0x26   : >> { %s1676_s21 = scalar_select %p2362_p2, 0, 1 }
  0x27   : >> { %v640_v40 = vstv %s1688_s16  ;;  %s2112_s24 = smov 2   ;;  %s2113_s25 = smov 3  }
  0x28   : >> { %vm2422_vm9 = vcmp.eq.s32.totalorder %v640_v40, 1  ;;  %s1720_s11 = sshll.u32 %s2105_s26, 3  ;;  %p297_p3 = scmp.ge.s32.totalorder %s2265_s28, 6  }
  0x29   : >> { %368 = vperm.xlu1 %1801, %v3176_v9   ;;  %363 = vperm.xlu0 %1800, %v3177_v8   ;;  %s1463_s12 = scalar_lea.vmem %s2221_s18, %s1720_s11  ;;  %s3241_s26 = smov %s2265_s28 }
  0x2b   : >> { %908 = vrot.lane.b32.xlu2 %v3137_v18, %s2110_s27 }
  0x31   : >> { %904 = vrot.lane.b32.xlu0 %v3137_v18, %s2110_s27  ;;  %989 = vrot.lane.b32.xlu1 %v3137_v18, %s2110_s27 }
  0x39   : >> { %993 = vrot.lane.b32.xlu0 %v3137_v18, %s2110_s27 }
  0x75   : >> { %v2284_v29 = vpop.permute.xlu2 %353 }
  0x7d   : >> { %v2353_v61 = vpop.permute.xlu2 %358 }
  0x8b   : >> { %v2286_v30 = vpop.permute.xlu1 %335  ;;  %v2288_v31 = vpop.permute.xlu0 %325 }
  0x8c   : >> { %v2292_v32 = vmul.f32 %v514_v24, %v2286_v30  ;;  %v2295_v33 = vmul.f32 %v591_v25, %v2286_v30  ;;  %v343_v34 = vmul.f32 %v2288_v31, %v315_v26  ;;  %v518_v35 = vmul.f32 %v510_v27, %v2288_v31  ;;  %v1675_v27 = vld [vmem:[%s2271_s30 + $0x78] sm:$0xf] }
  0x8d   : >> { %v595_v36 = vmul.f32 %v587_v28, %v2288_v31  ;;  %v347_v25 = vmul.f32 %v2286_v30, %v319_v57  ;;  %v436_v26 = vunpack.c.l.bf16 %v1674_v17  ;;  %v2399_v28 = vld [vmem:[%s2271_s30 + $0x68] sm:$0xf] }
  0x8e   : >> { %v371_v42 = vadd.f32 %v2284_v29, %v343_v34  ;;  %v2315_v43 = vadd.f32 %v518_v35, %v2284_v29  ;;  %v563_v34 = vstv %s2375_s15  ;;  %v440_v35 = vmul.f32 %v432_v7, %v2288_v31 }
  0x8f   : >> { %v2318_v44 = vadd.f32 %v595_v36, %v2284_v29  ;;  %v434_v45 = vunpack.c.l.bf16 %v2399_v28  ;;  %v2416_v31 = vmul.f32 %v436_v26, %v2286_v30  ;;  %vm2418_vm8 = vcmp.eq.s32.totalorder %v563_v34, 1 }
  0x90   : >> { %vm379_vm5 = vcmp.ge.f32.partialorder %v371_v42, 0.0  ;;  %v387_v48 = vmul.f32 0.05, %v371_v42  ;;  %vm534_vm11 = vcmp.ge.f32.partialorder %v2315_v43, 0.0  ;;  %v542_v30 = vmul.f32 0.05, %v2315_v43  ;;  %vm2464_vm15 = vmand %vm2209_vm3, %vm2418_vm8 }
  0x91   : >> { %vm611_vm13 = vcmp.ge.f32.partialorder %v2318_v44, 0.0 }
  0x92   : >> { %v395_v55 = vsel %vm379_vm5, %v371_v42, %v387_v48  ;;  %v438_v42 = vunpack.c.l.bf16 %v1675_v27  ;;  %v550_v56 = vsel %vm534_vm11, %v2315_v43, %v542_v30 }
  0x93   : >> { %v2337_v53 = vpop.permute.xlu1 %340  ;;  %v2339_v54 = vpop.permute.xlu0 %330  ;;  %v2368_v10 = vsel %vm2343_vm6, %v395_v55, 0.0 }
  0x94   : >> { %v601_v60 = vmul.f32 %v593_v46, %v2337_v53  ;;  %v345_v62 = vmul.f32 %v2339_v54, %v317_v47  ;;  %v520_v63 = vmul.f32 %v512_v50, %v2339_v54  ;;  %v597_v0 = vmul.f32 %v589_v51, %v2339_v54 }
  0x95   : >> { %v349_v23 = vmul.f32 %v2337_v53, %v321_v58  ;;  %v2392_v24 = vpack.i.bf16 0.0, %v2368_v10  ;;  %v524_v36 = vmul.f32 %v516_v19, %v2337_v53  ;;  %v2413_v47 = vstv %s1676_s21 }
  0x96   : >> { %v373_v20 = vadd.f32 %v2353_v61, %v345_v62  ;;  %v2380_v21 = vadd.f32 %v520_v63, %v2353_v61  ;;  %v2383_v22 = vadd.f32 %v597_v0, %v2353_v61  ;;  %v2427_v51 = vadd.f32 %v440_v35, %v2284_v29 }
  0x97   : >> { %1804 = vrot.lane.b32.xlu2 %v2392_v24, %s2111_s22  ;;  %v619_v58 = vmul.f32 0.05, %v2318_v44  ;;  %v446_v26 = vmul.f32 %v438_v42, %v2337_v53  ;;  %vm486_vm8 = vcmp.eq.s32.totalorder %v2413_v47, 1 }
  0x98   : >> { %v389_v37 = vmul.f32 0.05, %v373_v20  ;;  %vm381_vm7 = vcmp.ge.f32.partialorder %v373_v20, 0.0  ;;  %v544_v35 = vmul.f32 0.05, %v2380_v21  ;;  %vm536_vm2 = vcmp.ge.f32.partialorder %v2380_v21, 0.0 }
  0x99   : >> { %v627_v34 = vsel %vm611_vm13, %v2318_v44, %v619_v58  ;;  %vm613_vm4 = vcmp.ge.f32.partialorder %v2383_v22, 0.0  ;;  %v621_v44 = vmul.f32 0.05, %v2383_v22  ;;  %vm680_vm13 = vcmask 7168  }
  0x9a   : >> { %v397_v55 = vsel %vm381_vm7, %v373_v20, %v389_v37  ;;  %v2486_v37 = vsel %vm2464_vm15, %v550_v56, 0.0  ;;  %vm456_vm7 = vcmp.ge.f32.partialorder %v2427_v51, 0.0  ;;  %v552_v30 = vsel %vm536_vm2, %v2380_v21, %v544_v35 }
  0x9b   : >> { %v2406_v38 = vpop.permute.xlu1 %368  ;;  %v2408_v39 = vpop.permute.xlu0 %363  ;;  %v2441_v63 = vsel %vm2343_vm6, %v397_v55, 0.0 }
  0x9c   : >> { %v377_v41 = vadd.f32 %v2406_v38, %v349_v23  ;;  %v375_v46 = vadd.f32 %v2408_v39, %v347_v25  ;;  %v532_v52 = vadd.f32 %v524_v36, %v2406_v38  ;;  %v609_v59 = vadd.f32 %v601_v60, %v2406_v38 }
  0x9d   : >> { %v607_v29 = vadd.f32 %v2295_v33, %v2408_v39  ;;  %v530_v62 = vadd.f32 %v2292_v32, %v2408_v39  ;;  %v2444_v19 = vpack.i.bf16 0.0, %v2441_v63  ;;  %v464_v25 = vmul.f32 0.05, %v2427_v51 }
  0x9e   : >> { %v393_v48 = vmul.f32 0.05, %v377_v41  ;;  %vm385_vm10 = vcmp.ge.f32.partialorder %v377_v41, 0.0  ;;  %vm383_vm12 = vcmp.ge.f32.partialorder %v375_v46, 0.0  ;;  %v391_v57 = vmul.f32 0.05, %v375_v46 }
  0x9f   : >> { %v548_v17 = vmul.f32 0.05, %v532_v52  ;;  %vm540_vm14 = vcmp.ge.f32.partialorder %v532_v52, 0.0  ;;  %v623_v27 = vmul.f32 0.05, %v607_v29  ;;  %1809 = vrot.lane.b32.xlu0 %v2444_v19, %s2111_s22  ;;  %vm615_vm0 = vcmp.ge.f32.partialorder %v607_v29, 0.0 }
  0xa0   : >> { %v399_v0 = vsel %vm383_vm12, %v375_v46, %v391_v57  ;;  %v401_v7 = vsel %vm385_vm10, %v377_v41, %v393_v48  ;;  %v546_v36 = vmul.f32 0.05, %v530_v62  ;;  %v625_v43 = vmul.f32 0.05, %v609_v59 }
  0xa1   : >> { %v2448_v20 = vsel %vm2343_vm6, %v399_v0, 0.0  ;;  %v2452_v33 = vsel %vm2343_vm6, %v401_v7, 0.0  ;;  %vm538_vm1 = vcmp.ge.f32.partialorder %v530_v62, 0.0  ;;  %v556_v53 = vsel %vm540_vm14, %v532_v52, %v548_v17  ;;  %vm2499_vm6 = vmand %vm2209_vm3, %vm2422_vm9 }
  0xa2   : >> { %v2455_v32 = vpack.i.bf16 0.0, %v2448_v20  ;;  %v2458_v60 = vpack.i.bf16 0.0, %v2452_v33  ;;  %vm617_vm5 = vcmp.ge.f32.partialorder %v609_v59, 0.0  ;;  %v2493_v40 = vsel %vm2464_vm15, %v556_v53, 0.0  ;;  %vm2595_vm9 = vmand %vm2209_vm3, %vm486_vm8 }
  0xa3   : >> { %v631_v41 = vsel %vm615_vm0, %v607_v29, %v623_v27  ;;  %v2504_v46 = vpack.i.bf16 0.0, %v2493_v40  ;;  %v554_v49 = vsel %vm538_vm1, %v530_v62, %v546_v36  ;;  %v2511_v52 = vpack.i.bf16 0.0, %v2486_v37 }
  0xa4   : >> { %1814 = vrot.lane.b32.xlu1 %v2455_v32, %s2111_s22  ;;  %1819 = vrot.lane.b32.xlu2 %v2458_v60, %s2111_s22  ;;  %v2508_v48 = vsel %vm2499_vm6, %v631_v41, 0.0  ;;  %v2520_v55 = vsel %vm2464_vm15, %v554_v49, 0.0  ;;  %v633_v57 = vsel %vm617_vm5, %v609_v59, %v625_v43  ;;  %v2528_v29 = vsel %vm2464_vm15, %v552_v30, 0.0 }
  0xa5   : >> { %v2516_v50 = vpack.i.bf16 0.0, %v2508_v48  ;;  %v2524_v58 = vpack.i.bf16 0.0, %v2520_v55  ;;  %v2532_v62 = vsel %vm2499_vm6, %v633_v57, 0.0  ;;  %v629_v0 = vsel %vm613_vm4, %v2383_v22, %v621_v44  ;;  %v2647_v57 = vpop.permute.xlu0 %904 }
  0xa6   : >> { %v2540_v21 = vpack.i.bf16 0.0, %v2528_v29  ;;  %v2543_v59 = vpack.i.bf16 0.0, %v2532_v62  ;;  %v2547_v7 = vsel %vm2499_vm6, %v629_v0, 0.0  ;;  %v753_v17 = vpack.c.bf16 %v2441_v63, %v2368_v10 }
  0xa7   : >> { %1824 = vrot.lane.b32.xlu0 %v2392_v24, %s2112_s24  ;;  %v442_v22 = vmul.f32 %v434_v45, %v2339_v54  ;;  %v2559_v23 = vpack.i.bf16 0.0, %v2547_v7  ;;  %v2563_v56 = vsel %vm2499_vm6, %v627_v34, 0.0  ;;  %v755_v10 = vpack.c.bf16 %v2452_v33, %v2448_v20 }
  0xa8   : >> { %v2566_v27 = vpack.i.bf16 0.0, %v2563_v56  ;;  %v454_v35 = vadd.f32 %v446_v26, %v2406_v38  ;;  %v452_v20 = vadd.f32 %v2416_v31, %v2408_v39  ;;  %v472_v33 = vsel %vm456_vm7, %v2427_v51, %v464_v25 }
  0xa9   : >> { %v450_v34 = vadd.f32 %v442_v22, %v2353_v61  ;;  %v493_v39 = vsel %vm2595_vm9, %v472_v33, 0.0  ;;  %v2665_v22 = vpop.permute.xlu1 %989  ;;  %vm709_vm14 = vcmask 15360   ;;  %vm738_vm15 = vcmask 23552  }
  0xaa   : >> { %v468_v31 = vmul.f32 0.05, %v452_v20  ;;  %vm462_vm11 = vcmp.ge.f32.partialorder %v454_v35, 0.0  ;;  %vm460_vm12 = vcmp.ge.f32.partialorder %v452_v20, 0.0  ;;  %3197 = vst [vmem:[#allocation17_spill] sm:$0xff] %v2665_v22  ;;  %vm934_vm0 = vcmask 1014784  }
  0xab   : >> { %v466_v38 = vmul.f32 0.05, %v450_v34  ;;  %vm458_vm10 = vcmp.ge.f32.partialorder %v450_v34, 0.0  ;;  %vm1469_vm1 = vcmask (%p297_p3), 15368  }
  0xac   : >> { %1829 = vrot.lane.b32.xlu1 %v2444_v19, %s2112_s24  ;;  %1834 = vrot.lane.b32.xlu2 %v2455_v32, %s2112_s24  ;;  %v476_v51 = vsel %vm460_vm12, %v452_v20, %v468_v31 }
  0xad   : >> { %v474_v47 = vsel %vm458_vm10, %v450_v34, %v466_v38  ;;  %v497_v36 = vsel %vm2595_vm9, %v476_v51, 0.0 }
  0xae   : >> { %v495_v26 = vsel %vm2595_vm9, %v474_v47, 0.0  ;;  %v1873_v44 = vpack.i.bf16 0.0, %v497_v36 }
  0xaf   : >> { %1839 = vrot.lane.b32.xlu0 %v2458_v60, %s2112_s24  ;;  %v1868_v53 = vpack.i.bf16 0.0, %v495_v26  ;;  %v864_v41 = vpack.c.bf16 %v495_v26, %v493_v39 }
  0xb4   : >> { %1844 = vrot.lane.b32.xlu1 %v2392_v24, %s2113_s25  ;;  %1849 = vrot.lane.b32.xlu2 %v2444_v19, %s2113_s25  ;;  %v470_v24 = vmul.f32 0.05, %v454_v35  ;;  %v1863_v19 = vpack.i.bf16 0.0, %v493_v39 }
  0xb6   : >> { %v478_v25 = vsel %vm462_vm11, %v454_v35, %v470_v24 }
  0xb7   : >> { %1854 = vrot.lane.b32.xlu0 %v2455_v32, %s2113_s25  ;;  %v499_v43 = vsel %vm2595_vm9, %v478_v25, 0.0 }
  0xb8   : >> { %v1878_v32 = vpack.i.bf16 0.0, %v499_v43  ;;  %v866_v49 = vpack.c.bf16 %v499_v43, %v497_v36 }
  0xbc   : >> { %1859 = vrot.lane.b32.xlu1 %v2458_v60, %s2113_s25  ;;  %1864 = vrot.lane.b32.xlu2 %v1863_v19, %s2111_s22  ;;  %v2633_v60 = vpop.permute.xlu2 %908 }
  0xbf   : >> { %1869 = vrot.lane.b32.xlu0 %v1868_v53, %s2111_s22 }
  0xc4   : >> { %1874 = vrot.lane.b32.xlu1 %v1873_v44, %s2111_s22  ;;  %1879 = vrot.lane.b32.xlu2 %v1878_v32, %s2111_s22 }
  0xc7   : >> { %1884 = vrot.lane.b32.xlu0 %v1863_v19, %s2112_s24 }
  0xcc   : >> { %1889 = vrot.lane.b32.xlu1 %v1868_v53, %s2112_s24  ;;  %1894 = vrot.lane.b32.xlu2 %v1873_v44, %s2112_s24 }
  0xcf   : >> { %1899 = vrot.lane.b32.xlu0 %v1878_v32, %s2112_s24 }
  0xd4   : >> { %1904 = vrot.lane.b32.xlu1 %v1863_v19, %s2113_s25  ;;  %1909 = vrot.lane.b32.xlu2 %v1868_v53, %s2113_s25 }
  0xd7   : >> { %1914 = vrot.lane.b32.xlu0 %v1873_v44, %s2113_s25 }
  0xdc   : >> { %1919 = vrot.lane.b32.xlu1 %v1878_v32, %s2113_s25  ;;  %1929 = vrot.lane.b32.xlu2 %v2504_v46, %s2113_s25 }
  0xdf   : >> { %1934 = vrot.lane.b32.xlu0 %v2516_v50, %s2113_s25 }
  0xe4   : >> { %1924 = vrot.lane.b32.xlu1 %v2524_v58, %s2113_s25  ;;  %1944 = vrot.lane.b32.xlu2 %v2511_v52, %s2113_s25 }
  0xe7   : >> { %1949 = vrot.lane.b32.xlu0 %v2540_v21, %s2113_s25 }
  0xec   : >> { %1939 = vrot.lane.b32.xlu1 %v2543_v59, %s2113_s25  ;;  %1959 = vrot.lane.b32.xlu2 %v2559_v23, %s2113_s25 }
  0xef   : >> { %987 = vrot.lane.b32.xlu0 %v753_v17, %s2110_s27  ;;  %v2659_v17 = vpop.permute.xlu0 %993 }
  0xf0   : >> { %3196 = vst [vmem:[#allocation16_spill] sm:$0xff] %v2659_v17 }
  0xf1   : >> { %v1805_v42 = vpop.permute.xlu2 %1804 }
  0xf2   : >> { %v1807_v34 = vunpack.i.h.bf16 %v1805_v42  ;;  %v1806_v35 = vunpack.i.l.bf16 %v1805_v42 }
  0xf4   : >> { %1954 = vrot.lane.b32.xlu1 %v2566_v27, %s2113_s25  ;;  %902 = vrot.lane.b32.xlu2 %v864_v41, %s2110_s27 }
  0xf7   : >> { %1964 = vrot.lane.b32.xlu0 %v2524_v58, %s2112_s24 }
  0xfc   : >> { %906 = vrot.lane.b32.xlu1 %v866_v49, %s2110_s27  ;;  %991 = vrot.lane.b32.xlu2 %v755_v10, %s2110_s27 }
  0xfe   : >> { %v1820_v30 = vpop.permute.xlu2 %1819 }
  0xff   : >> { %1979 = vrot.lane.b32.xlu0 %v2543_v59, %s2112_s24  ;;  %v1822_v20 = vunpack.i.h.bf16 %v1820_v30  ;;  %v1821_v33 = vunpack.i.l.bf16 %v1820_v30 }
 0x101   : >> { %v2682_v26 = vsel %vm680_vm13, %v1821_v33, %v1822_v20 }
 0x104   : >> { %1969 = vrot.lane.b32.xlu1 %v2504_v46, %s2112_s24  ;;  %1974 = vrot.lane.b32.xlu2 %v2516_v50, %s2112_s24 }
 0x106   : >> { %v2655_v0 = vpop.permute.xlu2 %1834 }
 0x107   : >> { %1994 = vrot.lane.b32.xlu0 %v2566_v27, %s2112_s24 }
 0x10c   : >> { %1984 = vrot.lane.b32.xlu1 %v2511_v52, %s2112_s24  ;;  %1989 = vrot.lane.b32.xlu2 %v2540_v21, %s2112_s24 }
 0x10e   : >> { %v2667_v10 = vpop.permute.xlu2 %1849 }
 0x10f   : >> { %2009 = vrot.lane.b32.xlu0 %v2504_v46, %s2111_s22  ;;  %v3200_v13 = vunpack.i.l.bf16 %v2667_v10 }
 0x111   : >> { %v1810_v61 = vpop.permute.xlu0 %1809 }
 0x112   : >> { %v1812_v38 = vunpack.i.h.bf16 %v1810_v61  ;;  %v1811_v39 = vunpack.i.l.bf16 %v1810_v61 }
 0x114   : >> { %1999 = vrot.lane.b32.xlu1 %v2559_v23, %s2112_s24  ;;  %2004 = vrot.lane.b32.xlu2 %v2524_v58, %s2111_s22  ;;  %v2679_v25 = vpack.c.bf16 %v1811_v39, %v1806_v35  ;;  %v2685_v58 = vsel %vm680_vm13, %v1806_v35, %v1807_v34  ;;  %v2688_v36 = vsel %vm680_vm13, %v1811_v39, %v1812_v38 }
 0x116   : >> { %v1815_v24 = vpop.permute.xlu1 %1814  ;;  %v2675_v31 = vpop.permute.xlu2 %1864 }
 0x117   : >> { %v1817_v19 = vunpack.i.h.bf16 %v1815_v24  ;;  %v1816_v47 = vunpack.i.l.bf16 %v1815_v24  ;;  %v1867_v46 = vunpack.i.h.bf16 %v2675_v31  ;;  %v3143_v51 = vunpack.i.l.bf16 %v2675_v31  ;;  %2024 = vrot.lane.b32.xlu0 %v2511_v52, %s2111_s22 }
 0x118   : >> { %v3198_v1 = vunpack.i.l.bf16 %v2675_v31 }
 0x119   : >> { %v2690_v43 = vpack.c.bf16 %v1821_v33, %v1816_v47  ;;  %v2695_v53 = vsel %vm680_vm13, %v3143_v51, %v1867_v46  ;;  %v2698_v44 = vsel %vm680_vm13, %v1816_v47, %v1817_v19  ;;  %v1825_v42 = vpop.permute.xlu0 %1824  ;;  %v1837_v19 = vunpack.i.h.bf16 %v2655_v0 }
 0x11a   : >> { %v1827_v49 = vunpack.i.h.bf16 %v1825_v42  ;;  %v1826_v30 = vunpack.i.l.bf16 %v1825_v42  ;;  %v3140_v47 = vunpack.i.l.bf16 %v2655_v0  ;;  %v1852_v46 = vunpack.i.h.bf16 %v2667_v10 }
 0x11b   : >> { %v3141_v42 = vunpack.i.l.bf16 %v2667_v10  ;;  %v3202_v10 = vunpack.i.l.bf16 %v2655_v0 }
 0x11c   : >> { %2014 = vrot.lane.b32.xlu1 %v2516_v50, %s2111_s22  ;;  %2019 = vrot.lane.b32.xlu2 %v2543_v59, %s2111_s22  ;;  %v2716_v50 = vsel %vm709_vm14, %v1826_v30, %v1827_v49 }
 0x11e   : >> { %v1830_v34 = vpop.permute.xlu1 %1829  ;;  %v1880_v35 = vpop.permute.xlu2 %1879 }
 0x11f   : >> { %v1832_v20 = vunpack.i.h.bf16 %v1830_v34  ;;  %v1831_v33 = vunpack.i.l.bf16 %v1830_v34  ;;  %v1882_v61 = vunpack.i.h.bf16 %v1880_v35  ;;  %v1881_v38 = vunpack.i.l.bf16 %v1880_v35  ;;  %2039 = vrot.lane.b32.xlu0 %v2559_v23, %s2111_s22 }
 0x121   : >> { %v2710_v39 = vpack.c.bf16 %v1831_v33, %v1826_v30  ;;  %v2713_v52 = vsel %vm680_vm13, %v1881_v38, %v1882_v61  ;;  %v2719_v59 = vsel %vm709_vm14, %v1831_v33, %v1832_v20  ;;  %v2733_v49 = vpop.permute.xlu0 %1839  ;;  %v2744_v61 = vsel %vm709_vm14, %v3140_v47, %v1837_v19 }
 0x122   : >> { %v1842_v30 = vunpack.i.h.bf16 %v2733_v49  ;;  %v3139_v23 = vunpack.i.l.bf16 %v2733_v49 }
 0x124   : >> { %2029 = vrot.lane.b32.xlu1 %v2540_v21, %s2111_s22  ;;  %2034 = vrot.lane.b32.xlu2 %v2566_v27, %s2111_s22  ;;  %v2749_v63 = vsel %vm709_vm14, %v3139_v23, %v1842_v30 }
 0x126   : >> { %v2737_v34 = vpop.permute.xlu1 %1844  ;;  %v1895_v35 = vpop.permute.xlu2 %1894 }
 0x127   : >> { %v1847_v20 = vunpack.i.h.bf16 %v2737_v34  ;;  %v3142_v21 = vunpack.i.l.bf16 %v2737_v34  ;;  %v1897_v33 = vunpack.i.h.bf16 %v1895_v35  ;;  %v1896_v27 = vunpack.i.l.bf16 %v1895_v35 }
 0x128   : >> { %v2762_v35 = vsel %vm738_vm15, %v3141_v42, %v1852_v46 }
 0x129   : >> { %v2752_v45 = vsel %vm709_vm14, %v1896_v27, %v1897_v33  ;;  %v2757_v28 = vsel %vm738_vm15, %v3142_v21, %v1847_v20  ;;  %v1855_v32 = vpop.permute.xlu0 %1854 }
 0x12a   : >> { %v1857_v54 = vunpack.i.h.bf16 %v1855_v32  ;;  %v1856_v33 = vunpack.i.l.bf16 %v1855_v32 }
 0x12c   : >> { %v2771_v20 = vsel %vm738_vm15, %v1856_v33, %v1857_v54 }
 0x12e   : >> { %v1860_v18 = vpop.permute.xlu1 %1859  ;;  %v2768_v23 = vpop.permute.xlu2 %1909 }
 0x12f   : >> { %v1862_v41 = vunpack.i.h.bf16 %v1860_v18  ;;  %v1861_v24 = vunpack.i.l.bf16 %v1860_v18 }
 0x131   : >> { %v2774_v46 = vsel %vm738_vm15, %v1861_v24, %v1862_v41  ;;  %v1870_v47 = vpop.permute.xlu0 %1869 }
 0x132   : >> { %v1872_v42 = vunpack.i.h.bf16 %v1870_v47  ;;  %v1871_v30 = vunpack.i.l.bf16 %v1870_v47  ;;  %v3146_v47 = vunpack.i.l.bf16 %v2768_v23 }
 0x134   : >> { %v868_v18 = vpack.c.bf16 %v1871_v30, %v3198_v1  ;;  %v2781_v2 = vsel %vm680_vm13, %v1871_v30, %v1872_v42 }
 0x136   : >> { %v1875_v21 = vpop.permute.xlu1 %1874  ;;  %910 = vrot.lane.b32.xlu0 %v868_v18, %s2110_s27  ;;  %v2791_v19 = vpop.permute.xlu2 %1929 }
 0x137   : >> { %v1877_v51 = vunpack.i.h.bf16 %v1875_v21  ;;  %v1876_v32 = vunpack.i.l.bf16 %v1875_v21  ;;  %v1931_v6 = vunpack.i.l.bf16 %v2791_v19 }
 0x139   : >> { %v870_v54 = vpack.c.bf16 %v1881_v38, %v1876_v32  ;;  %v2784_v3 = vsel %vm680_vm13, %v1876_v32, %v1877_v51  ;;  %v1885_v1 = vpop.permute.xlu0 %1884 }
 0x13a   : >> { %v1886_v42 = vunpack.i.l.bf16 %v1885_v1 }
 0x13b   : >> { %914 = vrot.lane.b32.xlu2 %v870_v54, %s2110_s27 }
 0x13e   : >> { %v1890_v31 = vpop.permute.xlu1 %1889  ;;  %v2795_v51 = vpop.permute.xlu2 %1944 }
 0x13f   : >> { %v1891_v21 = vunpack.i.l.bf16 %v1890_v31 }
 0x141   : >> { %v872_v38 = vpack.c.bf16 %v1891_v21, %v1886_v42  ;;  %v1900_v30 = vpop.permute.xlu0 %1899 }
 0x142   : >> { %v1902_v32 = vunpack.i.h.bf16 %v1900_v30  ;;  %v1901_v41 = vunpack.i.l.bf16 %v1900_v30 }
 0x143   : >> { %918 = vrot.lane.b32.xlu1 %v872_v38, %s2110_s27 }
 0x144   : >> { %v874_v5 = vpack.c.bf16 %v1901_v41, %v1896_v27  ;;  %v2802_v54 = vsel %vm709_vm14, %v1901_v41, %v1902_v32  ;;  %v767_v41 = vpack.c.bf16 %v1861_v24, %v1856_v33 }
 0x146   : >> { %v2797_v18 = vpop.permute.xlu1 %1904  ;;  %922 = vrot.lane.b32.xlu0 %v874_v5, %s2110_s27  ;;  %v2812_v9 = vpop.permute.xlu2 %1959 }
 0x147   : >> { %v3147_v4 = vunpack.i.l.bf16 %v2797_v18 }
 0x149   : >> { %v876_v38 = vpack.c.bf16 %v3146_v47, %v3147_v4  ;;  %v1915_v30 = vpop.permute.xlu0 %1914 }
 0x14a   : >> { %v1916_v27 = vunpack.i.l.bf16 %v1915_v30 }
 0x14b   : >> { %926 = vrot.lane.b32.xlu2 %v876_v38, %s2110_s27  ;;  %v3199_v38 = vunpack.i.l.bf16 %v2737_v34 }
 0x14d   : >> { %v765_v15 = vpack.c.bf16 %v3200_v13, %v3199_v38  ;;  %v3203_v13 = vunpack.i.l.bf16 %v2733_v49 }
 0x14e   : >> { %v1920_v8 = vpop.permute.xlu1 %1919  ;;  %v2823_v14 = vpop.permute.xlu2 %902 }
 0x14f   : >> { %v1921_v12 = vunpack.i.l.bf16 %v1920_v8  ;;  %3201 = vst [vmem:[#allocation18_spill] sm:$0xff] %v2823_v14  ;;  %v763_v38 = vpack.c.bf16 %v3203_v13, %v3202_v10  ;;  %v1887_v14 = vunpack.i.h.bf16 %v1885_v1  ;;  %v3151_v13 = vunpack.i.l.bf16 %v2812_v9 }
 0x151   : >> { %v878_v32 = vpack.c.bf16 %v1921_v12, %v1916_v27  ;;  %v2816_v47 = vpop.permute.xlu0 %1934 }
 0x152   : >> { %v3149_v11 = vunpack.i.l.bf16 %v2816_v47 }
 0x153   : >> { %930 = vrot.lane.b32.xlu1 %v878_v32, %s2110_s27  ;;  %1015 = vrot.lane.b32.xlu2 %v767_v41, %s2110_s27  ;;  %v1946_v32 = vunpack.i.l.bf16 %v2795_v51 }
 0x156   : >> { %v1925_v4 = vpop.permute.xlu1 %1924  ;;  %v2840_v17 = vpop.permute.xlu2 %991 }
 0x157   : >> { %v1926_v5 = vunpack.i.l.bf16 %v1925_v4  ;;  %3204 = vst [vmem:[#allocation19_spill] sm:$0xff] %v2840_v17  ;;  %v1927_v17 = vunpack.i.h.bf16 %v1925_v4 }
 0x159   : >> { %v1158_v16 = vpack.c.bf16 %v1931_v6, %v1926_v5  ;;  %v1950_v24 = vpop.permute.xlu0 %1949 }
 0x15a   : >> { %v1951_v33 = vunpack.i.l.bf16 %v1950_v24 }
 0x15b   : >> { %1210 = vrot.lane.b32.xlu1 %v1158_v16, %s2110_s27  ;;  %1011 = vrot.lane.b32.xlu2 %v765_v15, %s2110_s27  ;;  %v1892_v16 = vunpack.i.h.bf16 %v1890_v31  ;;  %v821_v31 = vsel %vm709_vm14, %v1886_v42, %v1887_v14 }
 0x15c   : >> { %v1156_v22 = vpack.c.bf16 %v1951_v33, %v1946_v32 }
 0x15d   : >> { %v822_v10 = vsel %vm709_vm14, %v1891_v21, %v1892_v16 }
 0x15e   : >> { %v2827_v41 = vpop.permute.xlu1 %1939  ;;  %v873_v1 = vpack.c.bf16 %v822_v10, %v821_v31 }
 0x15f   : >> { %v3150_v34 = vunpack.i.l.bf16 %v2827_v41 }
 0x161   : >> { %v1355_v15 = vpack.c.bf16 %v3150_v34, %v3149_v11  ;;  %v2845_v0 = vpop.permute.xlu0 %987  ;;  %v2859_v34 = vpop.permute.xlu2 %1974 }
 0x162   : >> { %3205 = vst [vmem:[#allocation20_spill] sm:$0xff] %v2845_v0 }
 0x163   : >> { %1206 = vrot.lane.b32.xlu1 %v1156_v22, %s2110_s27  ;;  %1007 = vrot.lane.b32.xlu2 %v763_v38, %s2110_s27  ;;  %v1922_v38 = vunpack.i.h.bf16 %v1920_v8  ;;  %v1932_v8 = vunpack.i.h.bf16 %v2791_v19 }
 0x164   : >> { %1407 = vrot.lane.b32.xlu0 %v1355_v15, %s2110_s27  ;;  %v1917_v15 = vunpack.i.h.bf16 %v1915_v30  ;;  %v3152_v30 = vunpack.i.l.bf16 %v2859_v34 }
 0x165   : >> { %v852_v0 = vsel %vm738_vm15, %v1921_v12, %v1922_v38  ;;  %v1132_v19 = vsel %vm738_vm15, %v1931_v6, %v1932_v8 }
 0x166   : >> { %v2847_v49 = vpop.permute.xlu1 %1954  ;;  %v851_v14 = vsel %vm738_vm15, %v1916_v27, %v1917_v15  ;;  %v1952_v15 = vunpack.i.h.bf16 %v1950_v24  ;;  %v3206_v24 = vpack.c.bf16 %v2713_v52, %v2784_v3  ;;  %v3209_v3 = vunpack.i.l.bf16 %v2768_v23 }
 0x167   : >> { %v1956_v11 = vunpack.i.l.bf16 %v2847_v49  ;;  %v879_v42 = vpack.c.bf16 %v852_v0, %v851_v14 }
 0x169   : >> { %v1353_v22 = vpack.c.bf16 %v3151_v13, %v1956_v11  ;;  %v1965_v21 = vpop.permute.xlu0 %1964  ;;  %v2872_v13 = vpop.permute.xlu2 %1989 }
 0x16a   : >> { %v1966_v12 = vunpack.i.l.bf16 %v1965_v21 }
 0x16b   : >> { %920 = vrot.lane.b32.xlu2 %v873_v1, %s2110_s27  ;;  %v1131_v1 = vsel %vm738_vm15, %v1926_v5, %v1927_v17  ;;  %v1947_v17 = vunpack.i.h.bf16 %v2795_v51  ;;  %v1130_v5 = vsel %vm738_vm15, %v1951_v33, %v1952_v15  ;;  %v3207_v51 = vpack.c.bf16 %v2781_v2, %v2695_v53 }
 0x16c   : >> { %1403 = vrot.lane.b32.xlu0 %v1353_v22, %s2110_s27  ;;  %v1159_v0 = vpack.c.bf16 %v1132_v19, %v1131_v1  ;;  %v1912_v1 = vunpack.i.h.bf16 %v2768_v23  ;;  %v1967_v33 = vunpack.i.h.bf16 %v1965_v21  ;;  %v3210_v21 = vpack.c.bf16 %v2802_v54, %v2752_v45 }
 0x16d   : >> { %v1129_v14 = vsel %vm738_vm15, %v1946_v32, %v1947_v17  ;;  %v3208_v32 = vunpack.i.l.bf16 %v2797_v18  ;;  %v1942_v17 = vunpack.i.h.bf16 %v2827_v41  ;;  %v1937_v23 = vunpack.i.h.bf16 %v2816_v47 }
 0x16e   : >> { %v2861_v16 = vpop.permute.xlu1 %906  ;;  %v1157_v6 = vpack.c.bf16 %v1130_v5, %v1129_v14  ;;  %v850_v52 = vsel %vm738_vm15, %v3209_v3, %v1912_v1  ;;  %v3211_v14 = vunpack.i.l.bf16 %v2827_v41 }
 0x171   : >> { %v2867_v10 = vpop.permute.xlu0 %1979 }
 0x172   : >> { %v1981_v31 = vunpack.i.l.bf16 %v2867_v10 }
 0x173   : >> { %932 = vrot.lane.b32.xlu2 %v879_v42, %s2110_s27  ;;  %v1907_v42 = vunpack.i.h.bf16 %v2797_v18 }
 0x174   : >> { %v1351_v4 = vpack.c.bf16 %v1981_v31, %v3152_v30  ;;  %v2886_v30 = vpop.permute.xlu2 %2004 }
 0x176   : >> { %v1970_v22 = vpop.permute.xlu1 %1969  ;;  %1399 = vrot.lane.b32.xlu0 %v1351_v4, %s2110_s27  ;;  %v849_v4 = vsel %vm738_vm15, %v3208_v32, %v1907_v42  ;;  %v1329_v42 = vsel %vm738_vm15, %v3211_v14, %v1942_v17 }
 0x177   : >> { %v1971_v38 = vunpack.i.l.bf16 %v1970_v22  ;;  %v1972_v8 = vunpack.i.h.bf16 %v1970_v22 }
 0x179   : >> { %v1154_v27 = vpack.c.bf16 %v1971_v38, %v1966_v12  ;;  %v1104_v22 = vsel %vm709_vm14, %v1971_v38, %v1972_v8  ;;  %v1991_v38 = vunpack.i.l.bf16 %v2872_v13  ;;  %v1995_v5 = vpop.permute.xlu0 %1994  ;;  %v3212_v8 = vunpack.i.l.bf16 %v2816_v47 }
 0x17a   : >> { %v1962_v47 = vunpack.i.h.bf16 %v2812_v9 }
 0x17b   : >> { %1212 = vrot.lane.b32.xlu2 %v1159_v0, %s2110_s27  ;;  %1202 = vrot.lane.b32.xlu1 %v1154_v27, %s2110_s27  ;;  %v877_v27 = vpack.c.bf16 %v850_v52, %v849_v4  ;;  %v1103_v0 = vsel %vm709_vm14, %v1966_v12, %v1967_v33  ;;  %v1992_v12 = vunpack.i.h.bf16 %v2872_v13  ;;  %v1328_v45 = vsel %vm738_vm15, %v3212_v8, %v1937_v23 }
 0x17c   : >> { %v1155_v15 = vpack.c.bf16 %v1104_v22, %v1103_v0  ;;  %v2908_v18 = vpop.permute.xlu2 %2019  ;;  %v3213_v13 = vpack.c.bf16 %v2774_v46, %v2771_v20  ;;  %v3214_v22 = vunpack.i.l.bf16 %v2812_v9  ;;  %v1982_v46 = vunpack.i.h.bf16 %v2867_v10 }
 0x17d   : >> { %v1102_v54 = vsel %vm709_vm14, %v1991_v38, %v1992_v12  ;;  %v2007_v9 = vunpack.i.h.bf16 %v2886_v30  ;;  %v1996_v12 = vunpack.i.l.bf16 %v1995_v5 }
 0x17e   : >> { %916 = vrot.lane.b32.xlu0 %v3206_v24, %s2110_s27  ;;  %v1985_v19 = vpop.permute.xlu1 %1984  ;;  %v1356_v24 = vpack.c.bf16 %v1329_v42, %v1328_v45  ;;  %v1301_v17 = vsel %vm709_vm14, %v1981_v31, %v1982_v46 }
 0x17f   : >> { %v1987_v2 = vunpack.i.h.bf16 %v1985_v19  ;;  %v1986_v53 = vunpack.i.l.bf16 %v1985_v19  ;;  %v1327_v19 = vsel %vm738_vm15, %v3214_v22, %v1962_v47 }
 0x181   : >> { %v2010_v4 = vpop.permute.xlu0 %2009  ;;  %v1152_v42 = vpack.c.bf16 %v1991_v38, %v1986_v53 }
 0x182   : >> { %v2012_v3 = vunpack.i.h.bf16 %v2010_v4  ;;  %v2011_v52 = vunpack.i.l.bf16 %v2010_v4  ;;  %v2021_v4 = vunpack.i.l.bf16 %v2908_v18 }
 0x183   : >> { %1208 = vrot.lane.b32.xlu2 %v1157_v6, %s2110_s27  ;;  %912 = vrot.lane.b32.xlu1 %v3207_v51, %s2110_s27  ;;  %v1101_v6 = vsel %vm709_vm14, %v1986_v53, %v1987_v2  ;;  %v1957_v51 = vunpack.i.h.bf16 %v2847_v49  ;;  %v2006_v49 = vunpack.i.l.bf16 %v2886_v30  ;;  %v3217_v30 = vpack.c.bf16 %v2749_v63, %v2744_v61 }
 0x184   : >> { %v1153_v1 = vpack.c.bf16 %v1102_v54, %v1101_v6  ;;  %v2934_v33 = vpop.permute.xlu2 %2034  ;;  %v1997_v63 = vunpack.i.h.bf16 %v1995_v5 }
 0x185   : >> { %v1326_v32 = vsel %vm738_vm15, %v1956_v11, %v1957_v51  ;;  %v1977_v11 = vunpack.i.h.bf16 %v2859_v34 }
 0x186   : >> { %928 = vrot.lane.b32.xlu0 %v877_v27, %s2110_s27  ;;  %v2000_v41 = vpop.permute.xlu1 %1999  ;;  %v1354_v20 = vpack.c.bf16 %v1327_v19, %v1326_v32  ;;  %v3215_v27 = vpack.c.bf16 %v2762_v35, %v2757_v28  ;;  %v1076_v28 = vsel %vm680_vm13, %v2011_v52, %v2012_v3  ;;  %v3216_v35 = vunpack.i.l.bf16 %v2859_v34 }
 0x187   : >> { %v2001_v10 = vunpack.i.l.bf16 %v2000_v41  ;;  %v2002_v8 = vunpack.i.h.bf16 %v2000_v41  ;;  %v1298_v38 = vsel %vm709_vm14, %v1996_v12, %v1997_v63  ;;  %v3218_v32 = vpack.c.bf16 %v2719_v59, %v2716_v50 }
 0x188   : >> { %v1300_v2 = vsel %vm709_vm14, %v3216_v35, %v1977_v11  ;;  %v1150_v19 = vpack.c.bf16 %v2011_v52, %v2006_v49  ;;  %v2022_v50 = vunpack.i.h.bf16 %v2908_v18  ;;  %v3219_v52 = vpack.c.bf16 %v2682_v26, %v2698_v44 }
 0x189   : >> { %v1349_v14 = vpack.c.bf16 %v2001_v10, %v1996_v12  ;;  %v2025_v6 = vpop.permute.xlu0 %2024  ;;  %v1299_v51 = vsel %vm709_vm14, %v2001_v10, %v2002_v8  ;;  %v3221_v26 = vpack.c.bf16 %v2528_v29, %v2486_v37  ;;  %v2037_v44 = vunpack.i.h.bf16 %v2934_v33 }
 0x18a   : >> { %v2027_v61 = vunpack.i.h.bf16 %v2025_v6  ;;  %v1350_v41 = vpack.c.bf16 %v1299_v51, %v1298_v38  ;;  %v1273_v3 = vsel %vm680_vm13, %v2021_v4, %v2022_v50  ;;  %v936_v50 = vsel %vm934_vm0, %v2861_v16, %v2633_v60 }
 0x18b   : >> { %924 = vrot.lane.b32.xlu1 %v3210_v21, %s2110_s27  ;;  %1204 = vrot.lane.b32.xlu2 %v1155_v15, %s2110_s27  ;;  %v1352_v21 = vpack.c.bf16 %v1301_v17, %v1300_v2 }
 0x18e   : >> { %1017 = vrot.lane.b32.xlu0 %v3213_v13, %s2110_s27  ;;  %v2015_v0 = vpop.permute.xlu1 %2014 }
 0x193   : >> { %1409 = vrot.lane.b32.xlu1 %v1356_v24, %s2110_s27  ;;  %1200 = vrot.lane.b32.xlu2 %v1153_v1, %s2110_s27  ;;  %v2026_v24 = vunpack.i.l.bf16 %v2025_v6  ;;  %v3223_v6 = vpack.c.bf16 %v2532_v62, %v2508_v48  ;;  %v3225_v48 = vpack.c.bf16 %v2547_v7, %v2563_v56 }
 0x195   : >> { %v2953_v15 = vpop.permute.xlu2 %914  ;;  %v1073_v13 = vsel %vm680_vm13, %v2026_v24, %v2027_v61 }
 0x196   : >> { %1013 = vrot.lane.b32.xlu0 %v3215_v27, %s2110_s27  ;;  %v2030_v34 = vpop.permute.xlu1 %2029  ;;  %v2040_v27 = vpop.permute.xlu0 %2039 }
 0x197   : >> { %v2032_v45 = vunpack.i.h.bf16 %v2030_v34  ;;  %v2031_v54 = vunpack.i.l.bf16 %v2030_v34  ;;  %v2041_v18 = vunpack.i.l.bf16 %v2040_v27  ;;  %v2042_v2 = vunpack.i.h.bf16 %v2040_v27 }
 0x199   : >> { %v1074_v53 = vsel %vm680_vm13, %v2031_v54, %v2032_v45 }
 0x19a   : >> { %v1149_v47 = vpack.c.bf16 %v1074_v53, %v1073_v13 }
 0x19b   : >> { %1405 = vrot.lane.b32.xlu1 %v1354_v20, %s2110_s27  ;;  %1003 = vrot.lane.b32.xlu2 %v2710_v39, %s2110_s27  ;;  %v1075_v39 = vsel %vm680_vm13, %v2006_v49, %v2007_v9  ;;  %v2017_v20 = vunpack.i.h.bf16 %v2015_v0 }
 0x19c   : >> { %v1151_v23 = vpack.c.bf16 %v1076_v28, %v1075_v39  ;;  %v1148_v28 = vpack.c.bf16 %v2031_v54, %v2026_v24 }
 0x19e   : >> { %1009 = vrot.lane.b32.xlu0 %v3217_v30, %s2110_s27  ;;  %v1271_v30 = vsel %vm680_vm13, %v2041_v18, %v2042_v2 }
 0x1a3   : >> { %1401 = vrot.lane.b32.xlu1 %v1352_v21, %s2110_s27  ;;  %1196 = vrot.lane.b32.xlu2 %v1151_v23, %s2110_s27 }
 0x1a5   : >> { %v2969_v31 = vpop.permute.xlu2 %926 }
 0x1a6   : >> { %1395 = vrot.lane.b32.xlu0 %v1349_v14, %s2110_s27  ;;  %v3222_v14 = vpack.c.bf16 %v2688_v36, %v2685_v58  ;;  %v3224_v58 = vpack.c.bf16 %v2493_v40, %v2520_v55 }
 0x1a8   : >> { %v911_v39 = vpop.permute.xlu0 %910 }
 0x1ab   : >> { %1198 = vrot.lane.b32.xlu1 %v1152_v42, %s2110_s27  ;;  %999 = vrot.lane.b32.xlu2 %v2690_v43, %s2110_s27  ;;  %v2016_v43 = vunpack.i.l.bf16 %v2015_v0  ;;  %v2036_v0 = vunpack.i.l.bf16 %v2934_v33 }
 0x1ad   : >> { %v2975_v1 = vpop.permute.xlu2 %1015  ;;  %v1347_v22 = vpack.c.bf16 %v2021_v4, %v2016_v43  ;;  %v1272_v46 = vsel %vm680_vm13, %v2016_v43, %v2017_v20  ;;  %v1345_v17 = vpack.c.bf16 %v2041_v18, %v2036_v0  ;;  %v1270_v10 = vsel %vm680_vm13, %v2036_v0, %v2037_v44 }
 0x1ae   : >> { %1005 = vrot.lane.b32.xlu0 %v3218_v32, %s2110_s27  ;;  %v1348_v9 = vpack.c.bf16 %v1273_v3, %v1272_v46  ;;  %v1346_v12 = vpack.c.bf16 %v1271_v30, %v1270_v10  ;;  %v3226_v3 = vld [vmem:[#allocation18_spill] sm:$0xff] }
 0x1b3   : >> { %1397 = vrot.lane.b32.xlu1 %v1350_v41, %s2110_s27  ;;  %1192 = vrot.lane.b32.xlu2 %v1149_v47, %s2110_s27 }
 0x1b5   : >> { %v2987_v5 = vpop.permute.xlu2 %1011  ;;  %v919_v11 = vpop.permute.xlu1 %918 }
 0x1b6   : >> { %1391 = vrot.lane.b32.xlu0 %v1347_v22, %s2110_s27 }
 0x1b8   : >> { %v923_v34 = vpop.permute.xlu0 %922 }
 0x1bb   : >> { %1194 = vrot.lane.b32.xlu1 %v1150_v19, %s2110_s27  ;;  %995 = vrot.lane.b32.xlu2 %v2679_v25, %s2110_s27  ;;  %v3220_v25 = vmov 0.0|0.0  }
 0x1bd   : >> { %v2995_v59 = vpop.permute.xlu2 %1007 }
 0x1be   : >> { %1001 = vrot.lane.b32.xlu0 %v3219_v52, %s2110_s27 }
 0x1c3   : >> { %1393 = vrot.lane.b32.xlu1 %v1348_v9, %s2110_s27  ;;  %1188 = vrot.lane.b32.xlu2 %v3220_v25, %s2110_s27 }
 0x1c5   : >> { %v921_v49 = vpop.permute.xlu2 %920  ;;  %v931_v35 = vpop.permute.xlu1 %930 }
 0x1c6   : >> { %1387 = vrot.lane.b32.xlu0 %v1345_v17, %s2110_s27  ;;  %v939_v56 = vsel %vm934_vm0, %v919_v11, %v921_v49 }
 0x1cb   : >> { %1190 = vrot.lane.b32.xlu1 %v1148_v28, %s2110_s27  ;;  %1182 = vrot.lane.b32.xlu2 %v3221_v26, %s2110_s27 }
 0x1cd   : >> { %v933_v21 = vpop.permute.xlu2 %932  ;;  %v1211_v37 = vpop.permute.xlu1 %1210 }
 0x1ce   : >> { %v942_v23 = vsel %vm934_vm0, %v931_v35, %v933_v21  ;;  %997 = vrot.lane.b32.xlu0 %v3222_v14, %s2110_s27 }
 0x1cf   : >> { %951 = vmatpush.bf16.msra.mxu0 %v942_v23  ;;  %v1717_v23 = vld [vmem:[%s3132_s1 + $0x8] sm:$0xff] }
 0x1d3   : >> { %1389 = vrot.lane.b32.xlu1 %v1346_v12, %s2110_s27  ;;  %1381 = vrot.lane.b32.xlu2 %v3220_v25, %s2110_s27 }
 0x1d5   : >> { %v1213_v29 = vpop.permute.xlu2 %1212  ;;  %v1207_v36 = vpop.permute.xlu1 %1206 }
 0x1d6   : >> { %v1221_v33 = vsel %vm934_vm0, %v1211_v37, %v1213_v29  ;;  %v1408_v42 = vpop.permute.xlu0 %1407  ;;  %1383 = vrot.lane.b32.xlu0 %v3223_v6, %s2110_s27  ;;  %v3227_v6 = vld [vmem:[#allocation16_spill] sm:$0xff] }
 0x1d7   : >> { %1230 = vmatpush.bf16.msra.mxu2 %v1221_v33 }
 0x1db   : >> { %1186 = vrot.lane.b32.xlu1 %v3224_v58, %s2110_s27  ;;  %v3228_v58 = vld [vmem:[#allocation19_spill] sm:$0xff] }
 0x1dd   : >> { %v1209_v8 = vpop.permute.xlu2 %1208 }
 0x1de   : >> { %v1220_v45 = vsel %vm934_vm0, %v1207_v36, %v1209_v8  ;;  %1184 = vrot.lane.b32.xlu0 %v3220_v25, %s2110_s27  ;;  %v1404_v54 = vpop.permute.xlu0 %1403  ;;  %v1020_v36 = vsel %vm934_vm0, %v3228_v58, %v3227_v6 }
 0x1df   : >> { %1231 = vmatpush.bf16.msra.mxu2 %v1220_v45  ;;  %v3229_v45 = vld [vmem:[#allocation17_spill] sm:$0xff] }
 0x1e3   : >> { %1385 = vrot.lane.b32.xlu1 %v3220_v25, %s2110_s27 }
 0x1e5   : >> { %v1205_v40 = vpop.permute.xlu2 %1204 }
 0x1e8   : >> { %v1400_v62 = vpop.permute.xlu0 %1399 }
 0x1eb   : >> { %1379 = vrot.lane.b32.xlu1 %v3225_v48, %s2110_s27 }
 0x1ed   : >> { %v1203_v55 = vpop.permute.xlu1 %1202  ;;  %v1201_v4 = vpop.permute.xlu2 %1200 }
 0x1ee   : >> { %v1219_v63 = vsel %vm934_vm0, %v1203_v55, %v1205_v40  ;;  %v1716_v40 = vld [vmem:[%s3132_s1] sm:$0xff] }
 0x1ef   : >> { %1232 = vmatpush.bf16.msra.mxu2 %v1219_v63 }
 0x1f0   : >> { %v917_v61 = vpop.permute.xlu0 %916 }
 0x1f5   : >> { %v913_v24 = vpop.permute.xlu1 %912  ;;  %v1004_v9 = vpop.permute.xlu2 %1003 }
 0x1f6   : >> { %v937_v19 = vsel %vm934_vm0, %v911_v39, %v913_v24 }
 0x1f8   : >> { %v929_v51 = vpop.permute.xlu0 %928 }
 0x1f9   : >> { %v941_v53 = vsel %vm934_vm0, %v2969_v31, %v929_v51  ;;  %v938_v31 = vsel %vm934_vm0, %v2953_v15, %v917_v61 }
 0x1fa   : >> { %952 = vmatpush.bf16.msra.mxu0 %v941_v53  ;;  %v1718_v53 = vld [vmem:[%s3132_s1 + $0x10] sm:$0xff] }
 0x1fd   : >> { %v925_v38 = vpop.permute.xlu1 %924  ;;  %v1197_v16 = vpop.permute.xlu2 %1196 }
 0x1fe   : >> { %v940_v13 = vsel %vm934_vm0, %v923_v34, %v925_v38 }
 0x1ff   : >> { %953 = vmatpush.bf16.msra.mxu0 %v940_v13 }
 0x200   : >> { %v1018_v41 = vpop.permute.xlu0 %1017 }
 0x201   : >> { %v1026_v7 = vsel %vm934_vm0, %v2975_v1, %v1018_v41 }
 0x202   : >> { %1035 = vmatpush.bf16.msra.mxu1 %v1026_v7 }
 0x203   : >> { %954 = vmatpush.bf16.msra.mxu0 %v939_v56  ;;  %v1719_v56 = vld [vmem:[%s3132_s1 + $0x18] sm:$0xff] }
 0x205   : >> { %v1410_v47 = vpop.permute.xlu1 %1409  ;;  %v1000_v0 = vpop.permute.xlu2 %999 }
 0x206   : >> { %v1418_v32 = vsel %vm934_vm0, %v1408_v42, %v1410_v47 }
 0x207   : >> { %1427 = vmatpush.bf16.msra.mxu3 %v1418_v32  ;;  %955 = vmatpush.bf16.msra.mxu0 %v938_v31 }
 0x208   : >> { %v1014_v43 = vpop.permute.xlu0 %1013 }
 0x209   : >> { %v1025_v22 = vsel %vm934_vm0, %v2987_v5, %v1014_v43  ;;  %v935_v5 = vsel %vm934_vm0, %v3226_v3, %v2647_v57 }
 0x20a   : >> { %1036 = vmatpush.bf16.msra.mxu1 %v1025_v22 }
 0x20b   : >> { %956 = vmatpush.bf16.msra.mxu0 %v937_v19 }
 0x20d   : >> { %v1406_v1 = vpop.permute.xlu1 %1405  ;;  %v1193_v39 = vpop.permute.xlu2 %1192 }
 0x20e   : >> { %v1417_v20 = vsel %vm934_vm0, %v1404_v54, %v1406_v1  ;;  %v3230_v54 = vld [vmem:[#allocation20_spill] sm:$0xff] }
 0x20f   : >> { %1428 = vmatpush.bf16.msra.mxu3 %v1417_v20  ;;  %957 = vmatpush.bf16.msra.mxu0 %v936_v50  ;;  %v1019_v48 = vsel %vm934_vm0, %v3230_v54, %v3229_v45 }
 0x210   : >> { %v1010_v15 = vpop.permute.xlu0 %1009 }
 0x211   : >> { %v1024_v46 = vsel %vm934_vm0, %v2995_v59, %v1010_v15  ;;  %v3231_v15 = vld [vmem:[#allocation10_spill] sm:$0xff] }
 0x212   : >> { %1037 = vmatpush.bf16.msra.mxu1 %v1024_v46  ;;  %v3232_v46 = vmov %v3231_v15 }
 0x213   : >> { %958 = vmatpush.bf16.msra.mxu0 %v935_v5 }
 0x215   : >> { %v1402_v27 = vpop.permute.xlu1 %1401  ;;  %v996_v34 = vpop.permute.xlu2 %995 }
 0x216   : >> { %v1416_v11 = vsel %vm934_vm0, %v1400_v62, %v1402_v27  ;;  %959 = vmatmul.bf16.vlgmr.msra.gmra.mxu0 %v1717_v23 }
 0x217   : >> { %1429 = vmatpush.bf16.msra.mxu3 %v1416_v11 }
 0x218   : >> { %v1396_v52 = vpop.permute.xlu0 %1395 }
 0x21d   : >> { %v1199_v25 = vpop.permute.xlu1 %1198  ;;  %v1189_v42 = vpop.permute.xlu2 %1188 }
 0x21e   : >> { %v1218_v60 = vsel %vm934_vm0, %v1199_v25, %v1201_v4 }
 0x21f   : >> { %1233 = vmatpush.bf16.msra.mxu2 %v1218_v60 }
 0x220   : >> { %v1006_v18 = vpop.permute.xlu0 %1005 }
 0x221   : >> { %v1023_v59 = vsel %vm934_vm0, %v1004_v9, %v1006_v18 }
 0x222   : >> { %1038 = vmatpush.bf16.msra.mxu1 %v1023_v59  ;;  %v3233_v59 = vld [vmem:[#allocation15_spill] sm:$0xff] }
 0x225   : >> { %v1398_v49 = vpop.permute.xlu1 %1397  ;;  %v1183_v63 = vpop.permute.xlu2 %1182 }
 0x226   : >> { %v1415_v57 = vsel %vm934_vm0, %v1396_v52, %v1398_v49 }
 0x227   : >> { %1430 = vmatpush.bf16.msra.mxu3 %v1415_v57 }
 0x228   : >> { %v1392_v17 = vpop.permute.xlu0 %1391 }
 0x22d   : >> { %v1195_v28 = vpop.permute.xlu1 %1194  ;;  %v1382_v13 = vpop.permute.xlu2 %1381 }
 0x22e   : >> { %v1217_v35 = vsel %vm934_vm0, %v1195_v28, %v1197_v16 }
 0x22f   : >> { %1234 = vmatpush.bf16.msra.mxu2 %v1217_v35  ;;  %v3235_v35 = vld [vmem:[#allocation14_spill] sm:$0xff] }
 0x230   : >> { %v1002_v2 = vpop.permute.xlu0 %1001 }
 0x231   : >> { %v1022_v26 = vsel %vm934_vm0, %v1000_v0, %v1002_v2  ;;  %v3234_v0 = vld [vmem:[#allocation13_spill] sm:$0xff] }
 0x232   : >> { %1039 = vmatpush.bf16.msra.mxu1 %v1022_v26  ;;  %v3236_v26 = vld [vmem:[#allocation12_spill] sm:$0xff] }
 0x235   : >> { %v1394_v44 = vpop.permute.xlu1 %1393 }
 0x236   : >> { %v1414_v21 = vsel %vm934_vm0, %v1392_v17, %v1394_v44 }
 0x237   : >> { %1431 = vmatpush.bf16.msra.mxu3 %v1414_v21 }
 0x238   : >> { %v1388_v30 = vpop.permute.xlu0 %1387 }
 0x23d   : >> { %v1191_v10 = vpop.permute.xlu1 %1190 }
 0x23e   : >> { %v1216_v12 = vsel %vm934_vm0, %v1191_v10, %v1193_v39 }
 0x23f   : >> { %1235 = vmatpush.bf16.msra.mxu2 %v1216_v12 }
 0x240   : >> { %v998_v14 = vpop.permute.xlu0 %997 }
 0x241   : >> { %v1021_v37 = vsel %vm934_vm0, %v996_v34, %v998_v14 }
 0x242   : >> { %1040 = vmatpush.bf16.msra.mxu1 %v1021_v37 }
 0x245   : >> { %v1390_v29 = vpop.permute.xlu1 %1389 }
 0x246   : >> { %v1413_v33 = vsel %vm934_vm0, %v1388_v30, %v1390_v29  ;;  %1041 = vmatpush.bf16.msra.mxu1 %v1020_v36 }
 0x247   : >> { %1432 = vmatpush.bf16.msra.mxu3 %v1413_v33 }
 0x248   : >> { %v1384_v8 = vpop.permute.xlu0 %1383 }
 0x24a   : >> { %1042 = vmatpush.bf16.msra.mxu1 %v1019_v48 }
 0x24d   : >> { %v1187_v62 = vpop.permute.xlu1 %1186  ;;  %1043 = vmatmul.bf16.vlgmr.msra.gmra.mxu1 %v1716_v40 }
 0x24e   : >> { %v1215_v55 = vsel %vm934_vm0, %v1187_v62, %v1189_v42 }
 0x24f   : >> { %1236 = vmatpush.bf16.msra.mxu2 %v1215_v55 }
 0x250   : >> { %v1185_v61 = vpop.permute.xlu0 %1184 }
 0x251   : >> { %v1214_v24 = vsel %vm934_vm0, %v1183_v63, %v1185_v61 }
 0x253   : >> { %1237 = vmatpush.bf16.msra.mxu2 %v1214_v24 }
 0x255   : >> { %v1386_v51 = vpop.permute.xlu1 %1385 }
 0x256   : >> { %v1412_v38 = vsel %vm934_vm0, %v1384_v8, %v1386_v51  ;;  %1238 = vmatmul.bf16.vlgmr.msra.gmra.mxu2 %v1718_v53 }
 0x257   : >> { %1433 = vmatpush.bf16.msra.mxu3 %v1412_v38 }
 0x25d   : >> { %v1380_v41 = vpop.permute.xlu1 %1379 }
 0x25e   : >> { %v1411_v7 = vsel %vm934_vm0, %v1380_v41, %v1382_v13 }
 0x25f   : >> { %1434 = vmatpush.bf16.msra.mxu3 %v1411_v7 }
 0x262   : >> { %1435 = vmatmul.bf16.vlgmr.msra.gmra.mxu3 %v1719_v56 }
 0x293   : >> { %v960_v47 = vpop.f32.mrf.mxu0 }
 0x29b   : >> { %v962_v22 = vpop.f32.mrf.mxu0 }
 0x2ca   : >> { %v1044_v32 = vpop.f32.mrf.mxu1 }
 0x2cb   : >> { %v1045_v31 = vadd.f32 %v1044_v32, %v960_v47 }
 0x2d2   : >> { %v1046_v19 = vpop.f32.mrf.mxu1 }
 0x2d3   : >> { %v1047_v50 = vadd.f32 %v1046_v19, %v962_v22 }
 0x2d9   : >> { %v1239_v43 = vpop.f32.mrf.mxu2 }
 0x2da   : >> { %v1244_v4 = vadd.f32 %v1239_v43, %v1045_v31 }
 0x2e1   : >> { %v1241_v5 = vpop.f32.mrf.mxu2 }
 0x2e2   : >> { %v1245_v11 = vadd.f32 %v1241_v5, %v1047_v50 }
 0x2e5   : >> { %v1436_v1 = vpop.f32.mrf.mxu3 }
 0x2e6   : >> { %v1441_v20 = vadd.f32 %v1436_v1, %v1244_v4 }
 0x2e8   : >> { %v1443_v3 = vmul.f32 %v3231_v15, %v1441_v20 }
 0x2ea   : >> { %1445 = vadd.xlane.f32.xlu0 %v1443_v3  ;;  %v1451_v27 = vmul.f32 %v1443_v3, %v1443_v3 }
 0x2ec   : >> { %1453 = vadd.xlane.f32.xlu2 %v1451_v27 }
 0x2ed   : >> { %v1438_v9 = vpop.f32.mrf.mxu3 }
 0x2ee   : >> { %v1442_v52 = vadd.f32 %v1438_v9, %v1245_v11 }
 0x2f0   : >> { %v1444_v25 = vmul.f32 %v3232_v46, %v1442_v52 }
 0x2f2   : >> { %v1724_v60 = vpack.c.bf16 %v1444_v25, %v1443_v3  ;;  %1447 = vadd.xlane.f32.xlu1 %v1444_v25  ;;  %v1452_v16 = vmul.f32 %v1444_v25, %v1444_v25 }
 0x2f4   : >> { %1725 = vst [vmem:[%s1463_s12] sm:$0xff] %v1724_v60   ;;  %1455 = vadd.xlane.f32.xlu2 %v1452_v16 }
 0x35d   : >> { %v1446_v18 = vpop.xlane.xlu0 %1445 }
 0x35e   : >> { %v1449_v49 = vadd.f32 %v3233_v59, %v1446_v18  }
 0x35f   : >> { %v1454_v57 = vpop.xlane.xlu2 %1453 }
 0x360   : >> { %v1457_v17 = vadd.f32 %v3234_v0, %v1454_v57   ;;  %v3240_v16 = vmov %v1449_v49  ;;  %1467 = vst.msk [vmem:[%s2205_s17] sm:$0xff] (%p297_p3), %vm680_vm13, %v1449_v49 }
 0x362   : >> { %v3238_v14 = vmov %v1457_v17  ;;  %1470 = vst.msk [vmem:[%s2205_s17] sm:$0xff] (%p297_p3), %vm1469_vm1, %v1457_v17 }
 0x365   : >> { %v1448_v28 = vpop.xlane.xlu1 %1447 }
 0x366   : >> { %v1450_v2 = vadd.f32 %v3235_v35, %v1448_v28   ;;  %299 = sbr.rel (!%p297_p3) target bundleno = 23 (0x17), region = 94 }
 0x367   : >> { %v1456_v39 = vpop.xlane.xlu2 %1455 }
 0x368   : >> { %v1458_v44 = vadd.f32 %v3236_v26, %v1456_v39   ;;  %v3239_v15 = vmov %v1450_v2  ;;  %1468 = vst.msk [vmem:[%s2205_s17 + $0x8] sm:$0xff] (%p297_p3), %vm680_vm13, %v1450_v2 }
 0x36a   : >> { %v3237_v13 = vmov %v1458_v44  ;;  %1471 = vst.msk [vmem:[%s2205_s17 + $0x8] sm:$0xff] (%p297_p3), %vm1469_vm1, %v1458_v44 }
 0x36b PF: > { %s16_s20 = sadd.s32 1, %s2085_s20   ;;  %s3242_s18 = smov %s2081_s19 }
 0x36c   : > { %p13_p4 = scmp.ge.s32.totalorder %s16_s20, 4   ;;  %s3243_s19 = smov %s3245_s2 }
 0x36e   :  { %15 = sbr.rel (!%p13_p4) target bundleno = 2 (0x2), region = 105 }

// kernel: decoder_conv_variational_forward.10
= control target key start
LH: loop header
LB: loop body
LE: loop exit
PB: predicated region body
PF: predicated region fallthrough
CT: control target
= control target key end

     0   :  { %s1659_s18 = smov 0   ;;  %s1661_s19 = smov 0   ;;  %s2006_s0 = inlined_call_operand.vmem [shape: bf16[2,61,8,256], index: 0, kind: input, shape index: {}]   ;;  %s2007_s1 = inlined_call_operand.vmem [shape: bf16[12,4,24], index: 1, kind: input, shape index: {}]   ;;  %s2008_s2 = inlined_call_operand.vmem [shape: f32[4,1], index: 2, kind: input, shape index: {}]   ;;  %s2009_s3 = inlined_call_operand.vmem [shape: f32[2,8,1], index: 3, kind: input, shape index: {}]   ;;  %s2010_s4 = inlined_call_operand.vmem [shape: bf16[2,58,16,128], index: 4, kind: output, shape index: {0}]   ;;  %s2011_s5 = inlined_call_operand.vmem [shape: f32[2,2,4,2], index: 5, kind: output, shape index: {1}]  }
   0x1   :  { %s1663_s20 = smov 0   ;;  %s1665_s21 = smov 0  }
   0x2   :  { %s1667_s22 = smov 0  }
   0x3 LB: > { %s25_s2 = sadd.s32 1, %s1582_s20  ;;  %s28_s23 = sadd.s32 1, %s1586_s21  ;;  %s1590_s22 = sphi %s1667_s22, %s16_s22   ;;  %s1586_s21 = sphi %s1665_s21, %s2029_s21   ;;  %s1582_s20 = sphi %s1663_s20, %s2028_s20   ;;  %s1578_s19 = sphi %s1661_s19, %s2027_s19   ;;  %s1574_s18 = sphi %s1659_s18, %s2026_s18  }
   0x4   : > { %p26_p0 = scmp.ge.s32.totalorder %s25_s2, 2  ;;  %p1305_p1 = scmp.ge.s32.totalorder %s1590_s22, 1 }
   0x5   : > { %p206_p2 = scmp.lt.s32.totalorder %s1590_s22, 5 }
   0x6   : > { %s2031_s2 = smov (%p26_p0, %s25_s2), 0  ;;  %s2033_s23 = smov (!%p26_p0, %s28_s23), %s1586_s21 }
   0x7   : > { %p207_p3 = pnand %p1305_p1, %p206_p2  ;;  %p30_p4 = scmp.ge.s32.totalorder %s2033_s23, 2 }
   0x8   : > { %p247_p5 = scmp.lt.s32.totalorder (!%p207_p3), %s1578_s19, 1  ;;  %s1692_s24 = smul.u32 (!%p207_p3), 29, %s1574_s18 }
   0x9   : > { %s2035_s23 = smov (%p30_p4, %s2033_s23), 0  ;;  %210 = sbr.rel (%p207_p3) target bundleno = 1382 (0x566), region = 36 }
   0xa   : > { %p255_p6 = scmp.lt.s32.totalorder (!%p207_p3), %s1692_s24, 57  ;;  %p265_p7 = scmp.lt.s32.totalorder (!%p207_p3), %s1574_s18, 1 }
   0xe   : > { %v273_v0 = vlaneseq  ;;  %v1697_v1 = vld [vmem:[%s2009_s3] sm:$0xff]  ;;  %v1702_v2 = vld [vmem:[%s2009_s3 + $0x8] sm:$0xff]  ;;  %s2037_s19 = smov (!%p247_p5, %s1578_s19), 1  ;;  %v1616_v4 = vmov 0.0   ;;  %s2039_s18 = smov (!%p265_p7, %s1574_s18), 1  ;;  %v1729_v7 = vmov 0.0  }
   0xf   : > { %s1363_s29 = smul.u32 488, %s2037_s19  ;;  %s1309_s16 = sshll.u32 %s2037_s19, 1  ;;  %v1731_v8 = vmov 0.0  }
  0x10   : > { %v274_v3 = vand.u32 127, %v273_v0  ;;  %s256_s30 = scalar_select %p255_p6, %s1692_s24, 57 }
  0x11   : > { %s1715_s8 = scalar_lea.vmem %s2006_s0, %s1363_s29  ;;  %s1364_s9 = smul.u32 116, %s2037_s19 }
  0x12   : > { %vm275_vm0 = vcmp.lt.s32.totalorder %v274_v3, 58  ;;  %vm279_vm1 = vcmp.ge.s32.totalorder %v274_v3, 2  ;;  %vm281_vm2 = vcmp.lt.s32.totalorder %v274_v3, 59  ;;  %s1307_s10 = sshll.u32 %s256_s30, 1  ;;  %s268_s17 = sadd.s32 %s1309_s16, %s2039_s18 }
  0x13   : > { %v1706_v5 = vsel %vm275_vm0, 1.0, %v1616_v4  ;;  %vm1708_vm3 = vmand %vm279_vm1, %vm281_vm2  ;;  %s259_s11 = sadd.s32 %s1364_s9, %s1307_s10  ;;  %s1310_s25 = sshll.u32 %s268_s17, 2 }
  0x14   : > { %s1308_s12 = sshll.u32 %s259_s11, 2  ;;  %s1727_s28 = scalar_lea.vmem %s2011_s5, %s1310_s25 }
  0x15   : > { %s1721_s15 = scalar_lea.vmem %s2010_s4, %s1308_s12  ;;  %s1733_s29 = smov 0  }
  0x16 LB: >> { %v1617_v9 = vmov 0   ;;  %s296_s18 = sadd.s32 %s1602_s29, %s1692_s24  ;;  %s1618_s17 = smov 1   ;;  %vm418_vm13 = vcmask 15360   ;;  %vm410_vm14 = vcmask 7168   ;;  %v1622_v63 = vmov 0.0   ;;  %s1602_s29 = sphi %s1733_s29, %s293_s29   ;;  %v1598_v8 = vphi %v1731_v8, %v2019_v8   ;;  %v1594_v7 = vphi %v1729_v7, %v2018_v7  }
  0x17   : >> { %1466 = vset.pattern.permute.xlu0 %v1617_v9  ;;  %s372_s19 = sadd.s32 4294967295, %s296_s18  ;;  %s1313_s30 = sshll.u32 %s296_s18, 3  ;;  %vm469_vm15 = vcmask 1043456   ;;  %vm461_vm0 = vcmask 1022976   ;;  %vm465_vm1 = vcmask 195584   ;;  %vm602_vm2 = vcmask 1031168  }
  0x18   : >> { %307 = vperm.xlu0 %1466, %v1697_v1   ;;  %p357_p8 = scmp.ge.s32.totalorder %s296_s18, 0  ;;  %p358_p9 = scmp.lt.s32.totalorder %s296_s18, 57 }
  0x19   : >> { %p1748_p10 = scmp.ge.s32.totalorder %s372_s19, 0  ;;  %p390_p11 = scmp.lt.s32.totalorder %s372_s19, 57 }
  0x1a   : >> { %s298_s7 = sadd.s32 1, %s296_s18  ;;  %s1190_s9 = scalar_lea.vmem %s1715_s8, %s1313_s30 }
  0x1b   : >> { %p1753_p12 = pnand %p358_p9, %p357_p8  ;;  %p391_p13 = pnand %p390_p11, %p1748_p10  ;;  %v1314_v11 = vld [vmem:[%s1190_s9 + $0x18] sm:$0xf]  ;;  %v1317_v12 = vld [vmem:[%s1190_s9 + $0x10] sm:$0xf]  ;;  %v1320_v13 = vld [vmem:[%s1190_s9 + $0x8] sm:$0xf] }
  0x1c   : >> { %p1759_p0 = scmp.ge.s32.totalorder %s298_s7, 0  ;;  %p1763_p1 = scmp.lt.s32.totalorder %s298_s7, 57  ;;  %v303_v14 = vunpack.c.l.bf16 %v1314_v11  ;;  %v345_v15 = vunpack.c.l.bf16 %v1317_v12  ;;  %v377_v16 = vunpack.c.l.bf16 %v1320_v13 }
  0x1d   : >> { %s1318_s13 = scalar_select %p1753_p12, 0, 1 }
  0x1e   : >> { %s1321_s14 = scalar_select %p391_p13, 0, 1 }
  0x1f   : >> { %p327_p2 = pnand %p1763_p1, %p1759_p0  ;;  %v362_v17 = vstv %s1318_s13  ;;  %s1619_s25 = smov 2  }
  0x20   : >> { %314 = vperm.xlu0 %1466, %v1702_v2   ;;  %v394_v18 = vstv %s1321_s14  ;;  %vm363_vm4 = vcmp.eq.s32.totalorder %v362_v17, 1  ;;  %s1620_s26 = smov 125   ;;  %s1621_s27 = smov 126  }
  0x21   : >> { %s1315_s16 = scalar_select %p327_p2, 0, 1  ;;  %vm395_vm5 = vcmp.eq.s32.totalorder %v394_v18, 1  ;;  %vm364_vm7 = vmand %vm1708_vm3, %vm363_vm4 }
  0x22   : >> { %vm396_vm8 = vmand %vm1708_vm3, %vm395_vm5 }
  0x23   : >> { %v330_v27 = vstv %s1315_s16 }
  0x24   : >> { %vm331_vm11 = vcmp.eq.s32.totalorder %v330_v27, 1 }
  0x25   : >> { %vm332_vm12 = vmand %vm1708_vm3, %vm331_vm11 }
  0x8a   : >> { %v308_v10 = vpop.permute.xlu0 %307 }
  0x8b   : >> { %v310_v19 = vmul.f32 %v308_v10, %v303_v14  ;;  %v347_v20 = vmul.f32 %v345_v15, %v308_v10  ;;  %v379_v21 = vmul.f32 %v377_v16, %v308_v10 }
  0x92   : >> { %v315_v22 = vpop.permute.xlu0 %314 }
  0x93   : >> { %v317_v23 = vadd.f32 %v315_v22, %v310_v19  ;;  %v349_v24 = vadd.f32 %v347_v20, %v315_v22  ;;  %v381_v25 = vadd.f32 %v379_v21, %v315_v22 }
  0x95   : >> { %v353_v26 = vmul.f32 0.05, %v349_v24  ;;  %vm383_vm6 = vcmp.ge.f32.partialorder %v381_v25, 0.0  ;;  %v385_v28 = vmul.f32 0.05, %v381_v25  ;;  %vm351_vm9 = vcmp.ge.f32.partialorder %v349_v24, 0.0 }
  0x96   : >> { %v321_v29 = vmul.f32 0.05, %v317_v23  ;;  %vm319_vm10 = vcmp.ge.f32.partialorder %v317_v23, 0.0 }
  0x97   : >> { %v355_v30 = vsel %vm351_vm9, %v349_v24, %v353_v26  ;;  %v387_v31 = vsel %vm383_vm6, %v381_v25, %v385_v28 }
  0x98   : >> { %v370_v32 = vsel %vm364_vm7, %v355_v30, 0.0  ;;  %v402_v33 = vsel %vm396_vm8, %v387_v31, 0.0  ;;  %v323_v36 = vsel %vm319_vm10, %v317_v23, %v321_v29 }
  0x99   : >> { %v1477_v34 = vpack.i.bf16 0.0, %v370_v32  ;;  %v1487_v35 = vpack.i.bf16 0.0, %v402_v33  ;;  %v338_v37 = vsel %vm332_vm12, %v323_v36, 0.0 }
  0x9a   : >> { %v1482_v38 = vpack.i.bf16 0.0, %v338_v37 }
  0x9b   : >> { %1478 = vrot.lane.b32.xlu2 %v1477_v34, %s1618_s17  ;;  %1468 = vrot.lane.b32.xlu1 %v1477_v34, %s1619_s25 }
  0x9c   : >> { %1488 = vrot.lane.b32.xlu0 %v1487_v35, %s1619_s25 }
  0xa3   : >> { %1483 = vrot.lane.b32.xlu2 %v1482_v38, %s1618_s17  ;;  %1473 = vrot.lane.b32.xlu1 %v1482_v38, %s1619_s25 }
  0xab   : >> { %1493 = vrot.lane.b32.xlu1 %v1487_v35, %s1618_s17  ;;  %s1360_s17 = sshll.u32 %s1602_s29, 3  ;;  %s293_s29 = sadd.s32 1, %s1602_s29  }
  0xac   : >> { %s590_s25 = scalar_lea.vmem %s1721_s15, %s1360_s17  ;;  %p290_p3 = scmp.ge.s32.totalorder %s293_s29, 29  }
  0xf5   : >> { %v1479_v39 = vpop.permute.xlu2 %1478 }
  0xf6   : >> { %v1480_v40 = vunpack.i.l.bf16 %v1479_v39  ;;  %v1481_v10 = vunpack.i.h.bf16 %v1479_v39 }
  0xf8   : >> { %v445_v41 = vpack.c.bf16 %v1480_v40, %v370_v32  ;;  %v433_v12 = vsel %vm410_vm14, %v1480_v40, %v1481_v10 }
  0xf9   : >> { %v446_v15 = vpack.c.bf16 %v433_v12, %v1622_v63 }
  0xfa   : >> { %453 = vrot.lane.b32.xlu0 %v445_v41, %s1620_s26 }
  0xfd   : >> { %v1484_v45 = vpop.permute.xlu2 %1483 }
  0xfe   : >> { %v1485_v46 = vunpack.i.l.bf16 %v1484_v45  ;;  %v1486_v56 = vunpack.i.h.bf16 %v1484_v45 }
 0x100   : >> { %v423_v49 = vpack.c.bf16 %v1485_v46, %v338_v37  ;;  %v411_v61 = vsel %vm410_vm14, %v1485_v46, %v1486_v56 }
 0x101   : >> { %v424_v0 = vpack.c.bf16 %v411_v61, %v1622_v63 }
 0x10d   : >> { %v1469_v42 = vpop.permute.xlu1 %1468 }
 0x10e   : >> { %v1470_v43 = vunpack.i.l.bf16 %v1469_v42  ;;  %v1471_v51 = vunpack.i.h.bf16 %v1469_v42  ;;  %v1489_v52 = vpop.permute.xlu0 %1488  ;;  %v1325_v42 = vld [vmem:[%s2007_s1 + $0x4] sm:$0x3] }
 0x10f   : >> { %v1490_v53 = vunpack.i.l.bf16 %v1489_v52  ;;  %v1491_v4 = vunpack.i.h.bf16 %v1489_v52 }
 0x110   : >> { %v447_v44 = vpack.c.bf16 %v1470_v43, %v1470_v43  ;;  %v440_v54 = vsel %vm418_vm13, %v1470_v43, %v1471_v51 }
 0x111   : >> { %v448_v55 = vpack.c.bf16 %v440_v54, %v440_v54  ;;  %v540_v57 = vpack.c.bf16 %v1490_v53, %v1490_v53  ;;  %v533_v11 = vsel %vm418_vm13, %v1490_v53, %v1491_v4  ;;  %v1330_v54 = vld [vmem:[%s2007_s1 + $0x8] sm:$0x3] }
 0x112   : >> { %600 = vrot.lane.b32.xlu0 %v447_v44, %s1621_s27  ;;  %457 = vrot.lane.b32.xlu2 %v447_v44, %s1620_s26  ;;  %v541_v13 = vpack.c.bf16 %v533_v11, %v533_v11 }
 0x115   : >> { %v1474_v47 = vpop.permute.xlu1 %1473 }
 0x116   : >> { %v1475_v48 = vunpack.i.l.bf16 %v1474_v47  ;;  %v1476_v58 = vunpack.i.h.bf16 %v1474_v47 }
 0x118   : >> { %v425_v50 = vpack.c.bf16 %v1475_v48, %v1475_v48  ;;  %v419_v62 = vsel %vm418_vm13, %v1475_v48, %v1476_v58  ;;  %v1322_v48 = vld [vmem:[%s2007_s1 + $0x2] sm:$0x3] }
 0x119   : >> { %v426_v3 = vpack.c.bf16 %v419_v62, %v419_v62 }
 0x11a   : >> { %596 = vrot.lane.b32.xlu0 %v445_v41, %s1621_s27  ;;  %490 = vrot.lane.b32.xlu2 %v423_v49, %s1620_s26  ;;  %v422_v41 = vld [vmem:[%s2007_s1] sm:$0x3] }
 0x11b   : >> { %494 = vrot.lane.b32.xlu1 %v425_v50, %s1620_s26 }
 0x11d   : >> { %v1494_v59 = vpop.permute.xlu1 %1493 }
 0x11e   : >> { %v1495_v60 = vunpack.i.l.bf16 %v1494_v59  ;;  %v1496_v14 = vunpack.i.h.bf16 %v1494_v59  ;;  %v1333_v59 = vld [vmem:[%s2007_s1 + $0xa] sm:$0x3] }
 0x120   : >> { %v538_v9 = vpack.c.bf16 %v1495_v60, %v402_v33  ;;  %v526_v16 = vsel %vm410_vm14, %v1495_v60, %v1496_v14 }
 0x121   : >> { %v539_v17 = vpack.c.bf16 %v526_v16, %v1622_v63 }
 0x122   : >> { %459 = vrot.lane.b32.xlu0 %v448_v55, %s1620_s26  ;;  %628 = vrot.lane.b32.xlu2 %v425_v50, %s1621_s27  ;;  %v1329_v55 = vld [vmem:[%s2007_s1 + $0x6] sm:$0x3] }
 0x123   : >> { %550 = vrot.lane.b32.xlu1 %v540_v57, %s1620_s26 }
 0x12a   : >> { %492 = vrot.lane.b32.xlu0 %v424_v0, %s1620_s26  ;;  %496 = vrot.lane.b32.xlu2 %v426_v3, %s1620_s26 }
 0x12b   : >> { %546 = vrot.lane.b32.xlu1 %v538_v9, %s1620_s26 }
 0x132   : >> { %657 = vrot.lane.b32.xlu0 %v540_v57, %s1621_s27  ;;  %552 = vrot.lane.b32.xlu2 %v541_v13, %s1620_s26 }
 0x133   : >> { %455 = vrot.lane.b32.xlu1 %v446_v15, %s1620_s26 }
 0x13a   : >> { %653 = vrot.lane.b32.xlu0 %v538_v9, %s1621_s27  ;;  %548 = vrot.lane.b32.xlu2 %v539_v17, %s1620_s26  ;;  %s1866_s26 = smov (%p290_p3), 0  }
 0x13b   : >> { %624 = vrot.lane.b32.xlu1 %v423_v49, %s1621_s27 }
 0x142   : >> { %626 = vrot.lane.b32.xlu2 %v424_v0, %s1621_s27 }
 0x143   : >> { %598 = vrot.lane.b32.xlu1 %v446_v15, %s1621_s27 }
 0x14b   : >> { %655 = vrot.lane.b32.xlu1 %v539_v17, %s1621_s27 }
 0x16c   : >> { %v458_v18 = vpop.permute.xlu2 %457  ;;  %v454_v20 = vpop.permute.xlu0 %453 }
 0x174   : >> { %v491_v19 = vpop.permute.xlu2 %490 }
 0x17c   : >> { %v629_v21 = vpop.permute.xlu2 %628 }
 0x17d   : >> { %v636_v47 = vsel %vm469_vm15, %v629_v21, 0 }
 0x184   : >> { %v601_v22 = vpop.permute.xlu0 %600  ;;  %v497_v24 = vpop.permute.xlu2 %496 }
 0x185   : >> { %v609_v23 = vsel %vm469_vm15, %v601_v22, 0 }
 0x186   : >> { %617 = vmatpush.bf16.msra.mxu3 %v609_v23 }
 0x18c   : >> { %v597_v25 = vpop.permute.xlu0 %596  ;;  %v553_v29 = vpop.permute.xlu2 %552 }
 0x18d   : >> { %v495_v26 = vpop.permute.xlu1 %494 }
 0x18e   : >> { %v499_v27 = vsel %vm461_vm0, %v495_v26, %v497_v24 }
 0x18f   : >> { %v505_v28 = vsel %vm469_vm15, %v499_v27, 0 }
 0x190   : >> { %513 = vmatpush.bf16.msra.mxu1 %v505_v28 }
 0x194   : >> { %v460_v30 = vpop.permute.xlu0 %459  ;;  %v549_v37 = vpop.permute.xlu2 %548 }
 0x195   : >> { %v551_v31 = vpop.permute.xlu1 %550  ;;  %v463_v32 = vsel %vm461_vm0, %v458_v18, %v460_v30 }
 0x196   : >> { %v471_v33 = vsel %vm469_vm15, %v463_v32, 0  ;;  %v555_v34 = vsel %vm461_vm0, %v551_v31, %v553_v29 }
 0x197   : >> { %479 = vmatpush.bf16.msra.mxu0 %v471_v33  ;;  %v561_v35 = vsel %vm469_vm15, %v555_v34, 0 }
 0x198   : >> { %569 = vmatpush.bf16.msra.mxu2 %v561_v35 }
 0x19c   : >> { %v493_v36 = vpop.permute.xlu0 %492  ;;  %v627_v49 = vpop.permute.xlu2 %626 }
 0x19d   : >> { %v547_v38 = vpop.permute.xlu1 %546  ;;  %v498_v39 = vsel %vm461_vm0, %v491_v19, %v493_v36 }
 0x19e   : >> { %514 = vmatpush.bf16.msra.mxu1 %v498_v39  ;;  %v554_v40 = vsel %vm461_vm0, %v547_v38, %v549_v37 }
 0x19f   : >> { %570 = vmatpush.bf16.msra.mxu2 %v554_v40 }
 0x1a1   : >> { %1324 = vmatmul.msk.bf16.vlgmr.msra.gmra.mxu1 %vm465_vm1, %v422_v41 }
 0x1a2   : >> { %1326 = vmatmul.msk.bf16.vlgmr.msra.gmra.mxu2 %vm465_vm1, %v1325_v42 }
 0x1a4   : >> { %v658_v43 = vpop.permute.xlu0 %657 }
 0x1a5   : >> { %v456_v44 = vpop.permute.xlu1 %455  ;;  %v665_v45 = vsel %vm469_vm15, %v658_v43, 0 }
 0x1a6   : >> { %v462_v46 = vsel %vm461_vm0, %v454_v20, %v456_v44  ;;  %673 = vmatpush.bf16.msrb.mxu1 %v665_v45 }
 0x1a7   : >> { %480 = vmatpush.bf16.msra.mxu0 %v462_v46 }
 0x1aa   : >> { %1323 = vmatmul.msk.bf16.vlgmr.msra.gmra.mxu0 %vm465_vm1, %v1322_v48 }
 0x1ab   : >> { %644 = vmatpush.bf16.msrb.mxu0 %v636_v47 }
 0x1ac   : >> { %v654_v56 = vpop.permute.xlu0 %653 }
 0x1ad   : >> { %v625_v50 = vpop.permute.xlu1 %624 }
 0x1ae   : >> { %v630_v51 = vsel %vm602_vm2, %v625_v50, %v627_v49 }
 0x1af   : >> { %645 = vmatpush.bf16.msrb.mxu0 %v630_v51 }
 0x1b5   : >> { %v599_v52 = vpop.permute.xlu1 %598 }
 0x1b6   : >> { %v603_v53 = vsel %vm602_vm2, %v597_v25, %v599_v52 }
 0x1b7   : >> { %618 = vmatpush.bf16.msra.mxu3 %v603_v53 }
 0x1ba   : >> { %1331 = vmatmul.msk.bf16.vlgmr.msra.gmra.mxu3 %vm465_vm1, %v1330_v54  ;;  %1332 = vmatmul.msk.bf16.vlgmr.msrb.gmra.mxu0 %vm465_vm1, %v1329_v55 }
 0x1bd   : >> { %v656_v57 = vpop.permute.xlu1 %655 }
 0x1be   : >> { %v659_v58 = vsel %vm602_vm2, %v654_v56, %v656_v57 }
 0x1bf   : >> { %674 = vmatpush.bf16.msrb.mxu1 %v659_v58 }
 0x1c2   : >> { %1334 = vmatmul.msk.bf16.vlgmr.msrb.gmra.mxu1 %vm465_vm1, %v1333_v59 }
 0x21e   : >> { %v516_v60 = vpop.f32.mrf.mxu1 }
 0x225   : >> { %v572_v61 = vpop.f32.mrf.mxu2 }
 0x226   : >> { %v518_v62 = vpop.f32.mrf.mxu1 }
 0x227   : >> { %v482_v63 = vpop.f32.mrf.mxu0 }
 0x228   : >> { %v517_v0 = vadd.f32 %v516_v60, %v482_v63 }
 0x22a   : >> { %v576_v3 = vadd.f32 %v572_v61, %v517_v0 }
 0x22c   : >> { %v577_v4 = vmul.f32 %v1706_v5, %v576_v3 }
 0x22d   : >> { %v574_v9 = vpop.f32.mrf.mxu2 }
 0x22e   : >> { %v587_v10 = vpack.c.bf16 %v577_v4, %v577_v4  ;;  %v578_v11 = vsel %vm469_vm15, %v577_v4, 0.0  ;;  %v582_v12 = vmul.f32 %v577_v4, %v577_v4 }
 0x22f   : >> { %v484_v13 = vpop.f32.mrf.mxu0  ;;  %579 = vadd.xlane.f32.xlu2 %v578_v11 }
 0x230   : >> { %591 = vst [vmem:[%s590_s25] sm:$0x3] %v587_v10  ;;  %v583_v14 = vsel %vm469_vm15, %v582_v12, 0.0 }
 0x231   : >> { %584 = vadd.xlane.f32.xlu0 %v583_v14 }
 0x237   : >> { %v647_v15 = vpop.f32.mrf.mxu0 }
 0x23d   : >> { %v620_v16 = vpop.f32.mrf.mxu3 }
 0x23e   : >> { %v648_v17 = vadd.f32 %v647_v15, %v620_v16 }
 0x23f   : >> { %v676_v18 = vpop.f32.mrf.mxu1  ;;  %v649_v19 = vpop.f32.mrf.mxu0 }
 0x240   : >> { %v680_v20 = vadd.f32 %v676_v18, %v648_v17 }
 0x242   : >> { %v681_v21 = vmul.f32 %v1706_v5, %v680_v20 }
 0x244   : >> { %v691_v22 = vpack.c.bf16 %v681_v21, %v681_v21  ;;  %v682_v23 = vsel %vm469_vm15, %v681_v21, 0.0  ;;  %v686_v24 = vmul.f32 %v681_v21, %v681_v21 }
 0x245   : >> { %v622_v25 = vpop.f32.mrf.mxu3  ;;  %683 = vadd.xlane.f32.xlu1 %v682_v23 }
 0x246   : >> { %v693_v26 = vrot.slane %v691_v22, 6  ;;  %v687_v27 = vsel %vm469_vm15, %v686_v24, 0.0 }
 0x247   : >> { %v678_v28 = vpop.f32.mrf.mxu1  ;;  %688 = vadd.xlane.f32.xlu2 %v687_v27 }
 0x248   : >> { %695 = vst [vmem:[%s590_s25] sm:$0xc] %v693_v26 }
 0x2a2   : >> { %v580_v29 = vpop.xlane.xlu2 %579 }
 0x2a3   : >> { %v581_v31 = vadd.f32 %v1598_v8, %v580_v29 }
 0x2a4   : >> { %v585_v30 = vpop.xlane.xlu0 %584 }
 0x2a5   : >> { %v586_v33 = vadd.f32 %v1594_v7, %v585_v30 }
 0x2b8   : >> { %v684_v32 = vpop.xlane.xlu1 %683 }
 0x2b9   : >> { %v685_v34 = vadd.f32 %v684_v32, %v581_v31   ;;  %292 = sbr.rel (!%p290_p3) target bundleno = 22 (0x16), region = 112 }
 0x2ba   : >> { %v689_v35 = vpop.xlane.xlu2 %688 }
 0x2bb   : >> { %v690_v36 = vadd.f32 %v689_v35, %v586_v33   ;;  %v2019_v8 = vmov %v685_v34 }
 0x2bd   : >> { %v2018_v7 = vmov %v690_v36 }
 0x2be LB: >> { %v1623_v7 = vmov 0   ;;  %s704_s29 = sadd.s32 %s1614_s26, %s1692_s24  ;;  %s1624_s12 = smov 1   ;;  %v1628_v32 = vmov 0.0   ;;  %s1614_s26 = sphi %s1866_s26, %s701_s26   ;;  %v1610_v34 = vphi %v685_v34, %v2025_v34   ;;  %v1606_v36 = vphi %v690_v36, %v2024_v36  }
 0x2bf   : >> { %1497 = vset.pattern.permute.xlu0 %v1623_v7  ;;  %s748_s27 = sadd.s32 4294967295, %s704_s29  ;;  %s780_s18 = sadd.s32 4294967294, %s704_s29 }
 0x2c0   : >> { %714 = vperm.xlu0 %1497, %v1697_v1   ;;  %s1335_s19 = sshll.u32 %s704_s29, 3  ;;  %p1881_p4 = scmp.ge.s32.totalorder %s748_s27, 0 }
 0x2c1   : >> { %p766_p5 = scmp.lt.s32.totalorder %s748_s27, 57  ;;  %p797_p6 = scmp.ge.s32.totalorder %s780_s18, 0 }
 0x2c2   : >> { %p798_p7 = scmp.lt.s32.totalorder %s780_s18, 57  ;;  %s1207_s6 = scalar_lea.vmem %s1715_s8, %s1335_s19 }
 0x2c3   : >> { %p767_p8 = pnand %p766_p5, %p1881_p4  ;;  %p732_p10 = scmp.ge.s32.totalorder %s704_s29, 0  ;;  %v1336_v37 = vld [vmem:[%s1207_s6 + $0x10] sm:$0xf]  ;;  %v1339_v38 = vld [vmem:[%s1207_s6 + $0x8] sm:$0xf] }
 0x2c4   : >> { %p799_p9 = pnand %p798_p7, %p797_p6  ;;  %p733_p11 = scmp.lt.s32.totalorder %s704_s29, 57  ;;  %v784_v39 = vld [vmem:[%s1207_s6] sm:$0xf]  ;;  %v710_v40 = vunpack.c.l.bf16 %v1336_v37  ;;  %v753_v41 = vunpack.c.l.bf16 %v1339_v38 }
 0x2c5   : >> { %s1340_s7 = scalar_select %p767_p8, 0, 1  ;;  %v785_v42 = vunpack.c.l.bf16 %v784_v39 }
 0x2c6   : >> { %s1343_s9 = scalar_select %p799_p9, 0, 1 }
 0x2c7   : >> { %p1888_p12 = pnand %p733_p11, %p732_p10  ;;  %v770_v43 = vstv %s1340_s7  ;;  %s1625_s13 = smov 2  }
 0x2c8   : >> { %721 = vperm.xlu0 %1497, %v1702_v2   ;;  %v802_v44 = vstv %s1343_s9  ;;  %vm1894_vm4 = vcmp.eq.s32.totalorder %v770_v43, 1  ;;  %s1626_s14 = smov 125   ;;  %s1627_s16 = smov 126  }
 0x2c9   : >> { %s1337_s11 = scalar_select %p1888_p12, 0, 1  ;;  %vm803_vm5 = vcmp.eq.s32.totalorder %v802_v44, 1  ;;  %vm772_vm7 = vmand %vm1708_vm3, %vm1894_vm4 }
 0x2ca   : >> { %vm804_vm8 = vmand %vm1708_vm3, %vm803_vm5 }
 0x2cb   : >> { %v737_v54 = vstv %s1337_s11 }
 0x2cc   : >> { %vm738_vm11 = vcmp.eq.s32.totalorder %v737_v54, 1 }
 0x2cd   : >> { %vm739_vm12 = vmand %vm1708_vm3, %vm738_vm11 }
 0x332   : >> { %v715_v8 = vpop.permute.xlu0 %714 }
 0x333   : >> { %v717_v45 = vmul.f32 %v715_v8, %v710_v40  ;;  %v755_v46 = vmul.f32 %v753_v41, %v715_v8  ;;  %v787_v47 = vmul.f32 %v785_v42, %v715_v8 }
 0x33a   : >> { %v722_v48 = vpop.permute.xlu0 %721 }
 0x33b   : >> { %v724_v50 = vadd.f32 %v722_v48, %v717_v45  ;;  %v757_v51 = vadd.f32 %v755_v46, %v722_v48  ;;  %v789_v52 = vadd.f32 %v787_v47, %v722_v48 }
 0x33d   : >> { %v761_v53 = vmul.f32 0.05, %v757_v51  ;;  %vm791_vm6 = vcmp.ge.f32.partialorder %v789_v52, 0.0  ;;  %v793_v55 = vmul.f32 0.05, %v789_v52  ;;  %vm759_vm9 = vcmp.ge.f32.partialorder %v757_v51, 0.0 }
 0x33e   : >> { %v728_v56 = vmul.f32 0.05, %v724_v50  ;;  %vm726_vm10 = vcmp.ge.f32.partialorder %v724_v50, 0.0 }
 0x33f   : >> { %v763_v57 = vsel %vm759_vm9, %v757_v51, %v761_v53  ;;  %v795_v58 = vsel %vm791_vm6, %v789_v52, %v793_v55 }
 0x340   : >> { %v778_v59 = vsel %vm772_vm7, %v763_v57, 0.0  ;;  %v810_v60 = vsel %vm804_vm8, %v795_v58, 0.0  ;;  %v730_v63 = vsel %vm726_vm10, %v724_v50, %v728_v56 }
 0x341   : >> { %v1508_v61 = vpack.i.bf16 0.0, %v778_v59  ;;  %v1518_v62 = vpack.i.bf16 0.0, %v810_v60  ;;  %v745_v0 = vsel %vm739_vm12, %v730_v63, 0.0 }
 0x342   : >> { %v1513_v3 = vpack.i.bf16 0.0, %v745_v0 }
 0x343   : >> { %1509 = vrot.lane.b32.xlu2 %v1508_v61, %s1624_s12  ;;  %1499 = vrot.lane.b32.xlu1 %v1508_v61, %s1625_s13 }
 0x344   : >> { %1519 = vrot.lane.b32.xlu0 %v1518_v62, %s1625_s13 }
 0x34b   : >> { %1514 = vrot.lane.b32.xlu2 %v1513_v3, %s1624_s12  ;;  %1504 = vrot.lane.b32.xlu1 %v1513_v3, %s1625_s13 }
 0x353   : >> { %1524 = vrot.lane.b32.xlu1 %v1518_v62, %s1624_s12  ;;  %s1362_s12 = sshll.u32 %s1614_s26, 3  ;;  %s701_s26 = sadd.s32 1, %s1614_s26  }
 0x354   : >> { %s999_s13 = scalar_lea.vmem %s1721_s15, %s1362_s12  ;;  %p698_p13 = scmp.ge.s32.totalorder %s701_s26, 29  }
 0x355   : > { %vm1105_vm4 = vcmask (%p698_p13), 3072   ;;  %vm1107_vm5 = vcmask (%p698_p13), 11272  }
 0x39d   : >> { %v1510_v4 = vpop.permute.xlu2 %1509 }
 0x39e   : >> { %v1511_v9 = vunpack.i.l.bf16 %v1510_v4  ;;  %v1512_v37 = vunpack.i.h.bf16 %v1510_v4 }
 0x3a0   : >> { %v854_v10 = vpack.c.bf16 %v1511_v9, %v778_v59  ;;  %v842_v39 = vsel %vm410_vm14, %v1511_v9, %v1512_v37 }
 0x3a1   : >> { %v855_v42 = vpack.c.bf16 %v842_v39, %v1628_v32 }
 0x3a2   : >> { %862 = vrot.lane.b32.xlu0 %v854_v10, %s1626_s14 }
 0x3a5   : >> { %v1515_v14 = vpop.permute.xlu2 %1514 }
 0x3a6   : >> { %v1516_v15 = vunpack.i.l.bf16 %v1515_v14  ;;  %v1517_v25 = vunpack.i.h.bf16 %v1515_v14 }
 0x3a8   : >> { %v832_v18 = vpack.c.bf16 %v1516_v15, %v745_v0  ;;  %v819_v29 = vsel %vm410_vm14, %v1516_v15, %v1517_v25 }
 0x3a9   : >> { %v833_v33 = vpack.c.bf16 %v819_v29, %v1628_v32 }
 0x3b5   : >> { %v1500_v11 = vpop.permute.xlu1 %1499 }
 0x3b6   : >> { %v1501_v12 = vunpack.i.l.bf16 %v1500_v11  ;;  %v1502_v20 = vunpack.i.h.bf16 %v1500_v11  ;;  %v1520_v21 = vpop.permute.xlu0 %1519  ;;  %v1348_v11 = vld [vmem:[%s2007_s1 + $0x10] sm:$0x3] }
 0x3b7   : >> { %v1521_v22 = vunpack.i.l.bf16 %v1520_v21  ;;  %v1522_v7 = vunpack.i.h.bf16 %v1520_v21 }
 0x3b8   : >> { %v856_v13 = vpack.c.bf16 %v1501_v12, %v1501_v12  ;;  %v849_v23 = vsel %vm418_vm13, %v1501_v12, %v1502_v20 }
 0x3b9   : >> { %v857_v24 = vpack.c.bf16 %v849_v23, %v849_v23  ;;  %v949_v26 = vpack.c.bf16 %v1521_v22, %v1521_v22  ;;  %v942_v38 = vsel %vm418_vm13, %v1521_v22, %v1522_v7  ;;  %v1353_v23 = vld [vmem:[%s2007_s1 + $0x14] sm:$0x3] }
 0x3ba   : >> { %1009 = vrot.lane.b32.xlu0 %v856_v13, %s1627_s16  ;;  %866 = vrot.lane.b32.xlu2 %v856_v13, %s1626_s14  ;;  %v950_v40 = vpack.c.bf16 %v942_v38, %v942_v38 }
 0x3bd   : >> { %v1505_v16 = vpop.permute.xlu1 %1504 }
 0x3be   : >> { %v1506_v17 = vunpack.i.l.bf16 %v1505_v16  ;;  %v1507_v27 = vunpack.i.h.bf16 %v1505_v16 }
 0x3c0   : >> { %v834_v19 = vpack.c.bf16 %v1506_v17, %v1506_v17  ;;  %v827_v30 = vsel %vm418_vm13, %v1506_v17, %v1507_v27  ;;  %v1345_v17 = vld [vmem:[%s2007_s1 + $0xe] sm:$0x3] }
 0x3c1   : >> { %v835_v35 = vpack.c.bf16 %v827_v30, %v827_v30 }
 0x3c2   : >> { %1005 = vrot.lane.b32.xlu0 %v854_v10, %s1627_s16  ;;  %899 = vrot.lane.b32.xlu2 %v832_v18, %s1626_s14  ;;  %v1344_v10 = vld [vmem:[%s2007_s1 + $0xc] sm:$0x3] }
 0x3c3   : >> { %903 = vrot.lane.b32.xlu1 %v834_v19, %s1626_s14 }
 0x3c5   : >> { %v1525_v28 = vpop.permute.xlu1 %1524 }
 0x3c6   : >> { %v1526_v31 = vunpack.i.l.bf16 %v1525_v28  ;;  %v1527_v41 = vunpack.i.h.bf16 %v1525_v28  ;;  %v1356_v28 = vld [vmem:[%s2007_s1 + $0x16] sm:$0x3] }
 0x3c8   : >> { %v947_v8 = vpack.c.bf16 %v1526_v31, %v810_v60  ;;  %v935_v43 = vsel %vm410_vm14, %v1526_v31, %v1527_v41 }
 0x3c9   : >> { %v948_v44 = vpack.c.bf16 %v935_v43, %v1628_v32 }
 0x3ca   : >> { %868 = vrot.lane.b32.xlu0 %v857_v24, %s1626_s14  ;;  %1037 = vrot.lane.b32.xlu2 %v834_v19, %s1627_s16  ;;  %v1352_v24 = vld [vmem:[%s2007_s1 + $0x12] sm:$0x3] }
 0x3cb   : >> { %959 = vrot.lane.b32.xlu1 %v949_v26, %s1626_s14 }
 0x3d2   : >> { %901 = vrot.lane.b32.xlu0 %v833_v33, %s1626_s14  ;;  %905 = vrot.lane.b32.xlu2 %v835_v35, %s1626_s14 }
 0x3d3   : >> { %955 = vrot.lane.b32.xlu1 %v947_v8, %s1626_s14 }
 0x3da   : >> { %1066 = vrot.lane.b32.xlu0 %v949_v26, %s1627_s16  ;;  %961 = vrot.lane.b32.xlu2 %v950_v40, %s1626_s14 }
 0x3db   : >> { %864 = vrot.lane.b32.xlu1 %v855_v42, %s1626_s14 }
 0x3e2   : >> { %1062 = vrot.lane.b32.xlu0 %v947_v8, %s1627_s16  ;;  %957 = vrot.lane.b32.xlu2 %v948_v44, %s1626_s14 }
 0x3e3   : >> { %1033 = vrot.lane.b32.xlu1 %v832_v18, %s1627_s16 }
 0x3ea   : >> { %1035 = vrot.lane.b32.xlu2 %v833_v33, %s1627_s16 }
 0x3eb   : >> { %1007 = vrot.lane.b32.xlu1 %v855_v42, %s1627_s16 }
 0x3f3   : >> { %1064 = vrot.lane.b32.xlu1 %v948_v44, %s1627_s16 }
 0x414   : >> { %v867_v45 = vpop.permute.xlu2 %866  ;;  %v863_v47 = vpop.permute.xlu0 %862 }
 0x41c   : >> { %v900_v46 = vpop.permute.xlu2 %899 }
 0x424   : >> { %v1038_v48 = vpop.permute.xlu2 %1037 }
 0x425   : >> { %v1045_v16 = vsel %vm469_vm15, %v1038_v48, 0 }
 0x42c   : >> { %v1010_v49 = vpop.permute.xlu0 %1009  ;;  %v906_v51 = vpop.permute.xlu2 %905 }
 0x42d   : >> { %v1018_v50 = vsel %vm469_vm15, %v1010_v49, 0 }
 0x42e   : >> { %1026 = vmatpush.bf16.msra.mxu3 %v1018_v50 }
 0x434   : >> { %v1006_v52 = vpop.permute.xlu0 %1005  ;;  %v962_v56 = vpop.permute.xlu2 %961 }
 0x435   : >> { %v904_v53 = vpop.permute.xlu1 %903 }
 0x436   : >> { %v908_v54 = vsel %vm461_vm0, %v904_v53, %v906_v51 }
 0x437   : >> { %v914_v55 = vsel %vm469_vm15, %v908_v54, 0 }
 0x438   : >> { %922 = vmatpush.bf16.msra.mxu1 %v914_v55 }
 0x43c   : >> { %v869_v57 = vpop.permute.xlu0 %868  ;;  %v958_v0 = vpop.permute.xlu2 %957 }
 0x43d   : >> { %v960_v58 = vpop.permute.xlu1 %959  ;;  %v872_v59 = vsel %vm461_vm0, %v867_v45, %v869_v57 }
 0x43e   : >> { %v880_v60 = vsel %vm469_vm15, %v872_v59, 0  ;;  %v964_v61 = vsel %vm461_vm0, %v960_v58, %v962_v56 }
 0x43f   : >> { %888 = vmatpush.bf16.msra.mxu0 %v880_v60  ;;  %v970_v62 = vsel %vm469_vm15, %v964_v61, 0 }
 0x440   : >> { %978 = vmatpush.bf16.msra.mxu2 %v970_v62 }
 0x444   : >> { %v902_v63 = vpop.permute.xlu0 %901  ;;  %v1036_v18 = vpop.permute.xlu2 %1035 }
 0x445   : >> { %v956_v3 = vpop.permute.xlu1 %955  ;;  %v907_v4 = vsel %vm461_vm0, %v900_v46, %v902_v63 }
 0x446   : >> { %923 = vmatpush.bf16.msra.mxu1 %v907_v4  ;;  %v963_v9 = vsel %vm461_vm0, %v956_v3, %v958_v0 }
 0x447   : >> { %979 = vmatpush.bf16.msra.mxu2 %v963_v9 }
 0x449   : >> { %1347 = vmatmul.msk.bf16.vlgmr.msra.gmra.mxu1 %vm465_vm1, %v1344_v10 }
 0x44a   : >> { %1349 = vmatmul.msk.bf16.vlgmr.msra.gmra.mxu2 %vm465_vm1, %v1348_v11 }
 0x44c   : >> { %v1067_v12 = vpop.permute.xlu0 %1066 }
 0x44d   : >> { %v865_v13 = vpop.permute.xlu1 %864  ;;  %v1074_v14 = vsel %vm469_vm15, %v1067_v12, 0 }
 0x44e   : >> { %v871_v15 = vsel %vm461_vm0, %v863_v47, %v865_v13  ;;  %1082 = vmatpush.bf16.msrb.mxu1 %v1074_v14 }
 0x44f   : >> { %889 = vmatpush.bf16.msra.mxu0 %v871_v15 }
 0x452   : >> { %1346 = vmatmul.msk.bf16.vlgmr.msra.gmra.mxu0 %vm465_vm1, %v1345_v17 }
 0x453   : >> { %1053 = vmatpush.bf16.msrb.mxu0 %v1045_v16 }
 0x454   : >> { %v1063_v25 = vpop.permute.xlu0 %1062 }
 0x455   : >> { %v1034_v19 = vpop.permute.xlu1 %1033 }
 0x456   : >> { %v1039_v20 = vsel %vm602_vm2, %v1034_v19, %v1036_v18 }
 0x457   : >> { %1054 = vmatpush.bf16.msrb.mxu0 %v1039_v20 }
 0x45d   : >> { %v1008_v21 = vpop.permute.xlu1 %1007 }
 0x45e   : >> { %v1012_v22 = vsel %vm602_vm2, %v1006_v52, %v1008_v21 }
 0x45f   : >> { %1027 = vmatpush.bf16.msra.mxu3 %v1012_v22 }
 0x462   : >> { %1354 = vmatmul.msk.bf16.vlgmr.msra.gmra.mxu3 %vm465_vm1, %v1353_v23  ;;  %1355 = vmatmul.msk.bf16.vlgmr.msrb.gmra.mxu0 %vm465_vm1, %v1352_v24 }
 0x465   : >> { %v1065_v26 = vpop.permute.xlu1 %1064 }
 0x466   : >> { %v1068_v27 = vsel %vm602_vm2, %v1063_v25, %v1065_v26 }
 0x467   : >> { %1083 = vmatpush.bf16.msrb.mxu1 %v1068_v27 }
 0x46a   : >> { %1357 = vmatmul.msk.bf16.vlgmr.msrb.gmra.mxu1 %vm465_vm1, %v1356_v28 }
 0x4c6   : >> { %v925_v29 = vpop.f32.mrf.mxu1 }
 0x4cd   : >> { %v981_v30 = vpop.f32.mrf.mxu2 }
 0x4ce   : >> { %v927_v31 = vpop.f32.mrf.mxu1 }
 0x4cf   : >> { %v891_v32 = vpop.f32.mrf.mxu0 }
 0x4d0   : >> { %v926_v33 = vadd.f32 %v925_v29, %v891_v32 }
 0x4d2   : >> { %v985_v35 = vadd.f32 %v981_v30, %v926_v33 }
 0x4d4   : >> { %v986_v7 = vmul.f32 %v1706_v5, %v985_v35 }
 0x4d5   : >> { %v983_v8 = vpop.f32.mrf.mxu2 }
 0x4d6   : >> { %v996_v37 = vpack.c.bf16 %v986_v7, %v986_v7  ;;  %v987_v38 = vsel %vm469_vm15, %v986_v7, 0.0  ;;  %v991_v39 = vmul.f32 %v986_v7, %v986_v7 }
 0x4d7   : >> { %v893_v40 = vpop.f32.mrf.mxu0  ;;  %988 = vadd.xlane.f32.xlu2 %v987_v38 }
 0x4d8   : >> { %1000 = vst [vmem:[%s999_s13 + $0x4] sm:$0x3] %v996_v37  ;;  %v992_v41 = vsel %vm469_vm15, %v991_v39, 0.0 }
 0x4d9   : >> { %993 = vadd.xlane.f32.xlu0 %v992_v41 }
 0x4df   : >> { %v1056_v42 = vpop.f32.mrf.mxu0 }
 0x4e5   : >> { %v1029_v43 = vpop.f32.mrf.mxu3 }
 0x4e6   : >> { %v1057_v44 = vadd.f32 %v1056_v42, %v1029_v43 }
 0x4e7   : >> { %v1085_v45 = vpop.f32.mrf.mxu1  ;;  %v1058_v46 = vpop.f32.mrf.mxu0 }
 0x4e8   : >> { %v1089_v47 = vadd.f32 %v1085_v45, %v1057_v44 }
 0x4ea   : >> { %v1090_v48 = vmul.f32 %v1706_v5, %v1089_v47 }
 0x4ec   : >> { %v1100_v49 = vpack.c.bf16 %v1090_v48, %v1090_v48  ;;  %v1091_v50 = vsel %vm469_vm15, %v1090_v48, 0.0  ;;  %v1095_v51 = vmul.f32 %v1090_v48, %v1090_v48 }
 0x4ed   : >> { %v1031_v52 = vpop.f32.mrf.mxu3  ;;  %1092 = vadd.xlane.f32.xlu1 %v1091_v50 }
 0x4ee   : >> { %v1102_v53 = vrot.slane %v1100_v49, 6  ;;  %v1096_v54 = vsel %vm469_vm15, %v1095_v51, 0.0 }
 0x4ef   : >> { %v1087_v55 = vpop.f32.mrf.mxu1  ;;  %1097 = vadd.xlane.f32.xlu2 %v1096_v54 }
 0x4f0   : >> { %1104 = vst [vmem:[%s999_s13 + $0x4] sm:$0xc] %v1102_v53 }
 0x54a   : >> { %v989_v56 = vpop.xlane.xlu2 %988 }
 0x54b   : >> { %v990_v58 = vadd.f32 %v1610_v34, %v989_v56 }
 0x54c   : >> { %v994_v57 = vpop.xlane.xlu0 %993 }
 0x54d   : >> { %v995_v60 = vadd.f32 %v1606_v36, %v994_v57 }
 0x560   : >> { %v1093_v59 = vpop.xlane.xlu1 %1092 }
 0x561   : >> { %v1094_v61 = vadd.f32 %v1093_v59, %v990_v58   ;;  %700 = sbr.rel (!%p698_p13) target bundleno = 702 (0x2be), region = 123 }
 0x562   : >> { %v1098_v62 = vpop.xlane.xlu2 %1097 }
 0x563   : >> { %v1099_v63 = vadd.f32 %v1098_v62, %v995_v60   ;;  %v2025_v34 = vmov %v1094_v61  ;;  %1106 = vst.msk [vmem:[%s1727_s28] sm:$0xf] (%p698_p13), %vm1105_vm4, %v1094_v61 }
 0x565   : >> { %v2024_v36 = vmov %v1099_v63  ;;  %1108 = vst.msk [vmem:[%s1727_s28] sm:$0xf] (%p698_p13), %vm1107_vm5, %v1099_v63 }
 0x566 PF: > { %s16_s22 = sadd.s32 1, %s1590_s22   ;;  %s2026_s18 = smov %s1582_s20 }
 0x567   : > { %p13_p0 = scmp.ge.s32.totalorder %s16_s22, 6   ;;  %s2027_s19 = smov %s1586_s21 }
 0x568   : > { %s2028_s20 = smov %s2031_s2  ;;  %s2029_s21 = smov %s2035_s23 }
 0x569   :  { %15 = sbr.rel (!%p13_p0) target bundleno = 3 (0x3), region = 134 }

// kernel: decoder_conv_variational_forward.11
= control target key start
LH: loop header
LB: loop body
LE: loop exit
PB: predicated region body
PF: predicated region fallthrough
CT: control target
= control target key end

     0   :  { %s1934_s0 = inlined_call_operand.vmem [shape: bf16[2,238,4,384], index: 0, kind: input, shape index: {}]   ;;  %s1935_s1 = inlined_call_operand.vmem [shape: bf16[4,1,16], index: 1, kind: input, shape index: {}]   ;;  %s1936_s2 = inlined_call_operand.<no memory space> [shape: f32[1,1], index: 2, kind: input, shape index: {}]   ;;  %s1937_s3 = inlined_call_operand.vmem [shape: f32[2,4,1], index: 3, kind: input, shape index: {}]   ;;  %s1938_s4 = inlined_call_operand.vmem [shape: f32[2,234,1,256], index: 4, kind: output, shape index: {0}]   ;;  %s1939_s5 = inlined_call_operand.hbm [shape: f32[2,9,1,2], index: 5, kind: output, shape index: {1}]  }
   0x1   :  { %v11_v0 = vstv %s1936_s2 }
   0x2   :  { %12 = vst [vmem:[#allocation2] sm:$0x1] %v11_v0 }
   0x3   :  { %13 = vsyncpa [#allocation4], 0 }
   0x4   :  { %15 = vsyncpa [#allocation4 + $0x1], 0  ;;  %s1487_s20 = smov 0   ;;  %s1489_s21 = smov 0  }
   0x5   :  { %s1491_s22 = smov 0   ;;  %s1493_s23 = smov 0  }
   0x6   :  { %s1495_s24 = smov 0   ;;  %s1497_s25 = smov 0  }
   0x7   :  { %s1499_s26 = smov 0   ;;  %s1501_s27 = smov 0  }
   0x8 LB: > { %s1095_s2 = sadd.s32 4294967295, %s1431_s27   ;;  %s1096_s28 = sadd.s32 4294967294, %s1431_s27   ;;  %s1431_s27 = sphi %s1501_s27, %s21_s27   ;;  %s1427_s26 = sphi %s1499_s26, %s1963_s26   ;;  %s1423_s25 = sphi %s1497_s25, %s1962_s25   ;;  %s1419_s24 = sphi %s1495_s24, %s1961_s24   ;;  %s1415_s23 = sphi %s1493_s23, %s1960_s23   ;;  %s1411_s22 = sphi %s1491_s22, %s1959_s22   ;;  %s1407_s21 = sphi %s1489_s21, %s1958_s21   ;;  %s1403_s20 = sphi %s1487_s20, %s1957_s20  }
   0x9   : > { %s30_s29 = sadd.s32 1, %s1423_s25  ;;  %s33_s30 = sadd.s32 1, %s1427_s26 }
   0xa   : > { %p31_p0 = scmp.ge.s32.totalorder %s30_s29, 9  ;;  %p169_p1 = scmp.ne.s32.totalorder %s1411_s22, %s1407_s21 }
   0xb   : > { %p170_p2 = scmp.eq.s32.totalorder %s1095_s2, 17  ;;  %p175_p5 = scmp.ne.s32.totalorder %s1407_s21, %s1403_s20 }
   0xc   : > { %s1965_s29 = smov (%p31_p0, %s30_s29), 0  ;;  %s1967_s30 = smov (!%p31_p0, %s33_s30), %s1427_s26 }
   0xd   : > { %s155_s6 = ssub.s32 %s1423_s25, %s1965_s29  ;;  %p1538_p3 = por %p170_p2, %p169_p1 }
   0xe   : > { %p35_p4 = scmp.ge.s32.totalorder %s1967_s30, 2  ;;  %p176_p6 = scmp.eq.s32.totalorder %s1096_s28, 17 }
   0xf   : > { %p1099_p7 = scmp.ge.s32.totalorder %s1431_s27, 1  ;;  %p211_p9 = scmp.lt.s32.totalorder %s1431_s27, 19 }
  0x10   : > { %s1969_s30 = smov (%p35_p4, %s1967_s30), 0  ;;  %p1547_p8 = por %p176_p6, %p175_p5 }
  0x11   : > { %s154_s9 = ssub.s32 %s1427_s26, %s1969_s30  ;;  %s159_s10 = sadd.s32 1, %s1411_s22 }
  0x12   : > { %s156_s11 = sor.u32 %s155_s6, %s154_s9  ;;  %p212_p10 = pnand %p1099_p7, %p211_p9 }
  0x13   : > { %p157_p11 = scmp.eq.s32.totalorder %s156_s11, 0  ;;  %p247_p12 = scmp.lt.s32.totalorder (!%p212_p10), %s1419_s24, 1 }
  0x14   : > { %215 = sbr.rel (%p212_p10) target bundleno = 834 (0x342), region = 36  ;;  %s1942_s19 = sand.u32 (!%p212_p10), 1, %s1407_s21  }
  0x15   : > { %s1556_s12 = scalar_select %p157_p11, %s1411_s22, %s159_s10  }
  0x16   : > { %s1561_s14 = smul.u32 (!%p212_p10), 26, %s1415_s23 }
  0x18   : > { %p255_p13 = scmp.lt.s32.totalorder (!%p212_p10), %s1561_s14, 233 }
  0x19   : > { %v286_v1 = vld [vmem:[#allocation2] sm:$0x1]  ;;  %v1445_v2 = vmov 0   ;;  %s248_s15 = scalar_select %p247_p12, %s1419_s24, 1  ;;  %v264_v3 = vlaneseq  ;;  %v1446_v6 = vmov 0.0   ;;  %v1605_v12 = vmov 0.0  }
  0x1a   : > { %1233 = vset.pattern.permute.xlu0 %v1445_v2  ;;  %s256_s17 = scalar_select %p255_p13, %s1561_s14, 233  ;;  %v1591_v8 = vld [vmem:[%s1937_s3] sm:$0xf]  ;;  %v1596_v9 = vld [vmem:[%s1937_s3 + $0x4] sm:$0xf]  ;;  %v1607_v13 = vmov 0.0  }
  0x1b   : > { %289 = vperm.xlu0 %1233, %v286_v1   ;;  %s1126_s16 = smul.u32 1428, %s248_s15  ;;  %v1578_v4 = vand.u32 127, %v264_v3 }
  0x1c   : > { %s1127_s28 = smul.u32 468, %s248_s15  ;;  %s1101_s6 = sshll.u32 %s256_s17, 1 }
  0x1d   : > { %s1569_s2 = scalar_lea.vmem %s1934_s0, %s1126_s16  ;;  %v1581_v5 = vadd.s32 128, %v1578_v4  ;;  %vm274_vm1 = vcmp.ge.s32.totalorder %v1578_v4, 3 }
  0x1e   : > { %s1571_s9 = sadd.s32 %s1127_s28, %s1101_s6  ;;  %s1603_s28 = scalar_lea.vmem [#allocation3], %s1942_s19 }
  0x1f   : > { %vm268_vm0 = vcmp.lt.s32.totalorder %v1581_v5, 234  ;;  %vm278_vm2 = vcmp.lt.s32.totalorder %v1581_v5, 236  ;;  %s1609_s6 = smov 0  }
  0x20   : > { %v1584_v7 = vsel %vm268_vm0, 1.0, %v1446_v6 }
  0x8d   : > { %v1598_v10 = vpop.permute.xlu0 %289 }
  0x8e   : > { %v292_v11 = vperm.slane %v1598_v10, 0 }
  0x8f LB: >> { %v1447_v14 = vmov 0   ;;  %s1624_s10 = sadd.s32 %s1443_s6, %s1561_s14  ;;  %v1448_v15 = vmov 839922192   ;;  %s1451_s13 = smov 1   ;;  %v1452_v53 = vmov 0.0   ;;  %s1443_s6 = sphi %s1609_s6, %s299_s6   ;;  %v1439_v13 = vphi %v1607_v13, %v1955_v13   ;;  %v1435_v12 = vphi %v1605_v12, %v1954_v12  }
  0x90   : >> { %1234 = vset.pattern.permute.xlu0 %v1447_v14  ;;  %s1008_s11 = smul.u32 6, %s1624_s10  ;;  %v316_v16 = vunpack.c.l.s4 %v1448_v15  ;;  %s304_s15 = sadd.s32 1, %s1624_s10  ;;  %v516_v54 = vrot.slane %v1452_v53, 4 }
  0x91   : >> { %313 = vperm.xlu0 %1234, %v1591_v8   ;;  %p1629_p0 = scmp.ge.s32.totalorder %s304_s15, 0  ;;  %p340_p1 = scmp.lt.s32.totalorder %s304_s15, 233 }
  0x92   : >> { %s1009_s16 = scalar_lea.vmem %s1569_s2, %s1008_s11  ;;  %v317_v18 = vunpack.c.0.s8 %v316_v16  ;;  %p386_p4 = scmp.ge.s32.totalorder %s1624_s10, 0 }
  0x93   : >> { %v1104_v19 = vld [vmem:[%s1009_s16 + $0x18] sm:$0x3f]  ;;  %v1106_v20 = vld [vmem:[%s1009_s16 + $0x12] sm:$0x3f]  ;;  %v1108_v21 = vld [vmem:[%s1009_s16 + $0xc] sm:$0x3f]  ;;  %p341_p2 = pnand %p340_p1, %p1629_p0 }
  0x94   : >> { %v1110_v22 = vld [vmem:[%s1009_s16 + $0x6] sm:$0x3f]  ;;  %v309_v24 = vunpack.c.l.bf16 %v1104_v19  ;;  %v374_v26 = vunpack.c.l.bf16 %v1106_v20  ;;  %p387_p5 = scmp.lt.s32.totalorder %s1624_s10, 233  ;;  %s417_s11 = sadd.s32 4294967295, %s1624_s10  ;;  %v422_v35 = vunpack.c.l.bf16 %v1108_v21 }
  0x95   : >> { %s1105_s18 = scalar_select %p341_p2, 0, 1  ;;  %v469_v45 = vunpack.c.l.bf16 %v1110_v22 }
  0x96   : >> { %p1637_p6 = pnand %p387_p5, %p386_p4  ;;  %p1644_p7 = scmp.ge.s32.totalorder %s417_s11, 0 }
  0x97   : >> { %v344_v32 = vstv %s1105_s18  ;;  %p1648_p9 = scmp.lt.s32.totalorder %s417_s11, 233  ;;  %s464_s18 = sadd.s32 4294967294, %s1624_s10 }
  0x98   : >> { %vm345_vm4 = vcmp.eq.s32.totalorder %v344_v32, 1  ;;  %s1107_s15 = scalar_select %p1637_p6, 0, 1 }
  0x99   : >> { %324 = vperm.xlu0 %1234, %v1596_v9   ;;  %vm346_vm5 = vmand %vm274_vm1, %vm345_vm4  ;;  %p436_p10 = pnand %p1648_p9, %p1644_p7  ;;  %p1669_p11 = scmp.ge.s32.totalorder %s464_s18, 0 }
  0x9a   : >> { %vm347_vm7 = vmand %vm278_vm2, %vm345_vm4  ;;  %v391_v38 = vstv %s1107_s15  ;;  %p1673_p12 = scmp.lt.s32.totalorder %s464_s18, 233  ;;  %s1449_s11 = smov 2  }
  0x9b   : >> { %vm392_vm8 = vcmp.eq.s32.totalorder %v391_v38, 1  ;;  %s1109_s15 = scalar_select %p436_p10, 0, 1 }
  0x9c   : >> { %vm1686_vm9 = vmand %vm274_vm1, %vm392_vm8  ;;  %s1450_s18 = smov 3   ;;  %p483_p13 = pnand %p1673_p12, %p1669_p11 }
  0x9d   : >> { %vm394_vm11 = vmand %vm278_vm2, %vm392_vm8  ;;  %v439_v59 = vstv %s1109_s15  ;;  %vm553_vm8 = vcmask 1043456   ;;  %s1123_s17 = sshll.u32 %s1443_s6, 1  ;;  %s299_s6 = sadd.s32 1, %s1443_s6  }
  0x9e   : >> { %vm1707_vm12 = vcmp.eq.s32.totalorder %v439_v59, 1  ;;  %s1111_s16 = scalar_select %p483_p13, 0, 1 }
  0x9f   : >> { %vm441_vm14 = vmand %vm274_vm1, %vm1707_vm12  ;;  %p296_p0 = scmp.ge.s32.totalorder %s299_s6, 26  }
  0xa0   : >> { %v486_v15 = vstv %s1111_s16  ;;  %vm442_vm4 = vmand %vm278_vm2, %vm1707_vm12  ;;  %s955_s16 = sshll.u32 (%p296_p0), %s1603_s28, 4  ;;  %s1956_s14 = sand.u32 (%p296_p0), 1, %s1407_s21   ;;  %s956_s16 = int_to_ptr.vmem [resolvable:$true] %s955_s16 }
  0xa1   : >> { %vm487_vm15 = vcmp.eq.s32.totalorder %v486_v15, 1  ;;  %s939_s2 = scalar_lea.sflag (%p296_p0), [#allocation4], %s1956_s14 }
  0xa2   : >> { %vm488_vm0 = vmand %vm274_vm1, %vm487_vm15 }
 0x103   : >> { %v314_v17 = vpop.permute.xlu0 %313 }
 0x104   : >> { %v318_v23 = vperm.slane %v314_v17, %v317_v18 }
 0x106   : >> { %v320_v28 = vmul.f32 %v318_v23, %v309_v24  ;;  %v376_v30 = vmul.f32 %v374_v26, %v318_v23  ;;  %v424_v37 = vmul.f32 %v422_v35, %v318_v23  ;;  %v471_v52 = vmul.f32 %v469_v45, %v318_v23 }
 0x10b   : >> { %v325_v25 = vpop.permute.xlu0 %324 }
 0x10c   : >> { %v329_v27 = vperm.slane %v325_v25, %v317_v18 }
 0x10e   : >> { %v331_v29 = vadd.f32 %v329_v27, %v320_v28  ;;  %v378_v33 = vadd.f32 %v376_v30, %v329_v27  ;;  %v426_v42 = vadd.f32 %v424_v37, %v329_v27  ;;  %v473_v55 = vadd.f32 %v471_v52, %v329_v27 }
 0x110   : >> { %vm333_vm3 = vcmp.ge.f32.partialorder %v331_v29, 0.0  ;;  %v335_v31 = vmul.f32 0.05, %v331_v29  ;;  %v382_v36 = vmul.f32 0.05, %v378_v33  ;;  %vm380_vm6 = vcmp.ge.f32.partialorder %v378_v33, 0.0 }
 0x111   : >> { %v430_v50 = vmul.f32 0.05, %v426_v42  ;;  %vm428_vm10 = vcmp.ge.f32.partialorder %v426_v42, 0.0  ;;  %v477_v1 = vmul.f32 0.05, %v473_v55  ;;  %vm475_vm13 = vcmp.ge.f32.partialorder %v473_v55, 0.0 }
 0x112   : >> { %v337_v34 = vsel %vm333_vm3, %v331_v29, %v335_v31  ;;  %v384_v41 = vsel %vm380_vm6, %v378_v33, %v382_v36  ;;  %vm489_vm3 = vmand %vm278_vm2, %vm487_vm15  ;;  %vm547_vm6 = vcmask 23552   ;;  %vm925_vm15 = vcmask (%p296_p0), 0  }
 0x113   : >> { %357 = vst [vmem:[#allocation1] ss:$2 sm:$0xff] %v337_v34  ;;  %v432_v58 = vsel %vm428_vm10, %v426_v42, %v430_v50  ;;  %v479_v18 = vsel %vm475_vm13, %v473_v55, %v477_v1  ;;  %vm628_vm10 = vcmask 130048  }
 0x11a   : >> { %v360_v39 = vld.sshfl [vmem:[#allocation1] sm:$0xff pattern:$0x75316420]  ;;  %v361_v40 = vld.sshfl [vmem:[#allocation1 + $0x8] sm:$0xff pattern:$0x75316420] }
 0x11b   : >> { %v1661_v43 = vsel %vm346_vm5, %v360_v39, 0.0  ;;  %v1663_v44 = vsel %vm347_vm7, %v361_v40, 0.0  ;;  %404 = vst [vmem:[#allocation1] ss:$2 sm:$0xff] %v384_v41  ;;  %vm535_vm5 = vcmask 15360   ;;  %vm523_vm7 = vcmask 7168  }
 0x11c   : >> { %v1235_v46 = vpack.i.bf16 %v1663_v44, %v1661_v43  ;;  %v514_v47 = vrot.slane %v1661_v43, 4  ;;  %v515_v48 = vrot.slane %v1663_v44, 4 }
 0x11e   : >> { %1236 = vrot.lane.b32.xlu2 %v1235_v46, %s1449_s11  ;;  %v1245_v49 = vpack.i.bf16 %v515_v48, %v514_v47 }
 0x120   : >> { %1246 = vrot.lane.b32.xlu0 %v1245_v49, %s1450_s18  ;;  %1241 = vrot.lane.b32.xlu1 %v1245_v49, %s1451_s13 }
 0x122   : >> { %v407_v56 = vld.sshfl [vmem:[#allocation1] sm:$0xff pattern:$0x75316420]  ;;  %v408_v57 = vld.sshfl [vmem:[#allocation1 + $0x8] sm:$0xff pattern:$0x75316420] }
 0x123   : >> { %v1701_v60 = vsel %vm1686_vm9, %v407_v56, 0.0  ;;  %v1703_v61 = vsel %vm394_vm11, %v408_v57, 0.0  ;;  %452 = vst [vmem:[#allocation1] ss:$2 sm:$0xff] %v432_v58  ;;  %vm623_vm9 = vcmask 1014784   ;;  %vm890_vm11 = vcmask 1040384  }
 0x124   : >> { %v1250_v62 = vpack.i.bf16 %v1701_v60, %v1452_v53  ;;  %v567_v63 = vrot.slane %v1701_v60, 4  ;;  %v1255_v2 = vpack.i.bf16 0.0, %v1703_v61  ;;  %v568_v14 = vrot.slane %v1703_v61, 4 }
 0x126   : >> { %1251 = vrot.lane.b32.xlu2 %v1250_v62, %s1449_s11  ;;  %v1260_v6 = vpack.i.bf16 %v567_v63, %v516_v54  ;;  %v1270_v20 = vpack.i.bf16 %v516_v54, %v568_v14 }
 0x128   : >> { %1256 = vrot.lane.b32.xlu0 %v1255_v2, %s1449_s11  ;;  %1261 = vrot.lane.b32.xlu1 %v1260_v6, %s1451_s13 }
 0x12a   : >> { %v455_v16 = vld.sshfl [vmem:[#allocation1] sm:$0xff pattern:$0x75316420]  ;;  %v456_v17 = vld.sshfl [vmem:[#allocation1 + $0x8] sm:$0xff pattern:$0x75316420] }
 0x12b   : >> { %v1720_v19 = vsel %vm441_vm14, %v455_v16, 0.0  ;;  %499 = vst [vmem:[#allocation1] ss:$2 sm:$0xff] %v479_v18  ;;  %v1744_v31 = vsel %vm442_vm4, %v456_v17, 0.0  ;;  %vm922_vm14 = vcmp.lt.s32.totalorder %v264_v3, 256 }
 0x12c   : >> { %v703_v21 = vrot.slane %v1720_v19, 4  ;;  %v1280_v27 = vpack.i.bf16 %v1720_v19, %v1452_v53  ;;  %v1315_v32 = vpack.i.bf16 0.0, %v1744_v31  ;;  %v704_v33 = vrot.slane %v1744_v31, 4 }
 0x12e   : >> { %1271 = vrot.lane.b32.xlu2 %v1270_v20, %s1451_s13  ;;  %v1285_v22 = vpack.i.bf16 %v703_v21, %v516_v54  ;;  %v1305_v34 = vpack.i.bf16 %v516_v54, %v704_v33 }
 0x130   : >> { %1286 = vrot.lane.b32.xlu0 %v1285_v22, %s1451_s13  ;;  %1266 = vrot.lane.b32.xlu1 %v1260_v6, %s1450_s18 }
 0x132   : >> { %v502_v23 = vld.sshfl [vmem:[#allocation1] sm:$0xff pattern:$0x75316420]  ;;  %v503_v24 = vld.sshfl [vmem:[#allocation1 + $0x8] sm:$0xff pattern:$0x75316420] }
 0x133   : >> { %v1730_v25 = vsel %vm488_vm0, %v502_v23, 0.0  ;;  %v1732_v26 = vsel %vm489_vm3, %v503_v24, 0.0  ;;  %vm927_vm0 = vcmask (%p296_p0), 8200  }
 0x134   : >> { %v797_v28 = vrot.slane %v1730_v25, 4  ;;  %v798_v29 = vrot.slane %v1732_v26, 4  ;;  %v1295_v35 = vpack.i.bf16 %v1732_v26, %v1730_v25 }
 0x136   : >> { %1281 = vrot.lane.b32.xlu2 %v1280_v27, %s1449_s11  ;;  %v1310_v30 = vpack.i.bf16 %v798_v29, %v797_v28 }
 0x138   : >> { %1311 = vrot.lane.b32.xlu0 %v1310_v30, %s1450_s18  ;;  %1276 = vrot.lane.b32.xlu1 %v1270_v20, %s1450_s18 }
 0x13e   : >> { %1301 = vrot.lane.b32.xlu2 %v1310_v30, %s1451_s13 }
 0x140   : >> { %1316 = vrot.lane.b32.xlu0 %v1315_v32, %s1449_s11  ;;  %1291 = vrot.lane.b32.xlu1 %v1285_v22, %s1450_s18 }
 0x146   : >> { %1306 = vrot.lane.b32.xlu2 %v1305_v34, %s1451_s13  ;;  %s1453_s13 = smov 124  }
 0x148   : >> { %1296 = vrot.lane.b32.xlu1 %v1295_v35, %s1449_s11  ;;  %s1953_s11 = scalar_lea.vmem %s1938_s4, %s1571_s9 }
 0x149   : >> { %s919_s15 = scalar_lea.vmem %s1953_s11, %s1123_s17 }
 0x150   : >> { %1321 = vrot.lane.b32.xlu1 %v1305_v34, %s1450_s18  ;;  %s1128_s18 = smul.u32 (%p296_p0), 9, %s1419_s24 }
 0x178   : >> { %v1237_v36 = vpop.permute.xlu2 %1236 }
 0x179   : >> { %v1239_v37 = vunpack.i.h.bf16 %v1237_v36  ;;  %v1238_v38 = vunpack.i.l.bf16 %v1237_v36 }
 0x17b   : >> { %v536_v48 = vsel %vm535_vm5, %v1238_v38, %v1239_v37 }
 0x180   : >> { %v1252_v39 = vpop.permute.xlu2 %1251 }
 0x181   : >> { %v1253_v63 = vunpack.i.l.bf16 %v1252_v39  ;;  %v1254_v1 = vunpack.i.h.bf16 %v1252_v39 }
 0x183   : >> { %v537_v14 = vsel %vm535_vm5, %v1239_v37, %v1253_v63 }
 0x188   : >> { %v1272_v58 = vpop.permute.xlu2 %1271 }
 0x189   : >> { %v1274_v23 = vunpack.i.h.bf16 %v1272_v58  ;;  %v1273_v24 = vunpack.i.l.bf16 %v1272_v58 }
 0x18b   : >> { %v577_v35 = vsel %vm523_vm7, %v1273_v24, %v1274_v23 }
 0x190   : >> { %v1769_v15 = vpop.permute.xlu2 %1281 }
 0x191   : >> { %v1283_v58 = vunpack.i.l.bf16 %v1769_v15 }
 0x192   : >> { %v1247_v40 = vpop.permute.xlu0 %1246  ;;  %v1242_v41 = vpop.permute.xlu1 %1241 }
 0x193   : >> { %v1249_v42 = vunpack.i.h.bf16 %v1247_v40  ;;  %v1248_v45 = vunpack.i.l.bf16 %v1247_v40  ;;  %v1244_v46 = vunpack.i.h.bf16 %v1242_v41  ;;  %v1243_v47 = vunpack.i.l.bf16 %v1242_v41 }
 0x194   : >> { %v605_v40 = vsel %vm553_vm8, 0.0, %v577_v35 }
 0x195   : >> { %v548_v49 = vsel %vm547_vm6, %v1248_v45, %v1249_v42  ;;  %v524_v50 = vsel %vm523_vm7, %v1243_v47, %v1244_v46  ;;  %v554_v51 = vsel %vm553_vm8, %v1661_v43, %v1243_v47  ;;  %v557_v52 = vsel %vm553_vm8, %v1238_v38, %v1248_v45 }
 0x196   : >> { %v561_v53 = vpack.c.bf16 %v557_v52, %v554_v51  ;;  %v555_v54 = vsel %vm553_vm8, %v1663_v44, %v524_v50  ;;  %v558_v55 = vsel %vm553_vm8, %v536_v48, %v548_v49 }
 0x197   : >> { %v562_v56 = vpack.c.bf16 %v558_v55, %v555_v54 }
 0x198   : >> { %661 = vrot.lane.b32.xlu1 %v561_v53, %s1453_s13 }
 0x199   : >> { %663 = vrot.lane.b32.xlu2 %v562_v56, %s1453_s13 }
 0x19a   : >> { %v1262_v57 = vpop.permute.xlu1 %1261  ;;  %v1257_v62 = vpop.permute.xlu0 %1256 }
 0x19b   : >> { %v1263_v59 = vunpack.i.l.bf16 %v1262_v57  ;;  %v1264_v43 = vunpack.i.h.bf16 %v1262_v57  ;;  %v1259_v28 = vunpack.i.h.bf16 %v1257_v62  ;;  %v1258_v29 = vunpack.i.l.bf16 %v1257_v62 }
 0x19d   : >> { %v525_v44 = vsel %vm523_vm7, %v1244_v46, %v1263_v59  ;;  %v603_v17 = vsel %vm553_vm8, %v1701_v60, %v1264_v43  ;;  %v576_v60 = vsel %vm523_vm7, %v1264_v43, %v1273_v24  ;;  %v587_v36 = vsel %vm535_vm5, %v1254_v1, %v1258_v29  ;;  %v1302_v46 = vpop.permute.xlu2 %1301 }
 0x19e   : >> { %v556_v21 = vsel %vm553_vm8, 0.0, %v525_v44  ;;  %v588_v37 = vsel %vm535_vm5, %v1258_v29, %v1259_v28  ;;  %v1304_v51 = vunpack.i.h.bf16 %v1302_v46  ;;  %v1303_v52 = vunpack.i.l.bf16 %v1302_v46 }
 0x19f   : >> { %v1284_v29 = vunpack.i.h.bf16 %v1769_v15 }
 0x1a0   : >> { %v806_v56 = vsel %vm523_vm7, %v1303_v52, %v1304_v51  ;;  %v833_v43 = vsel %vm553_vm8, %v1730_v25, %v1303_v52 }
 0x1a1   : >> { %v834_v44 = vsel %vm553_vm8, %v1732_v26, %v806_v56 }
 0x1a2   : >> { %v1267_v0 = vpop.permute.xlu1 %1266  ;;  %v1779_v30 = vpop.permute.xlu0 %1286 }
 0x1a3   : >> { %v1269_v2 = vunpack.i.h.bf16 %v1267_v0  ;;  %v1268_v6 = vunpack.i.l.bf16 %v1267_v0  ;;  %v1288_v53 = vunpack.i.l.bf16 %v1779_v30  ;;  %v1289_v24 = vunpack.i.h.bf16 %v1779_v30 }
 0x1a5   : >> { %v549_v16 = vsel %vm547_vm6, %v1249_v42, %v1268_v6  ;;  %v606_v18 = vsel %vm553_vm8, %v1254_v1, %v1269_v2  ;;  %v604_v42 = vsel %vm553_vm8, %v1703_v61, %v576_v60  ;;  %v1307_v61 = vpop.permute.xlu2 %1306  ;;  %v807_v0 = vsel %vm523_vm7, %v1304_v51, %v1288_v53 }
 0x1a6   : >> { %v611_v20 = vpack.c.bf16 %v606_v18, %v603_v17  ;;  %v559_v22 = vsel %vm553_vm8, %v537_v14, %v549_v16  ;;  %v1309_v1 = vunpack.i.h.bf16 %v1307_v61  ;;  %v835_v25 = vsel %vm553_vm8, 0.0, %v807_v0 }
 0x1a7   : >> { %v563_v27 = vpack.c.bf16 %v559_v22, %v556_v21 }
 0x1a8   : >> { %617 = vrot.lane.b32.xlu1 %v611_v20, %s1453_s13 }
 0x1a9   : >> { %665 = vrot.lane.b32.xlu0 %v563_v27, %s1453_s13 }
 0x1aa   : >> { %v1277_v32 = vpop.permute.xlu1 %1276  ;;  %v1312_v50 = vpop.permute.xlu0 %1311 }
 0x1ab   : >> { %v1279_v33 = vunpack.i.h.bf16 %v1277_v32  ;;  %v1278_v34 = vunpack.i.l.bf16 %v1277_v32  ;;  %v1314_v54 = vunpack.i.h.bf16 %v1312_v50  ;;  %v1313_v55 = vunpack.i.l.bf16 %v1312_v50 }
 0x1ad   : >> { %v598_v38 = vsel %vm547_vm6, %v1269_v2, %v1278_v34  ;;  %v599_v39 = vsel %vm547_vm6, %v1278_v34, %v1279_v33  ;;  %v1308_v2 = vunpack.i.l.bf16 %v1307_v61  ;;  %v828_v6 = vsel %vm547_vm6, %v1313_v55, %v1314_v54 }
 0x1ae   : >> { %v608_v41 = vsel %vm553_vm8, %v588_v37, %v599_v39  ;;  %v607_v45 = vsel %vm553_vm8, %v587_v36, %v598_v38  ;;  %v739_v38 = vsel %vm553_vm8, %v1720_v19, %v1289_v24 }
 0x1af   : >> { %v613_v47 = vpack.c.bf16 %v608_v41, %v605_v40  ;;  %v612_v48 = vpack.c.bf16 %v607_v45, %v604_v42  ;;  %v713_v33 = vsel %vm523_vm7, %v1308_v2, %v1309_v1  ;;  %v712_v35 = vsel %vm523_vm7, %v1289_v24, %v1308_v2  ;;  %v1120_v2 = vld [vmem:[%s1935_s1 + $0x3] sm:$0x1] }
 0x1b0   : >> { %v741_v15 = vsel %vm553_vm8, 0.0, %v713_v33 }
 0x1b1   : >> { %621 = vrot.lane.b32.xlu0 %v613_v47, %s1453_s13  ;;  %619 = vrot.lane.b32.xlu2 %v612_v48, %s1453_s13  ;;  %v740_v47 = vsel %vm553_vm8, %v1744_v31, %v712_v35  ;;  %v560_v31 = vld [vmem:[%s1935_s1] sm:$0x1] }
 0x1b2   : >> { %v1292_v49 = vpop.permute.xlu1 %1291  ;;  %v1317_v20 = vpop.permute.xlu0 %1316 }
 0x1b3   : >> { %v1293_v57 = vunpack.i.l.bf16 %v1292_v49  ;;  %v1294_v27 = vunpack.i.h.bf16 %v1292_v49  ;;  %v1319_v32 = vunpack.i.h.bf16 %v1317_v20  ;;  %v1318_v60 = vunpack.i.l.bf16 %v1317_v20 }
 0x1b5   : >> { %v829_v14 = vsel %vm547_vm6, %v1314_v54, %v1293_v57  ;;  %v742_v37 = vsel %vm553_vm8, %v1284_v29, %v1294_v27  ;;  %v723_v39 = vsel %vm535_vm5, %v1284_v29, %v1318_v60  ;;  %v724_v40 = vsel %vm535_vm5, %v1318_v60, %v1319_v32  ;;  %v1112_v57 = vld [vmem:[%s1935_s1 + $0x1] sm:$0x1] }
 0x1b6   : >> { %v747_v45 = vpack.c.bf16 %v742_v37, %v739_v38 }
 0x1ba   : >> { %v1297_v59 = vpop.permute.xlu1 %1296 }
 0x1bb   : >> { %v1299_v62 = vunpack.i.h.bf16 %v1297_v59  ;;  %v1298_v63 = vunpack.i.l.bf16 %v1297_v59 }
 0x1bd   : >> { %v818_v16 = vsel %vm535_vm5, %v1299_v62, %v1283_v58  ;;  %v817_v17 = vsel %vm535_vm5, %v1298_v63, %v1299_v62  ;;  %v836_v18 = vsel %vm553_vm8, %v1298_v63, %v1313_v55 }
 0x1be   : >> { %v841_v21 = vpack.c.bf16 %v836_v18, %v833_v43  ;;  %v838_v22 = vsel %vm553_vm8, %v818_v16, %v829_v14  ;;  %v837_v23 = vsel %vm553_vm8, %v817_v17, %v828_v6  ;;  %v1117_v18 = vld [vmem:[%s1935_s1 + $0x2] sm:$0x1] }
 0x1bf   : >> { %v843_v26 = vpack.c.bf16 %v838_v22, %v835_v25  ;;  %v842_v28 = vpack.c.bf16 %v837_v23, %v834_v44 }
 0x1c0   : >> { %847 = vrot.lane.b32.xlu1 %v841_v21, %s1453_s13 }
 0x1c1   : >> { %851 = vrot.lane.b32.xlu0 %v843_v26, %s1453_s13  ;;  %849 = vrot.lane.b32.xlu2 %v842_v28, %s1453_s13 }
 0x1c2   : >> { %v1322_v34 = vpop.permute.xlu1 %1321 }
 0x1c3   : >> { %v1324_v36 = vunpack.i.h.bf16 %v1322_v34  ;;  %v1323_v30 = vunpack.i.l.bf16 %v1322_v34 }
 0x1c5   : >> { %v734_v41 = vsel %vm547_vm6, %v1294_v27, %v1323_v30  ;;  %v735_v42 = vsel %vm547_vm6, %v1323_v30, %v1324_v36 }
 0x1c6   : >> { %v744_v46 = vsel %vm553_vm8, %v724_v40, %v735_v42  ;;  %v743_v48 = vsel %vm553_vm8, %v723_v39, %v734_v41 }
 0x1c7   : >> { %v749_v49 = vpack.c.bf16 %v744_v46, %v741_v15  ;;  %v748_v19 = vpack.c.bf16 %v743_v48, %v740_v47 }
 0x1c8   : >> { %753 = vrot.lane.b32.xlu1 %v747_v45, %s1453_s13 }
 0x1c9   : >> { %757 = vrot.lane.b32.xlu0 %v749_v49, %s1453_s13  ;;  %755 = vrot.lane.b32.xlu2 %v748_v19, %s1453_s13  ;;  %s952_s13 = sadd.s32 (%p296_p0), %s1415_s23, %s1128_s18  ;;  %s1345_s23 = scalar_lea.hbm (%p296_p0), %s1939_s5, 18 }
 0x1ca   : > { %s953_s19 = scalar_lea.hbm (%p296_p0), %s1939_s5, %s952_s13 }
 0x1cb   : > { %s957_s6 = sshll.u32 (%p296_p0), %s953_s19, 4  ;;  %s958_s6 = int_to_ptr.hbm [resolvable:$true] %s957_s6 }
 0x1cc   : > { %s1339_s9 = sshra.s32 (%p296_p0), %s958_s6, 4  ;;  %s1340_s9 = int_to_ptr.hbm [resolvable:$true] %s1339_s9 }
 0x1cd   : > { %s1341_s11 = scalar_lea.hbm (%p296_p0), %s1340_s9, 1  ;;  %p1346_p5 = scmp.lt.s32.totalorder (%p296_p0), %s1340_s9, %s1939_s5 }
 0x1ce   : > { %p1342_p1 = scmp.ne.s32.totalorder (%p296_p0), %s1340_s9, %s1341_s11  ;;  %p1347_p6 = scmp.lt.s32.totalorder (%p296_p0), %s1345_s23, %s1341_s11 }
 0x1d0   : > { %p1343_p2 = pnand (%p296_p0), %p1342_p1, %p1538_p3  ;;  %p1348_p7 = por (%p296_p0), %p1347_p6, %p1346_p5 }
 0x1d2   : > { %p1344_p4 = pneg (%p296_p0), %p1343_p2 }
 0x1d4   : > { %p1349_p9 = pnand (%p296_p0), %p1348_p7, %p1344_p4 }
 0x1f3   : >> { %v664_v50 = vpop.permute.xlu2 %663 }
 0x20a   : >> { %v662_v51 = vpop.permute.xlu1 %661 }
 0x20b   : >> { %v667_v52 = vsel %vm623_vm9, %v662_v51, %v664_v50  ;;  %v620_v53 = vpop.permute.xlu2 %619 }
 0x20c   : >> { %681 = vmatpush.bf16.msra.mxu2 %v667_v52 }
 0x20f   : >> { %1115 = vmatmul.msk.bf16.vlgmr.msra.gmra.mxu2 %vm628_vm10, %v560_v31 }
 0x21a   : >> { %v618_v54 = vpop.permute.xlu1 %617 }
 0x21b   : >> { %v666_v55 = vpop.permute.xlu0 %665  ;;  %v624_v56 = vsel %vm623_vm9, %v618_v54, %v620_v53  ;;  %v850_v62 = vpop.permute.xlu2 %849 }
 0x21c   : >> { %639 = vmatpush.bf16.msra.mxu0 %v624_v56  ;;  %v668_v61 = vsel %vm623_vm9, %v664_v50, %v666_v55 }
 0x21d   : >> { %694 = vmatpush.bf16.msra.mxu3 %v668_v61 }
 0x21f   : >> { %1113 = vmatmul.msk.bf16.vlgmr.msra.gmra.mxu0 %vm628_vm10, %v1112_v57 }
 0x220   : >> { %1116 = vmatmul.msk.bf16.vlgmr.msra.gmra.mxu3 %vm628_vm10, %v560_v31 }
 0x223   : >> { %v622_v58 = vpop.permute.xlu0 %621  ;;  %v756_v6 = vpop.permute.xlu2 %755 }
 0x224   : >> { %v625_v59 = vsel %vm623_vm9, %v620_v53, %v622_v58 }
 0x225   : >> { %652 = vmatpush.bf16.msra.mxu1 %v625_v59 }
 0x228   : >> { %1114 = vmatmul.msk.bf16.vlgmr.msra.gmra.mxu1 %vm628_vm10, %v1112_v57 }
 0x232   : >> { %v848_v63 = vpop.permute.xlu1 %847 }
 0x233   : >> { %v852_v43 = vpop.permute.xlu0 %851  ;;  %v853_v0 = vsel %vm623_vm9, %v848_v63, %v850_v62 }
 0x234   : >> { %867 = vmatpush.bf16.msrb.mxu2 %v853_v0  ;;  %v854_v1 = vsel %vm623_vm9, %v850_v62, %v852_v43 }
 0x235   : >> { %880 = vmatpush.bf16.msrb.mxu3 %v854_v1 }
 0x237   : >> { %1121 = vmatmul.msk.bf16.vlgmr.msrb.gmra.mxu2 %vm628_vm10, %v1120_v2 }
 0x238   : >> { %1122 = vmatmul.msk.bf16.vlgmr.msrb.gmra.mxu3 %vm628_vm10, %v1120_v2 }
 0x23a   : >> { %v754_v44 = vpop.permute.xlu1 %753 }
 0x23b   : >> { %v758_v14 = vpop.permute.xlu0 %757  ;;  %v759_v16 = vsel %vm623_vm9, %v754_v44, %v756_v6 }
 0x23c   : >> { %773 = vmatpush.bf16.msrb.mxu0 %v759_v16  ;;  %v760_v17 = vsel %vm623_vm9, %v756_v6, %v758_v14 }
 0x23d   : >> { %786 = vmatpush.bf16.msrb.mxu1 %v760_v17 }
 0x23f   : >> { %1118 = vmatmul.msk.bf16.vlgmr.msrb.gmra.mxu0 %vm628_vm10, %v1117_v18 }
 0x240   : >> { %1119 = vmatmul.msk.bf16.vlgmr.msrb.gmra.mxu1 %vm628_vm10, %v1117_v18 }
 0x292   : >> { %v683_v20 = vpop.f32.mrf.mxu2 }
 0x29a   : >> { %v685_v21 = vpop.f32.mrf.mxu2 }
 0x29c   : >> { %v641_v25 = vpop.f32.mrf.mxu0 }
 0x29d   : >> { %v684_v29 = vadd.f32 %v683_v20, %v641_v25 }
 0x2a3   : >> { %v696_v22 = vpop.f32.mrf.mxu3 }
 0x2a4   : >> { %v643_v23 = vpop.f32.mrf.mxu0 }
 0x2a5   : >> { %v654_v24 = vpop.f32.mrf.mxu1 }
 0x2a6   : >> { %v697_v60 = vadd.f32 %v696_v22, %v654_v24 }
 0x2ab   : >> { %v698_v27 = vpop.f32.mrf.mxu3 }
 0x2ad   : >> { %v656_v26 = vpop.f32.mrf.mxu1 }
 0x2ba   : >> { %v869_v28 = vpop.f32.mrf.mxu2 }
 0x2bb   : >> { %v882_v32 = vpop.f32.mrf.mxu3 }
 0x2bc   : >> { %v775_v33 = vpop.f32.mrf.mxu0 }
 0x2bd   : >> { %v792_v34 = vadd.f32 %v775_v33, %v684_v29  ;;  %v788_v35 = vpop.f32.mrf.mxu1 }
 0x2be   : >> { %v793_v36 = vadd.f32 %v788_v35, %v697_v60 }
 0x2bf   : >> { %v886_v30 = vadd.f32 %v869_v28, %v792_v34 }
 0x2c0   : >> { %v887_v37 = vadd.f32 %v882_v32, %v793_v36 }
 0x2c1   : >> { %v905_v38 = vadd.f32 %v886_v30, %v292_v11  ;;  %v897_v39 = vmul.f32 %v886_v30, %v886_v30  ;;  %v891_v45 = vsel %vm890_vm11, %v886_v30, 0.0 }
 0x2c2   : >> { %v889_v15 = vmul.f32 %v1584_v7, %v887_v37  ;;  %v871_v40 = vpop.f32.mrf.mxu2 }
 0x2c3   : >> { %v884_v41 = vpop.f32.mrf.mxu3  ;;  %v909_v49 = vmul.f32 0.05, %v905_v38  ;;  %v899_v52 = vsel %vm890_vm11, %v897_v39, 0.0  ;;  %vm907_vm13 = vcmp.ge.f32.partialorder %v905_v38, 0.0 }
 0x2c4   : >> { %v906_v42 = vadd.f32 %v889_v15, %v292_v11  ;;  %v892_v46 = vsel %vm890_vm11, %v889_v15, 0.0  ;;  %v898_v47 = vmul.f32 %v889_v15, %v889_v15  ;;  %v777_v48 = vpop.f32.mrf.mxu0 }
 0x2c5   : >> { %v893_v19 = vadd.f32 %v892_v46, %v891_v45  ;;  %v790_v50 = vpop.f32.mrf.mxu1  ;;  %v911_v56 = vsel %vm907_vm13, %v905_v38, %v909_v49 }
 0x2c6   : >> { %vm908_vm12 = vcmp.ge.f32.partialorder %v906_v42, 0.0  ;;  %v910_v51 = vmul.f32 0.05, %v906_v42  ;;  %v900_v31 = vsel %vm890_vm11, %v898_v47, 0.0 }
 0x2c7   : >> { %894 = vadd.xlane.f32.xlu2 %v893_v19  ;;  %v901_v53 = vadd.f32 %v900_v31, %v899_v52 }
 0x2c8   : >> { %v912_v54 = vsel %vm908_vm12, %v906_v42, %v910_v51 }
 0x2c9   : >> { %v915_v55 = vrot.slane %v912_v54, 7  ;;  %902 = vadd.xlane.f32.xlu0 %v901_v53 }
 0x2cb   : >> { %v916_v61 = vsel %vm890_vm11, %v911_v56, %v915_v55 }
 0x2cc   : >> { %924 = vst.msk [vmem:[%s919_s15] sm:$0x3] %vm922_vm14, %v916_v61 }
 0x33a   : >> { %v895_v57 = vpop.xlane.xlu2 %894 }
 0x33b   : >> { %v896_v58 = vadd.f32 %v1439_v13, %v895_v57   ;;  %298 = sbr.rel (!%p296_p0) target bundleno = 143 (0x8f), region = 103 }
 0x33c   : >> { %v903_v59 = vpop.xlane.xlu0 %902 }
 0x33d   : >> { %v904_v62 = vadd.f32 %v1435_v12, %v903_v59   ;;  %v1955_v13 = vmov %v896_v58  ;;  %926 = vst.msk [vmem:[%s1603_s28] sm:$0x1] (%p296_p0), %vm925_vm15, %v896_v58 }
 0x33f   : >> { %v1954_v12 = vmov %v904_v62  ;;  %928 = vst.msk [vmem:[%s1603_s28] sm:$0x1] (%p296_p0), %vm927_vm0, %v904_v62 }
 0x340   : > { %1352 = shalt.err (!%p1349_p9)
}
 0x341   : > { %1129 = dma.vmem_to_hbm [thread:$0]  (%p1538_p3), %s956_s16, 16, %s958_s6, %s939_s2  }
 0x342 PF: > { %p1135_p10 = scmp.ge.s32.totalorder %s1431_s27, 2  ;;  %s981_s13 = sand.u32 1, %s1403_s20  }
 0x343   : > { %s982_s17 = scalar_lea.sflag [#allocation4], %s981_s13 }
 0x344   : > { %p1132_p11 = pnand %p1135_p10, %p1547_p8 }
 0x346   : > { %p1133_p12 = pneg %p1132_p11 }
 0x348   : > { %1398 = dma.done.wait (%p1133_p12), %s982_s17, 16  }
 0x349   : > { %1400 = vsyncadd (%p1133_p12), %s982_s17, 4294967280  ;;  %s21_s27 = sadd.s32 1, %s1431_s27   ;;  %s1957_s20 = smov %s1407_s21 }
 0x34a   : > { %p18_p13 = scmp.ge.s32.totalorder %s21_s27, 20   ;;  %s1958_s21 = smov %s1411_s22 }
 0x34b   : > { %s1959_s22 = smov %s1556_s12  ;;  %s1960_s23 = smov %s1423_s25 }
 0x34c   : > { %s1961_s24 = smov %s1427_s26  ;;  %s1962_s25 = smov %s1965_s29 }
 0x34d   : > { %s1963_s26 = smov %s1969_s30  ;;  %20 = sbr.rel (!%p18_p13) target bundleno = 8 (0x8), region = 114 }
 0x352   :  { %987 = vsyncpa [#allocation4], 1 }
 0x353   :  { %989 = vsyncpa [#allocation4 + $0x1], 1 }

</bundles_post_ra>
